<compile_context>
chip_gen: v6e
topology: v6e:2x2x1
jax: 0.10.0
libtpu: 0.0.40
codegen_flags: <defaults>
</compile_context>

<pallas_src>
import math
import jax
import jax.numpy as jnp
from jax import lax
from jax.experimental import pallas as pl
from jax.experimental.pallas import tpu as pltpu

# ---------------- hyper-parameters (consistent with the PyTorch forward) ----
NUM_BRANDS = 16
BRAND_EMB_DIM = 8
TIME_FEATURE_DIM = 4
NHEAD = 4
NUM_LAYERS = 2
D_MODEL = BRAND_EMB_DIM + 16 + 8          # concat width must equal d_model -> 32
DIM_FF = 2048                             # nn.TransformerDecoderLayer default
SEQ = 32                                  # forward hard-codes .expand(32, -1)
HEAD_DIM = D_MODEL // NHEAD               # 8
EPS = 1e-5                                # LayerNorm default eps
FF_CHUNK = 512                            # DIM_FF tile width (4 chunks)
HEAD_COLS = 128                           # lane-dense fused prediction-head width
TA_IN = TIME_FEATURE_DIM + 1              # fused time|amount input width (5)
TA_OUT = 16 + 8                           # fused time|amount output width (24)


# ---------------- in-kernel helpers -----------------------------------------
def _layer_norm(x, g, b):
    mu = jnp.mean(x, axis=-1, keepdims=True)
    var = jnp.mean((x - mu) ** 2, axis=-1, keepdims=True)
    return (x - mu) * lax.rsqrt(var + EPS) * g + b


def _softmax_last(x):
    # attention softmax: approximate reciprocal -> EUP slot (VALU stays free)
    x = x - jnp.max(x, axis=-1, keepdims=True)
    e = jnp.exp(x)
    return e * pl.reciprocal(jnp.sum(e, axis=-1, keepdims=True), approx=True)


def _mha_core(q, k, v, wo_ref, bo_ref, l):
    """Scaled dot-product attention on pre-projected q/k/v (S, D) tensors.

    Heads live in contiguous 8-lane slices (PyTorch head ordering); head
    outputs are lane-concatenated and hit a single (32,32) bf16 out-proj dot.
    """
    scale = 1.0 / math.sqrt(HEAD_DIM)
    heads = []
    for h in range(NHEAD):                       # 4 heads, tiny tensors -> static unroll
        s0, s1 = h * HEAD_DIM, (h + 1) * HEAD_DIM
        qh, kh, vh = q[:, s0:s1], k[:, s0:s1], v[:, s0:s1]
        # scores: (S, Dh) x (S, Dh) contracted on Dh (NT matmul, no transpose op)
        s = lax.dot_general(qh, kh, dimension_numbers=(((1,), (1,)), ((), ())),
                            preferred_element_type=jnp.float32) * scale
        heads.append(jnp.dot(_softmax_last(s), vh,
                             preferred_element_type=jnp.float32))        # (S, Dh)
    o = jnp.concatenate(heads, axis=-1)          # (S, D) lane concat (cheap XLU)
    return jnp.dot(o.astype(jnp.bfloat16), wo_ref[l],
                   preferred_element_type=jnp.float32) + bo_ref[l]


# ---------------- the Pallas kernel ------------------------------------------
def transaction_kernel(
    # inputs / embeddings
    brand_ref, ta_in_ref, ta_w_ref, ta_b_ref,
    # self-attention (fused QKV, layer-stacked, bf16 weights / f32 biases)
    sa_wqkv_ref, sa_bqkv_ref, sa_wo_ref, sa_bo_ref,
    # cross-attention (Q and fused KV)
    ca_wq_ref, ca_bq_ref, ca_wkv_ref, ca_bkv_ref, ca_wo_ref, ca_bo_ref,
    # feed-forward (bf16 weights; ff2 pre-transposed to (L, DIM_FF, D))
    ff1_w_ref, ff1_b_ref, ff2_w_ref, ff2_b_ref,
    # layer norms
    ln1_g_ref, ln1_b_ref, ln2_g_ref, ln2_b_ref, ln3_g_ref, ln3_b_ref,
    # fused prediction heads
    head_w_ref, head_b_ref,
    # single lane-dense output (merchant probs | amount | date | zero pad)
    out_ref,
):
    brand = brand_ref[...]                                   # (S, 8), pre-scaled by sqrt(d_model)

    # fused relu(Linear(time)) | relu(Linear(amount)) in one (S,5)@(5,24) dot
    ta = jnp.maximum(
        jnp.dot(ta_in_ref[...], ta_w_ref[...],
                preferred_element_type=jnp.float32) + ta_b_ref[...], 0.0)   # (S, 24)

    # combined_embeddings = cat([brand, time, amount], -1) -> (S, d_model)
    x = jnp.concatenate([brand, ta], axis=-1)                # (S, 32)
    memory = x                                               # tgt == memory in this model
    mem_b = memory.astype(jnp.bfloat16)                      # hoisted once

    # TransformerDecoder (post-norm, relu activation, dropout=identity in eval)
    for l in range(NUM_LAYERS):
        # ---- self-attention: one fused QKV dot ----
        xb = x.astype(jnp.bfloat16)
        qkv = jnp.dot(xb, sa_wqkv_ref[l],
                      preferred_element_type=jnp.float32) + sa_bqkv_ref[l]   # (S, 3D)
        sa = _mha_core(qkv[:, 0:D_MODEL], qkv[:, D_MODEL:2 * D_MODEL],
                       qkv[:, 2 * D_MODEL:3 * D_MODEL], sa_wo_ref, sa_bo_ref, l)
        x = _layer_norm(x + sa, ln1_g_ref[l], ln1_b_ref[l])

        # ---- cross-attention: Q dot + fused KV dot ----
        xb = x.astype(jnp.bfloat16)
        q = jnp.dot(xb, ca_wq_ref[l],
                    preferred_element_type=jnp.float32) + ca_bq_ref[l]       # (S, D)
        kv = jnp.dot(mem_b, ca_wkv_ref[l],
                     preferred_element_type=jnp.float32) + ca_bkv_ref[l]     # (S, 2D)
        ca = _mha_core(q, kv[:, 0:D_MODEL], kv[:, D_MODEL:2 * D_MODEL],
                       ca_wo_ref, ca_bo_ref, l)
        x = _layer_norm(x + ca, ln2_g_ref[l], ln2_b_ref[l])

        # ---- chunked feed-forward: never materialize the full (S, DIM_FF) hidden
        # fori_loop(unroll=True) bounds live ranges (no vreg spill); pl.ds starts
        # are flagged as multiples of FF_CHUNK for aligned vector loads.
        xb = x.astype(jnp.bfloat16)

        def ff_body(c, acc):
            c0 = pl.multiple_of(c * FF_CHUNK, FF_CHUNK)
            h = jnp.dot(xb, ff1_w_ref[l, :, pl.ds(c0, FF_CHUNK)],
                        preferred_element_type=jnp.float32) \
                + ff1_b_ref[l, :, pl.ds(c0, FF_CHUNK)]                       # (S, FF_CHUNK)
            # bf16 ReLU (relu commutes with the downcast up to rounding of tiny negatives)
            hb = jnp.maximum(h.astype(jnp.bfloat16), jnp.bfloat16(0.0))
            # ff2 pre-transposed to (L, DIM_FF, D): plain NN matmul, no transposes
            return acc + jnp.dot(hb, ff2_w_ref[l, pl.ds(c0, FF_CHUNK), :],
                                 preferred_element_type=jnp.float32)

        ff = lax.fori_loop(0, DIM_FF // FF_CHUNK, ff_body,
                           jnp.zeros((SEQ, D_MODEL), jnp.float32), unroll=True)
        x = _layer_norm(x + ff + ff2_b_ref[l], ln3_g_ref[l], ln3_b_ref[l])

    # fused prediction heads: one (S, 32) @ (32, 128) matmul, lane-dense store.
    # columns 0:16 -> merchant logits, 16 -> amount, 17 -> date, rest zero-padded.
    z = jnp.dot(x, head_w_ref[...], preferred_element_type=jnp.float32) + head_b_ref[...]
    col = lax.broadcasted_iota(jnp.int32, (SEQ, HEAD_COLS), 1)
    is_merch = col < NUM_BRANDS
    zm = jnp.where(is_merch, z, -jnp.inf)
    m = jnp.max(zm, axis=-1, keepdims=True)
    e = jnp.exp(zm - m)                                  # 0 outside the merchant block
    probs = e / jnp.sum(e, axis=-1, keepdims=True)       # exact f32 normalization
    out_ref[...] = jnp.where(is_merch, probs, z)


# ---------------- parameter construction (deterministic, PyTorch layout) ----
def init_params(key):
    def nrm(k, shape, scale=0.05):
        return jax.random.normal(k, shape, jnp.float32) * scale

    keys = iter(jax.random.split(key, 64))
    p = {}
    p["emb_table"] = nrm(next(keys), (NUM_BRANDS, BRAND_EMB_DIM), 1.0)
    # linear weights kept in PyTorch (out, in) convention; re-laid out in prepare_params
    p["time_w"] = nrm(next(keys), (16, TIME_FEATURE_DIM)); p["time_b"] = nrm(next(keys), (16,))
    p["amt_w"] = nrm(next(keys), (8, 1));                  p["amt_b"] = nrm(next(keys), (8,))

    def stack(shape, scale=0.05):
        return nrm(next(keys), (NUM_LAYERS,) + shape, scale)

    p["sa_in_w"] = stack((3 * D_MODEL, D_MODEL)); p["sa_in_b"] = stack((3 * D_MODEL,))
    p["sa_out_w"] = stack((D_MODEL, D_MODEL));    p["sa_out_b"] = stack((D_MODEL,))
    p["ca_in_w"] = stack((3 * D_MODEL, D_MODEL)); p["ca_in_b"] = stack((3 * D_MODEL,))
    p["ca_out_w"] = stack((D_MODEL, D_MODEL));    p["ca_out_b"] = stack((D_MODEL,))
    p["ff1_w"] = stack((DIM_FF, D_MODEL));        p["ff1_b"] = stack((DIM_FF,))
    p["ff2_w"] = stack((D_MODEL, DIM_FF));        p["ff2_b"] = stack((D_MODEL,))
    for i in (1, 2, 3):
        p[f"ln{i}_g"] = jnp.ones((NUM_LAYERS, D_MODEL), jnp.float32)
        p[f"ln{i}_b"] = jnp.zeros((NUM_LAYERS, D_MODEL), jnp.float32)
    p["amt_pw"] = nrm(next(keys), (1, D_MODEL));           p["amt_pb"] = nrm(next(keys), (1,))
    p["date_pw"] = nrm(next(keys), (1, D_MODEL));          p["date_pb"] = nrm(next(keys), (1,))
    p["mer_pw"] = nrm(next(keys), (NUM_BRANDS, D_MODEL));  p["mer_pb"] = nrm(next(keys), (NUM_BRANDS,))
    return p


# ---------------- one-time weight re-layout (OUTSIDE the jitted hot path) ---
def prepare_params(p):
    """Convert PyTorch-convention params into kernel-ready layouts. Run once."""
    f32, bf16 = jnp.float32, jnp.bfloat16
    D = D_MODEL
    out = {}

    # brand embedding pre-scaled by sqrt(d_model) (applied to brand only, per forward)
    out["emb_scaled"] = (p["emb_table"] * math.sqrt(D)).astype(f32)

    # fused time|amount projection: input (S, 5), weight (5, 24) block-diag
    ta_w = jnp.zeros((TA_IN, TA_OUT), f32)
    ta_w = ta_w.at[:TIME_FEATURE_DIM, :16].set(jnp.transpose(p["time_w"]))
    ta_w = ta_w.at[TIME_FEATURE_DIM:, 16:].set(jnp.transpose(p["amt_w"]))
    out["ta_w"] = ta_w
    out["ta_b"] = jnp.concatenate([p["time_b"], p["amt_b"]])[None, :].astype(f32)

    # self-attention: fused QKV (L, D, 3D) bf16; out-proj (L, D, D) bf16
    out["sa_wqkv"] = jnp.transpose(p["sa_in_w"], (0, 2, 1)).astype(bf16)
    out["sa_bqkv"] = p["sa_in_b"][:, None, :].astype(f32)
    out["sa_wo"] = jnp.transpose(p["sa_out_w"], (0, 2, 1)).astype(bf16)
    out["sa_bo"] = p["sa_out_b"][:, None, :].astype(f32)

    # cross-attention: Q (L, D, D) + fused KV (L, D, 2D)
    out["ca_wq"] = jnp.transpose(p["ca_in_w"][:, :D, :], (0, 2, 1)).astype(bf16)
    out["ca_bq"] = p["ca_in_b"][:, None, :D].astype(f32)
    out["ca_wkv"] = jnp.transpose(p["ca_in_w"][:, D:, :], (0, 2, 1)).astype(bf16)
    out["ca_bkv"] = p["ca_in_b"][:, None, D:].astype(f32)
    out["ca_wo"] = jnp.transpose(p["ca_out_w"], (0, 2, 1)).astype(bf16)
    out["ca_bo"] = p["ca_out_b"][:, None, :].astype(f32)

    # feed-forward: ff1 (L, D, FF) bf16; ff2 pre-transposed to (L, FF, D) bf16
    out["ff1_w"] = jnp.transpose(p["ff1_w"], (0, 2, 1)).astype(bf16)
    out["ff1_b"] = p["ff1_b"][:, None, :].astype(f32)
    out["ff2_w"] = jnp.transpose(p["ff2_w"], (0, 2, 1)).astype(bf16)
    out["ff2_b"] = p["ff2_b"][:, None, :].astype(f32)

    for i in (1, 2, 3):
        out[f"ln{i}_g"] = p[f"ln{i}_g"][:, None, :].astype(f32)
        out[f"ln{i}_b"] = p[f"ln{i}_b"][:, None, :].astype(f32)

    # fused prediction-head weights: [merchant(16) | amount(1) | date(1) | zero pad]
    head_w = jnp.zeros((D, HEAD_COLS), f32)
    head_w = head_w.at[:, :NUM_BRANDS].set(jnp.transpose(p["mer_pw"]))
    head_w = head_w.at[:, NUM_BRANDS].set(p["amt_pw"][0])
    head_w = head_w.at[:, NUM_BRANDS + 1].set(p["date_pw"][0])
    head_b = jnp.zeros((1, HEAD_COLS), f32)
    head_b = head_b.at[0, :NUM_BRANDS].set(p["mer_pb"])
    head_b = head_b.at[0, NUM_BRANDS].set(p["amt_pb"][0])
    head_b = head_b.at[0, NUM_BRANDS + 1].set(p["date_pb"][0])
    out["head_w"] = head_w
    out["head_b"] = head_b
    return jax.tree_util.tree_map(jnp.asarray, out)


# ---------------- wrapper (this is the jitted hot path) ---------------------
def transaction_forward(w, brand_indices, time_features, amount):
    f32 = jnp.float32

    # glue: embedding gather + (S,5) time|amount input (single tiny fused XLA op)
    brand_emb = w["emb_scaled"][brand_indices]                                  # (S, 8)
    ta_in = jnp.concatenate(
        [jnp.broadcast_to(time_features.astype(f32)[None, :], (SEQ, TIME_FEATURE_DIM)),
         amount.astype(f32)[:, None]], axis=-1)                                 # (S, 5)

    args = (
        brand_emb, ta_in, w["ta_w"], w["ta_b"],
        w["sa_wqkv"], w["sa_bqkv"], w["sa_wo"], w["sa_bo"],
        w["ca_wq"], w["ca_bq"], w["ca_wkv"], w["ca_bkv"], w["ca_wo"], w["ca_bo"],
        w["ff1_w"], w["ff1_b"], w["ff2_w"], w["ff2_b"],
        w["ln1_g"], w["ln1_b"], w["ln2_g"], w["ln2_b"], w["ln3_g"], w["ln3_b"],
        w["head_w"], w["head_b"],
    )

    vmem_spec = pl.BlockSpec(memory_space=pltpu.MemorySpace.VMEM)
    out = pl.pallas_call(
        transaction_kernel,
        out_shape=jax.ShapeDtypeStruct((SEQ, HEAD_COLS), f32),
        in_specs=[vmem_spec] * len(args),
        out_specs=vmem_spec,
        compiler_params=pltpu.CompilerParams(vmem_limit_bytes=4 * 1024 * 1024),
    )(*args)

    amount_out = out[:, NUM_BRANDS:NUM_BRANDS + 1]           # (S, 1)
    date_out = out[:, NUM_BRANDS + 1:NUM_BRANDS + 2]         # (S, 1)
    merchant_out = out[:, :NUM_BRANDS]                        # (S, 16), softmaxed in-kernel
    return amount_out, date_out, merchant_out


# TODO(synk): dropout layers (p=0.1) are identity in eval mode and are omitted;
#             PositionalEncoding is instantiated in __init__ but never used in forward.

if __name__ == "__main__":
    key = jax.random.PRNGKey(0)
    k_param, k_brand, k_time, k_amt = jax.random.split(key, 4)

    raw_params = init_params(k_param)
    prepped = prepare_params(raw_params)          # one-time re-layout, outside the hot path

    brand_indices = jax.random.randint(k_brand, (SEQ,), 0, NUM_BRANDS, jnp.int32)
    time_features = jax.random.normal(k_time, (TIME_FEATURE_DIM,), jnp.float32)
    amount = jax.random.normal(k_amt, (SEQ,), jnp.float32)

    forward = jax.jit(transaction_forward)
    amount_out, date_out, merchant_out = forward(prepped, brand_indices, time_features, amount)
    jax.block_until_ready((amount_out, date_out, merchant_out))

    assert amount_out.shape == (SEQ, 1)
    assert date_out.shape == (SEQ, 1)
    assert merchant_out.shape == (SEQ, NUM_BRANDS)
    assert bool(jnp.all(jnp.isfinite(amount_out)))
    assert bool(jnp.all(jnp.isfinite(date_out)))
    assert bool(jnp.all(jnp.isfinite(merchant_out)))
    # softmax rows sum to 1 (exact f32 normalization in-kernel)
    assert bool(jnp.allclose(jnp.sum(merchant_out, axis=-1), 1.0, atol=1e-4))

    print("KERNEL_OK")
</pallas_src>

<mosaic_0001>
module attributes {stable_mosaic.version = 11 : i64} {
  func.func @transaction_kernel(%arg0: memref<32x8xf32, #tpu.memory_space<vmem>>, %arg1: memref<32x5xf32, #tpu.memory_space<vmem>>, %arg2: memref<5x24xf32, #tpu.memory_space<vmem>>, %arg3: memref<1x24xf32, #tpu.memory_space<vmem>>, %arg4: memref<2x32x96xbf16, #tpu.memory_space<vmem>>, %arg5: memref<2x1x96xf32, #tpu.memory_space<vmem>>, %arg6: memref<2x32x32xbf16, #tpu.memory_space<vmem>>, %arg7: memref<2x1x32xf32, #tpu.memory_space<vmem>>, %arg8: memref<2x32x32xbf16, #tpu.memory_space<vmem>>, %arg9: memref<2x1x32xf32, #tpu.memory_space<vmem>>, %arg10: memref<2x32x64xbf16, #tpu.memory_space<vmem>>, %arg11: memref<2x1x64xf32, #tpu.memory_space<vmem>>, %arg12: memref<2x32x32xbf16, #tpu.memory_space<vmem>>, %arg13: memref<2x1x32xf32, #tpu.memory_space<vmem>>, %arg14: memref<2x32x2048xbf16, #tpu.memory_space<vmem>>, %arg15: memref<2x1x2048xf32, #tpu.memory_space<vmem>>, %arg16: memref<2x2048x32xbf16, #tpu.memory_space<vmem>>, %arg17: memref<2x1x32xf32, #tpu.memory_space<vmem>>, %arg18: memref<2x1x32xf32, #tpu.memory_space<vmem>>, %arg19: memref<2x1x32xf32, #tpu.memory_space<vmem>>, %arg20: memref<2x1x32xf32, #tpu.memory_space<vmem>>, %arg21: memref<2x1x32xf32, #tpu.memory_space<vmem>>, %arg22: memref<2x1x32xf32, #tpu.memory_space<vmem>>, %arg23: memref<2x1x32xf32, #tpu.memory_space<vmem>>, %arg24: memref<32x128xf32, #tpu.memory_space<vmem>>, %arg25: memref<1x128xf32, #tpu.memory_space<vmem>>, %arg26: memref<32x128xf32, #tpu.memory_space<vmem>>) attributes {dimension_semantics = [], scalar_prefetch = 0 : i64, scratch_operands = 0 : i64, tpu.core_type = #tpu.core_type<tc>} {
    %c0 = arith.constant 0 : index
    %c0_0 = arith.constant 0 : index
    %0 = vector.load %arg0[%c0, %c0_0] : memref<32x8xf32, #tpu.memory_space<vmem>>, vector<32x8xf32>
    %c0_1 = arith.constant 0 : index
    %c0_2 = arith.constant 0 : index
    %1 = vector.load %arg1[%c0_1, %c0_2] : memref<32x5xf32, #tpu.memory_space<vmem>>, vector<32x5xf32>
    %c0_3 = arith.constant 0 : index
    %c0_4 = arith.constant 0 : index
    %2 = vector.load %arg2[%c0_3, %c0_4] : memref<5x24xf32, #tpu.memory_space<vmem>>, vector<5x24xf32>
    %cst = arith.constant dense<0.000000e+00> : vector<32x24xf32>
    %3 = tpu.matmul %1, %2, %cst {dimension_numbers = #tpu.dot_dimension_numbers<[1], [0], [0], [1], [0, 0, 1, 1], [], []>} : vector<32x5xf32>, vector<5x24xf32>, vector<32x24xf32> -> vector<32x24xf32>
    %c0_5 = arith.constant 0 : index
    %c0_6 = arith.constant 0 : index
    %4 = vector.load %arg3[%c0_5, %c0_6] : memref<1x24xf32, #tpu.memory_space<vmem>>, vector<1x24xf32>
    %5 = vector.broadcast %4 : vector<1x24xf32> to vector<32x24xf32>
    %6 = arith.addf %3, %5 : vector<32x24xf32>
    %cst_7 = arith.constant 0.000000e+00 : f32
    %7 = vector.broadcast %cst_7 : f32 to vector<32x24xf32>
    %8 = arith.maximumf %6, %7 : vector<32x24xf32>
    %9 = tpu.concatenate %0, %8 in 1 : vector<32x8xf32>, vector<32x24xf32> -> vector<32x32xf32>
    %10 = arith.truncf %9 : vector<32x32xf32> to vector<32x32xbf16>
    %11 = arith.truncf %9 : vector<32x32xf32> to vector<32x32xbf16>
    %c0_8 = arith.constant 0 : index
    %c0_9 = arith.constant 0 : index
    %c0_10 = arith.constant 0 : index
    %12 = vector.load %arg4[%c0_8, %c0_9, %c0_10] : memref<2x32x96xbf16, #tpu.memory_space<vmem>>, vector<1x32x96xbf16>
    %13 = vector.shape_cast %12 : vector<1x32x96xbf16> to vector<32x96xbf16>
    %cst_11 = arith.constant dense<0.000000e+00> : vector<32x96xf32>
    %14 = tpu.matmul %11, %13, %cst_11 {dimension_numbers = #tpu.dot_dimension_numbers<[1], [0], [0], [1], [0, 0, 1, 1], [], []>} : vector<32x32xbf16>, vector<32x96xbf16>, vector<32x96xf32> -> vector<32x96xf32>
    %c0_12 = arith.constant 0 : index
    %c0_13 = arith.constant 0 : index
    %c0_14 = arith.constant 0 : index
    %15 = vector.load %arg5[%c0_12, %c0_13, %c0_14] : memref<2x1x96xf32, #tpu.memory_space<vmem>>, vector<1x1x96xf32>
    %16 = vector.shape_cast %15 : vector<1x1x96xf32> to vector<1x96xf32>
    %17 = vector.broadcast %16 : vector<1x96xf32> to vector<32x96xf32>
    %18 = arith.addf %14, %17 : vector<32x96xf32>
    %19 = vector.extract_strided_slice %18 {offsets = [0, 0], sizes = [32, 32], strides = [1, 1]} : vector<32x96xf32> to vector<32x32xf32>
    %20 = vector.extract_strided_slice %18 {offsets = [0, 32], sizes = [32, 32], strides = [1, 1]} : vector<32x96xf32> to vector<32x32xf32>
    %21 = vector.extract_strided_slice %18 {offsets = [0, 64], sizes = [32, 32], strides = [1, 1]} : vector<32x96xf32> to vector<32x32xf32>
    %22 = vector.extract_strided_slice %19 {offsets = [0, 0], sizes = [32, 8], strides = [1, 1]} : vector<32x32xf32> to vector<32x8xf32>
    %23 = vector.extract_strided_slice %20 {offsets = [0, 0], sizes = [32, 8], strides = [1, 1]} : vector<32x32xf32> to vector<32x8xf32>
    %24 = vector.extract_strided_slice %21 {offsets = [0, 0], sizes = [32, 8], strides = [1, 1]} : vector<32x32xf32> to vector<32x8xf32>
    %cst_15 = arith.constant dense<0.000000e+00> : vector<32x32xf32>
    %25 = tpu.matmul %22, %23, %cst_15 {dimension_numbers = #tpu.dot_dimension_numbers<[1], [1], [0], [0], [0, 0, 1, 0], [], []>} : vector<32x8xf32>, vector<32x8xf32>, vector<32x32xf32> -> vector<32x32xf32>
    %cst_16 = arith.constant 0.353553385 : f32
    %26 = vector.broadcast %cst_16 : f32 to vector<32x32xf32>
    %27 = arith.mulf %25, %26 : vector<32x32xf32>
    %cst_17 = arith.constant dense<0xFF800000> : vector<32xf32>
    %28 = vector.multi_reduction <maximumf>, %27, %cst_17 [1] : vector<32x32xf32> to vector<32xf32>
    %29 = vector.shape_cast %28 : vector<32xf32> to vector<32x1xf32>
    %30 = vector.broadcast %29 : vector<32x1xf32> to vector<32x32xf32>
    %31 = arith.subf %27, %30 : vector<32x32xf32>
    %32 = math.exp %31 : vector<32x32xf32>
    %cst_18 = arith.constant dense<0.000000e+00> : vector<32xf32>
    %33 = vector.multi_reduction <add>, %32, %cst_18 [1] : vector<32x32xf32> to vector<32xf32>
    %34 = vector.shape_cast %33 : vector<32xf32> to vector<32x1xf32>
    %35 = tpu.reciprocal %34 {approx = true} : vector<32x1xf32> -> vector<32x1xf32>
    %36 = vector.broadcast %35 : vector<32x1xf32> to vector<32x32xf32>
    %37 = arith.mulf %32, %36 : vector<32x32xf32>
    %cst_19 = arith.constant dense<0.000000e+00> : vector<32x8xf32>
    %38 = tpu.matmul %37, %24, %cst_19 {dimension_numbers = #tpu.dot_dimension_numbers<[1], [0], [0], [1], [0, 0, 1, 1], [], []>} : vector<32x32xf32>, vector<32x8xf32>, vector<32x8xf32> -> vector<32x8xf32>
    %39 = vector.extract_strided_slice %19 {offsets = [0, 8], sizes = [32, 8], strides = [1, 1]} : vector<32x32xf32> to vector<32x8xf32>
    %40 = vector.extract_strided_slice %20 {offsets = [0, 8], sizes = [32, 8], strides = [1, 1]} : vector<32x32xf32> to vector<32x8xf32>
    %41 = vector.extract_strided_slice %21 {offsets = [0, 8], sizes = [32, 8], strides = [1, 1]} : vector<32x32xf32> to vector<32x8xf32>
    %cst_20 = arith.constant dense<0.000000e+00> : vector<32x32xf32>
    %42 = tpu.matmul %39, %40, %cst_20 {dimension_numbers = #tpu.dot_dimension_numbers<[1], [1], [0], [0], [0, 0, 1, 0], [], []>} : vector<32x8xf32>, vector<32x8xf32>, vector<32x32xf32> -> vector<32x32xf32>
    %cst_21 = arith.constant 0.353553385 : f32
    %43 = vector.broadcast %cst_21 : f32 to vector<32x32xf32>
    %44 = arith.mulf %42, %43 : vector<32x32xf32>
    %cst_22 = arith.constant dense<0xFF800000> : vector<32xf32>
    %45 = vector.multi_reduction <maximumf>, %44, %cst_22 [1] : vector<32x32xf32> to vector<32xf32>
    %46 = vector.shape_cast %45 : vector<32xf32> to vector<32x1xf32>
    %47 = vector.broadcast %46 : vector<32x1xf32> to vector<32x32xf32>
    %48 = arith.subf %44, %47 : vector<32x32xf32>
    %49 = math.exp %48 : vector<32x32xf32>
    %cst_23 = arith.constant dense<0.000000e+00> : vector<32xf32>
    %50 = vector.multi_reduction <add>, %49, %cst_23 [1] : vector<32x32xf32> to vector<32xf32>
    %51 = vector.shape_cast %50 : vector<32xf32> to vector<32x1xf32>
    %52 = tpu.reciprocal %51 {approx = true} : vector<32x1xf32> -> vector<32x1xf32>
    %53 = vector.broadcast %52 : vector<32x1xf32> to vector<32x32xf32>
    %54 = arith.mulf %49, %53 : vector<32x32xf32>
    %cst_24 = arith.constant dense<0.000000e+00> : vector<32x8xf32>
    %55 = tpu.matmul %54, %41, %cst_24 {dimension_numbers = #tpu.dot_dimension_numbers<[1], [0], [0], [1], [0, 0, 1, 1], [], []>} : vector<32x32xf32>, vector<32x8xf32>, vector<32x8xf32> -> vector<32x8xf32>
    %56 = vector.extract_strided_slice %19 {offsets = [0, 16], sizes = [32, 8], strides = [1, 1]} : vector<32x32xf32> to vector<32x8xf32>
    %57 = vector.extract_strided_slice %20 {offsets = [0, 16], sizes = [32, 8], strides = [1, 1]} : vector<32x32xf32> to vector<32x8xf32>
    %58 = vector.extract_strided_slice %21 {offsets = [0, 16], sizes = [32, 8], strides = [1, 1]} : vector<32x32xf32> to vector<32x8xf32>
    %cst_25 = arith.constant dense<0.000000e+00> : vector<32x32xf32>
    %59 = tpu.matmul %56, %57, %cst_25 {dimension_numbers = #tpu.dot_dimension_numbers<[1], [1], [0], [0], [0, 0, 1, 0], [], []>} : vector<32x8xf32>, vector<32x8xf32>, vector<32x32xf32> -> vector<32x32xf32>
    %cst_26 = arith.constant 0.353553385 : f32
    %60 = vector.broadcast %cst_26 : f32 to vector<32x32xf32>
    %61 = arith.mulf %59, %60 : vector<32x32xf32>
    %cst_27 = arith.constant dense<0xFF800000> : vector<32xf32>
    %62 = vector.multi_reduction <maximumf>, %61, %cst_27 [1] : vector<32x32xf32> to vector<32xf32>
    %63 = vector.shape_cast %62 : vector<32xf32> to vector<32x1xf32>
    %64 = vector.broadcast %63 : vector<32x1xf32> to vector<32x32xf32>
    %65 = arith.subf %61, %64 : vector<32x32xf32>
    %66 = math.exp %65 : vector<32x32xf32>
    %cst_28 = arith.constant dense<0.000000e+00> : vector<32xf32>
    %67 = vector.multi_reduction <add>, %66, %cst_28 [1] : vector<32x32xf32> to vector<32xf32>
    %68 = vector.shape_cast %67 : vector<32xf32> to vector<32x1xf32>
    %69 = tpu.reciprocal %68 {approx = true} : vector<32x1xf32> -> vector<32x1xf32>
    %70 = vector.broadcast %69 : vector<32x1xf32> to vector<32x32xf32>
    %71 = arith.mulf %66, %70 : vector<32x32xf32>
    %cst_29 = arith.constant dense<0.000000e+00> : vector<32x8xf32>
    %72 = tpu.matmul %71, %58, %cst_29 {dimension_numbers = #tpu.dot_dimension_numbers<[1], [0], [0], [1], [0, 0, 1, 1], [], []>} : vector<32x32xf32>, vector<32x8xf32>, vector<32x8xf32> -> vector<32x8xf32>
    %73 = vector.extract_strided_slice %19 {offsets = [0, 24], sizes = [32, 8], strides = [1, 1]} : vector<32x32xf32> to vector<32x8xf32>
    %74 = vector.extract_strided_slice %20 {offsets = [0, 24], sizes = [32, 8], strides = [1, 1]} : vector<32x32xf32> to vector<32x8xf32>
    %75 = vector.extract_strided_slice %21 {offsets = [0, 24], sizes = [32, 8], strides = [1, 1]} : vector<32x32xf32> to vector<32x8xf32>
    %cst_30 = arith.constant dense<0.000000e+00> : vector<32x32xf32>
    %76 = tpu.matmul %73, %74, %cst_30 {dimension_numbers = #tpu.dot_dimension_numbers<[1], [1], [0], [0], [0, 0, 1, 0], [], []>} : vector<32x8xf32>, vector<32x8xf32>, vector<32x32xf32> -> vector<32x32xf32>
    %cst_31 = arith.constant 0.353553385 : f32
    %77 = vector.broadcast %cst_31 : f32 to vector<32x32xf32>
    %78 = arith.mulf %76, %77 : vector<32x32xf32>
    %cst_32 = arith.constant dense<0xFF800000> : vector<32xf32>
    %79 = vector.multi_reduction <maximumf>, %78, %cst_32 [1] : vector<32x32xf32> to vector<32xf32>
    %80 = vector.shape_cast %79 : vector<32xf32> to vector<32x1xf32>
    %81 = vector.broadcast %80 : vector<32x1xf32> to vector<32x32xf32>
    %82 = arith.subf %78, %81 : vector<32x32xf32>
    %83 = math.exp %82 : vector<32x32xf32>
    %cst_33 = arith.constant dense<0.000000e+00> : vector<32xf32>
    %84 = vector.multi_reduction <add>, %83, %cst_33 [1] : vector<32x32xf32> to vector<32xf32>
    %85 = vector.shape_cast %84 : vector<32xf32> to vector<32x1xf32>
    %86 = tpu.reciprocal %85 {approx = true} : vector<32x1xf32> -> vector<32x1xf32>
    %87 = vector.broadcast %86 : vector<32x1xf32> to vector<32x32xf32>
    %88 = arith.mulf %83, %87 : vector<32x32xf32>
    %cst_34 = arith.constant dense<0.000000e+00> : vector<32x8xf32>
    %89 = tpu.matmul %88, %75, %cst_34 {dimension_numbers = #tpu.dot_dimension_numbers<[1], [0], [0], [1], [0, 0, 1, 1], [], []>} : vector<32x32xf32>, vector<32x8xf32>, vector<32x8xf32> -> vector<32x8xf32>
    %90 = tpu.concatenate %38, %55, %72, %89 in 1 : vector<32x8xf32>, vector<32x8xf32>, vector<32x8xf32>, vector<32x8xf32> -> vector<32x32xf32>
    %91 = arith.truncf %90 : vector<32x32xf32> to vector<32x32xbf16>
    %c0_35 = arith.constant 0 : index
    %c0_36 = arith.constant 0 : index
    %c0_37 = arith.constant 0 : index
    %92 = vector.load %arg6[%c0_35, %c0_36, %c0_37] : memref<2x32x32xbf16, #tpu.memory_space<vmem>>, vector<1x32x32xbf16>
    %93 = vector.shape_cast %92 : vector<1x32x32xbf16> to vector<32x32xbf16>
    %cst_38 = arith.constant dense<0.000000e+00> : vector<32x32xf32>
    %94 = tpu.matmul %91, %93, %cst_38 {dimension_numbers = #tpu.dot_dimension_numbers<[1], [0], [0], [1], [0, 0, 1, 1], [], []>} : vector<32x32xbf16>, vector<32x32xbf16>, vector<32x32xf32> -> vector<32x32xf32>
    %c0_39 = arith.constant 0 : index
    %c0_40 = arith.constant 0 : index
    %c0_41 = arith.constant 0 : index
    %95 = vector.load %arg7[%c0_39, %c0_40, %c0_41] : memref<2x1x32xf32, #tpu.memory_space<vmem>>, vector<1x1x32xf32>
    %96 = vector.shape_cast %95 : vector<1x1x32xf32> to vector<1x32xf32>
    %97 = vector.broadcast %96 : vector<1x32xf32> to vector<32x32xf32>
    %98 = arith.addf %94, %97 : vector<32x32xf32>
    %99 = arith.addf %9, %98 : vector<32x32xf32>
    %c0_42 = arith.constant 0 : index
    %c0_43 = arith.constant 0 : index
    %c0_44 = arith.constant 0 : index
    %100 = vector.load %arg18[%c0_42, %c0_43, %c0_44] : memref<2x1x32xf32, #tpu.memory_space<vmem>>, vector<1x1x32xf32>
    %101 = vector.shape_cast %100 : vector<1x1x32xf32> to vector<1x32xf32>
    %c0_45 = arith.constant 0 : index
    %c0_46 = arith.constant 0 : index
    %c0_47 = arith.constant 0 : index
    %102 = vector.load %arg19[%c0_45, %c0_46, %c0_47] : memref<2x1x32xf32, #tpu.memory_space<vmem>>, vector<1x1x32xf32>
    %103 = vector.shape_cast %102 : vector<1x1x32xf32> to vector<1x32xf32>
    %cst_48 = arith.constant dense<0.000000e+00> : vector<32xf32>
    %104 = vector.multi_reduction <add>, %99, %cst_48 [1] : vector<32x32xf32> to vector<32xf32>
    %105 = vector.shape_cast %104 : vector<32xf32> to vector<32x1xf32>
    %cst_49 = arith.constant 3.200000e+01 : f32
    %106 = vector.broadcast %cst_49 : f32 to vector<32x1xf32>
    %107 = arith.divf %105, %106 : vector<32x1xf32>
    %108 = vector.broadcast %107 : vector<32x1xf32> to vector<32x32xf32>
    %109 = arith.subf %99, %108 : vector<32x32xf32>
    %110 = arith.mulf %109, %109 : vector<32x32xf32>
    %cst_50 = arith.constant dense<0.000000e+00> : vector<32xf32>
    %111 = vector.multi_reduction <add>, %110, %cst_50 [1] : vector<32x32xf32> to vector<32xf32>
    %112 = vector.shape_cast %111 : vector<32xf32> to vector<32x1xf32>
    %cst_51 = arith.constant 3.200000e+01 : f32
    %113 = vector.broadcast %cst_51 : f32 to vector<32x1xf32>
    %114 = arith.divf %112, %113 : vector<32x1xf32>
    %115 = vector.broadcast %107 : vector<32x1xf32> to vector<32x32xf32>
    %116 = arith.subf %99, %115 : vector<32x32xf32>
    %cst_52 = arith.constant 9.99999974E-6 : f32
    %117 = vector.broadcast %cst_52 : f32 to vector<32x1xf32>
    %118 = arith.addf %114, %117 : vector<32x1xf32>
    %119 = math.rsqrt %118 : vector<32x1xf32>
    %120 = vector.broadcast %119 : vector<32x1xf32> to vector<32x32xf32>
    %121 = arith.mulf %116, %120 : vector<32x32xf32>
    %122 = vector.broadcast %101 : vector<1x32xf32> to vector<32x32xf32>
    %123 = arith.mulf %121, %122 : vector<32x32xf32>
    %124 = vector.broadcast %103 : vector<1x32xf32> to vector<32x32xf32>
    %125 = arith.addf %123, %124 : vector<32x32xf32>
    %126 = arith.truncf %125 : vector<32x32xf32> to vector<32x32xbf16>
    %c0_53 = arith.constant 0 : index
    %c0_54 = arith.constant 0 : index
    %c0_55 = arith.constant 0 : index
    %127 = vector.load %arg8[%c0_53, %c0_54, %c0_55] : memref<2x32x32xbf16, #tpu.memory_space<vmem>>, vector<1x32x32xbf16>
    %128 = vector.shape_cast %127 : vector<1x32x32xbf16> to vector<32x32xbf16>
    %cst_56 = arith.constant dense<0.000000e+00> : vector<32x32xf32>
    %129 = tpu.matmul %126, %128, %cst_56 {dimension_numbers = #tpu.dot_dimension_numbers<[1], [0], [0], [1], [0, 0, 1, 1], [], []>} : vector<32x32xbf16>, vector<32x32xbf16>, vector<32x32xf32> -> vector<32x32xf32>
    %c0_57 = arith.constant 0 : index
    %c0_58 = arith.constant 0 : index
    %c0_59 = arith.constant 0 : index
    %130 = vector.load %arg9[%c0_57, %c0_58, %c0_59] : memref<2x1x32xf32, #tpu.memory_space<vmem>>, vector<1x1x32xf32>
    %131 = vector.shape_cast %130 : vector<1x1x32xf32> to vector<1x32xf32>
    %132 = vector.broadcast %131 : vector<1x32xf32> to vector<32x32xf32>
    %133 = arith.addf %129, %132 : vector<32x32xf32>
    %c0_60 = arith.constant 0 : index
    %c0_61 = arith.constant 0 : index
    %c0_62 = arith.constant 0 : index
    %134 = vector.load %arg10[%c0_60, %c0_61, %c0_62] : memref<2x32x64xbf16, #tpu.memory_space<vmem>>, vector<1x32x64xbf16>
    %135 = vector.shape_cast %134 : vector<1x32x64xbf16> to vector<32x64xbf16>
    %cst_63 = arith.constant dense<0.000000e+00> : vector<32x64xf32>
    %136 = tpu.matmul %10, %135, %cst_63 {dimension_numbers = #tpu.dot_dimension_numbers<[1], [0], [0], [1], [0, 0, 1, 1], [], []>} : vector<32x32xbf16>, vector<32x64xbf16>, vector<32x64xf32> -> vector<32x64xf32>
    %c0_64 = arith.constant 0 : index
    %c0_65 = arith.constant 0 : index
    %c0_66 = arith.constant 0 : index
    %137 = vector.load %arg11[%c0_64, %c0_65, %c0_66] : memref<2x1x64xf32, #tpu.memory_space<vmem>>, vector<1x1x64xf32>
    %138 = vector.shape_cast %137 : vector<1x1x64xf32> to vector<1x64xf32>
    %139 = vector.broadcast %138 : vector<1x64xf32> to vector<32x64xf32>
    %140 = arith.addf %136, %139 : vector<32x64xf32>
    %141 = vector.extract_strided_slice %140 {offsets = [0, 0], sizes = [32, 32], strides = [1, 1]} : vector<32x64xf32> to vector<32x32xf32>
    %142 = vector.extract_strided_slice %140 {offsets = [0, 32], sizes = [32, 32], strides = [1, 1]} : vector<32x64xf32> to vector<32x32xf32>
    %143 = vector.extract_strided_slice %133 {offsets = [0, 0], sizes = [32, 8], strides = [1, 1]} : vector<32x32xf32> to vector<32x8xf32>
    %144 = vector.extract_strided_slice %141 {offsets = [0, 0], sizes = [32, 8], strides = [1, 1]} : vector<32x32xf32> to vector<32x8xf32>
    %145 = vector.extract_strided_slice %142 {offsets = [0, 0], sizes = [32, 8], strides = [1, 1]} : vector<32x32xf32> to vector<32x8xf32>
    %cst_67 = arith.constant dense<0.000000e+00> : vector<32x32xf32>
    %146 = tpu.matmul %143, %144, %cst_67 {dimension_numbers = #tpu.dot_dimension_numbers<[1], [1], [0], [0], [0, 0, 1, 0], [], []>} : vector<32x8xf32>, vector<32x8xf32>, vector<32x32xf32> -> vector<32x32xf32>
    %cst_68 = arith.constant 0.353553385 : f32
    %147 = vector.broadcast %cst_68 : f32 to vector<32x32xf32>
    %148 = arith.mulf %146, %147 : vector<32x32xf32>
    %cst_69 = arith.constant dense<0xFF800000> : vector<32xf32>
    %149 = vector.multi_reduction <maximumf>, %148, %cst_69 [1] : vector<32x32xf32> to vector<32xf32>
    %150 = vector.shape_cast %149 : vector<32xf32> to vector<32x1xf32>
    %151 = vector.broadcast %150 : vector<32x1xf32> to vector<32x32xf32>
    %152 = arith.subf %148, %151 : vector<32x32xf32>
    %153 = math.exp %152 : vector<32x32xf32>
    %cst_70 = arith.constant dense<0.000000e+00> : vector<32xf32>
    %154 = vector.multi_reduction <add>, %153, %cst_70 [1] : vector<32x32xf32> to vector<32xf32>
    %155 = vector.shape_cast %154 : vector<32xf32> to vector<32x1xf32>
    %156 = tpu.reciprocal %155 {approx = true} : vector<32x1xf32> -> vector<32x1xf32>
    %157 = vector.broadcast %156 : vector<32x1xf32> to vector<32x32xf32>
    %158 = arith.mulf %153, %157 : vector<32x32xf32>
    %cst_71 = arith.constant dense<0.000000e+00> : vector<32x8xf32>
    %159 = tpu.matmul %158, %145, %cst_71 {dimension_numbers = #tpu.dot_dimension_numbers<[1], [0], [0], [1], [0, 0, 1, 1], [], []>} : vector<32x32xf32>, vector<32x8xf32>, vector<32x8xf32> -> vector<32x8xf32>
    %160 = vector.extract_strided_slice %133 {offsets = [0, 8], sizes = [32, 8], strides = [1, 1]} : vector<32x32xf32> to vector<32x8xf32>
    %161 = vector.extract_strided_slice %141 {offsets = [0, 8], sizes = [32, 8], strides = [1, 1]} : vector<32x32xf32> to vector<32x8xf32>
    %162 = vector.extract_strided_slice %142 {offsets = [0, 8], sizes = [32, 8], strides = [1, 1]} : vector<32x32xf32> to vector<32x8xf32>
    %cst_72 = arith.constant dense<0.000000e+00> : vector<32x32xf32>
    %163 = tpu.matmul %160, %161, %cst_72 {dimension_numbers = #tpu.dot_dimension_numbers<[1], [1], [0], [0], [0, 0, 1, 0], [], []>} : vector<32x8xf32>, vector<32x8xf32>, vector<32x32xf32> -> vector<32x32xf32>
    %cst_73 = arith.constant 0.353553385 : f32
    %164 = vector.broadcast %cst_73 : f32 to vector<32x32xf32>
    %165 = arith.mulf %163, %164 : vector<32x32xf32>
    %cst_74 = arith.constant dense<0xFF800000> : vector<32xf32>
    %166 = vector.multi_reduction <maximumf>, %165, %cst_74 [1] : vector<32x32xf32> to vector<32xf32>
    %167 = vector.shape_cast %166 : vector<32xf32> to vector<32x1xf32>
    %168 = vector.broadcast %167 : vector<32x1xf32> to vector<32x32xf32>
    %169 = arith.subf %165, %168 : vector<32x32xf32>
    %170 = math.exp %169 : vector<32x32xf32>
    %cst_75 = arith.constant dense<0.000000e+00> : vector<32xf32>
    %171 = vector.multi_reduction <add>, %170, %cst_75 [1] : vector<32x32xf32> to vector<32xf32>
    %172 = vector.shape_cast %171 : vector<32xf32> to vector<32x1xf32>
    %173 = tpu.reciprocal %172 {approx = true} : vector<32x1xf32> -> vector<32x1xf32>
    %174 = vector.broadcast %173 : vector<32x1xf32> to vector<32x32xf32>
    %175 = arith.mulf %170, %174 : vector<32x32xf32>
    %cst_76 = arith.constant dense<0.000000e+00> : vector<32x8xf32>
    %176 = tpu.matmul %175, %162, %cst_76 {dimension_numbers = #tpu.dot_dimension_numbers<[1], [0], [0], [1], [0, 0, 1, 1], [], []>} : vector<32x32xf32>, vector<32x8xf32>, vector<32x8xf32> -> vector<32x8xf32>
    %177 = vector.extract_strided_slice %133 {offsets = [0, 16], sizes = [32, 8], strides = [1, 1]} : vector<32x32xf32> to vector<32x8xf32>
    %178 = vector.extract_strided_slice %141 {offsets = [0, 16], sizes = [32, 8], strides = [1, 1]} : vector<32x32xf32> to vector<32x8xf32>
    %179 = vector.extract_strided_slice %142 {offsets = [0, 16], sizes = [32, 8], strides = [1, 1]} : vector<32x32xf32> to vector<32x8xf32>
    %cst_77 = arith.constant dense<0.000000e+00> : vector<32x32xf32>
    %180 = tpu.matmul %177, %178, %cst_77 {dimension_numbers = #tpu.dot_dimension_numbers<[1], [1], [0], [0], [0, 0, 1, 0], [], []>} : vector<32x8xf32>, vector<32x8xf32>, vector<32x32xf32> -> vector<32x32xf32>
    %cst_78 = arith.constant 0.353553385 : f32
    %181 = vector.broadcast %cst_78 : f32 to vector<32x32xf32>
    %182 = arith.mulf %180, %181 : vector<32x32xf32>
    %cst_79 = arith.constant dense<0xFF800000> : vector<32xf32>
    %183 = vector.multi_reduction <maximumf>, %182, %cst_79 [1] : vector<32x32xf32> to vector<32xf32>
    %184 = vector.shape_cast %183 : vector<32xf32> to vector<32x1xf32>
    %185 = vector.broadcast %184 : vector<32x1xf32> to vector<32x32xf32>
    %186 = arith.subf %182, %185 : vector<32x32xf32>
    %187 = math.exp %186 : vector<32x32xf32>
    %cst_80 = arith.constant dense<0.000000e+00> : vector<32xf32>
    %188 = vector.multi_reduction <add>, %187, %cst_80 [1] : vector<32x32xf32> to vector<32xf32>
    %189 = vector.shape_cast %188 : vector<32xf32> to vector<32x1xf32>
    %190 = tpu.reciprocal %189 {approx = true} : vector<32x1xf32> -> vector<32x1xf32>
    %191 = vector.broadcast %190 : vector<32x1xf32> to vector<32x32xf32>
    %192 = arith.mulf %187, %191 : vector<32x32xf32>
    %cst_81 = arith.constant dense<0.000000e+00> : vector<32x8xf32>
    %193 = tpu.matmul %192, %179, %cst_81 {dimension_numbers = #tpu.dot_dimension_numbers<[1], [0], [0], [1], [0, 0, 1, 1], [], []>} : vector<32x32xf32>, vector<32x8xf32>, vector<32x8xf32> -> vector<32x8xf32>
    %194 = vector.extract_strided_slice %133 {offsets = [0, 24], sizes = [32, 8], strides = [1, 1]} : vector<32x32xf32> to vector<32x8xf32>
    %195 = vector.extract_strided_slice %141 {offsets = [0, 24], sizes = [32, 8], strides = [1, 1]} : vector<32x32xf32> to vector<32x8xf32>
    %196 = vector.extract_strided_slice %142 {offsets = [0, 24], sizes = [32, 8], strides = [1, 1]} : vector<32x32xf32> to vector<32x8xf32>
    %cst_82 = arith.constant dense<0.000000e+00> : vector<32x32xf32>
    %197 = tpu.matmul %194, %195, %cst_82 {dimension_numbers = #tpu.dot_dimension_numbers<[1], [1], [0], [0], [0, 0, 1, 0], [], []>} : vector<32x8xf32>, vector<32x8xf32>, vector<32x32xf32> -> vector<32x32xf32>
    %cst_83 = arith.constant 0.353553385 : f32
    %198 = vector.broadcast %cst_83 : f32 to vector<32x32xf32>
    %199 = arith.mulf %197, %198 : vector<32x32xf32>
    %cst_84 = arith.constant dense<0xFF800000> : vector<32xf32>
    %200 = vector.multi_reduction <maximumf>, %199, %cst_84 [1] : vector<32x32xf32> to vector<32xf32>
    %201 = vector.shape_cast %200 : vector<32xf32> to vector<32x1xf32>
    %202 = vector.broadcast %201 : vector<32x1xf32> to vector<32x32xf32>
    %203 = arith.subf %199, %202 : vector<32x32xf32>
    %204 = math.exp %203 : vector<32x32xf32>
    %cst_85 = arith.constant dense<0.000000e+00> : vector<32xf32>
    %205 = vector.multi_reduction <add>, %204, %cst_85 [1] : vector<32x32xf32> to vector<32xf32>
    %206 = vector.shape_cast %205 : vector<32xf32> to vector<32x1xf32>
    %207 = tpu.reciprocal %206 {approx = true} : vector<32x1xf32> -> vector<32x1xf32>
    %208 = vector.broadcast %207 : vector<32x1xf32> to vector<32x32xf32>
    %209 = arith.mulf %204, %208 : vector<32x32xf32>
    %cst_86 = arith.constant dense<0.000000e+00> : vector<32x8xf32>
    %210 = tpu.matmul %209, %196, %cst_86 {dimension_numbers = #tpu.dot_dimension_numbers<[1], [0], [0], [1], [0, 0, 1, 1], [], []>} : vector<32x32xf32>, vector<32x8xf32>, vector<32x8xf32> -> vector<32x8xf32>
    %211 = tpu.concatenate %159, %176, %193, %210 in 1 : vector<32x8xf32>, vector<32x8xf32>, vector<32x8xf32>, vector<32x8xf32> -> vector<32x32xf32>
    %212 = arith.truncf %211 : vector<32x32xf32> to vector<32x32xbf16>
    %c0_87 = arith.constant 0 : index
    %c0_88 = arith.constant 0 : index
    %c0_89 = arith.constant 0 : index
    %213 = vector.load %arg12[%c0_87, %c0_88, %c0_89] : memref<2x32x32xbf16, #tpu.memory_space<vmem>>, vector<1x32x32xbf16>
    %214 = vector.shape_cast %213 : vector<1x32x32xbf16> to vector<32x32xbf16>
    %cst_90 = arith.constant dense<0.000000e+00> : vector<32x32xf32>
    %215 = tpu.matmul %212, %214, %cst_90 {dimension_numbers = #tpu.dot_dimension_numbers<[1], [0], [0], [1], [0, 0, 1, 1], [], []>} : vector<32x32xbf16>, vector<32x32xbf16>, vector<32x32xf32> -> vector<32x32xf32>
    %c0_91 = arith.constant 0 : index
    %c0_92 = arith.constant 0 : index
    %c0_93 = arith.constant 0 : index
    %216 = vector.load %arg13[%c0_91, %c0_92, %c0_93] : memref<2x1x32xf32, #tpu.memory_space<vmem>>, vector<1x1x32xf32>
    %217 = vector.shape_cast %216 : vector<1x1x32xf32> to vector<1x32xf32>
    %218 = vector.broadcast %217 : vector<1x32xf32> to vector<32x32xf32>
    %219 = arith.addf %215, %218 : vector<32x32xf32>
    %220 = arith.addf %125, %219 : vector<32x32xf32>
    %c0_94 = arith.constant 0 : index
    %c0_95 = arith.constant 0 : index
    %c0_96 = arith.constant 0 : index
    %221 = vector.load %arg20[%c0_94, %c0_95, %c0_96] : memref<2x1x32xf32, #tpu.memory_space<vmem>>, vector<1x1x32xf32>
    %222 = vector.shape_cast %221 : vector<1x1x32xf32> to vector<1x32xf32>
    %c0_97 = arith.constant 0 : index
    %c0_98 = arith.constant 0 : index
    %c0_99 = arith.constant 0 : index
    %223 = vector.load %arg21[%c0_97, %c0_98, %c0_99] : memref<2x1x32xf32, #tpu.memory_space<vmem>>, vector<1x1x32xf32>
    %224 = vector.shape_cast %223 : vector<1x1x32xf32> to vector<1x32xf32>
    %cst_100 = arith.constant dense<0.000000e+00> : vector<32xf32>
    %225 = vector.multi_reduction <add>, %220, %cst_100 [1] : vector<32x32xf32> to vector<32xf32>
    %226 = vector.shape_cast %225 : vector<32xf32> to vector<32x1xf32>
    %cst_101 = arith.constant 3.200000e+01 : f32
    %227 = vector.broadcast %cst_101 : f32 to vector<32x1xf32>
    %228 = arith.divf %226, %227 : vector<32x1xf32>
    %229 = vector.broadcast %228 : vector<32x1xf32> to vector<32x32xf32>
    %230 = arith.subf %220, %229 : vector<32x32xf32>
    %231 = arith.mulf %230, %230 : vector<32x32xf32>
    %cst_102 = arith.constant dense<0.000000e+00> : vector<32xf32>
    %232 = vector.multi_reduction <add>, %231, %cst_102 [1] : vector<32x32xf32> to vector<32xf32>
    %233 = vector.shape_cast %232 : vector<32xf32> to vector<32x1xf32>
    %cst_103 = arith.constant 3.200000e+01 : f32
    %234 = vector.broadcast %cst_103 : f32 to vector<32x1xf32>
    %235 = arith.divf %233, %234 : vector<32x1xf32>
    %236 = vector.broadcast %228 : vector<32x1xf32> to vector<32x32xf32>
    %237 = arith.subf %220, %236 : vector<32x32xf32>
    %cst_104 = arith.constant 9.99999974E-6 : f32
    %238 = vector.broadcast %cst_104 : f32 to vector<32x1xf32>
    %239 = arith.addf %235, %238 : vector<32x1xf32>
    %240 = math.rsqrt %239 : vector<32x1xf32>
    %241 = vector.broadcast %240 : vector<32x1xf32> to vector<32x32xf32>
    %242 = arith.mulf %237, %241 : vector<32x32xf32>
    %243 = vector.broadcast %222 : vector<1x32xf32> to vector<32x32xf32>
    %244 = arith.mulf %242, %243 : vector<32x32xf32>
    %245 = vector.broadcast %224 : vector<1x32xf32> to vector<32x32xf32>
    %246 = arith.addf %244, %245 : vector<32x32xf32>
    %247 = arith.truncf %246 : vector<32x32xf32> to vector<32x32xbf16>
    %cst_105 = arith.constant 0.000000e+00 : f32
    %248 = vector.broadcast %cst_105 : f32 to vector<32x32xf32>
    %c0_i32 = arith.constant 0 : i32
    %c512_i32 = arith.constant 512 : i32
    %249 = arith.muli %c0_i32, %c512_i32 : i32
    %250 = tpu.assume_multiple %249, 512 : i32
    %c0_106 = arith.constant 0 : index
    %c0_107 = arith.constant 0 : index
    %251 = arith.index_cast %250 : i32 to index
    %252 = vector.load %arg14[%c0_106, %c0_107, %251] : memref<2x32x2048xbf16, #tpu.memory_space<vmem>>, vector<1x32x512xbf16>
    %253 = vector.shape_cast %252 : vector<1x32x512xbf16> to vector<32x512xbf16>
    %cst_108 = arith.constant dense<0.000000e+00> : vector<32x512xf32>
    %254 = tpu.matmul %247, %253, %cst_108 {dimension_numbers = #tpu.dot_dimension_numbers<[1], [0], [0], [1], [0, 0, 1, 1], [], []>} : vector<32x32xbf16>, vector<32x512xbf16>, vector<32x512xf32> -> vector<32x512xf32>
    %c0_109 = arith.constant 0 : index
    %c0_110 = arith.constant 0 : index
    %255 = arith.index_cast %250 : i32 to index
    %256 = vector.load %arg15[%c0_109, %c0_110, %255] : memref<2x1x2048xf32, #tpu.memory_space<vmem>>, vector<1x1x512xf32>
    %257 = vector.shape_cast %256 : vector<1x1x512xf32> to vector<1x512xf32>
    %258 = vector.broadcast %257 : vector<1x512xf32> to vector<32x512xf32>
    %259 = arith.addf %254, %258 : vector<32x512xf32>
    %260 = arith.truncf %259 : vector<32x512xf32> to vector<32x512xbf16>
    %cst_111 = arith.constant 0.000000e+00 : bf16
    %261 = vector.broadcast %cst_111 : bf16 to vector<32x512xbf16>
    %262 = arith.maximumf %260, %261 : vector<32x512xbf16>
    %c0_112 = arith.constant 0 : index
    %263 = arith.index_cast %250 : i32 to index
    %c0_113 = arith.constant 0 : index
    %264 = vector.load %arg16[%c0_112, %263, %c0_113] : memref<2x2048x32xbf16, #tpu.memory_space<vmem>>, vector<1x512x32xbf16>
    %265 = vector.shape_cast %264 : vector<1x512x32xbf16> to vector<512x32xbf16>
    %cst_114 = arith.constant dense<0.000000e+00> : vector<32x32xf32>
    %266 = tpu.matmul %262, %265, %cst_114 {dimension_numbers = #tpu.dot_dimension_numbers<[1], [0], [0], [1], [0, 0, 1, 1], [], []>} : vector<32x512xbf16>, vector<512x32xbf16>, vector<32x32xf32> -> vector<32x32xf32>
    %267 = arith.addf %248, %266 : vector<32x32xf32>
    %c1_i32 = arith.constant 1 : i32
    %c512_i32_115 = arith.constant 512 : i32
    %268 = arith.muli %c1_i32, %c512_i32_115 : i32
    %269 = tpu.assume_multiple %268, 512 : i32
    %c0_116 = arith.constant 0 : index
    %c0_117 = arith.constant 0 : index
    %270 = arith.index_cast %269 : i32 to index
    %271 = vector.load %arg14[%c0_116, %c0_117, %270] : memref<2x32x2048xbf16, #tpu.memory_space<vmem>>, vector<1x32x512xbf16>
    %272 = vector.shape_cast %271 : vector<1x32x512xbf16> to vector<32x512xbf16>
    %cst_118 = arith.constant dense<0.000000e+00> : vector<32x512xf32>
    %273 = tpu.matmul %247, %272, %cst_118 {dimension_numbers = #tpu.dot_dimension_numbers<[1], [0], [0], [1], [0, 0, 1, 1], [], []>} : vector<32x32xbf16>, vector<32x512xbf16>, vector<32x512xf32> -> vector<32x512xf32>
    %c0_119 = arith.constant 0 : index
    %c0_120 = arith.constant 0 : index
    %274 = arith.index_cast %269 : i32 to index
    %275 = vector.load %arg15[%c0_119, %c0_120, %274] : memref<2x1x2048xf32, #tpu.memory_space<vmem>>, vector<1x1x512xf32>
    %276 = vector.shape_cast %275 : vector<1x1x512xf32> to vector<1x512xf32>
    %277 = vector.broadcast %276 : vector<1x512xf32> to vector<32x512xf32>
    %278 = arith.addf %273, %277 : vector<32x512xf32>
    %279 = arith.truncf %278 : vector<32x512xf32> to vector<32x512xbf16>
    %cst_121 = arith.constant 0.000000e+00 : bf16
    %280 = vector.broadcast %cst_121 : bf16 to vector<32x512xbf16>
    %281 = arith.maximumf %279, %280 : vector<32x512xbf16>
    %c0_122 = arith.constant 0 : index
    %282 = arith.index_cast %269 : i32 to index
    %c0_123 = arith.constant 0 : index
    %283 = vector.load %arg16[%c0_122, %282, %c0_123] : memref<2x2048x32xbf16, #tpu.memory_space<vmem>>, vector<1x512x32xbf16>
    %284 = vector.shape_cast %283 : vector<1x512x32xbf16> to vector<512x32xbf16>
    %cst_124 = arith.constant dense<0.000000e+00> : vector<32x32xf32>
    %285 = tpu.matmul %281, %284, %cst_124 {dimension_numbers = #tpu.dot_dimension_numbers<[1], [0], [0], [1], [0, 0, 1, 1], [], []>} : vector<32x512xbf16>, vector<512x32xbf16>, vector<32x32xf32> -> vector<32x32xf32>
    %286 = arith.addf %267, %285 : vector<32x32xf32>
    %c2_i32 = arith.constant 2 : i32
    %c512_i32_125 = arith.constant 512 : i32
    %287 = arith.muli %c2_i32, %c512_i32_125 : i32
    %288 = tpu.assume_multiple %287, 512 : i32
    %c0_126 = arith.constant 0 : index
    %c0_127 = arith.constant 0 : index
    %289 = arith.index_cast %288 : i32 to index
    %290 = vector.load %arg14[%c0_126, %c0_127, %289] : memref<2x32x2048xbf16, #tpu.memory_space<vmem>>, vector<1x32x512xbf16>
    %291 = vector.shape_cast %290 : vector<1x32x512xbf16> to vector<32x512xbf16>
    %cst_128 = arith.constant dense<0.000000e+00> : vector<32x512xf32>
    %292 = tpu.matmul %247, %291, %cst_128 {dimension_numbers = #tpu.dot_dimension_numbers<[1], [0], [0], [1], [0, 0, 1, 1], [], []>} : vector<32x32xbf16>, vector<32x512xbf16>, vector<32x512xf32> -> vector<32x512xf32>
    %c0_129 = arith.constant 0 : index
    %c0_130 = arith.constant 0 : index
    %293 = arith.index_cast %288 : i32 to index
    %294 = vector.load %arg15[%c0_129, %c0_130, %293] : memref<2x1x2048xf32, #tpu.memory_space<vmem>>, vector<1x1x512xf32>
    %295 = vector.shape_cast %294 : vector<1x1x512xf32> to vector<1x512xf32>
    %296 = vector.broadcast %295 : vector<1x512xf32> to vector<32x512xf32>
    %297 = arith.addf %292, %296 : vector<32x512xf32>
    %298 = arith.truncf %297 : vector<32x512xf32> to vector<32x512xbf16>
    %cst_131 = arith.constant 0.000000e+00 : bf16
    %299 = vector.broadcast %cst_131 : bf16 to vector<32x512xbf16>
    %300 = arith.maximumf %298, %299 : vector<32x512xbf16>
    %c0_132 = arith.constant 0 : index
    %301 = arith.index_cast %288 : i32 to index
    %c0_133 = arith.constant 0 : index
    %302 = vector.load %arg16[%c0_132, %301, %c0_133] : memref<2x2048x32xbf16, #tpu.memory_space<vmem>>, vector<1x512x32xbf16>
    %303 = vector.shape_cast %302 : vector<1x512x32xbf16> to vector<512x32xbf16>
    %cst_134 = arith.constant dense<0.000000e+00> : vector<32x32xf32>
    %304 = tpu.matmul %300, %303, %cst_134 {dimension_numbers = #tpu.dot_dimension_numbers<[1], [0], [0], [1], [0, 0, 1, 1], [], []>} : vector<32x512xbf16>, vector<512x32xbf16>, vector<32x32xf32> -> vector<32x32xf32>
    %305 = arith.addf %286, %304 : vector<32x32xf32>
    %c3_i32 = arith.constant 3 : i32
    %c512_i32_135 = arith.constant 512 : i32
    %306 = arith.muli %c3_i32, %c512_i32_135 : i32
    %307 = tpu.assume_multiple %306, 512 : i32
    %c0_136 = arith.constant 0 : index
    %c0_137 = arith.constant 0 : index
    %308 = arith.index_cast %307 : i32 to index
    %309 = vector.load %arg14[%c0_136, %c0_137, %308] : memref<2x32x2048xbf16, #tpu.memory_space<vmem>>, vector<1x32x512xbf16>
    %310 = vector.shape_cast %309 : vector<1x32x512xbf16> to vector<32x512xbf16>
    %cst_138 = arith.constant dense<0.000000e+00> : vector<32x512xf32>
    %311 = tpu.matmul %247, %310, %cst_138 {dimension_numbers = #tpu.dot_dimension_numbers<[1], [0], [0], [1], [0, 0, 1, 1], [], []>} : vector<32x32xbf16>, vector<32x512xbf16>, vector<32x512xf32> -> vector<32x512xf32>
    %c0_139 = arith.constant 0 : index
    %c0_140 = arith.constant 0 : index
    %312 = arith.index_cast %307 : i32 to index
    %313 = vector.load %arg15[%c0_139, %c0_140, %312] : memref<2x1x2048xf32, #tpu.memory_space<vmem>>, vector<1x1x512xf32>
    %314 = vector.shape_cast %313 : vector<1x1x512xf32> to vector<1x512xf32>
    %315 = vector.broadcast %314 : vector<1x512xf32> to vector<32x512xf32>
    %316 = arith.addf %311, %315 : vector<32x512xf32>
    %317 = arith.truncf %316 : vector<32x512xf32> to vector<32x512xbf16>
    %cst_141 = arith.constant 0.000000e+00 : bf16
    %318 = vector.broadcast %cst_141 : bf16 to vector<32x512xbf16>
    %319 = arith.maximumf %317, %318 : vector<32x512xbf16>
    %c0_142 = arith.constant 0 : index
    %320 = arith.index_cast %307 : i32 to index
    %c0_143 = arith.constant 0 : index
    %321 = vector.load %arg16[%c0_142, %320, %c0_143] : memref<2x2048x32xbf16, #tpu.memory_space<vmem>>, vector<1x512x32xbf16>
    %322 = vector.shape_cast %321 : vector<1x512x32xbf16> to vector<512x32xbf16>
    %cst_144 = arith.constant dense<0.000000e+00> : vector<32x32xf32>
    %323 = tpu.matmul %319, %322, %cst_144 {dimension_numbers = #tpu.dot_dimension_numbers<[1], [0], [0], [1], [0, 0, 1, 1], [], []>} : vector<32x512xbf16>, vector<512x32xbf16>, vector<32x32xf32> -> vector<32x32xf32>
    %324 = arith.addf %305, %323 : vector<32x32xf32>
    %c4_i32 = arith.constant 4 : i32
    %325 = arith.addf %246, %324 : vector<32x32xf32>
    %c0_145 = arith.constant 0 : index
    %c0_146 = arith.constant 0 : index
    %c0_147 = arith.constant 0 : index
    %326 = vector.load %arg17[%c0_145, %c0_146, %c0_147] : memref<2x1x32xf32, #tpu.memory_space<vmem>>, vector<1x1x32xf32>
    %327 = vector.shape_cast %326 : vector<1x1x32xf32> to vector<1x32xf32>
    %328 = vector.broadcast %327 : vector<1x32xf32> to vector<32x32xf32>
    %329 = arith.addf %325, %328 : vector<32x32xf32>
    %c0_148 = arith.constant 0 : index
    %c0_149 = arith.constant 0 : index
    %c0_150 = arith.constant 0 : index
    %330 = vector.load %arg22[%c0_148, %c0_149, %c0_150] : memref<2x1x32xf32, #tpu.memory_space<vmem>>, vector<1x1x32xf32>
    %331 = vector.shape_cast %330 : vector<1x1x32xf32> to vector<1x32xf32>
    %c0_151 = arith.constant 0 : index
    %c0_152 = arith.constant 0 : index
    %c0_153 = arith.constant 0 : index
    %332 = vector.load %arg23[%c0_151, %c0_152, %c0_153] : memref<2x1x32xf32, #tpu.memory_space<vmem>>, vector<1x1x32xf32>
    %333 = vector.shape_cast %332 : vector<1x1x32xf32> to vector<1x32xf32>
    %cst_154 = arith.constant dense<0.000000e+00> : vector<32xf32>
    %334 = vector.multi_reduction <add>, %329, %cst_154 [1] : vector<32x32xf32> to vector<32xf32>
    %335 = vector.shape_cast %334 : vector<32xf32> to vector<32x1xf32>
    %cst_155 = arith.constant 3.200000e+01 : f32
    %336 = vector.broadcast %cst_155 : f32 to vector<32x1xf32>
    %337 = arith.divf %335, %336 : vector<32x1xf32>
    %338 = vector.broadcast %337 : vector<32x1xf32> to vector<32x32xf32>
    %339 = arith.subf %329, %338 : vector<32x32xf32>
    %340 = arith.mulf %339, %339 : vector<32x32xf32>
    %cst_156 = arith.constant dense<0.000000e+00> : vector<32xf32>
    %341 = vector.multi_reduction <add>, %340, %cst_156 [1] : vector<32x32xf32> to vector<32xf32>
    %342 = vector.shape_cast %341 : vector<32xf32> to vector<32x1xf32>
    %cst_157 = arith.constant 3.200000e+01 : f32
    %343 = vector.broadcast %cst_157 : f32 to vector<32x1xf32>
    %344 = arith.divf %342, %343 : vector<32x1xf32>
    %345 = vector.broadcast %337 : vector<32x1xf32> to vector<32x32xf32>
    %346 = arith.subf %329, %345 : vector<32x32xf32>
    %cst_158 = arith.constant 9.99999974E-6 : f32
    %347 = vector.broadcast %cst_158 : f32 to vector<32x1xf32>
    %348 = arith.addf %344, %347 : vector<32x1xf32>
    %349 = math.rsqrt %348 : vector<32x1xf32>
    %350 = vector.broadcast %349 : vector<32x1xf32> to vector<32x32xf32>
    %351 = arith.mulf %346, %350 : vector<32x32xf32>
    %352 = vector.broadcast %331 : vector<1x32xf32> to vector<32x32xf32>
    %353 = arith.mulf %351, %352 : vector<32x32xf32>
    %354 = vector.broadcast %333 : vector<1x32xf32> to vector<32x32xf32>
    %355 = arith.addf %353, %354 : vector<32x32xf32>
    %356 = arith.truncf %355 : vector<32x32xf32> to vector<32x32xbf16>
    %c1 = arith.constant 1 : index
    %c0_159 = arith.constant 0 : index
    %c0_160 = arith.constant 0 : index
    %357 = vector.load %arg4[%c1, %c0_159, %c0_160] : memref<2x32x96xbf16, #tpu.memory_space<vmem>>, vector<1x32x96xbf16>
    %358 = vector.shape_cast %357 : vector<1x32x96xbf16> to vector<32x96xbf16>
    %cst_161 = arith.constant dense<0.000000e+00> : vector<32x96xf32>
    %359 = tpu.matmul %356, %358, %cst_161 {dimension_numbers = #tpu.dot_dimension_numbers<[1], [0], [0], [1], [0, 0, 1, 1], [], []>} : vector<32x32xbf16>, vector<32x96xbf16>, vector<32x96xf32> -> vector<32x96xf32>
    %c1_162 = arith.constant 1 : index
    %c0_163 = arith.constant 0 : index
    %c0_164 = arith.constant 0 : index
    %360 = vector.load %arg5[%c1_162, %c0_163, %c0_164] : memref<2x1x96xf32, #tpu.memory_space<vmem>>, vector<1x1x96xf32>
    %361 = vector.shape_cast %360 : vector<1x1x96xf32> to vector<1x96xf32>
    %362 = vector.broadcast %361 : vector<1x96xf32> to vector<32x96xf32>
    %363 = arith.addf %359, %362 : vector<32x96xf32>
    %364 = vector.extract_strided_slice %363 {offsets = [0, 0], sizes = [32, 32], strides = [1, 1]} : vector<32x96xf32> to vector<32x32xf32>
    %365 = vector.extract_strided_slice %363 {offsets = [0, 32], sizes = [32, 32], strides = [1, 1]} : vector<32x96xf32> to vector<32x32xf32>
    %366 = vector.extract_strided_slice %363 {offsets = [0, 64], sizes = [32, 32], strides = [1, 1]} : vector<32x96xf32> to vector<32x32xf32>
    %367 = vector.extract_strided_slice %364 {offsets = [0, 0], sizes = [32, 8], strides = [1, 1]} : vector<32x32xf32> to vector<32x8xf32>
    %368 = vector.extract_strided_slice %365 {offsets = [0, 0], sizes = [32, 8], strides = [1, 1]} : vector<32x32xf32> to vector<32x8xf32>
    %369 = vector.extract_strided_slice %366 {offsets = [0, 0], sizes = [32, 8], strides = [1, 1]} : vector<32x32xf32> to vector<32x8xf32>
    %cst_165 = arith.constant dense<0.000000e+00> : vector<32x32xf32>
    %370 = tpu.matmul %367, %368, %cst_165 {dimension_numbers = #tpu.dot_dimension_numbers<[1], [1], [0], [0], [0, 0, 1, 0], [], []>} : vector<32x8xf32>, vector<32x8xf32>, vector<32x32xf32> -> vector<32x32xf32>
    %cst_166 = arith.constant 0.353553385 : f32
    %371 = vector.broadcast %cst_166 : f32 to vector<32x32xf32>
    %372 = arith.mulf %370, %371 : vector<32x32xf32>
    %cst_167 = arith.constant dense<0xFF800000> : vector<32xf32>
    %373 = vector.multi_reduction <maximumf>, %372, %cst_167 [1] : vector<32x32xf32> to vector<32xf32>
    %374 = vector.shape_cast %373 : vector<32xf32> to vector<32x1xf32>
    %375 = vector.broadcast %374 : vector<32x1xf32> to vector<32x32xf32>
    %376 = arith.subf %372, %375 : vector<32x32xf32>
    %377 = math.exp %376 : vector<32x32xf32>
    %cst_168 = arith.constant dense<0.000000e+00> : vector<32xf32>
    %378 = vector.multi_reduction <add>, %377, %cst_168 [1] : vector<32x32xf32> to vector<32xf32>
    %379 = vector.shape_cast %378 : vector<32xf32> to vector<32x1xf32>
    %380 = tpu.reciprocal %379 {approx = true} : vector<32x1xf32> -> vector<32x1xf32>
    %381 = vector.broadcast %380 : vector<32x1xf32> to vector<32x32xf32>
    %382 = arith.mulf %377, %381 : vector<32x32xf32>
    %cst_169 = arith.constant dense<0.000000e+00> : vector<32x8xf32>
    %383 = tpu.matmul %382, %369, %cst_169 {dimension_numbers = #tpu.dot_dimension_numbers<[1], [0], [0], [1], [0, 0, 1, 1], [], []>} : vector<32x32xf32>, vector<32x8xf32>, vector<32x8xf32> -> vector<32x8xf32>
    %384 = vector.extract_strided_slice %364 {offsets = [0, 8], sizes = [32, 8], strides = [1, 1]} : vector<32x32xf32> to vector<32x8xf32>
    %385 = vector.extract_strided_slice %365 {offsets = [0, 8], sizes = [32, 8], strides = [1, 1]} : vector<32x32xf32> to vector<32x8xf32>
    %386 = vector.extract_strided_slice %366 {offsets = [0, 8], sizes = [32, 8], strides = [1, 1]} : vector<32x32xf32> to vector<32x8xf32>
    %cst_170 = arith.constant dense<0.000000e+00> : vector<32x32xf32>
    %387 = tpu.matmul %384, %385, %cst_170 {dimension_numbers = #tpu.dot_dimension_numbers<[1], [1], [0], [0], [0, 0, 1, 0], [], []>} : vector<32x8xf32>, vector<32x8xf32>, vector<32x32xf32> -> vector<32x32xf32>
    %cst_171 = arith.constant 0.353553385 : f32
    %388 = vector.broadcast %cst_171 : f32 to vector<32x32xf32>
    %389 = arith.mulf %387, %388 : vector<32x32xf32>
    %cst_172 = arith.constant dense<0xFF800000> : vector<32xf32>
    %390 = vector.multi_reduction <maximumf>, %389, %cst_172 [1] : vector<32x32xf32> to vector<32xf32>
    %391 = vector.shape_cast %390 : vector<32xf32> to vector<32x1xf32>
    %392 = vector.broadcast %391 : vector<32x1xf32> to vector<32x32xf32>
    %393 = arith.subf %389, %392 : vector<32x32xf32>
    %394 = math.exp %393 : vector<32x32xf32>
    %cst_173 = arith.constant dense<0.000000e+00> : vector<32xf32>
    %395 = vector.multi_reduction <add>, %394, %cst_173 [1] : vector<32x32xf32> to vector<32xf32>
    %396 = vector.shape_cast %395 : vector<32xf32> to vector<32x1xf32>
    %397 = tpu.reciprocal %396 {approx = true} : vector<32x1xf32> -> vector<32x1xf32>
    %398 = vector.broadcast %397 : vector<32x1xf32> to vector<32x32xf32>
    %399 = arith.mulf %394, %398 : vector<32x32xf32>
    %cst_174 = arith.constant dense<0.000000e+00> : vector<32x8xf32>
    %400 = tpu.matmul %399, %386, %cst_174 {dimension_numbers = #tpu.dot_dimension_numbers<[1], [0], [0], [1], [0, 0, 1, 1], [], []>} : vector<32x32xf32>, vector<32x8xf32>, vector<32x8xf32> -> vector<32x8xf32>
    %401 = vector.extract_strided_slice %364 {offsets = [0, 16], sizes = [32, 8], strides = [1, 1]} : vector<32x32xf32> to vector<32x8xf32>
    %402 = vector.extract_strided_slice %365 {offsets = [0, 16], sizes = [32, 8], strides = [1, 1]} : vector<32x32xf32> to vector<32x8xf32>
    %403 = vector.extract_strided_slice %366 {offsets = [0, 16], sizes = [32, 8], strides = [1, 1]} : vector<32x32xf32> to vector<32x8xf32>
    %cst_175 = arith.constant dense<0.000000e+00> : vector<32x32xf32>
    %404 = tpu.matmul %401, %402, %cst_175 {dimension_numbers = #tpu.dot_dimension_numbers<[1], [1], [0], [0], [0, 0, 1, 0], [], []>} : vector<32x8xf32>, vector<32x8xf32>, vector<32x32xf32> -> vector<32x32xf32>
    %cst_176 = arith.constant 0.353553385 : f32
    %405 = vector.broadcast %cst_176 : f32 to vector<32x32xf32>
    %406 = arith.mulf %404, %405 : vector<32x32xf32>
    %cst_177 = arith.constant dense<0xFF800000> : vector<32xf32>
    %407 = vector.multi_reduction <maximumf>, %406, %cst_177 [1] : vector<32x32xf32> to vector<32xf32>
    %408 = vector.shape_cast %407 : vector<32xf32> to vector<32x1xf32>
    %409 = vector.broadcast %408 : vector<32x1xf32> to vector<32x32xf32>
    %410 = arith.subf %406, %409 : vector<32x32xf32>
    %411 = math.exp %410 : vector<32x32xf32>
    %cst_178 = arith.constant dense<0.000000e+00> : vector<32xf32>
    %412 = vector.multi_reduction <add>, %411, %cst_178 [1] : vector<32x32xf32> to vector<32xf32>
    %413 = vector.shape_cast %412 : vector<32xf32> to vector<32x1xf32>
    %414 = tpu.reciprocal %413 {approx = true} : vector<32x1xf32> -> vector<32x1xf32>
    %415 = vector.broadcast %414 : vector<32x1xf32> to vector<32x32xf32>
    %416 = arith.mulf %411, %415 : vector<32x32xf32>
    %cst_179 = arith.constant dense<0.000000e+00> : vector<32x8xf32>
    %417 = tpu.matmul %416, %403, %cst_179 {dimension_numbers = #tpu.dot_dimension_numbers<[1], [0], [0], [1], [0, 0, 1, 1], [], []>} : vector<32x32xf32>, vector<32x8xf32>, vector<32x8xf32> -> vector<32x8xf32>
    %418 = vector.extract_strided_slice %364 {offsets = [0, 24], sizes = [32, 8], strides = [1, 1]} : vector<32x32xf32> to vector<32x8xf32>
    %419 = vector.extract_strided_slice %365 {offsets = [0, 24], sizes = [32, 8], strides = [1, 1]} : vector<32x32xf32> to vector<32x8xf32>
    %420 = vector.extract_strided_slice %366 {offsets = [0, 24], sizes = [32, 8], strides = [1, 1]} : vector<32x32xf32> to vector<32x8xf32>
    %cst_180 = arith.constant dense<0.000000e+00> : vector<32x32xf32>
    %421 = tpu.matmul %418, %419, %cst_180 {dimension_numbers = #tpu.dot_dimension_numbers<[1], [1], [0], [0], [0, 0, 1, 0], [], []>} : vector<32x8xf32>, vector<32x8xf32>, vector<32x32xf32> -> vector<32x32xf32>
    %cst_181 = arith.constant 0.353553385 : f32
    %422 = vector.broadcast %cst_181 : f32 to vector<32x32xf32>
    %423 = arith.mulf %421, %422 : vector<32x32xf32>
    %cst_182 = arith.constant dense<0xFF800000> : vector<32xf32>
    %424 = vector.multi_reduction <maximumf>, %423, %cst_182 [1] : vector<32x32xf32> to vector<32xf32>
    %425 = vector.shape_cast %424 : vector<32xf32> to vector<32x1xf32>
    %426 = vector.broadcast %425 : vector<32x1xf32> to vector<32x32xf32>
    %427 = arith.subf %423, %426 : vector<32x32xf32>
    %428 = math.exp %427 : vector<32x32xf32>
    %cst_183 = arith.constant dense<0.000000e+00> : vector<32xf32>
    %429 = vector.multi_reduction <add>, %428, %cst_183 [1] : vector<32x32xf32> to vector<32xf32>
    %430 = vector.shape_cast %429 : vector<32xf32> to vector<32x1xf32>
    %431 = tpu.reciprocal %430 {approx = true} : vector<32x1xf32> -> vector<32x1xf32>
    %432 = vector.broadcast %431 : vector<32x1xf32> to vector<32x32xf32>
    %433 = arith.mulf %428, %432 : vector<32x32xf32>
    %cst_184 = arith.constant dense<0.000000e+00> : vector<32x8xf32>
    %434 = tpu.matmul %433, %420, %cst_184 {dimension_numbers = #tpu.dot_dimension_numbers<[1], [0], [0], [1], [0, 0, 1, 1], [], []>} : vector<32x32xf32>, vector<32x8xf32>, vector<32x8xf32> -> vector<32x8xf32>
    %435 = tpu.concatenate %383, %400, %417, %434 in 1 : vector<32x8xf32>, vector<32x8xf32>, vector<32x8xf32>, vector<32x8xf32> -> vector<32x32xf32>
    %436 = arith.truncf %435 : vector<32x32xf32> to vector<32x32xbf16>
    %c1_185 = arith.constant 1 : index
    %c0_186 = arith.constant 0 : index
    %c0_187 = arith.constant 0 : index
    %437 = vector.load %arg6[%c1_185, %c0_186, %c0_187] : memref<2x32x32xbf16, #tpu.memory_space<vmem>>, vector<1x32x32xbf16>
    %438 = vector.shape_cast %437 : vector<1x32x32xbf16> to vector<32x32xbf16>
    %cst_188 = arith.constant dense<0.000000e+00> : vector<32x32xf32>
    %439 = tpu.matmul %436, %438, %cst_188 {dimension_numbers = #tpu.dot_dimension_numbers<[1], [0], [0], [1], [0, 0, 1, 1], [], []>} : vector<32x32xbf16>, vector<32x32xbf16>, vector<32x32xf32> -> vector<32x32xf32>
    %c1_189 = arith.constant 1 : index
    %c0_190 = arith.constant 0 : index
    %c0_191 = arith.constant 0 : index
    %440 = vector.load %arg7[%c1_189, %c0_190, %c0_191] : memref<2x1x32xf32, #tpu.memory_space<vmem>>, vector<1x1x32xf32>
    %441 = vector.shape_cast %440 : vector<1x1x32xf32> to vector<1x32xf32>
    %442 = vector.broadcast %441 : vector<1x32xf32> to vector<32x32xf32>
    %443 = arith.addf %439, %442 : vector<32x32xf32>
    %444 = arith.addf %355, %443 : vector<32x32xf32>
    %c1_192 = arith.constant 1 : index
    %c0_193 = arith.constant 0 : index
    %c0_194 = arith.constant 0 : index
    %445 = vector.load %arg18[%c1_192, %c0_193, %c0_194] : memref<2x1x32xf32, #tpu.memory_space<vmem>>, vector<1x1x32xf32>
    %446 = vector.shape_cast %445 : vector<1x1x32xf32> to vector<1x32xf32>
    %c1_195 = arith.constant 1 : index
    %c0_196 = arith.constant 0 : index
    %c0_197 = arith.constant 0 : index
    %447 = vector.load %arg19[%c1_195, %c0_196, %c0_197] : memref<2x1x32xf32, #tpu.memory_space<vmem>>, vector<1x1x32xf32>
    %448 = vector.shape_cast %447 : vector<1x1x32xf32> to vector<1x32xf32>
    %cst_198 = arith.constant dense<0.000000e+00> : vector<32xf32>
    %449 = vector.multi_reduction <add>, %444, %cst_198 [1] : vector<32x32xf32> to vector<32xf32>
    %450 = vector.shape_cast %449 : vector<32xf32> to vector<32x1xf32>
    %cst_199 = arith.constant 3.200000e+01 : f32
    %451 = vector.broadcast %cst_199 : f32 to vector<32x1xf32>
    %452 = arith.divf %450, %451 : vector<32x1xf32>
    %453 = vector.broadcast %452 : vector<32x1xf32> to vector<32x32xf32>
    %454 = arith.subf %444, %453 : vector<32x32xf32>
    %455 = arith.mulf %454, %454 : vector<32x32xf32>
    %cst_200 = arith.constant dense<0.000000e+00> : vector<32xf32>
    %456 = vector.multi_reduction <add>, %455, %cst_200 [1] : vector<32x32xf32> to vector<32xf32>
    %457 = vector.shape_cast %456 : vector<32xf32> to vector<32x1xf32>
    %cst_201 = arith.constant 3.200000e+01 : f32
    %458 = vector.broadcast %cst_201 : f32 to vector<32x1xf32>
    %459 = arith.divf %457, %458 : vector<32x1xf32>
    %460 = vector.broadcast %452 : vector<32x1xf32> to vector<32x32xf32>
    %461 = arith.subf %444, %460 : vector<32x32xf32>
    %cst_202 = arith.constant 9.99999974E-6 : f32
    %462 = vector.broadcast %cst_202 : f32 to vector<32x1xf32>
    %463 = arith.addf %459, %462 : vector<32x1xf32>
    %464 = math.rsqrt %463 : vector<32x1xf32>
    %465 = vector.broadcast %464 : vector<32x1xf32> to vector<32x32xf32>
    %466 = arith.mulf %461, %465 : vector<32x32xf32>
    %467 = vector.broadcast %446 : vector<1x32xf32> to vector<32x32xf32>
    %468 = arith.mulf %466, %467 : vector<32x32xf32>
    %469 = vector.broadcast %448 : vector<1x32xf32> to vector<32x32xf32>
    %470 = arith.addf %468, %469 : vector<32x32xf32>
    %471 = arith.truncf %470 : vector<32x32xf32> to vector<32x32xbf16>
    %c1_203 = arith.constant 1 : index
    %c0_204 = arith.constant 0 : index
    %c0_205 = arith.constant 0 : index
    %472 = vector.load %arg8[%c1_203, %c0_204, %c0_205] : memref<2x32x32xbf16, #tpu.memory_space<vmem>>, vector<1x32x32xbf16>
    %473 = vector.shape_cast %472 : vector<1x32x32xbf16> to vector<32x32xbf16>
    %cst_206 = arith.constant dense<0.000000e+00> : vector<32x32xf32>
    %474 = tpu.matmul %471, %473, %cst_206 {dimension_numbers = #tpu.dot_dimension_numbers<[1], [0], [0], [1], [0, 0, 1, 1], [], []>} : vector<32x32xbf16>, vector<32x32xbf16>, vector<32x32xf32> -> vector<32x32xf32>
    %c1_207 = arith.constant 1 : index
    %c0_208 = arith.constant 0 : index
    %c0_209 = arith.constant 0 : index
    %475 = vector.load %arg9[%c1_207, %c0_208, %c0_209] : memref<2x1x32xf32, #tpu.memory_space<vmem>>, vector<1x1x32xf32>
    %476 = vector.shape_cast %475 : vector<1x1x32xf32> to vector<1x32xf32>
    %477 = vector.broadcast %476 : vector<1x32xf32> to vector<32x32xf32>
    %478 = arith.addf %474, %477 : vector<32x32xf32>
    %c1_210 = arith.constant 1 : index
    %c0_211 = arith.constant 0 : index
    %c0_212 = arith.constant 0 : index
    %479 = vector.load %arg10[%c1_210, %c0_211, %c0_212] : memref<2x32x64xbf16, #tpu.memory_space<vmem>>, vector<1x32x64xbf16>
    %480 = vector.shape_cast %479 : vector<1x32x64xbf16> to vector<32x64xbf16>
    %cst_213 = arith.constant dense<0.000000e+00> : vector<32x64xf32>
    %481 = tpu.matmul %10, %480, %cst_213 {dimension_numbers = #tpu.dot_dimension_numbers<[1], [0], [0], [1], [0, 0, 1, 1], [], []>} : vector<32x32xbf16>, vector<32x64xbf16>, vector<32x64xf32> -> vector<32x64xf32>
    %c1_214 = arith.constant 1 : index
    %c0_215 = arith.constant 0 : index
    %c0_216 = arith.constant 0 : index
    %482 = vector.load %arg11[%c1_214, %c0_215, %c0_216] : memref<2x1x64xf32, #tpu.memory_space<vmem>>, vector<1x1x64xf32>
    %483 = vector.shape_cast %482 : vector<1x1x64xf32> to vector<1x64xf32>
    %484 = vector.broadcast %483 : vector<1x64xf32> to vector<32x64xf32>
    %485 = arith.addf %481, %484 : vector<32x64xf32>
    %486 = vector.extract_strided_slice %485 {offsets = [0, 0], sizes = [32, 32], strides = [1, 1]} : vector<32x64xf32> to vector<32x32xf32>
    %487 = vector.extract_strided_slice %485 {offsets = [0, 32], sizes = [32, 32], strides = [1, 1]} : vector<32x64xf32> to vector<32x32xf32>
    %488 = vector.extract_strided_slice %478 {offsets = [0, 0], sizes = [32, 8], strides = [1, 1]} : vector<32x32xf32> to vector<32x8xf32>
    %489 = vector.extract_strided_slice %486 {offsets = [0, 0], sizes = [32, 8], strides = [1, 1]} : vector<32x32xf32> to vector<32x8xf32>
    %490 = vector.extract_strided_slice %487 {offsets = [0, 0], sizes = [32, 8], strides = [1, 1]} : vector<32x32xf32> to vector<32x8xf32>
    %cst_217 = arith.constant dense<0.000000e+00> : vector<32x32xf32>
    %491 = tpu.matmul %488, %489, %cst_217 {dimension_numbers = #tpu.dot_dimension_numbers<[1], [1], [0], [0], [0, 0, 1, 0], [], []>} : vector<32x8xf32>, vector<32x8xf32>, vector<32x32xf32> -> vector<32x32xf32>
    %cst_218 = arith.constant 0.353553385 : f32
    %492 = vector.broadcast %cst_218 : f32 to vector<32x32xf32>
    %493 = arith.mulf %491, %492 : vector<32x32xf32>
    %cst_219 = arith.constant dense<0xFF800000> : vector<32xf32>
    %494 = vector.multi_reduction <maximumf>, %493, %cst_219 [1] : vector<32x32xf32> to vector<32xf32>
    %495 = vector.shape_cast %494 : vector<32xf32> to vector<32x1xf32>
    %496 = vector.broadcast %495 : vector<32x1xf32> to vector<32x32xf32>
    %497 = arith.subf %493, %496 : vector<32x32xf32>
    %498 = math.exp %497 : vector<32x32xf32>
    %cst_220 = arith.constant dense<0.000000e+00> : vector<32xf32>
    %499 = vector.multi_reduction <add>, %498, %cst_220 [1] : vector<32x32xf32> to vector<32xf32>
    %500 = vector.shape_cast %499 : vector<32xf32> to vector<32x1xf32>
    %501 = tpu.reciprocal %500 {approx = true} : vector<32x1xf32> -> vector<32x1xf32>
    %502 = vector.broadcast %501 : vector<32x1xf32> to vector<32x32xf32>
    %503 = arith.mulf %498, %502 : vector<32x32xf32>
    %cst_221 = arith.constant dense<0.000000e+00> : vector<32x8xf32>
    %504 = tpu.matmul %503, %490, %cst_221 {dimension_numbers = #tpu.dot_dimension_numbers<[1], [0], [0], [1], [0, 0, 1, 1], [], []>} : vector<32x32xf32>, vector<32x8xf32>, vector<32x8xf32> -> vector<32x8xf32>
    %505 = vector.extract_strided_slice %478 {offsets = [0, 8], sizes = [32, 8], strides = [1, 1]} : vector<32x32xf32> to vector<32x8xf32>
    %506 = vector.extract_strided_slice %486 {offsets = [0, 8], sizes = [32, 8], strides = [1, 1]} : vector<32x32xf32> to vector<32x8xf32>
    %507 = vector.extract_strided_slice %487 {offsets = [0, 8], sizes = [32, 8], strides = [1, 1]} : vector<32x32xf32> to vector<32x8xf32>
    %cst_222 = arith.constant dense<0.000000e+00> : vector<32x32xf32>
    %508 = tpu.matmul %505, %506, %cst_222 {dimension_numbers = #tpu.dot_dimension_numbers<[1], [1], [0], [0], [0, 0, 1, 0], [], []>} : vector<32x8xf32>, vector<32x8xf32>, vector<32x32xf32> -> vector<32x32xf32>
    %cst_223 = arith.constant 0.353553385 : f32
    %509 = vector.broadcast %cst_223 : f32 to vector<32x32xf32>
    %510 = arith.mulf %508, %509 : vector<32x32xf32>
    %cst_224 = arith.constant dense<0xFF800000> : vector<32xf32>
    %511 = vector.multi_reduction <maximumf>, %510, %cst_224 [1] : vector<32x32xf32> to vector<32xf32>
    %512 = vector.shape_cast %511 : vector<32xf32> to vector<32x1xf32>
    %513 = vector.broadcast %512 : vector<32x1xf32> to vector<32x32xf32>
    %514 = arith.subf %510, %513 : vector<32x32xf32>
    %515 = math.exp %514 : vector<32x32xf32>
    %cst_225 = arith.constant dense<0.000000e+00> : vector<32xf32>
    %516 = vector.multi_reduction <add>, %515, %cst_225 [1] : vector<32x32xf32> to vector<32xf32>
    %517 = vector.shape_cast %516 : vector<32xf32> to vector<32x1xf32>
    %518 = tpu.reciprocal %517 {approx = true} : vector<32x1xf32> -> vector<32x1xf32>
    %519 = vector.broadcast %518 : vector<32x1xf32> to vector<32x32xf32>
    %520 = arith.mulf %515, %519 : vector<32x32xf32>
    %cst_226 = arith.constant dense<0.000000e+00> : vector<32x8xf32>
    %521 = tpu.matmul %520, %507, %cst_226 {dimension_numbers = #tpu.dot_dimension_numbers<[1], [0], [0], [1], [0, 0, 1, 1], [], []>} : vector<32x32xf32>, vector<32x8xf32>, vector<32x8xf32> -> vector<32x8xf32>
    %522 = vector.extract_strided_slice %478 {offsets = [0, 16], sizes = [32, 8], strides = [1, 1]} : vector<32x32xf32> to vector<32x8xf32>
    %523 = vector.extract_strided_slice %486 {offsets = [0, 16], sizes = [32, 8], strides = [1, 1]} : vector<32x32xf32> to vector<32x8xf32>
    %524 = vector.extract_strided_slice %487 {offsets = [0, 16], sizes = [32, 8], strides = [1, 1]} : vector<32x32xf32> to vector<32x8xf32>
    %cst_227 = arith.constant dense<0.000000e+00> : vector<32x32xf32>
    %525 = tpu.matmul %522, %523, %cst_227 {dimension_numbers = #tpu.dot_dimension_numbers<[1], [1], [0], [0], [0, 0, 1, 0], [], []>} : vector<32x8xf32>, vector<32x8xf32>, vector<32x32xf32> -> vector<32x32xf32>
    %cst_228 = arith.constant 0.353553385 : f32
    %526 = vector.broadcast %cst_228 : f32 to vector<32x32xf32>
    %527 = arith.mulf %525, %526 : vector<32x32xf32>
    %cst_229 = arith.constant dense<0xFF800000> : vector<32xf32>
    %528 = vector.multi_reduction <maximumf>, %527, %cst_229 [1] : vector<32x32xf32> to vector<32xf32>
    %529 = vector.shape_cast %528 : vector<32xf32> to vector<32x1xf32>
    %530 = vector.broadcast %529 : vector<32x1xf32> to vector<32x32xf32>
    %531 = arith.subf %527, %530 : vector<32x32xf32>
    %532 = math.exp %531 : vector<32x32xf32>
    %cst_230 = arith.constant dense<0.000000e+00> : vector<32xf32>
    %533 = vector.multi_reduction <add>, %532, %cst_230 [1] : vector<32x32xf32> to vector<32xf32>
    %534 = vector.shape_cast %533 : vector<32xf32> to vector<32x1xf32>
    %535 = tpu.reciprocal %534 {approx = true} : vector<32x1xf32> -> vector<32x1xf32>
    %536 = vector.broadcast %535 : vector<32x1xf32> to vector<32x32xf32>
    %537 = arith.mulf %532, %536 : vector<32x32xf32>
    %cst_231 = arith.constant dense<0.000000e+00> : vector<32x8xf32>
    %538 = tpu.matmul %537, %524, %cst_231 {dimension_numbers = #tpu.dot_dimension_numbers<[1], [0], [0], [1], [0, 0, 1, 1], [], []>} : vector<32x32xf32>, vector<32x8xf32>, vector<32x8xf32> -> vector<32x8xf32>
    %539 = vector.extract_strided_slice %478 {offsets = [0, 24], sizes = [32, 8], strides = [1, 1]} : vector<32x32xf32> to vector<32x8xf32>
    %540 = vector.extract_strided_slice %486 {offsets = [0, 24], sizes = [32, 8], strides = [1, 1]} : vector<32x32xf32> to vector<32x8xf32>
    %541 = vector.extract_strided_slice %487 {offsets = [0, 24], sizes = [32, 8], strides = [1, 1]} : vector<32x32xf32> to vector<32x8xf32>
    %cst_232 = arith.constant dense<0.000000e+00> : vector<32x32xf32>
    %542 = tpu.matmul %539, %540, %cst_232 {dimension_numbers = #tpu.dot_dimension_numbers<[1], [1], [0], [0], [0, 0, 1, 0], [], []>} : vector<32x8xf32>, vector<32x8xf32>, vector<32x32xf32> -> vector<32x32xf32>
    %cst_233 = arith.constant 0.353553385 : f32
    %543 = vector.broadcast %cst_233 : f32 to vector<32x32xf32>
    %544 = arith.mulf %542, %543 : vector<32x32xf32>
    %cst_234 = arith.constant dense<0xFF800000> : vector<32xf32>
    %545 = vector.multi_reduction <maximumf>, %544, %cst_234 [1] : vector<32x32xf32> to vector<32xf32>
    %546 = vector.shape_cast %545 : vector<32xf32> to vector<32x1xf32>
    %547 = vector.broadcast %546 : vector<32x1xf32> to vector<32x32xf32>
    %548 = arith.subf %544, %547 : vector<32x32xf32>
    %549 = math.exp %548 : vector<32x32xf32>
    %cst_235 = arith.constant dense<0.000000e+00> : vector<32xf32>
    %550 = vector.multi_reduction <add>, %549, %cst_235 [1] : vector<32x32xf32> to vector<32xf32>
    %551 = vector.shape_cast %550 : vector<32xf32> to vector<32x1xf32>
    %552 = tpu.reciprocal %551 {approx = true} : vector<32x1xf32> -> vector<32x1xf32>
    %553 = vector.broadcast %552 : vector<32x1xf32> to vector<32x32xf32>
    %554 = arith.mulf %549, %553 : vector<32x32xf32>
    %cst_236 = arith.constant dense<0.000000e+00> : vector<32x8xf32>
    %555 = tpu.matmul %554, %541, %cst_236 {dimension_numbers = #tpu.dot_dimension_numbers<[1], [0], [0], [1], [0, 0, 1, 1], [], []>} : vector<32x32xf32>, vector<32x8xf32>, vector<32x8xf32> -> vector<32x8xf32>
    %556 = tpu.concatenate %504, %521, %538, %555 in 1 : vector<32x8xf32>, vector<32x8xf32>, vector<32x8xf32>, vector<32x8xf32> -> vector<32x32xf32>
    %557 = arith.truncf %556 : vector<32x32xf32> to vector<32x32xbf16>
    %c1_237 = arith.constant 1 : index
    %c0_238 = arith.constant 0 : index
    %c0_239 = arith.constant 0 : index
    %558 = vector.load %arg12[%c1_237, %c0_238, %c0_239] : memref<2x32x32xbf16, #tpu.memory_space<vmem>>, vector<1x32x32xbf16>
    %559 = vector.shape_cast %558 : vector<1x32x32xbf16> to vector<32x32xbf16>
    %cst_240 = arith.constant dense<0.000000e+00> : vector<32x32xf32>
    %560 = tpu.matmul %557, %559, %cst_240 {dimension_numbers = #tpu.dot_dimension_numbers<[1], [0], [0], [1], [0, 0, 1, 1], [], []>} : vector<32x32xbf16>, vector<32x32xbf16>, vector<32x32xf32> -> vector<32x32xf32>
    %c1_241 = arith.constant 1 : index
    %c0_242 = arith.constant 0 : index
    %c0_243 = arith.constant 0 : index
    %561 = vector.load %arg13[%c1_241, %c0_242, %c0_243] : memref<2x1x32xf32, #tpu.memory_space<vmem>>, vector<1x1x32xf32>
    %562 = vector.shape_cast %561 : vector<1x1x32xf32> to vector<1x32xf32>
    %563 = vector.broadcast %562 : vector<1x32xf32> to vector<32x32xf32>
    %564 = arith.addf %560, %563 : vector<32x32xf32>
    %565 = arith.addf %470, %564 : vector<32x32xf32>
    %c1_244 = arith.constant 1 : index
    %c0_245 = arith.constant 0 : index
    %c0_246 = arith.constant 0 : index
    %566 = vector.load %arg20[%c1_244, %c0_245, %c0_246] : memref<2x1x32xf32, #tpu.memory_space<vmem>>, vector<1x1x32xf32>
    %567 = vector.shape_cast %566 : vector<1x1x32xf32> to vector<1x32xf32>
    %c1_247 = arith.constant 1 : index
    %c0_248 = arith.constant 0 : index
    %c0_249 = arith.constant 0 : index
    %568 = vector.load %arg21[%c1_247, %c0_248, %c0_249] : memref<2x1x32xf32, #tpu.memory_space<vmem>>, vector<1x1x32xf32>
    %569 = vector.shape_cast %568 : vector<1x1x32xf32> to vector<1x32xf32>
    %cst_250 = arith.constant dense<0.000000e+00> : vector<32xf32>
    %570 = vector.multi_reduction <add>, %565, %cst_250 [1] : vector<32x32xf32> to vector<32xf32>
    %571 = vector.shape_cast %570 : vector<32xf32> to vector<32x1xf32>
    %cst_251 = arith.constant 3.200000e+01 : f32
    %572 = vector.broadcast %cst_251 : f32 to vector<32x1xf32>
    %573 = arith.divf %571, %572 : vector<32x1xf32>
    %574 = vector.broadcast %573 : vector<32x1xf32> to vector<32x32xf32>
    %575 = arith.subf %565, %574 : vector<32x32xf32>
    %576 = arith.mulf %575, %575 : vector<32x32xf32>
    %cst_252 = arith.constant dense<0.000000e+00> : vector<32xf32>
    %577 = vector.multi_reduction <add>, %576, %cst_252 [1] : vector<32x32xf32> to vector<32xf32>
    %578 = vector.shape_cast %577 : vector<32xf32> to vector<32x1xf32>
    %cst_253 = arith.constant 3.200000e+01 : f32
    %579 = vector.broadcast %cst_253 : f32 to vector<32x1xf32>
    %580 = arith.divf %578, %579 : vector<32x1xf32>
    %581 = vector.broadcast %573 : vector<32x1xf32> to vector<32x32xf32>
    %582 = arith.subf %565, %581 : vector<32x32xf32>
    %cst_254 = arith.constant 9.99999974E-6 : f32
    %583 = vector.broadcast %cst_254 : f32 to vector<32x1xf32>
    %584 = arith.addf %580, %583 : vector<32x1xf32>
    %585 = math.rsqrt %584 : vector<32x1xf32>
    %586 = vector.broadcast %585 : vector<32x1xf32> to vector<32x32xf32>
    %587 = arith.mulf %582, %586 : vector<32x32xf32>
    %588 = vector.broadcast %567 : vector<1x32xf32> to vector<32x32xf32>
    %589 = arith.mulf %587, %588 : vector<32x32xf32>
    %590 = vector.broadcast %569 : vector<1x32xf32> to vector<32x32xf32>
    %591 = arith.addf %589, %590 : vector<32x32xf32>
    %592 = arith.truncf %591 : vector<32x32xf32> to vector<32x32xbf16>
    %cst_255 = arith.constant 0.000000e+00 : f32
    %593 = vector.broadcast %cst_255 : f32 to vector<32x32xf32>
    %c0_i32_256 = arith.constant 0 : i32
    %c512_i32_257 = arith.constant 512 : i32
    %594 = arith.muli %c0_i32_256, %c512_i32_257 : i32
    %595 = tpu.assume_multiple %594, 512 : i32
    %c1_258 = arith.constant 1 : index
    %c0_259 = arith.constant 0 : index
    %596 = arith.index_cast %595 : i32 to index
    %597 = vector.load %arg14[%c1_258, %c0_259, %596] : memref<2x32x2048xbf16, #tpu.memory_space<vmem>>, vector<1x32x512xbf16>
    %598 = vector.shape_cast %597 : vector<1x32x512xbf16> to vector<32x512xbf16>
    %cst_260 = arith.constant dense<0.000000e+00> : vector<32x512xf32>
    %599 = tpu.matmul %592, %598, %cst_260 {dimension_numbers = #tpu.dot_dimension_numbers<[1], [0], [0], [1], [0, 0, 1, 1], [], []>} : vector<32x32xbf16>, vector<32x512xbf16>, vector<32x512xf32> -> vector<32x512xf32>
    %c1_261 = arith.constant 1 : index
    %c0_262 = arith.constant 0 : index
    %600 = arith.index_cast %595 : i32 to index
    %601 = vector.load %arg15[%c1_261, %c0_262, %600] : memref<2x1x2048xf32, #tpu.memory_space<vmem>>, vector<1x1x512xf32>
    %602 = vector.shape_cast %601 : vector<1x1x512xf32> to vector<1x512xf32>
    %603 = vector.broadcast %602 : vector<1x512xf32> to vector<32x512xf32>
    %604 = arith.addf %599, %603 : vector<32x512xf32>
    %605 = arith.truncf %604 : vector<32x512xf32> to vector<32x512xbf16>
    %cst_263 = arith.constant 0.000000e+00 : bf16
    %606 = vector.broadcast %cst_263 : bf16 to vector<32x512xbf16>
    %607 = arith.maximumf %605, %606 : vector<32x512xbf16>
    %c1_264 = arith.constant 1 : index
    %608 = arith.index_cast %595 : i32 to index
    %c0_265 = arith.constant 0 : index
    %609 = vector.load %arg16[%c1_264, %608, %c0_265] : memref<2x2048x32xbf16, #tpu.memory_space<vmem>>, vector<1x512x32xbf16>
    %610 = vector.shape_cast %609 : vector<1x512x32xbf16> to vector<512x32xbf16>
    %cst_266 = arith.constant dense<0.000000e+00> : vector<32x32xf32>
    %611 = tpu.matmul %607, %610, %cst_266 {dimension_numbers = #tpu.dot_dimension_numbers<[1], [0], [0], [1], [0, 0, 1, 1], [], []>} : vector<32x512xbf16>, vector<512x32xbf16>, vector<32x32xf32> -> vector<32x32xf32>
    %612 = arith.addf %593, %611 : vector<32x32xf32>
    %c1_i32_267 = arith.constant 1 : i32
    %c512_i32_268 = arith.constant 512 : i32
    %613 = arith.muli %c1_i32_267, %c512_i32_268 : i32
    %614 = tpu.assume_multiple %613, 512 : i32
    %c1_269 = arith.constant 1 : index
    %c0_270 = arith.constant 0 : index
    %615 = arith.index_cast %614 : i32 to index
    %616 = vector.load %arg14[%c1_269, %c0_270, %615] : memref<2x32x2048xbf16, #tpu.memory_space<vmem>>, vector<1x32x512xbf16>
    %617 = vector.shape_cast %616 : vector<1x32x512xbf16> to vector<32x512xbf16>
    %cst_271 = arith.constant dense<0.000000e+00> : vector<32x512xf32>
    %618 = tpu.matmul %592, %617, %cst_271 {dimension_numbers = #tpu.dot_dimension_numbers<[1], [0], [0], [1], [0, 0, 1, 1], [], []>} : vector<32x32xbf16>, vector<32x512xbf16>, vector<32x512xf32> -> vector<32x512xf32>
    %c1_272 = arith.constant 1 : index
    %c0_273 = arith.constant 0 : index
    %619 = arith.index_cast %614 : i32 to index
    %620 = vector.load %arg15[%c1_272, %c0_273, %619] : memref<2x1x2048xf32, #tpu.memory_space<vmem>>, vector<1x1x512xf32>
    %621 = vector.shape_cast %620 : vector<1x1x512xf32> to vector<1x512xf32>
    %622 = vector.broadcast %621 : vector<1x512xf32> to vector<32x512xf32>
    %623 = arith.addf %618, %622 : vector<32x512xf32>
    %624 = arith.truncf %623 : vector<32x512xf32> to vector<32x512xbf16>
    %cst_274 = arith.constant 0.000000e+00 : bf16
    %625 = vector.broadcast %cst_274 : bf16 to vector<32x512xbf16>
    %626 = arith.maximumf %624, %625 : vector<32x512xbf16>
    %c1_275 = arith.constant 1 : index
    %627 = arith.index_cast %614 : i32 to index
    %c0_276 = arith.constant 0 : index
    %628 = vector.load %arg16[%c1_275, %627, %c0_276] : memref<2x2048x32xbf16, #tpu.memory_space<vmem>>, vector<1x512x32xbf16>
    %629 = vector.shape_cast %628 : vector<1x512x32xbf16> to vector<512x32xbf16>
    %cst_277 = arith.constant dense<0.000000e+00> : vector<32x32xf32>
    %630 = tpu.matmul %626, %629, %cst_277 {dimension_numbers = #tpu.dot_dimension_numbers<[1], [0], [0], [1], [0, 0, 1, 1], [], []>} : vector<32x512xbf16>, vector<512x32xbf16>, vector<32x32xf32> -> vector<32x32xf32>
    %631 = arith.addf %612, %630 : vector<32x32xf32>
    %c2_i32_278 = arith.constant 2 : i32
    %c512_i32_279 = arith.constant 512 : i32
    %632 = arith.muli %c2_i32_278, %c512_i32_279 : i32
    %633 = tpu.assume_multiple %632, 512 : i32
    %c1_280 = arith.constant 1 : index
    %c0_281 = arith.constant 0 : index
    %634 = arith.index_cast %633 : i32 to index
    %635 = vector.load %arg14[%c1_280, %c0_281, %634] : memref<2x32x2048xbf16, #tpu.memory_space<vmem>>, vector<1x32x512xbf16>
    %636 = vector.shape_cast %635 : vector<1x32x512xbf16> to vector<32x512xbf16>
    %cst_282 = arith.constant dense<0.000000e+00> : vector<32x512xf32>
    %637 = tpu.matmul %592, %636, %cst_282 {dimension_numbers = #tpu.dot_dimension_numbers<[1], [0], [0], [1], [0, 0, 1, 1], [], []>} : vector<32x32xbf16>, vector<32x512xbf16>, vector<32x512xf32> -> vector<32x512xf32>
    %c1_283 = arith.constant 1 : index
    %c0_284 = arith.constant 0 : index
    %638 = arith.index_cast %633 : i32 to index
    %639 = vector.load %arg15[%c1_283, %c0_284, %638] : memref<2x1x2048xf32, #tpu.memory_space<vmem>>, vector<1x1x512xf32>
    %640 = vector.shape_cast %639 : vector<1x1x512xf32> to vector<1x512xf32>
    %641 = vector.broadcast %640 : vector<1x512xf32> to vector<32x512xf32>
    %642 = arith.addf %637, %641 : vector<32x512xf32>
    %643 = arith.truncf %642 : vector<32x512xf32> to vector<32x512xbf16>
    %cst_285 = arith.constant 0.000000e+00 : bf16
    %644 = vector.broadcast %cst_285 : bf16 to vector<32x512xbf16>
    %645 = arith.maximumf %643, %644 : vector<32x512xbf16>
    %c1_286 = arith.constant 1 : index
    %646 = arith.index_cast %633 : i32 to index
    %c0_287 = arith.constant 0 : index
    %647 = vector.load %arg16[%c1_286, %646, %c0_287] : memref<2x2048x32xbf16, #tpu.memory_space<vmem>>, vector<1x512x32xbf16>
    %648 = vector.shape_cast %647 : vector<1x512x32xbf16> to vector<512x32xbf16>
    %cst_288 = arith.constant dense<0.000000e+00> : vector<32x32xf32>
    %649 = tpu.matmul %645, %648, %cst_288 {dimension_numbers = #tpu.dot_dimension_numbers<[1], [0], [0], [1], [0, 0, 1, 1], [], []>} : vector<32x512xbf16>, vector<512x32xbf16>, vector<32x32xf32> -> vector<32x32xf32>
    %650 = arith.addf %631, %649 : vector<32x32xf32>
    %c3_i32_289 = arith.constant 3 : i32
    %c512_i32_290 = arith.constant 512 : i32
    %651 = arith.muli %c3_i32_289, %c512_i32_290 : i32
    %652 = tpu.assume_multiple %651, 512 : i32
    %c1_291 = arith.constant 1 : index
    %c0_292 = arith.constant 0 : index
    %653 = arith.index_cast %652 : i32 to index
    %654 = vector.load %arg14[%c1_291, %c0_292, %653] : memref<2x32x2048xbf16, #tpu.memory_space<vmem>>, vector<1x32x512xbf16>
    %655 = vector.shape_cast %654 : vector<1x32x512xbf16> to vector<32x512xbf16>
    %cst_293 = arith.constant dense<0.000000e+00> : vector<32x512xf32>
    %656 = tpu.matmul %592, %655, %cst_293 {dimension_numbers = #tpu.dot_dimension_numbers<[1], [0], [0], [1], [0, 0, 1, 1], [], []>} : vector<32x32xbf16>, vector<32x512xbf16>, vector<32x512xf32> -> vector<32x512xf32>
    %c1_294 = arith.constant 1 : index
    %c0_295 = arith.constant 0 : index
    %657 = arith.index_cast %652 : i32 to index
    %658 = vector.load %arg15[%c1_294, %c0_295, %657] : memref<2x1x2048xf32, #tpu.memory_space<vmem>>, vector<1x1x512xf32>
    %659 = vector.shape_cast %658 : vector<1x1x512xf32> to vector<1x512xf32>
    %660 = vector.broadcast %659 : vector<1x512xf32> to vector<32x512xf32>
    %661 = arith.addf %656, %660 : vector<32x512xf32>
    %662 = arith.truncf %661 : vector<32x512xf32> to vector<32x512xbf16>
    %cst_296 = arith.constant 0.000000e+00 : bf16
    %663 = vector.broadcast %cst_296 : bf16 to vector<32x512xbf16>
    %664 = arith.maximumf %662, %663 : vector<32x512xbf16>
    %c1_297 = arith.constant 1 : index
    %665 = arith.index_cast %652 : i32 to index
    %c0_298 = arith.constant 0 : index
    %666 = vector.load %arg16[%c1_297, %665, %c0_298] : memref<2x2048x32xbf16, #tpu.memory_space<vmem>>, vector<1x512x32xbf16>
    %667 = vector.shape_cast %666 : vector<1x512x32xbf16> to vector<512x32xbf16>
    %cst_299 = arith.constant dense<0.000000e+00> : vector<32x32xf32>
    %668 = tpu.matmul %664, %667, %cst_299 {dimension_numbers = #tpu.dot_dimension_numbers<[1], [0], [0], [1], [0, 0, 1, 1], [], []>} : vector<32x512xbf16>, vector<512x32xbf16>, vector<32x32xf32> -> vector<32x32xf32>
    %669 = arith.addf %650, %668 : vector<32x32xf32>
    %c4_i32_300 = arith.constant 4 : i32
    %670 = arith.addf %591, %669 : vector<32x32xf32>
    %c1_301 = arith.constant 1 : index
    %c0_302 = arith.constant 0 : index
    %c0_303 = arith.constant 0 : index
    %671 = vector.load %arg17[%c1_301, %c0_302, %c0_303] : memref<2x1x32xf32, #tpu.memory_space<vmem>>, vector<1x1x32xf32>
    %672 = vector.shape_cast %671 : vector<1x1x32xf32> to vector<1x32xf32>
    %673 = vector.broadcast %672 : vector<1x32xf32> to vector<32x32xf32>
    %674 = arith.addf %670, %673 : vector<32x32xf32>
    %c1_304 = arith.constant 1 : index
    %c0_305 = arith.constant 0 : index
    %c0_306 = arith.constant 0 : index
    %675 = vector.load %arg22[%c1_304, %c0_305, %c0_306] : memref<2x1x32xf32, #tpu.memory_space<vmem>>, vector<1x1x32xf32>
    %676 = vector.shape_cast %675 : vector<1x1x32xf32> to vector<1x32xf32>
    %c1_307 = arith.constant 1 : index
    %c0_308 = arith.constant 0 : index
    %c0_309 = arith.constant 0 : index
    %677 = vector.load %arg23[%c1_307, %c0_308, %c0_309] : memref<2x1x32xf32, #tpu.memory_space<vmem>>, vector<1x1x32xf32>
    %678 = vector.shape_cast %677 : vector<1x1x32xf32> to vector<1x32xf32>
    %cst_310 = arith.constant dense<0.000000e+00> : vector<32xf32>
    %679 = vector.multi_reduction <add>, %674, %cst_310 [1] : vector<32x32xf32> to vector<32xf32>
    %680 = vector.shape_cast %679 : vector<32xf32> to vector<32x1xf32>
    %cst_311 = arith.constant 3.200000e+01 : f32
    %681 = vector.broadcast %cst_311 : f32 to vector<32x1xf32>
    %682 = arith.divf %680, %681 : vector<32x1xf32>
    %683 = vector.broadcast %682 : vector<32x1xf32> to vector<32x32xf32>
    %684 = arith.subf %674, %683 : vector<32x32xf32>
    %685 = arith.mulf %684, %684 : vector<32x32xf32>
    %cst_312 = arith.constant dense<0.000000e+00> : vector<32xf32>
    %686 = vector.multi_reduction <add>, %685, %cst_312 [1] : vector<32x32xf32> to vector<32xf32>
    %687 = vector.shape_cast %686 : vector<32xf32> to vector<32x1xf32>
    %cst_313 = arith.constant 3.200000e+01 : f32
    %688 = vector.broadcast %cst_313 : f32 to vector<32x1xf32>
    %689 = arith.divf %687, %688 : vector<32x1xf32>
    %690 = vector.broadcast %682 : vector<32x1xf32> to vector<32x32xf32>
    %691 = arith.subf %674, %690 : vector<32x32xf32>
    %cst_314 = arith.constant 9.99999974E-6 : f32
    %692 = vector.broadcast %cst_314 : f32 to vector<32x1xf32>
    %693 = arith.addf %689, %692 : vector<32x1xf32>
    %694 = math.rsqrt %693 : vector<32x1xf32>
    %695 = vector.broadcast %694 : vector<32x1xf32> to vector<32x32xf32>
    %696 = arith.mulf %691, %695 : vector<32x32xf32>
    %697 = vector.broadcast %676 : vector<1x32xf32> to vector<32x32xf32>
    %698 = arith.mulf %696, %697 : vector<32x32xf32>
    %699 = vector.broadcast %678 : vector<1x32xf32> to vector<32x32xf32>
    %700 = arith.addf %698, %699 : vector<32x32xf32>
    %c0_315 = arith.constant 0 : index
    %c0_316 = arith.constant 0 : index
    %701 = vector.load %arg24[%c0_315, %c0_316] : memref<32x128xf32, #tpu.memory_space<vmem>>, vector<32x128xf32>
    %cst_317 = arith.constant dense<0.000000e+00> : vector<32x128xf32>
    %702 = tpu.matmul %700, %701, %cst_317 {dimension_numbers = #tpu.dot_dimension_numbers<[1], [0], [0], [1], [0, 0, 1, 1], [], []>} : vector<32x32xf32>, vector<32x128xf32>, vector<32x128xf32> -> vector<32x128xf32>
    %c0_318 = arith.constant 0 : index
    %c0_319 = arith.constant 0 : index
    %703 = vector.load %arg25[%c0_318, %c0_319] : memref<1x128xf32, #tpu.memory_space<vmem>>, vector<1x128xf32>
    %704 = vector.broadcast %703 : vector<1x128xf32> to vector<32x128xf32>
    %705 = arith.addf %702, %704 : vector<32x128xf32>
    %706 = tpu.iota {dimensions = array<i32: 1>} : vector<32x128xi32>
    %c16_i32 = arith.constant 16 : i32
    %707 = vector.broadcast %c16_i32 : i32 to vector<32x128xi32>
    %708 = arith.cmpi slt, %706, %707 : vector<32x128xi32>
    %cst_320 = arith.constant 0xFF800000 : f32
    %709 = vector.broadcast %cst_320 : f32 to vector<32x128xf32>
    %710 = arith.select %708, %705, %709 : vector<32x128xi1>, vector<32x128xf32>
    %cst_321 = arith.constant dense<0xFF800000> : vector<32xf32>
    %711 = vector.multi_reduction <maximumf>, %710, %cst_321 [1] : vector<32x128xf32> to vector<32xf32>
    %712 = vector.shape_cast %711 : vector<32xf32> to vector<32x1xf32>
    %713 = vector.broadcast %712 : vector<32x1xf32> to vector<32x128xf32>
    %714 = arith.subf %710, %713 : vector<32x128xf32>
    %715 = math.exp %714 : vector<32x128xf32>
    %cst_322 = arith.constant dense<0.000000e+00> : vector<32xf32>
    %716 = vector.multi_reduction <add>, %715, %cst_322 [1] : vector<32x128xf32> to vector<32xf32>
    %717 = vector.shape_cast %716 : vector<32xf32> to vector<32x1xf32>
    %718 = vector.broadcast %717 : vector<32x1xf32> to vector<32x128xf32>
    %719 = arith.divf %715, %718 : vector<32x128xf32>
    %720 = arith.select %708, %719, %705 : vector<32x128xi1>, vector<32x128xf32>
    %c0_323 = arith.constant 0 : index
    %c0_324 = arith.constant 0 : index
    %721 = vector.load %arg26[%c0_323, %c0_324] : memref<32x128xf32, #tpu.memory_space<vmem>>, vector<32x128xf32>
    tpu.vector_store %arg26[%c0_323, %c0_324], %720 {strides = array<i32>} : memref<32x128xf32, #tpu.memory_space<vmem>>, vector<32x128xf32>,
    return
  }
}

</mosaic_0001>

<bundles_post_ra>
// kernel: transaction_forward.1
= control target key start
LH: loop header
LB: loop body
LE: loop exit
PB: predicated region body
PF: predicated region fallthrough
CT: control target
= control target key end

     0   :  { %vm113_vm0 = vcmask 1044480   ;;  %vm100_vm1 = vcmask 39936   ;;  %vm222_vm2 = vcmask 64512   ;;  %vm252_vm3 = vcmask 261120   ;;  %s16993_s29 = smov 64   ;;  %s16991_s30 = smov 56   ;;  %s16951_s2 = inlined_call_operand.vmem [shape: f32[5,24], index: 2, kind: input, shape index: {}]   ;;  %s16952_s1 = inlined_call_operand.vmem [shape: f32[32,5], index: 1, kind: input, shape index: {}]   ;;  %s16953_s4 = inlined_call_operand.vmem [shape: bf16[2,32,96], index: 4, kind: input, shape index: {}]   ;;  %s16954_s3 = inlined_call_operand.vmem [shape: f32[1,24], index: 3, kind: input, shape index: {}]   ;;  %s16955_s0 = inlined_call_operand.vmem [shape: f32[32,8], index: 0, kind: input, shape index: {}]   ;;  %s16956_s5 = inlined_call_operand.vmem [shape: f32[2,1,96], index: 5, kind: input, shape index: {}]   ;;  %s16957_s6 = inlined_call_operand.vmem [shape: bf16[2,32,32], index: 6, kind: input, shape index: {}]   ;;  %s16958_s10 = inlined_call_operand.vmem [shape: bf16[2,32,64], index: 10, kind: input, shape index: {}]   ;;  %s16959_s8 = inlined_call_operand.vmem [shape: bf16[2,32,32], index: 8, kind: input, shape index: {}]   ;;  %s16960_s7 = inlined_call_operand.vmem [shape: f32[2,1,32], index: 7, kind: input, shape index: {}]   ;;  %s16961_s11 = inlined_call_operand.vmem [shape: f32[2,1,64], index: 11, kind: input, shape index: {}]   ;;  %s16962_s18 = inlined_call_operand.vmem [shape: f32[2,1,32], index: 18, kind: input, shape index: {}]   ;;  %s16963_s19 = inlined_call_operand.vmem [shape: f32[2,1,32], index: 19, kind: input, shape index: {}]   ;;  %s16964_s9 = inlined_call_operand.vmem [shape: f32[2,1,32], index: 9, kind: input, shape index: {}]   ;;  %s16965_s12 = inlined_call_operand.vmem [shape: bf16[2,32,32], index: 12, kind: input, shape index: {}]   ;;  %s16966_s13 = inlined_call_operand.vmem [shape: f32[2,1,32], index: 13, kind: input, shape index: {}]   ;;  %s16967_s14 = inlined_call_operand.vmem [shape: bf16[2,32,2048], index: 14, kind: input, shape index: {}]   ;;  %s16968_s16 = inlined_call_operand.vmem [shape: bf16[2,2048,32], index: 16, kind: input, shape index: {}]   ;;  %s16969_s20 = inlined_call_operand.vmem [shape: f32[2,1,32], index: 20, kind: input, shape index: {}]   ;;  %s16970_s21 = inlined_call_operand.vmem [shape: f32[2,1,32], index: 21, kind: input, shape index: {}]   ;;  %s16971_s15 = inlined_call_operand.vmem [shape: f32[2,1,2048], index: 15, kind: input, shape index: {}]   ;;  %s16972_s17 = inlined_call_operand.vmem [shape: f32[2,1,32], index: 17, kind: input, shape index: {}]   ;;  %s16973_s22 = inlined_call_operand.vmem [shape: f32[2,1,32], index: 22, kind: input, shape index: {}]   ;;  %s16974_s23 = inlined_call_operand.vmem [shape: f32[2,1,32], index: 23, kind: input, shape index: {}]   ;;  %s16975_s24 = inlined_call_operand.vmem [shape: f32[32,128], index: 24, kind: input, shape index: {}]   ;;  %s16976_s25 = inlined_call_operand.vmem [shape: f32[1,128], index: 25, kind: input, shape index: {}]   ;;  %s16977_s26 = inlined_call_operand.vmem [shape: f32[32,128], index: 26, kind: output, shape index: {}]  }
   0x1   :  { %17025 = sst [smem:[#allocation2_spill]] %s16951_s2  ;;  %s17009_s2 = smov 88   ;;  %vm1452_vm4 = vcmask 130048   ;;  %vm1457_vm5 = vcmask 195584  }
   0x2   :  { %17026 = sst [smem:[#allocation3_spill]] %s16952_s1  ;;  %s17001_s27 = smov 104  }
   0x3   :  { %17027 = sst [smem:[#allocation4_spill]] %s16953_s4  ;;  %s17003_s4 = smov 80  }
   0x4   :  { %17028 = sst [smem:[#allocation5_spill]] %s16954_s3  ;;  %s16987_s3 = smov 40  }
   0x5   :  { %17029 = sst [smem:[#allocation6_spill]] %s16955_s0 }
   0x6   :  { %17030 = sst [smem:[#allocation7_spill]] %s16956_s5  ;;  %s17007_s5 = smov 112  }
   0x7   :  { %17031 = sst [smem:[#allocation8_spill]] %s16957_s6  ;;  %s16999_s6 = smov 72  }
   0x8   :  { %17032 = sst [smem:[#allocation9_spill]] %s16958_s10 }
   0x9   :  { %17033 = sst [smem:[#allocation10_spill]] %s16959_s8 }
   0xa   :  { %17034 = sst [smem:[#allocation11_spill]] %s16960_s7 }
   0xb   :  { %17035 = sst [smem:[#allocation12_spill]] %s16961_s11  ;;  %s16989_s11 = smov 48  }
   0xc   :  { %17036 = sst [smem:[#allocation13_spill]] %s16962_s18 }
   0xd   :  { %17037 = sst [smem:[#allocation14_spill]] %s16963_s19 }
   0xe   :  { %17038 = sst [smem:[#allocation15_spill]] %s16964_s9 }
   0xf   :  { %17039 = sst [smem:[#allocation16_spill]] %s16965_s12 }
  0x10   :  { %17040 = sst [smem:[#allocation17_spill]] %s16966_s13 }
  0x11   :  { %17041 = sst [smem:[#allocation18_spill]] %s16969_s20 }
  0x12   :  { %17042 = sst [smem:[#allocation19_spill]] %s16970_s21 }
  0x13   :  { %17043 = sst [smem:[#allocation20_spill]] %s16975_s24 }
  0x14   :  { %17044 = sst [smem:[#allocation21_spill]] %s16976_s25 }
  0x15   :  { %17045 = sst [smem:[#allocation22_spill]] %s16977_s26 }
  0x16   :  { %s17046_s10 = sld [smem:[#allocation2_spill]] }
  0x17   :  { %s17047_s0 = sld [smem:[#allocation3_spill]] }
  0x18   :  { %s17048_s1 = sld [smem:[#allocation4_spill]] }
  0x19   :  { %s17049_s8 = sld [smem:[#allocation5_spill]] }
  0x1a   :  { %s17050_s7 = sld [smem:[#allocation6_spill]] }
  0x1b   :  { %s17051_s28 = sld [smem:[#allocation7_spill]] }
  0x1c   :  { %v92_v0 = vld [vmem:[%s17046_s10] sm:$0x1f]  ;;  %s16995_s10 = smov 16   ;;  %s17078_s24 = sld [smem:[#allocation20_spill]] }
  0x1d   :  { %v88_v1 = vld [vmem:[%s17047_s0] sm:$0xff]  ;;  %v89_v2 = vld [vmem:[%s17047_s0 + $0x8] sm:$0xff]  ;;  %12657 = vmatprep.subr.msk.mxu0 %vm113_vm0, %v92_v0  ;;  %v90_v3 = vld [vmem:[%s17047_s0 + $0x10] sm:$0xff] }
  0x1e   :  { %12659 = vmatprep.mubr.msk.f32.mxu0 %vm100_vm1, %v88_v1  ;;  %12658 = vmatpush3.msk.msra.mxu0 %vm113_vm0, %v92_v0  ;;  %v91_v4 = vld [vmem:[%s17047_s0 + $0x18] sm:$0xff]  ;;  %v13342_v5 = vld [vmem:[%s17048_s1 + $0x8] sm:$0xff]   ;;  %v13343_v6 = vld [vmem:[%s17048_s1] sm:$0xff]   ;;  %s16997_s0 = smov 8  }
  0x1f   :  { %12660 = vmatmul.mubr.msk.f32.vlgmr.msra.gmra.mxu0 %vm100_vm1, %v89_v2  ;;  %12665 = vmatprep.subr.bf16.mxu1 %v13342_v5  ;;  %v10738_v8 = vld [vmem:[%s17049_s8] ss:$0 sm:$0xff]  ;;  %s17013_s8 = smov 96  }
  0x20   :  { %12662 = vmatprep.mubr.msk.f32.mxu0 %vm100_vm1, %v90_v3  ;;  %12666 = vmatpush3.bf16.msra.mxu1 %v13342_v5  ;;  %v84_v21 = vld [vmem:[%s17050_s7] sm:$0xff]  ;;  %v85_v22 = vld [vmem:[%s17050_s7 + $0x8] sm:$0xff]  ;;  %v86_v27 = vld [vmem:[%s17050_s7 + $0x10] sm:$0xff] }
  0x21   :  { %12667 = vmatprep.subr.bf16.mxu1 %v13343_v6  ;;  %v87_v29 = vld [vmem:[%s17050_s7 + $0x18] sm:$0xff]  ;;  %v10744_v34 = vld [vmem:[%s17051_s28] ss:$0 sm:$0xff]  ;;  %s17011_s7 = smov 120  }
  0x23   :  { %12663 = vmatmul.mubr.msk.f32.gmra.mxu0 %vm100_vm1, %v91_v4 }
  0x24   :  { %12668 = vmatpush3.bf16.msra.mxu1 %v13343_v6 }
  0xdf   :  { %v12661_v7 = vpop.f32.mrf.mxu0 }
  0xe0   :  { %v189_v12 = vadd.f32 %v12661_v7, %v10738_v8 }
  0xe1   :  { %v183_v9 = vpop.f32.mrf.mxu0 }
  0xe2   :  { %v184_v10 = vadd.f32 %v10738_v8, %v183_v9  ;;  %v203_v16 = vmax.f32 %v189_v12, 0.0 }
  0xe3   :  { %v12664_v11 = vpop.f32.mrf.mxu0 }
  0xe4   :  { %v202_v13 = vmax.f32 %v184_v10, 0.0  ;;  %v199_v17 = vadd.f32 %v12664_v11, %v10738_v8 }
  0xe5   :  { %v193_v14 = vpop.f32.mrf.mxu0 }
  0xe6   :  { %v194_v15 = vadd.f32 %v10738_v8, %v193_v14  ;;  %210 = vrot.lane.b32.xlu0 %v202_v13, %s16997_s0  ;;  %v205_v19 = vmax.f32 %v199_v17, 0.0 }
  0xe8   :  { %v204_v18 = vmax.f32 %v194_v15, 0.0 }
  0xea   :  { %214 = vrot.lane.b32.xlu1 %v204_v18, %s16997_s0  ;;  %212 = vrot.lane.b32.xlu0 %v203_v16, %s16997_s0 }
  0xee   :  { %216 = vrot.lane.b32.xlu1 %v205_v19, %s16997_s0 }
 0x158   :  { %v211_v20 = vpop.permute.xlu0 %210 }
 0x159   :  { %v14123_v25 = vsel %vm222_vm2, %v84_v21, %v211_v20 }
 0x15c   :  { %v215_v23 = vpop.permute.xlu1 %214  ;;  %v213_v24 = vpop.permute.xlu0 %212 }
 0x15d   :  { %v14126_v26 = vsel %vm222_vm2, %v85_v22, %v213_v24  ;;  %v14141_v31 = vsel %vm222_vm2, %v86_v27, %v215_v23 }
 0x15e   :  { %v14133_v28 = vpack.c.bf16 %v14126_v26, %v14123_v25 }
 0x160   :  { %v217_v30 = vpop.permute.xlu1 %216  ;;  %12669 = vmatprep.mubr.msk.bf16.mxu1 %vm252_vm3, %v14133_v28 }
 0x161   :  { %v14144_v32 = vsel %vm222_vm2, %v87_v29, %v217_v30 }
 0x162   :  { %v14148_v33 = vpack.c.bf16 %v14144_v32, %v14141_v31 }
 0x164   :  { %12670 = vmatmul.mubr.msk.bf16.vlgmr.msra.gmra.mxu1 %vm252_vm3, %v14148_v33 }
 0x224   :  { %v12671_v35 = vpop.f32.mrf.mxu1 }
 0x225   :  { %v14155_v36 = vadd.f32 %v12671_v35, %v10744_v34 }
 0x226   :  { %v293_v37 = vpop.f32.mrf.mxu1 }
 0x227   :  { %v14157_v38 = vadd.f32 %v10744_v34, %v293_v37  ;;  %316 = vrot.lane.b32.xlu1 %v14155_v36, %s17013_s8 }
 0x228   :  { %v12672_v39 = vpop.f32.mrf.mxu1 }
 0x229   :  { %v14161_v40 = vadd.f32 %v12672_v39, %v10744_v34  ;;  %12681 = vmatprep.mubr.msk.f32.mxu0 %vm222_vm2, %v14157_v38 }
 0x22a   :  { %v296_v41 = vpop.f32.mrf.mxu1 }
 0x22b   :  { %318 = vrot.lane.b32.xlu0 %v14161_v40, %s17013_s8  ;;  %312 = vrot.lane.b32.xlu1 %v14157_v38, %s17013_s8  ;;  %v14169_v42 = vadd.f32 %v10744_v34, %v296_v41 }
 0x22f   :  { %314 = vrot.lane.b32.xlu0 %v14169_v42, %s17013_s8  ;;  %475 = vrot.lane.b32.xlu1 %v14161_v40, %s16993_s29 }
 0x233   :  { %473 = vrot.lane.b32.xlu0 %v14155_v36, %s16993_s29  ;;  %469 = vrot.lane.b32.xlu1 %v14157_v38, %s16993_s29 }
 0x237   :  { %471 = vrot.lane.b32.xlu1 %v14169_v42, %s16993_s29  ;;  %s17059_s29 = smov 80  }
 0x299   :  { %v317_v43 = vpop.permute.xlu1 %316 }
 0x29d   :  { %v319_v44 = vpop.permute.xlu0 %318  ;;  %v313_v45 = vpop.permute.xlu1 %312 }
 0x29e   :  { %12673 = vmatprep.subr.msk.mxu0 %vm222_vm2, %v319_v44 }
 0x29f   :  { %12674 = vmatpush3.xpose.msk.msra.mxu0 %vm222_vm2, %v319_v44 }
 0x2a0   :  { %12675 = vmatprep.subr.msk.mxu0 %vm222_vm2, %v317_v43 }
 0x2a1   :  { %v315_v46 = vpop.permute.xlu0 %314  ;;  %v476_v47 = vpop.permute.xlu1 %475 }
 0x2a2   :  { %12687 = vmatprep.subr.mxu1 %v476_v47 }
 0x2a3   :  { %12676 = vmatpush3.xpose.msk.msra.mxu0 %vm222_vm2, %v317_v43  ;;  %12688 = vmatpush3.msra.mxu1 %v476_v47 }
 0x2a4   :  { %12677 = vmatprep.subr.msk.mxu0 %vm222_vm2, %v315_v46 }
 0x2a5   :  { %v474_v48 = vpop.permute.xlu0 %473  ;;  %v470_v49 = vpop.permute.xlu1 %469 }
 0x2a6   :  { %12689 = vmatprep.subr.mxu1 %v474_v48 }
 0x2a7   :  { %12678 = vmatpush3.xpose.msk.msra.mxu0 %vm222_vm2, %v315_v46  ;;  %12690 = vmatpush3.msra.mxu1 %v474_v48 }
 0x2a8   :  { %12679 = vmatprep.subr.msk.mxu0 %vm222_vm2, %v313_v45 }
 0x2a9   :  { %v472_v50 = vpop.permute.xlu1 %471 }
 0x2aa   :  { %12691 = vmatprep.subr.mxu1 %v472_v50 }
 0x2ab   :  { %12680 = vmatpush3.xpose.msk.msra.mxu0 %vm222_vm2, %v313_v45  ;;  %12692 = vmatpush3.msra.mxu1 %v472_v50 }
 0x2ac   :  { %12693 = vmatprep.subr.mxu1 %v470_v49 }
 0x2ad   :  { %12694 = vmatpush3.msra.mxu1 %v470_v49 }
 0x2ae   :  { %12682 = vmatmul.mubr.msk.f32.vlgmr.msra.gmra.mxu0 %vm222_vm2, %v14169_v42 }
 0x2af   :  { %12684 = vmatprep.mubr.msk.f32.mxu0 %vm222_vm2, %v14155_v36 }
 0x2b2   :  { %12685 = vmatmul.mubr.msk.f32.gmra.mxu0 %vm222_vm2, %v14161_v40 }
 0x36e   :  { %v12683_v51 = vpop.f32.mrf.mxu0 }
 0x36f   :  { %v422_v52 = vmul.f32 0.35355338, %v12683_v51 }
 0x370   :  { %v402_v53 = vpop.f32.mrf.mxu0 }
 0x371   :  { %v421_v54 = vmul.f32 0.35355338, %v402_v53  ;;  %v428_v55 = vsel %vm252_vm3, %v422_v52, -inf }
 0x372   :  { %429 = vmax.xlane.f32.xlu1 %v428_v55  ;;  %v12686_v56 = vpop.f32.mrf.mxu0 }
 0x373   :  { %v424_v57 = vmul.f32 0.35355338, %v12686_v56  ;;  %v425_v58 = vsel %vm252_vm3, %v421_v54, -inf }
 0x374   :  { %426 = vmax.xlane.f32.xlu0 %v425_v58  ;;  %v412_v59 = vpop.f32.mrf.mxu0 }
 0x375   :  { %v423_v60 = vmul.f32 0.35355338, %v412_v59  ;;  %v434_v61 = vsel %vm252_vm3, %v424_v57, -inf }
 0x377   :  { %v431_v62 = vsel %vm252_vm3, %v423_v60, -inf }
 0x378   :  { %435 = vmax.xlane.f32.xlu0 %v434_v61 }
 0x37c   :  { %432 = vmax.xlane.f32.xlu0 %v431_v62 }
 0x383   :  { %590 = vrot.lane.b32.xlu1 %v14155_v36, %s17009_s2 }
 0x392   :  { %592 = vrot.lane.b32.xlu0 %v14161_v40, %s17009_s2 }
 0x3fb   :  { %v430_v63 = vpop.xlane.xlu1 %429 }
 0x3fc   :  { %v438_v0 = vsub.f32 %v422_v52, %v430_v63 }
 0x3fd   :  { %v427_v1 = vpop.xlane.xlu0 %426 }
 0x3fe   :  { %v443_v2 = vmul.f32 1.442695, %v438_v0  ;;  %v437_v3 = vsub.f32 %v421_v54, %v427_v1 }
 0x3ff   :  { %v591_v20 = vpop.permute.xlu1 %590 }
 0x400   :  { %13618 = vpow2.f32 %v443_v2  ;;  %v441_v4 = vmul.f32 1.442695, %v437_v3 }
 0x401   :  { %v436_v5 = vpop.xlane.xlu0 %435 }
 0x402   :  { %13620 = vpow2.f32 %v441_v4  ;;  %v440_v12 = vsub.f32 %v424_v57, %v436_v5 }
 0x404   :  { %v447_v14 = vmul.f32 1.442695, %v440_v12 }
 0x405   :  { %v433_v6 = vpop.xlane.xlu0 %432 }
 0x406   :  { %v439_v13 = vsub.f32 %v423_v60, %v433_v6  ;;  %13622 = vpow2.f32 %v447_v14 }
 0x408   :  { %v445_v15 = vmul.f32 1.442695, %v439_v13 }
 0x409   :  { %v593_v7 = vpop.permute.xlu0 %592 }
 0x40a   :  { %12701 = vmatprep.subr.msk.mxu1 %vm222_vm2, %v593_v7  ;;  %13624 = vpow2.f32 %v445_v15 }
 0x40d   :  { %v13619_v8 = vpop.eup %13618 }
 0x40e   :  { %v452_v9 = vsel %vm252_vm3, %v13619_v8, 0.0 }
 0x40f   :  { %v13621_v10 = vpop.eup %13620  ;;  %453 = vadd.xlane.f32.xlu0 %v452_v9 }
 0x410   :  { %v449_v11 = vsel %vm252_vm3, %v13621_v10, 0.0 }
 0x411   :  { %450 = vadd.xlane.f32.xlu1 %v449_v11 }
 0x413   :  { %v13623_v16 = vpop.eup %13622 }
 0x414   :  { %v458_v18 = vsel %vm252_vm3, %v13623_v16, 0.0 }
 0x417   :  { %v13625_v17 = vpop.eup %13624 }
 0x418   :  { %v455_v19 = vsel %vm252_vm3, %v13625_v17, 0.0 }
 0x422   :  { %586 = vrot.lane.b32.xlu1 %v14157_v38, %s17009_s2 }
 0x425   :  { %588 = vrot.lane.b32.xlu0 %v14169_v42, %s17009_s2  ;;  %s17056_s2 = sld [smem:[#allocation12_spill]] }
 0x444   :  { %459 = vadd.xlane.f32.xlu0 %v458_v18 }
 0x446   :  { %456 = vadd.xlane.f32.xlu1 %v455_v19 }
 0x457   :  { %580 = vrot.lane.b32.xlu1 %v14169_v42, %s17011_s7 }
 0x45a   :  { %578 = vrot.lane.b32.xlu0 %v14157_v38, %s17011_s7 }
 0x45b   :  { %584 = vrot.lane.b32.xlu1 %v14161_v40, %s17011_s7 }
 0x45e   :  { %582 = vrot.lane.b32.xlu0 %v14155_v36, %s17011_s7 }
 0x45f   :  { %749 = vrot.lane.b32.xlu1 %v14161_v40, %s16991_s30 }
 0x462   :  { %747 = vrot.lane.b32.xlu0 %v14155_v36, %s16991_s30 }
 0x463   :  { %745 = vrot.lane.b32.xlu1 %v14169_v42, %s16991_s30 }
 0x467   :  { %743 = vrot.lane.b32.xlu1 %v14157_v38, %s16991_s30  ;;  %s17052_s30 = sld [smem:[#allocation8_spill]] }
 0x498   :  { %v454_v21 = vpop.xlane.xlu0 %453 }
 0x499   :  { %13626 = vrcp.f32 %v454_v21 }
 0x49a   :  { %v451_v22 = vpop.xlane.xlu1 %450 }
 0x49b   :  { %13628 = vrcp.f32 %v451_v22 }
 0x49c   :  { %v589_v30 = vpop.permute.xlu0 %588 }
 0x49e   :  { %v587_v34 = vpop.permute.xlu1 %586 }
 0x4a6   :  { %v13627_v23 = vpop.eup %13626 }
 0x4a7   :  { %v466_v29 = vmul.f32 %v13627_v23, %v13619_v8 }
 0x4a8   :  { %v13629_v24 = vpop.eup %13628 }
 0x4a9   :  { %v465_v27 = vmul.f32 %v13629_v24, %v13621_v10 }
 0x4ab   :  { %12695 = vmatprep.mubr.msk.f32.mxu1 %vm252_vm3, %v465_v27 }
 0x4ac   :  { %12696 = vmatmul.mubr.msk.f32.vlgmr.msra.gmra.mxu1 %vm252_vm3, %v466_v29 }
 0x4ad   :  { %12702 = vmatpush3.xpose.msk.msra.mxu1 %vm222_vm2, %v593_v7 }
 0x4ae   :  { %12703 = vmatprep.subr.msk.mxu1 %vm222_vm2, %v591_v20 }
 0x4b1   :  { %12704 = vmatpush3.xpose.msk.msra.mxu1 %vm222_vm2, %v591_v20 }
 0x4b2   :  { %12705 = vmatprep.subr.msk.mxu1 %vm222_vm2, %v589_v30 }
 0x4b5   :  { %12706 = vmatpush3.xpose.msk.msra.mxu1 %vm222_vm2, %v589_v30 }
 0x4b6   :  { %12707 = vmatprep.subr.msk.mxu1 %vm222_vm2, %v587_v34 }
 0x4b9   :  { %12708 = vmatpush3.xpose.msk.msra.mxu1 %vm222_vm2, %v587_v34 }
 0x4cd   :  { %v460_v35 = vpop.xlane.xlu0 %459 }
 0x4ce   :  { %13630 = vrcp.f32 %v460_v35 }
 0x4cf   :  { %v457_v37 = vpop.xlane.xlu1 %456 }
 0x4d0   :  { %13632 = vrcp.f32 %v457_v37 }
 0x4d1   :  { %v579_v39 = vpop.permute.xlu0 %578 }
 0x4d3   :  { %v581_v41 = vpop.permute.xlu1 %580 }
 0x4d5   :  { %v583_v43 = vpop.permute.xlu0 %582 }
 0x4d7   :  { %v585_v44 = vpop.permute.xlu1 %584 }
 0x4d9   :  { %v748_v48 = vpop.permute.xlu0 %747 }
 0x4db   :  { %v750_v45 = vpop.permute.xlu1 %749  ;;  %v13631_v46 = vpop.eup %13630 }
 0x4dc   :  { %12715 = vmatprep.subr.mxu0 %v750_v45  ;;  %v468_v51 = vmul.f32 %v13631_v46, %v13623_v16 }
 0x4dd   :  { %v13633_v47 = vpop.eup %13632  ;;  %12716 = vmatpush3.msra.mxu0 %v750_v45 }
 0x4de   :  { %12717 = vmatprep.subr.mxu0 %v748_v48  ;;  %v467_v49 = vmul.f32 %v13633_v47, %v13625_v17 }
 0x4df   :  { %v746_v50 = vpop.permute.xlu1 %745  ;;  %12718 = vmatpush3.msra.mxu0 %v748_v48 }
 0x4e0   :  { %12698 = vmatprep.mubr.msk.f32.mxu1 %vm252_vm3, %v467_v49  ;;  %12719 = vmatprep.subr.mxu0 %v746_v50 }
 0x4e1   :  { %12699 = vmatmul.mubr.msk.f32.gmra.mxu1 %vm252_vm3, %v468_v51  ;;  %12720 = vmatpush3.msra.mxu0 %v746_v50 }
 0x4e2   :  { %12709 = vmatprep.mubr.msk.f32.mxu1 %vm222_vm2, %v579_v39 }
 0x4e3   :  { %v744_v52 = vpop.permute.xlu1 %743 }
 0x4e4   :  { %12721 = vmatprep.subr.mxu0 %v744_v52 }
 0x4e5   :  { %12710 = vmatmul.mubr.msk.f32.vlgmr.msra.gmra.mxu1 %vm222_vm2, %v581_v41  ;;  %12722 = vmatpush3.msra.mxu0 %v744_v52 }
 0x4e6   :  { %12712 = vmatprep.mubr.msk.f32.mxu1 %vm222_vm2, %v583_v43 }
 0x4e9   :  { %12713 = vmatmul.mubr.msk.f32.gmra.mxu1 %vm222_vm2, %v585_v44 }
 0x56c   :  { %v14243_v53 = vpop.f32.mrf.mxu1 }
 0x56e   :  { %v14245_v54 = vpop.f32.mrf.mxu1 }
 0x5a1   :  { %v14247_v55 = vpop.f32.mrf.mxu1 }
 0x5a3   :  { %v14249_v56 = vpop.f32.mrf.mxu1 }
 0x5a5   :  { %v12711_v57 = vpop.f32.mrf.mxu1 }
 0x5a6   :  { %v696_v58 = vmul.f32 0.35355338, %v12711_v57 }
 0x5a7   :  { %v676_v59 = vpop.f32.mrf.mxu1 }
 0x5a8   :  { %v695_v60 = vmul.f32 0.35355338, %v676_v59  ;;  %v702_v61 = vsel %vm252_vm3, %v696_v58, -inf }
 0x5a9   :  { %703 = vmax.xlane.f32.xlu1 %v702_v61  ;;  %v12714_v62 = vpop.f32.mrf.mxu1 }
 0x5aa   :  { %v698_v63 = vmul.f32 0.35355338, %v12714_v62  ;;  %v699_v0 = vsel %vm252_vm3, %v695_v60, -inf }
 0x5ab   :  { %700 = vmax.xlane.f32.xlu0 %v699_v0  ;;  %v686_v1 = vpop.f32.mrf.mxu1 }
 0x5ac   :  { %v697_v2 = vmul.f32 0.35355338, %v686_v1  ;;  %v708_v3 = vsel %vm252_vm3, %v698_v63, -inf }
 0x5ae   :  { %v705_v4 = vsel %vm252_vm3, %v697_v2, -inf }
 0x5af   :  { %709 = vmax.xlane.f32.xlu0 %v708_v3 }
 0x5b3   :  { %706 = vmax.xlane.f32.xlu0 %v705_v4 }
 0x5ba   :  { %864 = vrot.lane.b32.xlu1 %v14155_v36, %s17003_s4 }
 0x5c9   :  { %866 = vrot.lane.b32.xlu0 %v14161_v40, %s17003_s4 }
 0x632   :  { %v704_v5 = vpop.xlane.xlu1 %703 }
 0x633   :  { %v712_v6 = vsub.f32 %v696_v58, %v704_v5 }
 0x634   :  { %v701_v7 = vpop.xlane.xlu0 %700 }
 0x635   :  { %v717_v8 = vmul.f32 1.442695, %v712_v6  ;;  %v711_v9 = vsub.f32 %v695_v60, %v701_v7 }
 0x636   :  { %v865_v29 = vpop.permute.xlu1 %864 }
 0x637   :  { %13634 = vpow2.f32 %v717_v8  ;;  %v715_v10 = vmul.f32 1.442695, %v711_v9 }
 0x638   :  { %v710_v11 = vpop.xlane.xlu0 %709 }
 0x639   :  { %13636 = vpow2.f32 %v715_v10  ;;  %v714_v18 = vsub.f32 %v698_v63, %v710_v11 }
 0x63b   :  { %v721_v20 = vmul.f32 1.442695, %v714_v18 }
 0x63c   :  { %v707_v12 = vpop.xlane.xlu0 %706 }
 0x63d   :  { %v713_v19 = vsub.f32 %v697_v2, %v707_v12  ;;  %13638 = vpow2.f32 %v721_v20 }
 0x63f   :  { %v719_v21 = vmul.f32 1.442695, %v713_v19 }
 0x640   :  { %v867_v13 = vpop.permute.xlu0 %866 }
 0x641   :  { %12729 = vmatprep.subr.msk.mxu0 %vm222_vm2, %v867_v13  ;;  %13640 = vpow2.f32 %v719_v21 }
 0x644   :  { %v13635_v14 = vpop.eup %13634 }
 0x645   :  { %v726_v15 = vsel %vm252_vm3, %v13635_v14, 0.0 }
 0x646   :  { %v13637_v16 = vpop.eup %13636  ;;  %727 = vadd.xlane.f32.xlu0 %v726_v15 }
 0x647   :  { %v723_v17 = vsel %vm252_vm3, %v13637_v16, 0.0 }
 0x648   :  { %724 = vadd.xlane.f32.xlu1 %v723_v17 }
 0x64a   :  { %v13639_v22 = vpop.eup %13638 }
 0x64b   :  { %v732_v24 = vsel %vm252_vm3, %v13639_v22, 0.0 }
 0x64e   :  { %v13641_v23 = vpop.eup %13640 }
 0x64f   :  { %v729_v27 = vsel %vm252_vm3, %v13641_v23, 0.0 }
 0x659   :  { %860 = vrot.lane.b32.xlu1 %v14157_v38, %s17003_s4 }
 0x65c   :  { %862 = vrot.lane.b32.xlu0 %v14169_v42, %s17003_s4  ;;  %s17053_s4 = sld [smem:[#allocation9_spill]] }
 0x67b   :  { %733 = vadd.xlane.f32.xlu0 %v732_v24 }
 0x67d   :  { %730 = vadd.xlane.f32.xlu1 %v729_v27 }
 0x68e   :  { %854 = vrot.lane.b32.xlu1 %v14169_v42, %s17007_s5 }
 0x691   :  { %852 = vrot.lane.b32.xlu0 %v14157_v38, %s17007_s5 }
 0x692   :  { %858 = vrot.lane.b32.xlu1 %v14161_v40, %s17007_s5 }
 0x695   :  { %856 = vrot.lane.b32.xlu0 %v14155_v36, %s17007_s5  ;;  %s17055_s5 = sld [smem:[#allocation11_spill]] }
 0x696   :  { %1023 = vrot.lane.b32.xlu1 %v14161_v40, %s16989_s11 }
 0x699   :  { %1021 = vrot.lane.b32.xlu0 %v14155_v36, %s16989_s11 }
 0x69a   :  { %1019 = vrot.lane.b32.xlu1 %v14169_v42, %s16989_s11 }
 0x69e   :  { %1017 = vrot.lane.b32.xlu1 %v14157_v38, %s16989_s11  ;;  %s17060_s11 = smov 104  }
 0x6cf   :  { %v728_v30 = vpop.xlane.xlu0 %727 }
 0x6d0   :  { %13642 = vrcp.f32 %v728_v30 }
 0x6d1   :  { %v725_v34 = vpop.xlane.xlu1 %724 }
 0x6d2   :  { %13644 = vrcp.f32 %v725_v34 }
 0x6d3   :  { %v863_v43 = vpop.permute.xlu0 %862 }
 0x6d5   :  { %v861_v44 = vpop.permute.xlu1 %860 }
 0x6dd   :  { %v13643_v35 = vpop.eup %13642 }
 0x6de   :  { %v740_v41 = vmul.f32 %v13643_v35, %v13635_v14 }
 0x6df   :  { %v13645_v37 = vpop.eup %13644 }
 0x6e0   :  { %v739_v39 = vmul.f32 %v13645_v37, %v13637_v16 }
 0x6e2   :  { %12723 = vmatprep.mubr.msk.f32.mxu0 %vm252_vm3, %v739_v39 }
 0x6e3   :  { %12724 = vmatmul.mubr.msk.f32.vlgmr.msra.gmra.mxu0 %vm252_vm3, %v740_v41 }
 0x6e4   :  { %12730 = vmatpush3.xpose.msk.msra.mxu0 %vm222_vm2, %v867_v13 }
 0x6e5   :  { %12731 = vmatprep.subr.msk.mxu0 %vm222_vm2, %v865_v29 }
 0x6e8   :  { %12732 = vmatpush3.xpose.msk.msra.mxu0 %vm222_vm2, %v865_v29 }
 0x6e9   :  { %12733 = vmatprep.subr.msk.mxu0 %vm222_vm2, %v863_v43 }
 0x6ec   :  { %12734 = vmatpush3.xpose.msk.msra.mxu0 %vm222_vm2, %v863_v43 }
 0x6ed   :  { %12735 = vmatprep.subr.msk.mxu0 %vm222_vm2, %v861_v44 }
 0x6f0   :  { %12736 = vmatpush3.xpose.msk.msra.mxu0 %vm222_vm2, %v861_v44 }
 0x704   :  { %v734_v45 = vpop.xlane.xlu0 %733 }
 0x705   :  { %13646 = vrcp.f32 %v734_v45 }
 0x706   :  { %v731_v46 = vpop.xlane.xlu1 %730 }
 0x707   :  { %13648 = vrcp.f32 %v731_v46 }
 0x708   :  { %v853_v47 = vpop.permute.xlu0 %852 }
 0x70a   :  { %v855_v48 = vpop.permute.xlu1 %854 }
 0x70c   :  { %v857_v49 = vpop.permute.xlu0 %856 }
 0x70e   :  { %v859_v50 = vpop.permute.xlu1 %858 }
 0x710   :  { %v1022_v58 = vpop.permute.xlu0 %1021 }
 0x712   :  { %v1024_v51 = vpop.permute.xlu1 %1023  ;;  %v13647_v52 = vpop.eup %13646 }
 0x713   :  { %12743 = vmatprep.subr.mxu1 %v1024_v51  ;;  %v742_v61 = vmul.f32 %v13647_v52, %v13639_v22 }
 0x714   :  { %v13649_v57 = vpop.eup %13648  ;;  %12744 = vmatpush3.msra.mxu1 %v1024_v51 }
 0x715   :  { %12745 = vmatprep.subr.mxu1 %v1022_v58  ;;  %v741_v59 = vmul.f32 %v13649_v57, %v13641_v23 }
 0x716   :  { %v1020_v60 = vpop.permute.xlu1 %1019  ;;  %12746 = vmatpush3.msra.mxu1 %v1022_v58 }
 0x717   :  { %12726 = vmatprep.mubr.msk.f32.mxu0 %vm252_vm3, %v741_v59  ;;  %12747 = vmatprep.subr.mxu1 %v1020_v60 }
 0x718   :  { %12727 = vmatmul.mubr.msk.f32.gmra.mxu0 %vm252_vm3, %v742_v61  ;;  %12748 = vmatpush3.msra.mxu1 %v1020_v60 }
 0x719   :  { %12737 = vmatprep.mubr.msk.f32.mxu0 %vm222_vm2, %v853_v47 }
 0x71a   :  { %v1018_v62 = vpop.permute.xlu1 %1017 }
 0x71b   :  { %12749 = vmatprep.subr.mxu1 %v1018_v62 }
 0x71c   :  { %12738 = vmatmul.mubr.msk.f32.vlgmr.msra.gmra.mxu0 %vm222_vm2, %v855_v48  ;;  %12750 = vmatpush3.msra.mxu1 %v1018_v62 }
 0x71d   :  { %12740 = vmatprep.mubr.msk.f32.mxu0 %vm222_vm2, %v857_v49 }
 0x720   :  { %12741 = vmatmul.mubr.msk.f32.gmra.mxu0 %vm222_vm2, %v859_v50 }
 0x7a3   :  { %v14299_v63 = vpop.f32.mrf.mxu0 }
 0x7a5   :  { %v14301_v0 = vpop.f32.mrf.mxu0 }
 0x7d8   :  { %v14303_v1 = vpop.f32.mrf.mxu0 }
 0x7da   :  { %v14305_v2 = vpop.f32.mrf.mxu0 }
 0x7dc   :  { %v12739_v3 = vpop.f32.mrf.mxu0 }
 0x7dd   :  { %v970_v4 = vmul.f32 0.35355338, %v12739_v3 }
 0x7de   :  { %v950_v5 = vpop.f32.mrf.mxu0 }
 0x7df   :  { %v969_v6 = vmul.f32 0.35355338, %v950_v5  ;;  %v976_v7 = vsel %vm252_vm3, %v970_v4, -inf }
 0x7e0   :  { %977 = vmax.xlane.f32.xlu1 %v976_v7  ;;  %v12742_v8 = vpop.f32.mrf.mxu0 }
 0x7e1   :  { %v972_v9 = vmul.f32 0.35355338, %v12742_v8  ;;  %v973_v10 = vsel %vm252_vm3, %v969_v6, -inf }
 0x7e2   :  { %974 = vmax.xlane.f32.xlu0 %v973_v10  ;;  %v960_v11 = vpop.f32.mrf.mxu0 }
 0x7e3   :  { %v971_v12 = vmul.f32 0.35355338, %v960_v11  ;;  %v982_v13 = vsel %vm252_vm3, %v972_v9, -inf }
 0x7e5   :  { %v979_v14 = vsel %vm252_vm3, %v971_v12, -inf }
 0x7e6   :  { %983 = vmax.xlane.f32.xlu0 %v982_v13 }
 0x7ea   :  { %980 = vmax.xlane.f32.xlu0 %v979_v14 }
 0x7f1   :  { %1138 = vrot.lane.b32.xlu1 %v14155_v36, %s16999_s6 }
 0x800   :  { %1140 = vrot.lane.b32.xlu0 %v14161_v40, %s16999_s6 }
 0x869   :  { %v978_v15 = vpop.xlane.xlu1 %977 }
 0x86a   :  { %v986_v16 = vsub.f32 %v970_v4, %v978_v15 }
 0x86b   :  { %v975_v17 = vpop.xlane.xlu0 %974 }
 0x86c   :  { %v991_v18 = vmul.f32 1.442695, %v986_v16  ;;  %v985_v19 = vsub.f32 %v969_v6, %v975_v17 }
 0x86d   :  { %v1139_v46 = vpop.permute.xlu1 %1138 }
 0x86e   :  { %13650 = vpow2.f32 %v991_v18  ;;  %v989_v20 = vmul.f32 1.442695, %v985_v19 }
 0x86f   :  { %v984_v21 = vpop.xlane.xlu0 %983 }
 0x870   :  { %13652 = vpow2.f32 %v989_v20  ;;  %v988_v34 = vsub.f32 %v972_v9, %v984_v21 }
 0x872   :  { %v995_v37 = vmul.f32 1.442695, %v988_v34 }
 0x873   :  { %v981_v22 = vpop.xlane.xlu0 %980 }
 0x874   :  { %v987_v35 = vsub.f32 %v971_v12, %v981_v22  ;;  %13654 = vpow2.f32 %v995_v37 }
 0x876   :  { %v993_v39 = vmul.f32 1.442695, %v987_v35 }
 0x877   :  { %v1141_v23 = vpop.permute.xlu0 %1140 }
 0x878   :  { %12757 = vmatprep.subr.msk.mxu1 %vm222_vm2, %v1141_v23  ;;  %13656 = vpow2.f32 %v993_v39 }
 0x87b   :  { %v13651_v24 = vpop.eup %13650 }
 0x87c   :  { %v1000_v27 = vsel %vm252_vm3, %v13651_v24, 0.0 }
 0x87d   :  { %v13653_v29 = vpop.eup %13652  ;;  %1001 = vadd.xlane.f32.xlu0 %v1000_v27 }
 0x87e   :  { %v997_v30 = vsel %vm252_vm3, %v13653_v29, 0.0 }
 0x87f   :  { %998 = vadd.xlane.f32.xlu1 %v997_v30 }
 0x881   :  { %v13655_v41 = vpop.eup %13654 }
 0x882   :  { %v1006_v44 = vsel %vm252_vm3, %v13655_v41, 0.0 }
 0x885   :  { %v13657_v43 = vpop.eup %13656 }
 0x886   :  { %v1003_v45 = vsel %vm252_vm3, %v13657_v43, 0.0 }
 0x890   :  { %1134 = vrot.lane.b32.xlu1 %v14157_v38, %s16999_s6 }
 0x893   :  { %1136 = vrot.lane.b32.xlu0 %v14169_v42, %s16999_s6  ;;  %s17061_s6 = smov 72  }
 0x8b2   :  { %1007 = vadd.xlane.f32.xlu0 %v1006_v44 }
 0x8b4   :  { %1004 = vadd.xlane.f32.xlu1 %v1003_v45 }
 0x8c5   :  { %1128 = vrot.lane.b32.xlu1 %v14169_v42, %s17001_s27 }
 0x8c8   :  { %1126 = vrot.lane.b32.xlu0 %v14157_v38, %s17001_s27 }
 0x8c9   :  { %1132 = vrot.lane.b32.xlu1 %v14161_v40, %s17001_s27 }
 0x8cc   :  { %1130 = vrot.lane.b32.xlu0 %v14155_v36, %s17001_s27  ;;  %s17062_s27 = smov 8  }
 0x906   :  { %v1002_v47 = vpop.xlane.xlu0 %1001 }
 0x907   :  { %13658 = vrcp.f32 %v1002_v47 }
 0x908   :  { %v999_v48 = vpop.xlane.xlu1 %998 }
 0x909   :  { %13660 = vrcp.f32 %v999_v48 }
 0x90a   :  { %v1137_v57 = vpop.permute.xlu0 %1136 }
 0x90c   :  { %v1135_v58 = vpop.permute.xlu1 %1134 }
 0x914   :  { %v13659_v49 = vpop.eup %13658 }
 0x915   :  { %v1014_v52 = vmul.f32 %v13659_v49, %v13651_v24 }
 0x916   :  { %v13661_v50 = vpop.eup %13660 }
 0x917   :  { %v1013_v51 = vmul.f32 %v13661_v50, %v13653_v29 }
 0x919   :  { %12751 = vmatprep.mubr.msk.f32.mxu1 %vm252_vm3, %v1013_v51 }
 0x91a   :  { %12752 = vmatmul.mubr.msk.f32.vlgmr.msra.gmra.mxu1 %vm252_vm3, %v1014_v52 }
 0x91b   :  { %12758 = vmatpush3.xpose.msk.msra.mxu1 %vm222_vm2, %v1141_v23 }
 0x91c   :  { %12759 = vmatprep.subr.msk.mxu1 %vm222_vm2, %v1139_v46 }
 0x91f   :  { %12760 = vmatpush3.xpose.msk.msra.mxu1 %vm222_vm2, %v1139_v46 }
 0x920   :  { %12761 = vmatprep.subr.msk.mxu1 %vm222_vm2, %v1137_v57 }
 0x923   :  { %12762 = vmatpush3.xpose.msk.msra.mxu1 %vm222_vm2, %v1137_v57  ;;  %v13222_v57 = vpack.i.bf16 %v14299_v63, %v14301_v0 }
 0x924   :  { %12763 = vmatprep.subr.msk.mxu1 %vm222_vm2, %v1135_v58 }
 0x927   :  { %12764 = vmatpush3.xpose.msk.msra.mxu1 %vm222_vm2, %v1135_v58 }
 0x93b   :  { %v1008_v59 = vpop.xlane.xlu0 %1007 }
 0x93c   :  { %13662 = vrcp.f32 %v1008_v59 }
 0x93d   :  { %v1005_v60 = vpop.xlane.xlu1 %1004 }
 0x93e   :  { %13664 = vrcp.f32 %v1005_v60 }
 0x93f   :  { %v1127_v4 = vpop.permute.xlu0 %1126 }
 0x941   :  { %v1129_v6 = vpop.permute.xlu1 %1128 }
 0x943   :  { %v1131_v7 = vpop.permute.xlu0 %1130 }
 0x945   :  { %v1133_v8 = vpop.permute.xlu1 %1132 }
 0x949   :  { %v13663_v61 = vpop.eup %13662 }
 0x94a   :  { %v1016_v5 = vmul.f32 %v13663_v61, %v13655_v41 }
 0x94b   :  { %v13665_v62 = vpop.eup %13664 }
 0x94c   :  { %v1015_v3 = vmul.f32 %v13665_v62, %v13657_v43 }
 0x94e   :  { %12754 = vmatprep.mubr.msk.f32.mxu1 %vm252_vm3, %v1015_v3 }
 0x94f   :  { %12755 = vmatmul.mubr.msk.f32.gmra.mxu1 %vm252_vm3, %v1016_v5 }
 0x950   :  { %12765 = vmatprep.mubr.msk.f32.mxu1 %vm222_vm2, %v1127_v4 }
 0x953   :  { %12766 = vmatmul.mubr.msk.f32.vlgmr.msra.gmra.mxu1 %vm222_vm2, %v1129_v6 }
 0x954   :  { %12768 = vmatprep.mubr.msk.f32.mxu1 %vm222_vm2, %v1131_v7 }
 0x957   :  { %12769 = vmatmul.mubr.msk.f32.gmra.mxu1 %vm222_vm2, %v1133_v8 }
 0x9da   :  { %v12753_v9 = vpop.f32.mrf.mxu1 }
 0x9dc   :  { %v1107_v10 = vpop.f32.mrf.mxu1 }
 0x9dd   :  { %v13232_v11 = vpack.i.bf16 %v12753_v9, %v1107_v10 }
 0xa0f   :  { %v12756_v12 = vpop.f32.mrf.mxu1 }
 0xa11   :  { %v1117_v13 = vpop.f32.mrf.mxu1 }
 0xa13   :  { %v12767_v14 = vpop.f32.mrf.mxu1 }
 0xa14   :  { %v1244_v15 = vmul.f32 0.35355338, %v12767_v14 }
 0xa15   :  { %v1224_v16 = vpop.f32.mrf.mxu1 }
 0xa16   :  { %v1243_v17 = vmul.f32 0.35355338, %v1224_v16  ;;  %v1250_v18 = vsel %vm252_vm3, %v1244_v15, -inf  ;;  %v13346_v16 = vld [vmem:[%s17053_s4 + $0x8] sm:$0xff]  }
 0xa17   :  { %1251 = vmax.xlane.f32.xlu1 %v1250_v18  ;;  %v12770_v19 = vpop.f32.mrf.mxu1 }
 0xa18   :  { %v1247_v20 = vsel %vm252_vm3, %v1243_v17, -inf  ;;  %v1246_v23 = vmul.f32 0.35355338, %v12770_v19 }
 0xa19   :  { %1248 = vmax.xlane.f32.xlu0 %v1247_v20  ;;  %v1234_v21 = vpop.f32.mrf.mxu1 }
 0xa1a   :  { %v1245_v22 = vmul.f32 0.35355338, %v1234_v21  ;;  %v1256_v27 = vsel %vm252_vm3, %v1246_v23, -inf }
 0xa1c   :  { %v1253_v24 = vsel %vm252_vm3, %v1245_v22, -inf }
 0xa1d   :  { %1254 = vmax.xlane.f32.xlu0 %v1253_v24 }
 0xa21   :  { %1257 = vmax.xlane.f32.xlu0 %v1256_v27 }
 0xa28   :  { %1297 = vrot.lane.b32.xlu1 %v14161_v40, %s16987_s3 }
 0xaa0   :  { %v1252_v29 = vpop.xlane.xlu1 %1251 }
 0xaa1   :  { %v1260_v30 = vsub.f32 %v1244_v15, %v1252_v29  ;;  %v13345_v15 = vld [vmem:[%s17052_s30] sm:$0xff]  }
 0xaa2   :  { %v1249_v34 = vpop.xlane.xlu0 %1248 }
 0xaa3   :  { %v1265_v35 = vmul.f32 1.442695, %v1260_v30  ;;  %v1259_v37 = vsub.f32 %v1243_v17, %v1249_v34 }
 0xaa4   :  { %v1298_v39 = vpop.permute.xlu1 %1297 }
 0xaa5   :  { %13666 = vpow2.f32 %v1265_v35  ;;  %v1263_v41 = vmul.f32 1.442695, %v1259_v37  ;;  %12771 = vmatprep.subr.mxu0 %v1298_v39 }
 0xaa6   :  { %12772 = vmatpush3.msra.mxu0 %v1298_v39  ;;  %v1255_v43 = vpop.xlane.xlu0 %1254 }
 0xaa7   :  { %13668 = vpow2.f32 %v1263_v41  ;;  %v1261_v52 = vsub.f32 %v1245_v22, %v1255_v43 }
 0xaa9   :  { %v1267_v58 = vmul.f32 1.442695, %v1261_v52 }
 0xaaa   :  { %v1258_v44 = vpop.xlane.xlu0 %1257 }
 0xaab   :  { %v1262_v45 = vsub.f32 %v1246_v23, %v1258_v44 }
 0xaad   :  { %v1269_v46 = vmul.f32 1.442695, %v1262_v45 }
 0xaaf   :  { %13670 = vpow2.f32 %v1269_v46 }
 0xab0   :  { %13672 = vpow2.f32 %v1267_v58 }
 0xab2   :  { %v13667_v47 = vpop.eup %13666 }
 0xab3   :  { %v1274_v48 = vsel %vm252_vm3, %v13667_v47, 0.0 }
 0xab4   :  { %v13669_v40 = vpop.eup %13668  ;;  %1275 = vadd.xlane.f32.xlu0 %v1274_v48 }
 0xab5   :  { %v1271_v49 = vsel %vm252_vm3, %v13669_v40, 0.0 }
 0xab6   :  { %1272 = vadd.xlane.f32.xlu1 %v1271_v49 }
 0xabc   :  { %v13671_v50 = vpop.eup %13670 }
 0xabd   :  { %v1280_v51 = vsel %vm252_vm3, %v13671_v50, 0.0  ;;  %v13673_v59 = vpop.eup %13672 }
 0xabe   :  { %1281 = vadd.xlane.f32.xlu0 %v1280_v51  ;;  %v1277_v60 = vsel %vm252_vm3, %v13673_v59, 0.0 }
 0xac7   :  { %1293 = vrot.lane.b32.xlu1 %v14169_v42, %s16987_s3  ;;  %v13237_v42 = vpack.i.bf16 %v12756_v12, %v1117_v13 }
 0xad4   :  { %1295 = vrot.lane.b32.xlu0 %v14155_v36, %s16987_s3  ;;  %v13227_v36 = vpack.i.bf16 %v14303_v1, %v14305_v2 }
 0xad8   :  { %13223 = vrot.lane.b32.xlu0 %v13222_v57, %s16997_s0 }
 0xadc   :  { %13233 = vrot.lane.b32.xlu0 %v13232_v11, %s16995_s10  ;;  %v13344_v11 = vld [vmem:[%s17052_s30 + $0x8] sm:$0xff]  }
 0xaeb   :  { %1278 = vadd.xlane.f32.xlu1 %v1277_v60 }
 0xafc   :  { %1291 = vrot.lane.b32.xlu1 %v14157_v38, %s16987_s3  ;;  %s17054_s3 = sld [smem:[#allocation10_spill]] }
 0xb00   :  { %13228 = vrot.lane.b32.xlu1 %v13227_v36, %s16997_s0  ;;  %s17005_s0 = smov 24  }
 0xb04   :  { %13238 = vrot.lane.b32.xlu1 %v13237_v42, %s16995_s10  ;;  %s17058_s10 = smov 112  }
 0xb3d   :  { %v1276_v0 = vpop.xlane.xlu0 %1275 }
 0xb3f   :  { %v1273_v63 = vpop.xlane.xlu1 %1272 }
 0xb40   :  { %13674 = vrcp.f32 %v1273_v63  ;;  %v13347_v63 = vld [vmem:[%s17053_s4] sm:$0xff]  }
 0xb41   :  { %13676 = vrcp.f32 %v1276_v0 }
 0xb43   :  { %v1294_v4 = vpop.permute.xlu1 %1293 }
 0xb47   :  { %v1282_v61 = vpop.xlane.xlu0 %1281 }
 0xb48   :  { %13678 = vrcp.f32 %v1282_v61  ;;  %v10797_v61 = vld [vmem:[%s17055_s5] ss:$0 sm:$0xff] }
 0xb4b   :  { %v1296_v62 = vpop.permute.xlu0 %1295 }
 0xb4c   :  { %12773 = vmatprep.subr.mxu0 %v1296_v62 }
 0xb4d   :  { %v13675_v3 = vpop.eup %13674  ;;  %12774 = vmatpush3.msra.mxu0 %v1296_v62 }
 0xb4e   :  { %12775 = vmatprep.subr.mxu0 %v1294_v4  ;;  %v1287_v5 = vmul.f32 %v13675_v3, %v13669_v40  ;;  %v13677_v1 = vpop.eup %13676 }
 0xb4f   :  { %12776 = vmatpush3.msra.mxu0 %v1294_v4  ;;  %v1288_v6 = vmul.f32 %v13677_v1, %v13667_v47  ;;  %v13224_v20 = vpop.permute.xlu0 %13223 }
 0xb50   :  { %12779 = vmatprep.mubr.msk.f32.mxu0 %vm252_vm3, %v1287_v5  ;;  %v13226_v22 = vunpack.i.h.bf16 %v13224_v20  ;;  %v13225_v23 = vunpack.i.l.bf16 %v13224_v20 }
 0xb52   :  { %v1449_v34 = vsel %vm222_vm2, %v14243_v53, %v13226_v22  ;;  %v1448_v35 = vsel %vm222_vm2, %v14245_v54, %v13225_v23 }
 0xb53   :  { %v13234_v21 = vpop.permute.xlu0 %13233 }
 0xb54   :  { %v13236_v24 = vunpack.i.h.bf16 %v13234_v21  ;;  %v13235_v27 = vunpack.i.l.bf16 %v13234_v21 }
 0xb55   :  { %v13679_v7 = vpop.eup %13678 }
 0xb56   :  { %v1290_v10 = vmul.f32 %v13679_v7, %v13671_v50  ;;  %v1453_v41 = vsel %vm1452_vm4, %v1448_v35, %v13235_v27  ;;  %v1454_v43 = vsel %vm1452_vm4, %v1449_v34, %v13236_v24 }
 0xb74   :  { %v1279_v38 = vpop.xlane.xlu1 %1278 }
 0xb75   :  { %13680 = vrcp.f32 %v1279_v38 }
 0xb78   :  { %v1292_v2 = vpop.permute.xlu1 %1291 }
 0xb79   :  { %12777 = vmatprep.subr.mxu0 %v1292_v2 }
 0xb7a   :  { %12778 = vmatpush3.msra.mxu0 %v1292_v2  ;;  %v10809_v2 = vld [vmem:[%s17056_s2] ss:$0 sm:$0xff] }
 0xb7b   :  { %12780 = vmatmul.mubr.msk.f32.vlgmr.msra.gmra.mxu0 %vm252_vm3, %v1288_v6  ;;  %12785 = vmatprep.subr.bf16.mxu0 %v13344_v11 }
 0xb7c   :  { %12786 = vmatpush3.bf16.msra.mxu0 %v13344_v11  ;;  %v13229_v29 = vpop.permute.xlu1 %13228 }
 0xb7d   :  { %12787 = vmatprep.subr.bf16.mxu0 %v13345_v15  ;;  %v13231_v48 = vunpack.i.h.bf16 %v13229_v29  ;;  %v13230_v40 = vunpack.i.l.bf16 %v13229_v29 }
 0xb7f   :  { %v1451_v54 = vsel %vm222_vm2, %v14247_v55, %v13231_v48  ;;  %v1450_v51 = vsel %vm222_vm2, %v14249_v56, %v13230_v40  ;;  %v13348_v55 = vld [vmem:[%s17054_s3 + $0x8] sm:$0xff]   ;;  %v13349_v56 = vld [vmem:[%s17054_s3] sm:$0xff]  }
 0xb80   :  { %12788 = vmatpush3.bf16.msra.mxu0 %v13345_v15  ;;  %v13239_v47 = vpop.permute.xlu1 %13238  ;;  %12793 = vmatprep.subr.bf16.mxu1 %v13348_v55 }
 0xb81   :  { %12801 = vmatprep.subr.bf16.mxu0 %v13346_v16  ;;  %v13241_v53 = vunpack.i.h.bf16 %v13239_v47  ;;  %v13240_v49 = vunpack.i.l.bf16 %v13239_v47  ;;  %12794 = vmatpush3.bf16.msra.mxu1 %v13348_v55 }
 0xb82   :  { %v13681_v8 = vpop.eup %13680  ;;  %12795 = vmatprep.subr.bf16.mxu1 %v13349_v56 }
 0xb83   :  { %v1289_v9 = vmul.f32 %v13681_v8, %v13673_v59  ;;  %v1455_v58 = vsel %vm1452_vm4, %v1450_v51, %v13240_v49  ;;  %v1456_v59 = vsel %vm1452_vm4, %v1451_v54, %v13241_v53 }
 0xb85   :  { %12782 = vmatprep.mubr.msk.f32.mxu0 %vm252_vm3, %v1289_v9  ;;  %12796 = vmatpush3.bf16.msra.mxu1 %v13349_v56 }
 0xb86   :  { %12783 = vmatmul.mubr.msk.f32.gmra.mxu0 %vm252_vm3, %v1290_v10 }
 0xc3b   :  { %v12781_v12 = vpop.f32.mrf.mxu0 }
 0xc3d   :  { %v1381_v13 = vpop.f32.mrf.mxu0 }
 0xc3e   :  { %v13242_v14 = vpack.i.bf16 %v12781_v12, %v1381_v13 }
 0xc40   :  { %13243 = vrot.lane.b32.xlu0 %v13242_v14, %s17005_s0 }
 0xc46   :  { %v12784_v17 = vpop.f32.mrf.mxu0 }
 0xc48   :  { %v1391_v18 = vpop.f32.mrf.mxu0 }
 0xc49   :  { %v13247_v19 = vpack.i.bf16 %v12784_v17, %v1391_v18 }
 0xc4b   :  { %13248 = vrot.lane.b32.xlu1 %v13247_v19, %s17005_s0  ;;  %s17057_s0 = smov 88  }
 0xcb2   :  { %v13244_v30 = vpop.permute.xlu0 %13243 }
 0xcb3   :  { %v13246_v37 = vunpack.i.h.bf16 %v13244_v30  ;;  %v13245_v39 = vunpack.i.l.bf16 %v13244_v30 }
 0xcb5   :  { %v1458_v44 = vsel %vm1457_vm5, %v1453_v41, %v13245_v39  ;;  %v1459_v45 = vsel %vm1457_vm5, %v1454_v43, %v13246_v37 }
 0xcb6   :  { %v1462_v46 = vpack.c.bf16 %v1459_v45, %v1458_v44 }
 0xcb8   :  { %12789 = vmatprep.mubr.msk.bf16.mxu0 %vm252_vm3, %v1462_v46 }
 0xcbd   :  { %v13249_v50 = vpop.permute.xlu1 %13248 }
 0xcbe   :  { %v13251_v52 = vunpack.i.h.bf16 %v13249_v50  ;;  %v13250_v57 = vunpack.i.l.bf16 %v13249_v50 }
 0xcc0   :  { %v1461_v60 = vsel %vm1457_vm5, %v1456_v59, %v13251_v52  ;;  %v1460_v36 = vsel %vm1457_vm5, %v1455_v58, %v13250_v57 }
 0xcc1   :  { %v1463_v42 = vpack.c.bf16 %v1461_v60, %v1460_v36 }
 0xcc3   :  { %12790 = vmatmul.mubr.msk.bf16.vlgmr.msra.gmra.mxu0 %vm252_vm3, %v1463_v42 }
 0xcc4   :  { %12802 = vmatpush3.bf16.msra.mxu0 %v13346_v16  ;;  %12805 = vmatprep.mubr.msk.bf16.mxu0 %vm252_vm3, %v14133_v28 }
 0xcc5   :  { %12803 = vmatprep.subr.bf16.mxu0 %v13347_v63 }
 0xcc8   :  { %12804 = vmatpush3.bf16.msra.mxu0 %v13347_v63 }
 0xccb   :  { %12806 = vmatmul.mubr.msk.bf16.vlgmr.msra.gmra.mxu0 %vm252_vm3, %v14148_v33 }
 0xd83   :  { %v12791_v0 = vpop.f32.mrf.mxu0 }
 0xd84   :  { %v1536_v3 = vadd.f32 %v12791_v0, %v10797_v61 }
 0xd85   :  { %v1527_v62 = vpop.f32.mrf.mxu0 }
 0xd86   :  { %v1528_v4 = vadd.f32 %v10797_v61, %v1527_v62  ;;  %v1544_v9 = vadd.f32 %v1536_v3, %v14141_v31  ;;  %v10802_v62 = vld [vmem:[%s16962_s18] ss:$0 sm:$0xff]  ;;  %s17069_s18 = smov 48  }
 0xd87   :  { %v12792_v5 = vpop.f32.mrf.mxu0 }
 0xd88   :  { %v1542_v38 = vadd.f32 %v1528_v4, %v14123_v25  ;;  %v1539_v6 = vadd.f32 %v12792_v5, %v10797_v61  ;;  %v1554_v14 = vsel %vm252_vm3, %v1544_v9, 0.0 }
 0xd89   :  { %v1530_v1 = vpop.f32.mrf.mxu0 }
 0xd8a   :  { %v1531_v7 = vadd.f32 %v10797_v61, %v1530_v1  ;;  %v1548_v8 = vsel %vm252_vm3, %v1542_v38, 0.0  ;;  %v1545_v15 = vadd.f32 %v1539_v6, %v14144_v32 }
 0xd8b   :  { %v12807_v10 = vpop.f32.mrf.mxu0  ;;  %1549 = vadd.xlane.f32.xlu0 %v1548_v8 }
 0xd8c   :  { %v14426_v11 = vadd.f32 %v12807_v10, %v10809_v2  ;;  %v1543_v12 = vadd.f32 %v1531_v7, %v14126_v26  ;;  %v1557_v31 = vsel %vm252_vm3, %v1545_v15, 0.0 }
 0xd8d   :  { %v1758_v13 = vpop.f32.mrf.mxu0 }
 0xd8e   :  { %v1551_v25 = vsel %vm252_vm3, %v1543_v12, 0.0  ;;  %v14447_v48 = vadd.f32 %v10809_v2, %v1758_v13 }
 0xd8f   :  { %v12808_v16 = vpop.f32.mrf.mxu0  ;;  %1552 = vadd.xlane.f32.xlu1 %v1551_v25  ;;  %1555 = vadd.xlane.f32.xlu0 %v1554_v14 }
 0xd90   :  { %v14432_v17 = vadd.f32 %v12808_v16, %v10809_v2 }
 0xd91   :  { %v1761_v46 = vpop.f32.mrf.mxu0 }
 0xd92   :  { %12809 = vmatprep.subr.msk.mxu1 %vm222_vm2, %v14432_v17  ;;  %v14443_v47 = vadd.f32 %v10809_v2, %v1761_v46  ;;  %v10803_v2 = vld [vmem:[%s16963_s19] ss:$0 sm:$0xff]  ;;  %s17070_s19 = smov 40  }
 0xd93   :  { %1558 = vadd.xlane.f32.xlu0 %v1557_v31 }
 0xe14   :  { %v1550_v18 = vpop.xlane.xlu0 %1549 }
 0xe15   :  { %v1561_v26 = vmul.f32 0.03125, %v1550_v18  ;;  %v10804_v18 = vld [vmem:[%s16964_s9] ss:$0 sm:$0xff]  ;;  %s17064_s9 = smov 24  }
 0xe17   :  { %v1565_v19 = vsub.f32 %v1542_v38, %v1561_v26 }
 0xe18   :  { %v1553_v20 = vpop.xlane.xlu1 %1552  ;;  %v1556_v21 = vpop.xlane.xlu0 %1555 }
 0xe19   :  { %v1562_v22 = vmul.f32 0.03125, %v1553_v20  ;;  %v1563_v23 = vmul.f32 0.03125, %v1556_v21  ;;  %v1569_v24 = vmul.f32 %v1565_v19, %v1565_v19 }
 0xe1b   :  { %v1566_v32 = vsub.f32 %v1543_v12, %v1562_v22  ;;  %v1567_v27 = vsub.f32 %v1544_v9, %v1563_v23  ;;  %v1573_v29 = vsel %vm252_vm3, %v1569_v24, 0.0 }
 0xe1c   :  { %1574 = vadd.xlane.f32.xlu1 %v1573_v29  ;;  %v1559_v30 = vpop.xlane.xlu0 %1558 }
 0xe1d   :  { %v1564_v34 = vmul.f32 0.03125, %v1559_v30  ;;  %v1570_v35 = vmul.f32 %v1566_v32, %v1566_v32  ;;  %v1571_v37 = vmul.f32 %v1567_v27, %v1567_v27 }
 0xe1f   :  { %v1568_v39 = vsub.f32 %v1545_v15, %v1564_v34  ;;  %v1576_v41 = vsel %vm252_vm3, %v1570_v35, 0.0  ;;  %v1579_v43 = vsel %vm252_vm3, %v1571_v37, 0.0 }
 0xe20   :  { %1577 = vadd.xlane.f32.xlu0 %v1576_v41  ;;  %1580 = vadd.xlane.f32.xlu1 %v1579_v43 }
 0xe21   :  { %v1572_v44 = vmul.f32 %v1568_v39, %v1568_v39 }
 0xe23   :  { %v1582_v45 = vsel %vm252_vm3, %v1572_v44, 0.0 }
 0xe24   :  { %1583 = vadd.xlane.f32.xlu0 %v1582_v45 }
 0xe31   :  { %1936 = vrot.lane.b32.xlu1 %v14432_v17, %s17013_s8 }
 0xe35   :  { %1932 = vrot.lane.b32.xlu1 %v14443_v47, %s17013_s8 }
 0xe39   :  { %1930 = vrot.lane.b32.xlu1 %v14447_v48, %s17013_s8 }
 0xe3a   :  { %1934 = vrot.lane.b32.xlu0 %v14426_v11, %s17013_s8 }
 0xea5   :  { %v1575_v40 = vpop.xlane.xlu1 %1574 }
 0xea6   :  { %v1585_v53 = vmul.f32 0.03125, %v1575_v40 }
 0xea8   :  { %v1589_v49 = vadd.f32 1e-05, %v1585_v53 }
 0xea9   :  { %v1581_v50 = vpop.xlane.xlu1 %1580  ;;  %v1578_v54 = vpop.xlane.xlu0 %1577 }
 0xeaa   :  { %13682 = vrsqrt.f32 %v1589_v49  ;;  %v1587_v51 = vmul.f32 0.03125, %v1581_v50  ;;  %v1586_v52 = vmul.f32 0.03125, %v1578_v54 }
 0xeac   :  { %v1591_v57 = vadd.f32 1e-05, %v1587_v51  ;;  %v1590_v58 = vadd.f32 1e-05, %v1586_v52 }
 0xead   :  { %v1937_v59 = vpop.permute.xlu1 %1936  ;;  %v1584_v60 = vpop.xlane.xlu0 %1583 }
 0xeae   :  { %13684 = vrsqrt.f32 %v1591_v57  ;;  %v1588_v36 = vmul.f32 0.03125, %v1584_v60  ;;  %12823 = vmatprep.subr.mxu0 %v1937_v59 }
 0xeaf   :  { %13686 = vrsqrt.f32 %v1590_v58  ;;  %12824 = vmatpush3.msra.mxu0 %v1937_v59 }
 0xeb0   :  { %v1592_v42 = vadd.f32 1e-05, %v1588_v36 }
 0xeb1   :  { %v1933_v63 = vpop.permute.xlu1 %1932  ;;  %v1935_v55 = vpop.permute.xlu0 %1934 }
 0xeb2   :  { %13688 = vrsqrt.f32 %v1592_v42  ;;  %12825 = vmatprep.subr.mxu0 %v1935_v55 }
 0xeb3   :  { %12826 = vmatpush3.msra.mxu0 %v1935_v55 }
 0xeb4   :  { %12827 = vmatprep.subr.mxu0 %v1933_v63 }
 0xeb5   :  { %v1931_v56 = vpop.permute.xlu1 %1930  ;;  %12828 = vmatpush3.msra.mxu0 %v1933_v63 }
 0xeb6   :  { %12829 = vmatprep.subr.mxu0 %v1931_v56 }
 0xeb7   :  { %v13683_v0 = vpop.eup %13682  ;;  %12830 = vmatpush3.msra.mxu0 %v1931_v56 }
 0xeb8   :  { %v1597_v61 = vmul.f32 %v13683_v0, %v1565_v19 }
 0xeba   :  { %v1607_v1 = vmul.f32 %v10802_v62, %v1597_v61 }
 0xebb   :  { %v13685_v3 = vpop.eup %13684 }
 0xebc   :  { %v13687_v4 = vpop.eup %13686  ;;  %v1599_v5 = vmul.f32 %v13685_v3, %v1567_v27  ;;  %v14459_v10 = vadd.f32 %v10803_v2, %v1607_v1 }
 0xebd   :  { %v1598_v38 = vmul.f32 %v13687_v4, %v1566_v32 }
 0xebe   :  { %v1609_v9 = vmul.f32 %v10802_v62, %v1599_v5 }
 0xebf   :  { %v13689_v6 = vpop.eup %13688  ;;  %v1608_v7 = vmul.f32 %v10802_v62, %v1598_v38 }
 0xec0   :  { %v1600_v8 = vmul.f32 %v13689_v6, %v1568_v39  ;;  %v14465_v14 = vadd.f32 %v10803_v2, %v1609_v9 }
 0xec1   :  { %v14461_v12 = vadd.f32 %v10803_v2, %v1608_v7 }
 0xec2   :  { %v1610_v13 = vmul.f32 %v10802_v62, %v1600_v8 }
 0xec3   :  { %v1621_v25 = vpack.c.bf16 %v14461_v12, %v14459_v10 }
 0xec4   :  { %v14467_v15 = vadd.f32 %v10803_v2, %v1610_v13 }
 0xec5   :  { %12797 = vmatprep.mubr.msk.bf16.mxu1 %vm252_vm3, %v1621_v25 }
 0xec6   :  { %v1622_v16 = vpack.c.bf16 %v14467_v15, %v14465_v14 }
 0xec8   :  { %12798 = vmatmul.mubr.msk.bf16.vlgmr.msra.gmra.mxu1 %vm252_vm3, %v1622_v16 }
 0xec9   :  { %12810 = vmatpush3.xpose.msk.msra.mxu1 %vm222_vm2, %v14432_v17 }
 0xeca   :  { %12811 = vmatprep.subr.msk.mxu1 %vm222_vm2, %v14426_v11 }
 0xecd   :  { %12812 = vmatpush3.xpose.msk.msra.mxu1 %vm222_vm2, %v14426_v11 }
 0xece   :  { %12813 = vmatprep.subr.msk.mxu1 %vm222_vm2, %v14443_v47 }
 0xed1   :  { %12814 = vmatpush3.xpose.msk.msra.mxu1 %vm222_vm2, %v14443_v47 }
 0xed2   :  { %12815 = vmatprep.subr.msk.mxu1 %vm222_vm2, %v14447_v48 }
 0xed5   :  { %12816 = vmatpush3.xpose.msk.msra.mxu1 %vm222_vm2, %v14447_v48 }
 0xf88   :  { %v12799_v31 = vpop.f32.mrf.mxu1 }
 0xf89   :  { %v14496_v23 = vadd.f32 %v12799_v31, %v10804_v18 }
 0xf8a   :  { %v1686_v26 = vpop.f32.mrf.mxu1 }
 0xf8b   :  { %v14490_v19 = vadd.f32 %v10804_v18, %v1686_v26 }
 0xf8c   :  { %v12800_v20 = vpop.f32.mrf.mxu1 }
 0xf8d   :  { %12817 = vmatprep.mubr.msk.f32.mxu1 %vm222_vm2, %v14490_v19  ;;  %v14502_v24 = vadd.f32 %v12800_v20, %v10804_v18 }
 0xf8e   :  { %v1689_v21 = vpop.f32.mrf.mxu1 }
 0xf8f   :  { %v14494_v22 = vadd.f32 %v10804_v18, %v1689_v21 }
 0xf91   :  { %12818 = vmatmul.mubr.msk.f32.vlgmr.msra.gmra.mxu1 %vm222_vm2, %v14494_v22 }
 0xf92   :  { %12820 = vmatprep.mubr.msk.f32.mxu1 %vm222_vm2, %v14496_v23 }
 0xf95   :  { %12821 = vmatmul.mubr.msk.f32.gmra.mxu1 %vm222_vm2, %v14502_v24 }
0x1051   :  { %v12819_v32 = vpop.f32.mrf.mxu1 }
0x1052   :  { %v1883_v27 = vmul.f32 0.35355338, %v12819_v32 }
0x1053   :  { %v1863_v29 = vpop.f32.mrf.mxu1 }
0x1054   :  { %v1882_v30 = vmul.f32 0.35355338, %v1863_v29  ;;  %v1889_v34 = vsel %vm252_vm3, %v1883_v27, -inf }
0x1055   :  { %1890 = vmax.xlane.f32.xlu0 %v1889_v34  ;;  %v12822_v35 = vpop.f32.mrf.mxu1 }
0x1056   :  { %v1885_v37 = vmul.f32 0.35355338, %v12822_v35  ;;  %v1886_v39 = vsel %vm252_vm3, %v1882_v30, -inf }
0x1057   :  { %1887 = vmax.xlane.f32.xlu1 %v1886_v39  ;;  %v1873_v41 = vpop.f32.mrf.mxu1 }
0x1058   :  { %v1884_v43 = vmul.f32 0.35355338, %v1873_v41  ;;  %v1895_v44 = vsel %vm252_vm3, %v1885_v37, -inf }
0x1059   :  { %1896 = vmax.xlane.f32.xlu0 %v1895_v44 }
0x105a   :  { %v1892_v45 = vsel %vm252_vm3, %v1884_v43, -inf }
0x105b   :  { %1893 = vmax.xlane.f32.xlu1 %v1892_v45 }
0x106c   :  { %2051 = vrot.lane.b32.xlu1 %v14426_v11, %s17011_s7 }
0x106f   :  { %2053 = vrot.lane.b32.xlu0 %v14432_v17, %s17011_s7 }
0x10de   :  { %v1891_v46 = vpop.xlane.xlu0 %1890 }
0x10df   :  { %v1899_v40 = vsub.f32 %v1883_v27, %v1891_v46 }
0x10e0   :  { %v1888_v53 = vpop.xlane.xlu1 %1887 }
0x10e1   :  { %v1904_v49 = vmul.f32 1.442695, %v1899_v40  ;;  %v1898_v50 = vsub.f32 %v1882_v30, %v1888_v53 }
0x10e2   :  { %v1897_v54 = vpop.xlane.xlu0 %1896 }
0x10e3   :  { %13690 = vpow2.f32 %v1904_v49  ;;  %v1902_v51 = vmul.f32 1.442695, %v1898_v50  ;;  %v1901_v42 = vsub.f32 %v1885_v37, %v1897_v54 }
0x10e4   :  { %v1894_v36 = vpop.xlane.xlu1 %1893 }
0x10e5   :  { %13692 = vpow2.f32 %v1902_v51  ;;  %v1900_v63 = vsub.f32 %v1884_v43, %v1894_v36  ;;  %v1908_v55 = vmul.f32 1.442695, %v1901_v42 }
0x10e6   :  { %v2054_v52 = vpop.permute.xlu0 %2053 }
0x10e7   :  { %12837 = vmatprep.subr.msk.mxu0 %vm222_vm2, %v2054_v52  ;;  %v1906_v56 = vmul.f32 1.442695, %v1900_v63  ;;  %13694 = vpow2.f32 %v1908_v55 }
0x10e8   :  { %v2052_v4 = vpop.permute.xlu1 %2051 }
0x10e9   :  { %13696 = vpow2.f32 %v1906_v56 }
0x10f0   :  { %v13691_v57 = vpop.eup %13690 }
0x10f1   :  { %v1913_v58 = vsel %vm252_vm3, %v13691_v57, 0.0 }
0x10f2   :  { %v13693_v59 = vpop.eup %13692  ;;  %1914 = vadd.xlane.f32.xlu0 %v1913_v58 }
0x10f3   :  { %v1910_v60 = vsel %vm252_vm3, %v13693_v59, 0.0 }
0x10f4   :  { %1911 = vadd.xlane.f32.xlu1 %v1910_v60  ;;  %v13695_v0 = vpop.eup %13694 }
0x10f5   :  { %v1919_v62 = vsel %vm252_vm3, %v13695_v0, 0.0 }
0x10f6   :  { %v13697_v61 = vpop.eup %13696 }
0x10f7   :  { %v1916_v3 = vsel %vm252_vm3, %v13697_v61, 0.0 }
0x1105   :  { %2047 = vrot.lane.b32.xlu1 %v14447_v48, %s17011_s7 }
0x1108   :  { %2049 = vrot.lane.b32.xlu0 %v14443_v47, %s17011_s7 }
0x1127   :  { %1920 = vadd.xlane.f32.xlu0 %v1919_v62 }
0x1129   :  { %1917 = vadd.xlane.f32.xlu1 %v1916_v3 }
0x113a   :  { %2041 = vrot.lane.b32.xlu1 %v14494_v22, %s17011_s7 }
0x113d   :  { %2039 = vrot.lane.b32.xlu0 %v14490_v19, %s17011_s7 }
0x113e   :  { %2045 = vrot.lane.b32.xlu1 %v14502_v24, %s17011_s7 }
0x1141   :  { %2043 = vrot.lane.b32.xlu0 %v14496_v23, %s17011_s7  ;;  %s17063_s7 = smov 16  }
0x1142   :  { %2210 = vrot.lane.b32.xlu1 %v14432_v17, %s17057_s0 }
0x1145   :  { %2208 = vrot.lane.b32.xlu0 %v14426_v11, %s17057_s0 }
0x1146   :  { %2206 = vrot.lane.b32.xlu1 %v14443_v47, %s17057_s0 }
0x114a   :  { %2204 = vrot.lane.b32.xlu1 %v14447_v48, %s17057_s0 }
0x117b   :  { %v1915_v5 = vpop.xlane.xlu0 %1914 }
0x117c   :  { %13698 = vrcp.f32 %v1915_v5 }
0x117d   :  { %v1912_v38 = vpop.xlane.xlu1 %1911 }
0x117e   :  { %13700 = vrcp.f32 %v1912_v38 }
0x117f   :  { %v2050_v8 = vpop.permute.xlu0 %2049 }
0x1181   :  { %v2048_v9 = vpop.permute.xlu1 %2047 }
0x1189   :  { %v13699_v1 = vpop.eup %13698 }
0x118a   :  { %v1927_v7 = vmul.f32 %v13699_v1, %v13691_v57 }
0x118b   :  { %v13701_v2 = vpop.eup %13700 }
0x118c   :  { %v1926_v6 = vmul.f32 %v13701_v2, %v13693_v59 }
0x118e   :  { %12831 = vmatprep.mubr.msk.f32.mxu0 %vm252_vm3, %v1926_v6 }
0x118f   :  { %12832 = vmatmul.mubr.msk.f32.vlgmr.msra.gmra.mxu0 %vm252_vm3, %v1927_v7 }
0x1190   :  { %12838 = vmatpush3.xpose.msk.msra.mxu0 %vm222_vm2, %v2054_v52 }
0x1191   :  { %12839 = vmatprep.subr.msk.mxu0 %vm222_vm2, %v2052_v4 }
0x1194   :  { %12840 = vmatpush3.xpose.msk.msra.mxu0 %vm222_vm2, %v2052_v4 }
0x1195   :  { %12841 = vmatprep.subr.msk.mxu0 %vm222_vm2, %v2050_v8 }
0x1198   :  { %12842 = vmatpush3.xpose.msk.msra.mxu0 %vm222_vm2, %v2050_v8 }
0x1199   :  { %12843 = vmatprep.subr.msk.mxu0 %vm222_vm2, %v2048_v9 }
0x119c   :  { %12844 = vmatpush3.xpose.msk.msra.mxu0 %vm222_vm2, %v2048_v9 }
0x11b0   :  { %v1921_v13 = vpop.xlane.xlu0 %1920 }
0x11b1   :  { %13702 = vrcp.f32 %v1921_v13 }
0x11b2   :  { %v1918_v25 = vpop.xlane.xlu1 %1917 }
0x11b3   :  { %13704 = vrcp.f32 %v1918_v25 }
0x11b4   :  { %v2040_v16 = vpop.permute.xlu0 %2039 }
0x11b6   :  { %v2042_v31 = vpop.permute.xlu1 %2041 }
0x11b8   :  { %v2044_v18 = vpop.permute.xlu0 %2043 }
0x11ba   :  { %v2046_v26 = vpop.permute.xlu1 %2045 }
0x11bc   :  { %v2209_v27 = vpop.permute.xlu0 %2208 }
0x11be   :  { %v2211_v20 = vpop.permute.xlu1 %2210  ;;  %v13703_v21 = vpop.eup %13702 }
0x11bf   :  { %12851 = vmatprep.subr.mxu1 %v2211_v20  ;;  %v1929_v34 = vmul.f32 %v13703_v21, %v13695_v0 }
0x11c0   :  { %v13705_v32 = vpop.eup %13704  ;;  %12852 = vmatpush3.msra.mxu1 %v2211_v20 }
0x11c1   :  { %12853 = vmatprep.subr.mxu1 %v2209_v27  ;;  %v1928_v29 = vmul.f32 %v13705_v32, %v13697_v61 }
0x11c2   :  { %v2207_v30 = vpop.permute.xlu1 %2206  ;;  %12854 = vmatpush3.msra.mxu1 %v2209_v27 }
0x11c3   :  { %12834 = vmatprep.mubr.msk.f32.mxu0 %vm252_vm3, %v1928_v29  ;;  %12855 = vmatprep.subr.mxu1 %v2207_v30 }
0x11c4   :  { %12835 = vmatmul.mubr.msk.f32.gmra.mxu0 %vm252_vm3, %v1929_v34  ;;  %12856 = vmatpush3.msra.mxu1 %v2207_v30 }
0x11c5   :  { %12845 = vmatprep.mubr.msk.f32.mxu0 %vm222_vm2, %v2040_v16 }
0x11c6   :  { %v2205_v35 = vpop.permute.xlu1 %2204 }
0x11c7   :  { %12857 = vmatprep.subr.mxu1 %v2205_v35 }
0x11c8   :  { %12846 = vmatmul.mubr.msk.f32.vlgmr.msra.gmra.mxu0 %vm222_vm2, %v2042_v31  ;;  %12858 = vmatpush3.msra.mxu1 %v2205_v35 }
0x11c9   :  { %12848 = vmatprep.mubr.msk.f32.mxu0 %vm222_vm2, %v2044_v18 }
0x11cc   :  { %12849 = vmatmul.mubr.msk.f32.gmra.mxu0 %vm222_vm2, %v2046_v26 }
0x124f   :  { %v14554_v37 = vpop.f32.mrf.mxu0 }
0x1251   :  { %v14556_v39 = vpop.f32.mrf.mxu0 }
0x1284   :  { %v14558_v41 = vpop.f32.mrf.mxu0 }
0x1286   :  { %v14560_v43 = vpop.f32.mrf.mxu0 }
0x1288   :  { %v12847_v44 = vpop.f32.mrf.mxu0 }
0x1289   :  { %v2157_v45 = vmul.f32 0.35355338, %v12847_v44 }
0x128a   :  { %v2137_v46 = vpop.f32.mrf.mxu0 }
0x128b   :  { %v2156_v40 = vmul.f32 0.35355338, %v2137_v46  ;;  %v2163_v53 = vsel %vm252_vm3, %v2157_v45, -inf }
0x128c   :  { %2164 = vmax.xlane.f32.xlu1 %v2163_v53  ;;  %v12850_v49 = vpop.f32.mrf.mxu0 }
0x128d   :  { %v2159_v50 = vmul.f32 0.35355338, %v12850_v49  ;;  %v2160_v54 = vsel %vm252_vm3, %v2156_v40, -inf }
0x128e   :  { %2161 = vmax.xlane.f32.xlu0 %v2160_v54  ;;  %v2147_v51 = vpop.f32.mrf.mxu0 }
0x128f   :  { %v2158_v52 = vmul.f32 0.35355338, %v2147_v51  ;;  %v2169_v57 = vsel %vm252_vm3, %v2159_v50, -inf }
0x1291   :  { %v2166_v58 = vsel %vm252_vm3, %v2158_v52, -inf }
0x1292   :  { %2170 = vmax.xlane.f32.xlu0 %v2169_v57 }
0x1296   :  { %2167 = vmax.xlane.f32.xlu0 %v2166_v58 }
0x129d   :  { %2325 = vrot.lane.b32.xlu1 %v14426_v11, %s17058_s10 }
0x12ac   :  { %2327 = vrot.lane.b32.xlu0 %v14432_v17, %s17058_s10 }
0x1315   :  { %v2165_v59 = vpop.xlane.xlu1 %2164 }
0x1316   :  { %v2173_v60 = vsub.f32 %v2157_v45, %v2165_v59 }
0x1317   :  { %v2162_v36 = vpop.xlane.xlu0 %2161 }
0x1318   :  { %v2178_v42 = vmul.f32 1.442695, %v2173_v60  ;;  %v2172_v63 = vsub.f32 %v2156_v40, %v2162_v36 }
0x1319   :  { %v2326_v25 = vpop.permute.xlu1 %2325 }
0x131a   :  { %13706 = vpow2.f32 %v2178_v42  ;;  %v2176_v55 = vmul.f32 1.442695, %v2172_v63 }
0x131b   :  { %v2171_v56 = vpop.xlane.xlu0 %2170 }
0x131c   :  { %13708 = vpow2.f32 %v2176_v55  ;;  %v2175_v38 = vsub.f32 %v2159_v50, %v2171_v56 }
0x131e   :  { %v2182_v2 = vmul.f32 1.442695, %v2175_v38 }
0x131f   :  { %v2168_v0 = vpop.xlane.xlu0 %2167 }
0x1320   :  { %v2174_v1 = vsub.f32 %v2158_v52, %v2168_v0  ;;  %13710 = vpow2.f32 %v2182_v2 }
0x1322   :  { %v2180_v6 = vmul.f32 1.442695, %v2174_v1 }
0x1323   :  { %v2328_v61 = vpop.permute.xlu0 %2327 }
0x1324   :  { %12865 = vmatprep.subr.msk.mxu1 %vm222_vm2, %v2328_v61  ;;  %13712 = vpow2.f32 %v2180_v6 }
0x1327   :  { %v13707_v62 = vpop.eup %13706 }
0x1328   :  { %v2187_v3 = vsel %vm252_vm3, %v13707_v62, 0.0 }
0x1329   :  { %v13709_v4 = vpop.eup %13708  ;;  %2188 = vadd.xlane.f32.xlu0 %v2187_v3 }
0x132a   :  { %v2184_v5 = vsel %vm252_vm3, %v13709_v4, 0.0 }
0x132b   :  { %2185 = vadd.xlane.f32.xlu1 %v2184_v5 }
0x132d   :  { %v13711_v7 = vpop.eup %13710 }
0x132e   :  { %v2193_v9 = vsel %vm252_vm3, %v13711_v7, 0.0 }
0x1331   :  { %v13713_v8 = vpop.eup %13712 }
0x1332   :  { %v2190_v13 = vsel %vm252_vm3, %v13713_v8, 0.0 }
0x133c   :  { %2321 = vrot.lane.b32.xlu1 %v14447_v48, %s17058_s10 }
0x133f   :  { %2323 = vrot.lane.b32.xlu0 %v14443_v47, %s17058_s10 }
0x135e   :  { %2194 = vadd.xlane.f32.xlu0 %v2193_v9 }
0x1360   :  { %2191 = vadd.xlane.f32.xlu1 %v2190_v13 }
0x1371   :  { %2315 = vrot.lane.b32.xlu1 %v14494_v22, %s17058_s10 }
0x1374   :  { %2313 = vrot.lane.b32.xlu0 %v14490_v19, %s17058_s10 }
0x1375   :  { %2319 = vrot.lane.b32.xlu1 %v14502_v24, %s17058_s10 }
0x1378   :  { %2317 = vrot.lane.b32.xlu0 %v14496_v23, %s17058_s10 }
0x1379   :  { %2484 = vrot.lane.b32.xlu1 %v14432_v17, %s17059_s29 }
0x137c   :  { %2482 = vrot.lane.b32.xlu0 %v14426_v11, %s17059_s29 }
0x137d   :  { %2480 = vrot.lane.b32.xlu1 %v14443_v47, %s17059_s29 }
0x1381   :  { %2478 = vrot.lane.b32.xlu1 %v14447_v48, %s17059_s29 }
0x13b2   :  { %v2189_v16 = vpop.xlane.xlu0 %2188 }
0x13b3   :  { %13714 = vrcp.f32 %v2189_v16 }
0x13b4   :  { %v2186_v31 = vpop.xlane.xlu1 %2185 }
0x13b5   :  { %13716 = vrcp.f32 %v2186_v31 }
0x13b6   :  { %v2324_v32 = vpop.permute.xlu0 %2323 }
0x13b8   :  { %v2322_v27 = vpop.permute.xlu1 %2321 }
0x13c0   :  { %v13715_v18 = vpop.eup %13714 }
0x13c1   :  { %v2201_v21 = vmul.f32 %v13715_v18, %v13707_v62 }
0x13c2   :  { %v13717_v26 = vpop.eup %13716 }
0x13c3   :  { %v2200_v20 = vmul.f32 %v13717_v26, %v13709_v4 }
0x13c5   :  { %12859 = vmatprep.mubr.msk.f32.mxu1 %vm252_vm3, %v2200_v20 }
0x13c6   :  { %12860 = vmatmul.mubr.msk.f32.vlgmr.msra.gmra.mxu1 %vm252_vm3, %v2201_v21 }
0x13c7   :  { %12866 = vmatpush3.xpose.msk.msra.mxu1 %vm222_vm2, %v2328_v61 }
0x13c8   :  { %12867 = vmatprep.subr.msk.mxu1 %vm222_vm2, %v2326_v25 }
0x13cb   :  { %12868 = vmatpush3.xpose.msk.msra.mxu1 %vm222_vm2, %v2326_v25 }
0x13cc   :  { %12869 = vmatprep.subr.msk.mxu1 %vm222_vm2, %v2324_v32 }
0x13cf   :  { %12870 = vmatpush3.xpose.msk.msra.mxu1 %vm222_vm2, %v2324_v32 }
0x13d0   :  { %12871 = vmatprep.subr.msk.mxu1 %vm222_vm2, %v2322_v27 }
0x13d3   :  { %12872 = vmatpush3.xpose.msk.msra.mxu1 %vm222_vm2, %v2322_v27 }
0x13e7   :  { %v2195_v29 = vpop.xlane.xlu0 %2194 }
0x13e8   :  { %13718 = vrcp.f32 %v2195_v29 }
0x13e9   :  { %v2192_v30 = vpop.xlane.xlu1 %2191 }
0x13ea   :  { %13720 = vrcp.f32 %v2192_v30 }
0x13eb   :  { %v2314_v34 = vpop.permute.xlu0 %2313 }
0x13ed   :  { %v2316_v35 = vpop.permute.xlu1 %2315 }
0x13ef   :  { %v2318_v44 = vpop.permute.xlu0 %2317 }
0x13f1   :  { %v2320_v45 = vpop.permute.xlu1 %2319 }
0x13f3   :  { %v2483_v49 = vpop.permute.xlu0 %2482 }
0x13f5   :  { %v2485_v46 = vpop.permute.xlu1 %2484  ;;  %v13719_v40 = vpop.eup %13718 }
0x13f6   :  { %12879 = vmatprep.subr.mxu0 %v2485_v46  ;;  %v2203_v51 = vmul.f32 %v13719_v40, %v13711_v7 }
0x13f7   :  { %v13721_v53 = vpop.eup %13720  ;;  %12880 = vmatpush3.msra.mxu0 %v2485_v46 }
0x13f8   :  { %12881 = vmatprep.subr.mxu0 %v2483_v49  ;;  %v2202_v50 = vmul.f32 %v13721_v53, %v13713_v8 }
0x13f9   :  { %v2481_v54 = vpop.permute.xlu1 %2480  ;;  %12882 = vmatpush3.msra.mxu0 %v2483_v49 }
0x13fa   :  { %12862 = vmatprep.mubr.msk.f32.mxu1 %vm252_vm3, %v2202_v50  ;;  %12883 = vmatprep.subr.mxu0 %v2481_v54 }
0x13fb   :  { %12863 = vmatmul.mubr.msk.f32.gmra.mxu1 %vm252_vm3, %v2203_v51  ;;  %12884 = vmatpush3.msra.mxu0 %v2481_v54 }
0x13fc   :  { %12873 = vmatprep.mubr.msk.f32.mxu1 %vm222_vm2, %v2314_v34 }
0x13fd   :  { %v2479_v52 = vpop.permute.xlu1 %2478 }
0x13fe   :  { %12885 = vmatprep.subr.mxu0 %v2479_v52 }
0x13ff   :  { %12874 = vmatmul.mubr.msk.f32.vlgmr.msra.gmra.mxu1 %vm222_vm2, %v2316_v35  ;;  %12886 = vmatpush3.msra.mxu0 %v2479_v52 }
0x1400   :  { %12876 = vmatprep.mubr.msk.f32.mxu1 %vm222_vm2, %v2318_v44 }
0x1403   :  { %12877 = vmatmul.mubr.msk.f32.gmra.mxu1 %vm222_vm2, %v2320_v45 }
0x1486   :  { %v14610_v57 = vpop.f32.mrf.mxu1 }
0x1488   :  { %v14612_v58 = vpop.f32.mrf.mxu1 }
0x14bb   :  { %v14614_v59 = vpop.f32.mrf.mxu1 }
0x14bd   :  { %v14616_v60 = vpop.f32.mrf.mxu1 }
0x14bf   :  { %v12875_v36 = vpop.f32.mrf.mxu1 }
0x14c0   :  { %v2431_v42 = vmul.f32 0.35355338, %v12875_v36 }
0x14c1   :  { %v2411_v63 = vpop.f32.mrf.mxu1 }
0x14c2   :  { %v2430_v55 = vmul.f32 0.35355338, %v2411_v63  ;;  %v2437_v56 = vsel %vm252_vm3, %v2431_v42, -inf }
0x14c3   :  { %2438 = vmax.xlane.f32.xlu1 %v2437_v56  ;;  %v12878_v0 = vpop.f32.mrf.mxu1 }
0x14c4   :  { %v2433_v61 = vmul.f32 0.35355338, %v12878_v0  ;;  %v2434_v62 = vsel %vm252_vm3, %v2430_v55, -inf }
0x14c5   :  { %2435 = vmax.xlane.f32.xlu0 %v2434_v62  ;;  %v2421_v3 = vpop.f32.mrf.mxu1 }
0x14c6   :  { %v2432_v4 = vmul.f32 0.35355338, %v2421_v3  ;;  %v2443_v5 = vsel %vm252_vm3, %v2433_v61, -inf }
0x14c8   :  { %v2440_v38 = vsel %vm252_vm3, %v2432_v4, -inf }
0x14c9   :  { %2444 = vmax.xlane.f32.xlu0 %v2443_v5 }
0x14cd   :  { %2441 = vmax.xlane.f32.xlu0 %v2440_v38 }
0x14d4   :  { %2599 = vrot.lane.b32.xlu1 %v14426_v11, %s17060_s11 }
0x14e3   :  { %2601 = vrot.lane.b32.xlu0 %v14432_v17, %s17060_s11 }
0x154c   :  { %v2439_v1 = vpop.xlane.xlu1 %2438 }
0x154d   :  { %v2447_v2 = vsub.f32 %v2431_v42, %v2439_v1 }
0x154e   :  { %v2436_v6 = vpop.xlane.xlu0 %2435 }
0x154f   :  { %v2452_v7 = vmul.f32 1.442695, %v2447_v2  ;;  %v2446_v8 = vsub.f32 %v2430_v55, %v2436_v6 }
0x1550   :  { %v2600_v45 = vpop.permute.xlu1 %2599 }
0x1551   :  { %13722 = vpow2.f32 %v2452_v7  ;;  %v2450_v9 = vmul.f32 1.442695, %v2446_v8 }
0x1552   :  { %v2445_v13 = vpop.xlane.xlu0 %2444 }
0x1553   :  { %13724 = vpow2.f32 %v2450_v9  ;;  %v2449_v21 = vsub.f32 %v2433_v61, %v2445_v13 }
0x1555   :  { %v2456_v27 = vmul.f32 1.442695, %v2449_v21 }
0x1556   :  { %v2442_v25 = vpop.xlane.xlu0 %2441 }
0x1557   :  { %v2448_v32 = vsub.f32 %v2432_v4, %v2442_v25  ;;  %13726 = vpow2.f32 %v2456_v27 }
0x1559   :  { %v2454_v29 = vmul.f32 1.442695, %v2448_v32 }
0x155a   :  { %v2602_v16 = vpop.permute.xlu0 %2601 }
0x155b   :  { %12893 = vmatprep.subr.msk.mxu0 %vm222_vm2, %v2602_v16  ;;  %13728 = vpow2.f32 %v2454_v29 }
0x155e   :  { %v13723_v31 = vpop.eup %13722 }
0x155f   :  { %v2461_v18 = vsel %vm252_vm3, %v13723_v31, 0.0 }
0x1560   :  { %v13725_v26 = vpop.eup %13724  ;;  %2462 = vadd.xlane.f32.xlu0 %v2461_v18 }
0x1561   :  { %v2458_v20 = vsel %vm252_vm3, %v13725_v26, 0.0 }
0x1562   :  { %2459 = vadd.xlane.f32.xlu1 %v2458_v20 }
0x1564   :  { %v13727_v30 = vpop.eup %13726 }
0x1565   :  { %v2467_v35 = vsel %vm252_vm3, %v13727_v30, 0.0 }
0x1568   :  { %v13729_v34 = vpop.eup %13728 }
0x1569   :  { %v2464_v44 = vsel %vm252_vm3, %v13729_v34, 0.0 }
0x1573   :  { %2595 = vrot.lane.b32.xlu1 %v14447_v48, %s17060_s11 }
0x1576   :  { %2597 = vrot.lane.b32.xlu0 %v14443_v47, %s17060_s11 }
0x1595   :  { %2468 = vadd.xlane.f32.xlu0 %v2467_v35 }
0x1597   :  { %2465 = vadd.xlane.f32.xlu1 %v2464_v44 }
0x15a8   :  { %2589 = vrot.lane.b32.xlu1 %v14494_v22, %s17060_s11 }
0x15ab   :  { %2587 = vrot.lane.b32.xlu0 %v14490_v19, %s17060_s11 }
0x15ac   :  { %2593 = vrot.lane.b32.xlu1 %v14502_v24, %s17060_s11 }
0x15af   :  { %2591 = vrot.lane.b32.xlu0 %v14496_v23, %s17060_s11 }
0x15e9   :  { %v2463_v46 = vpop.xlane.xlu0 %2462 }
0x15ea   :  { %13730 = vrcp.f32 %v2463_v46 }
0x15eb   :  { %v2460_v40 = vpop.xlane.xlu1 %2459 }
0x15ec   :  { %13732 = vrcp.f32 %v2460_v40 }
0x15ed   :  { %v2598_v19 = vpop.permute.xlu0 %2597 }
0x15ef   :  { %v2596_v22 = vpop.permute.xlu1 %2595 }
0x15f7   :  { %v13731_v53 = vpop.eup %13730 }
0x15f8   :  { %v2475_v54 = vmul.f32 %v13731_v53, %v13723_v31 }
0x15f9   :  { %v13733_v49 = vpop.eup %13732 }
0x15fa   :  { %v2474_v50 = vmul.f32 %v13733_v49, %v13725_v26 }
0x15fc   :  { %12887 = vmatprep.mubr.msk.f32.mxu0 %vm252_vm3, %v2474_v50 }
0x15fd   :  { %12888 = vmatmul.mubr.msk.f32.vlgmr.msra.gmra.mxu0 %vm252_vm3, %v2475_v54  ;;  %v13252_v54 = vpack.i.bf16 %v14610_v57, %v14612_v58 }
0x15fe   :  { %12894 = vmatpush3.xpose.msk.msra.mxu0 %vm222_vm2, %v2602_v16 }
0x15ff   :  { %12895 = vmatprep.subr.msk.mxu0 %vm222_vm2, %v2600_v45 }
0x1602   :  { %12896 = vmatpush3.xpose.msk.msra.mxu0 %vm222_vm2, %v2600_v45 }
0x1603   :  { %12897 = vmatprep.subr.msk.mxu0 %vm222_vm2, %v2598_v19 }
0x1606   :  { %12898 = vmatpush3.xpose.msk.msra.mxu0 %vm222_vm2, %v2598_v19 }
0x1607   :  { %12899 = vmatprep.subr.msk.mxu0 %vm222_vm2, %v2596_v22 }
0x160a   :  { %12900 = vmatpush3.xpose.msk.msra.mxu0 %vm222_vm2, %v2596_v22 }
0x161e   :  { %v2469_v23 = vpop.xlane.xlu0 %2468 }
0x161f   :  { %13734 = vrcp.f32 %v2469_v23 }
0x1620   :  { %v2466_v24 = vpop.xlane.xlu1 %2465 }
0x1621   :  { %13736 = vrcp.f32 %v2466_v24 }
0x1622   :  { %v2588_v42 = vpop.permute.xlu0 %2587 }
0x1624   :  { %v2590_v55 = vpop.permute.xlu1 %2589 }
0x1626   :  { %v2592_v56 = vpop.permute.xlu0 %2591 }
0x1628   :  { %v2594_v0 = vpop.permute.xlu1 %2593 }
0x162c   :  { %v13735_v51 = vpop.eup %13734 }
0x162d   :  { %v2477_v63 = vmul.f32 %v13735_v51, %v13727_v30 }
0x162e   :  { %v13737_v52 = vpop.eup %13736 }
0x162f   :  { %v2476_v36 = vmul.f32 %v13737_v52, %v13729_v34 }
0x1631   :  { %12890 = vmatprep.mubr.msk.f32.mxu0 %vm252_vm3, %v2476_v36 }
0x1632   :  { %12891 = vmatmul.mubr.msk.f32.gmra.mxu0 %vm252_vm3, %v2477_v63 }
0x1633   :  { %12901 = vmatprep.mubr.msk.f32.mxu0 %vm222_vm2, %v2588_v42 }
0x1636   :  { %12902 = vmatmul.mubr.msk.f32.vlgmr.msra.gmra.mxu0 %vm222_vm2, %v2590_v55 }
0x1637   :  { %12904 = vmatprep.mubr.msk.f32.mxu0 %vm222_vm2, %v2592_v56 }
0x163a   :  { %12905 = vmatmul.mubr.msk.f32.gmra.mxu0 %vm222_vm2, %v2594_v0 }
0x16bd   :  { %v12889_v61 = vpop.f32.mrf.mxu0 }
0x16bf   :  { %v2568_v62 = vpop.f32.mrf.mxu0 }
0x16c0   :  { %v13262_v22 = vpack.i.bf16 %v12889_v61, %v2568_v62 }
0x16f2   :  { %v12892_v3 = vpop.f32.mrf.mxu0 }
0x16f4   :  { %v2578_v4 = vpop.f32.mrf.mxu0 }
0x16f6   :  { %v12903_v5 = vpop.f32.mrf.mxu0 }
0x16f7   :  { %v2705_v38 = vmul.f32 0.35355338, %v12903_v5 }
0x16f8   :  { %v2685_v1 = vpop.f32.mrf.mxu0 }
0x16f9   :  { %v2704_v2 = vmul.f32 0.35355338, %v2685_v1  ;;  %v2711_v6 = vsel %vm252_vm3, %v2705_v38, -inf  ;;  %v13351_v1 = vld [vmem:[%s16965_s12] sm:$0xff]  }
0x16fa   :  { %2712 = vmax.xlane.f32.xlu1 %v2711_v6  ;;  %v12906_v7 = vpop.f32.mrf.mxu0 }
0x16fb   :  { %v2708_v8 = vsel %vm252_vm3, %v2704_v2, -inf  ;;  %v2707_v25 = vmul.f32 0.35355338, %v12906_v7 }
0x16fc   :  { %2709 = vmax.xlane.f32.xlu0 %v2708_v8  ;;  %v2695_v9 = vpop.f32.mrf.mxu0 }
0x16fd   :  { %v2706_v13 = vmul.f32 0.35355338, %v2695_v9  ;;  %v2717_v31 = vsel %vm252_vm3, %v2707_v25, -inf }
0x16ff   :  { %v2714_v16 = vsel %vm252_vm3, %v2706_v13, -inf }
0x1700   :  { %2715 = vmax.xlane.f32.xlu0 %v2714_v16 }
0x1704   :  { %2718 = vmax.xlane.f32.xlu0 %v2717_v31 }
0x170b   :  { %2758 = vrot.lane.b32.xlu1 %v14432_v17, %s17061_s6 }
0x1783   :  { %v2713_v18 = vpop.xlane.xlu1 %2712 }
0x1784   :  { %v2721_v26 = vsub.f32 %v2705_v38, %v2713_v18 }
0x1785   :  { %v2710_v20 = vpop.xlane.xlu0 %2709 }
0x1786   :  { %v2726_v21 = vmul.f32 1.442695, %v2721_v26  ;;  %v2720_v32 = vsub.f32 %v2704_v2, %v2710_v20 }
0x1787   :  { %v2759_v27 = vpop.permute.xlu1 %2758 }
0x1788   :  { %13738 = vpow2.f32 %v2726_v21  ;;  %v2724_v29 = vmul.f32 1.442695, %v2720_v32  ;;  %12907 = vmatprep.subr.mxu1 %v2759_v27 }
0x1789   :  { %12908 = vmatpush3.msra.mxu1 %v2759_v27  ;;  %v2716_v30 = vpop.xlane.xlu0 %2715 }
0x178a   :  { %13740 = vpow2.f32 %v2724_v29  ;;  %v2722_v50 = vsub.f32 %v2706_v13, %v2716_v30 }
0x178c   :  { %v2728_v19 = vmul.f32 1.442695, %v2722_v50 }
0x178d   :  { %v2719_v34 = vpop.xlane.xlu0 %2718 }
0x178e   :  { %v2723_v35 = vsub.f32 %v2707_v25, %v2719_v34 }
0x1790   :  { %v2730_v44 = vmul.f32 1.442695, %v2723_v35 }
0x1792   :  { %13742 = vpow2.f32 %v2730_v44 }
0x1793   :  { %13744 = vpow2.f32 %v2728_v19 }
0x1795   :  { %v13739_v45 = vpop.eup %13738 }
0x1796   :  { %v2735_v46 = vsel %vm252_vm3, %v13739_v45, 0.0 }
0x1797   :  { %v13741_v17 = vpop.eup %13740  ;;  %2736 = vadd.xlane.f32.xlu0 %v2735_v46 }
0x1798   :  { %v2732_v40 = vsel %vm252_vm3, %v13741_v17, 0.0 }
0x1799   :  { %2733 = vadd.xlane.f32.xlu1 %v2732_v40 }
0x179f   :  { %v13743_v53 = vpop.eup %13742 }
0x17a0   :  { %v2741_v49 = vsel %vm252_vm3, %v13743_v53, 0.0  ;;  %v13745_v23 = vpop.eup %13744 }
0x17a1   :  { %2742 = vadd.xlane.f32.xlu0 %v2741_v49  ;;  %v2738_v24 = vsel %vm252_vm3, %v13745_v23, 0.0 }
0x17aa   :  { %2754 = vrot.lane.b32.xlu1 %v14443_v47, %s17061_s6  ;;  %v13267_v47 = vpack.i.bf16 %v12892_v3, %v2578_v4  ;;  %v13350_v3 = vld [vmem:[%s16965_s12 + $0x8] sm:$0xff]   ;;  %s17067_s12 = smov 64  }
0x17b7   :  { %2756 = vrot.lane.b32.xlu0 %v14426_v11, %s17061_s6  ;;  %v13257_v11 = vpack.i.bf16 %v14614_v59, %v14616_v60 }
0x17bb   :  { %13253 = vrot.lane.b32.xlu0 %v13252_v54, %s17062_s27 }
0x17bf   :  { %13263 = vrot.lane.b32.xlu0 %v13262_v22, %s17063_s7 }
0x17ce   :  { %2739 = vadd.xlane.f32.xlu1 %v2738_v24 }
0x17df   :  { %2752 = vrot.lane.b32.xlu1 %v14447_v48, %s17061_s6 }
0x17e3   :  { %13258 = vrot.lane.b32.xlu1 %v13257_v11, %s17062_s27 }
0x17e7   :  { %13268 = vrot.lane.b32.xlu1 %v13267_v47, %s17063_s7 }
0x1820   :  { %v2737_v58 = vpop.xlane.xlu0 %2736 }
0x1822   :  { %v2734_v57 = vpop.xlane.xlu1 %2733 }
0x1823   :  { %13746 = vrcp.f32 %v2734_v57 }
0x1824   :  { %13748 = vrcp.f32 %v2737_v58 }
0x1826   :  { %v2755_v42 = vpop.permute.xlu1 %2754 }
0x182a   :  { %v2743_v51 = vpop.xlane.xlu0 %2742 }
0x182b   :  { %13750 = vrcp.f32 %v2743_v51 }
0x182e   :  { %v2757_v52 = vpop.permute.xlu0 %2756 }
0x182f   :  { %12909 = vmatprep.subr.mxu1 %v2757_v52 }
0x1830   :  { %v13747_v36 = vpop.eup %13746  ;;  %12910 = vmatpush3.msra.mxu1 %v2757_v52 }
0x1831   :  { %12911 = vmatprep.subr.mxu1 %v2755_v42  ;;  %v2748_v63 = vmul.f32 %v13747_v36, %v13741_v17  ;;  %v13749_v59 = vpop.eup %13748 }
0x1832   :  { %12912 = vmatpush3.msra.mxu1 %v2755_v42  ;;  %v2749_v55 = vmul.f32 %v13749_v59, %v13739_v45  ;;  %v13254_v8 = vpop.permute.xlu0 %13253 }
0x1833   :  { %12915 = vmatprep.mubr.msk.f32.mxu1 %vm252_vm3, %v2748_v63  ;;  %v13256_v13 = vunpack.i.h.bf16 %v13254_v8  ;;  %v13255_v25 = vunpack.i.l.bf16 %v13254_v8 }
0x1835   :  { %v2910_v20 = vsel %vm222_vm2, %v14554_v37, %v13256_v13  ;;  %v2909_v21 = vsel %vm222_vm2, %v14556_v39, %v13255_v25 }
0x1836   :  { %v13264_v9 = vpop.permute.xlu0 %13263 }
0x1837   :  { %v13266_v16 = vunpack.i.h.bf16 %v13264_v9  ;;  %v13265_v31 = vunpack.i.l.bf16 %v13264_v9 }
0x1838   :  { %v13751_v56 = vpop.eup %13750 }
0x1839   :  { %v2751_v62 = vmul.f32 %v13751_v56, %v13743_v53  ;;  %v2913_v29 = vsel %vm1452_vm4, %v2909_v21, %v13265_v31  ;;  %v2914_v30 = vsel %vm1452_vm4, %v2910_v20, %v13266_v16  ;;  %v3087_v20 = vld [vmem:[%s16967_s14 + $0xc0] sm:$0xff]  ;;  %v3086_v21 = vld [vmem:[%s16967_s14 + $0x88] sm:$0xff] }
0x1857   :  { %v2740_v48 = vpop.xlane.xlu1 %2739 }
0x1858   :  { %13752 = vrcp.f32 %v2740_v48 }
0x185b   :  { %v2753_v60 = vpop.permute.xlu1 %2752 }
0x185c   :  { %12913 = vmatprep.subr.mxu1 %v2753_v60 }
0x185d   :  { %12914 = vmatpush3.msra.mxu1 %v2753_v60 }
0x185e   :  { %12916 = vmatmul.mubr.msk.f32.vlgmr.msra.gmra.mxu1 %vm252_vm3, %v2749_v55  ;;  %12921 = vmatprep.subr.bf16.mxu1 %v13350_v3 }
0x185f   :  { %12922 = vmatpush3.bf16.msra.mxu1 %v13350_v3  ;;  %v13259_v18 = vpop.permute.xlu1 %13258 }
0x1860   :  { %12923 = vmatprep.subr.bf16.mxu1 %v13351_v1  ;;  %v13261_v46 = vunpack.i.h.bf16 %v13259_v18  ;;  %v13260_v17 = vunpack.i.l.bf16 %v13259_v18 }
0x1862   :  { %v2912_v39 = vsel %vm222_vm2, %v14558_v41, %v13261_v46  ;;  %v2911_v49 = vsel %vm222_vm2, %v14560_v43, %v13260_v17  ;;  %v10862_v41 = vld [vmem:[%s16966_s13] ss:$0 sm:$0xff]  ;;  %v3084_v17 = vld [vmem:[%s16967_s14 + $0x48] sm:$0xff]  ;;  %s17068_s13 = smov 56  }
0x1863   :  { %12924 = vmatpush3.bf16.msra.mxu1 %v13351_v1  ;;  %v13269_v45 = vpop.permute.xlu1 %13268 }
0x1864   :  { %v13271_v37 = vunpack.i.h.bf16 %v13269_v45  ;;  %v13270_v40 = vunpack.i.l.bf16 %v13269_v45  ;;  %v3082_v45 = vld [vmem:[%s16967_s14 + $0x8] sm:$0xff] }
0x1865   :  { %v13753_v0 = vpop.eup %13752 }
0x1866   :  { %v2750_v61 = vmul.f32 %v13753_v0, %v13745_v23  ;;  %v2915_v19 = vsel %vm1452_vm4, %v2911_v49, %v13270_v40  ;;  %v2916_v22 = vsel %vm1452_vm4, %v2912_v39, %v13271_v37  ;;  %v10871_v40 = vcombine.low %v3082_v45, %v3084_v17  ;;  %v10885_v49 = vld [vmem:[%s16967_s14 + $0x90] sm:$0xff] }
0x1867   :  { %v13952_v39 = vmov 0  }
0x1868   :  { %12918 = vmatprep.mubr.msk.f32.mxu1 %vm252_vm3, %v2750_v61  ;;  %3189 = vmatprep.mubr.bf16.mxu0 %v13952_v39 }
0x1869   :  { %12919 = vmatmul.mubr.msk.f32.gmra.mxu1 %vm252_vm3, %v2751_v62 }
0x191e   :  { %v12917_v4 = vpop.f32.mrf.mxu1 }
0x1920   :  { %v2842_v5 = vpop.f32.mrf.mxu1 }
0x1921   :  { %v13272_v38 = vpack.i.bf16 %v12917_v4, %v2842_v5 }
0x1923   :  { %13273 = vrot.lane.b32.xlu0 %v13272_v38, %s17064_s9 }
0x1929   :  { %v12920_v2 = vpop.f32.mrf.mxu1 }
0x192b   :  { %v2852_v6 = vpop.f32.mrf.mxu1 }
0x192c   :  { %v13277_v7 = vpack.i.bf16 %v12920_v2, %v2852_v6 }
0x192e   :  { %13278 = vrot.lane.b32.xlu1 %v13277_v7, %s17064_s9 }
0x1995   :  { %v13274_v26 = vpop.permute.xlu0 %13273 }
0x1996   :  { %v13276_v32 = vunpack.i.h.bf16 %v13274_v26  ;;  %v13275_v27 = vunpack.i.l.bf16 %v13274_v26  ;;  %v3085_v26 = vld [vmem:[%s16967_s14 + $0x80] sm:$0xff] }
0x1998   :  { %v2917_v34 = vsel %vm1457_vm5, %v2913_v29, %v13275_v27  ;;  %v2918_v35 = vsel %vm1457_vm5, %v2914_v30, %v13276_v32  ;;  %v10874_v32 = vcombine.high %v3085_v26, %v3087_v20  ;;  %v3088_v27 = vld [vmem:[%s16967_s14 + $0xc8] sm:$0xff]  ;;  %v10873_v29 = vcombine.low %v3085_v26, %v3087_v20 }
0x1999   :  { %v2921_v44 = vpack.c.bf16 %v2918_v35, %v2917_v34  ;;  %v10875_v30 = vcombine.low %v3086_v21, %v3088_v27  ;;  %v10876_v34 = vcombine.high %v3086_v21, %v3088_v27  ;;  %v3081_v35 = vld [vmem:[%s16967_s14] sm:$0xff] }
0x199a   :  { %3169 = vmatprep.subr.bf16.mxu0 %v10874_v32 }
0x199b   :  { %12925 = vmatprep.mubr.msk.bf16.mxu1 %vm252_vm3, %v2921_v44  ;;  %3222 = vmatprep.subr.bf16.mxu1 %v10876_v34  ;;  %v3083_v44 = vld [vmem:[%s16967_s14 + $0x40] sm:$0xff]  ;;  %v13356_v34 = vld [vmem:[%s16968_s16 + $0x170] sm:$0xff]  }
0x199c   :  { %3170 = vmatpush1.bf16.msra.mxu0 %v10873_v29  ;;  %v10870_v46 = vcombine.high %v3081_v35, %v3083_v44  ;;  %v10869_v37 = vcombine.low %v3081_v35, %v3083_v44  ;;  %v13354_v29 = vld [vmem:[%s16968_s16 + $0x138] sm:$0xff]   ;;  %v13357_v35 = vld [vmem:[%s16968_s16 + $0x1f0] sm:$0xff]  }
0x199d   :  { %v13358_v44 = vld [vmem:[%s16968_s16 + $0x130] sm:$0xff]  }
0x199e   :  { %3171 = vmatprep.subr.bf16.mxu0 %v10870_v46  ;;  %v13360_v46 = vld [vmem:[%s16968_s16 + $0x168] sm:$0xff]  }
0x19a0   :  { %v13279_v53 = vpop.permute.xlu1 %13278  ;;  %3172 = vmatpush1.bf16.msra.mxu0 %v10869_v37  ;;  %v13362_v37 = vld [vmem:[%s16968_s16 + $0x128] sm:$0xff]  }
0x19a1   :  { %v13281_v50 = vunpack.i.h.bf16 %v13279_v53  ;;  %v13280_v54 = vunpack.i.l.bf16 %v13279_v53  ;;  %v10872_v53 = vcombine.high %v3082_v45, %v3084_v17  ;;  %v13359_v45 = vld [vmem:[%s16968_s16 + $0x1b0] sm:$0xff]   ;;  %v13361_v17 = vld [vmem:[%s16968_s16 + $0x1e8] sm:$0xff]  }
0x19a3   :  { %v2920_v23 = vsel %vm1457_vm5, %v2916_v22, %v13281_v50  ;;  %v2919_v24 = vsel %vm1457_vm5, %v2915_v19, %v13280_v54  ;;  %v10887_v50 = vld [vmem:[%s16967_s14 + $0xd0] sm:$0xff]  ;;  %v10886_v54 = vld [vmem:[%s16967_s14 + $0x98] sm:$0xff] }
0x19a4   :  { %v2922_v11 = vpack.c.bf16 %v2920_v23, %v2919_v24  ;;  %v10894_v19 = vcombine.low %v10885_v49, %v10887_v50  ;;  %v10895_v22 = vcombine.high %v10885_v49, %v10887_v50  ;;  %v10888_v23 = vld [vmem:[%s16967_s14 + $0xd8] sm:$0xff]  ;;  %v13365_v49 = vld [vmem:[%s16968_s16 + $0x1e0] sm:$0xff]  }
0x19a5   :  { %v10896_v24 = vcombine.low %v10886_v54, %v10888_v23  ;;  %v13366_v50 = vld [vmem:[%s16968_s16 + $0x120] sm:$0xff]  }
0x19a6   :  { %12926 = vmatmul.mubr.msk.bf16.vlgmr.msra.gmra.mxu1 %vm252_vm3, %v2922_v11  ;;  %v10897_v11 = vcombine.high %v10886_v54, %v10888_v23  ;;  %3427 = vmatprep.subr.bf16.mxu0 %v10895_v22  ;;  %v13367_v54 = vld [vmem:[%s16968_s16 + $0x1a0] sm:$0xff]   ;;  %v13369_v22 = vld [vmem:[%s16968_s16 + $0x1d8] sm:$0xff]  }
0x19a7   :  { %3223 = vmatpush1.bf16.msra.mxu1 %v10875_v30  ;;  %3242 = vmatprep.mubr.bf16.mxu1 %v13952_v39  ;;  %v13355_v30 = vld [vmem:[%s16968_s16 + $0x1b8] sm:$0xff]  }
0x19a8   :  { %3224 = vmatprep.subr.bf16.mxu1 %v10872_v53  ;;  %v13364_v53 = vld [vmem:[%s16968_s16 + $0x160] sm:$0xff]   ;;  %v13370_v23 = vld [vmem:[%s16968_s16 + $0x118] sm:$0xff]  }
0x19ab   :  { %3225 = vmatpush1.bf16.msra.mxu1 %v10871_v40  ;;  %v13363_v40 = vld [vmem:[%s16968_s16 + $0x1a8] sm:$0xff]  }
0x19ac   :  { %3480 = vmatprep.subr.bf16.mxu1 %v10897_v11  ;;  %v13372_v11 = vld [vmem:[%s16968_s16 + $0x150] sm:$0xff]  }
0x1a66   :  { %v12927_v47 = vpop.f32.mrf.mxu1 }
0x1a67   :  { %v2995_v43 = vadd.f32 %v12927_v47, %v10862_v41 }
0x1a68   :  { %v2986_v57 = vpop.f32.mrf.mxu1 }
0x1a69   :  { %v2987_v58 = vadd.f32 %v10862_v41, %v2986_v57  ;;  %v3003_v42 = vadd.f32 %v2995_v43, %v14465_v14 }
0x1a6a   :  { %v12928_v51 = vpop.f32.mrf.mxu1 }
0x1a6b   :  { %v3001_v52 = vadd.f32 %v2987_v58, %v14459_v10  ;;  %v2998_v63 = vadd.f32 %v12928_v51, %v10862_v41  ;;  %v3013_v0 = vsel %vm252_vm3, %v3003_v42, 0.0 }
0x1a6c   :  { %v2989_v36 = vpop.f32.mrf.mxu1 }
0x1a6d   :  { %v2990_v48 = vadd.f32 %v10862_v41, %v2989_v36  ;;  %v3007_v59 = vsel %vm252_vm3, %v3001_v52, 0.0  ;;  %v3004_v55 = vadd.f32 %v2998_v63, %v14467_v15 }
0x1a6e   :  { %3008 = vadd.xlane.f32.xlu0 %v3007_v59 }
0x1a6f   :  { %v3002_v60 = vadd.f32 %v2990_v48, %v14461_v12  ;;  %v3016_v10 = vsel %vm252_vm3, %v3004_v55, 0.0 }
0x1a71   :  { %v3010_v56 = vsel %vm252_vm3, %v3002_v60, 0.0 }
0x1a72   :  { %3011 = vadd.xlane.f32.xlu1 %v3010_v56  ;;  %3014 = vadd.xlane.f32.xlu0 %v3013_v0 }
0x1a76   :  { %3017 = vadd.xlane.f32.xlu0 %v3016_v10  ;;  %v10868_v10 = vld [vmem:[%s16970_s21] ss:$0 sm:$0xff]  ;;  %s17065_s21 = smov 96  }
0x1af7   :  { %v3009_v61 = vpop.xlane.xlu0 %3008 }
0x1af8   :  { %v3019_v14 = vmul.f32 0.03125, %v3009_v61 }
0x1afa   :  { %v14723_v62 = vsub.f32 %v3001_v52, %v3019_v14 }
0x1afb   :  { %v3012_v3 = vpop.xlane.xlu1 %3011  ;;  %v3015_v4 = vpop.xlane.xlu0 %3014 }
0x1afc   :  { %v3020_v5 = vmul.f32 0.03125, %v3012_v3  ;;  %v3021_v38 = vmul.f32 0.03125, %v3015_v4  ;;  %v3027_v12 = vmul.f32 %v14723_v62, %v14723_v62 }
0x1afe   :  { %v14727_v15 = vsub.f32 %v3002_v60, %v3020_v5  ;;  %v14729_v1 = vsub.f32 %v3003_v42, %v3021_v38  ;;  %v3031_v2 = vsel %vm252_vm3, %v3027_v12, 0.0  ;;  %v10881_v38 = vld [vmem:[%s16967_s14 + $0x10] sm:$0xff] }
0x1aff   :  { %3032 = vadd.xlane.f32.xlu1 %v3031_v2  ;;  %v3018_v6 = vpop.xlane.xlu0 %3017  ;;  %v10883_v12 = vld [vmem:[%s16967_s14 + $0x50] sm:$0xff]  ;;  %v10884_v2 = vld [vmem:[%s16967_s14 + $0x58] sm:$0xff] }
0x1b00   :  { %v3022_v7 = vmul.f32 0.03125, %v3018_v6  ;;  %v3028_v8 = vmul.f32 %v14727_v15, %v14727_v15  ;;  %v3029_v9 = vmul.f32 %v14729_v1, %v14729_v1  ;;  %v10890_v26 = vcombine.low %v10881_v38, %v10883_v12 }
0x1b02   :  { %v14736_v13 = vsub.f32 %v3004_v55, %v3022_v7  ;;  %v3034_v25 = vsel %vm252_vm3, %v3028_v8, 0.0  ;;  %v3037_v16 = vsel %vm252_vm3, %v3029_v9, 0.0  ;;  %v10867_v55 = vld [vmem:[%s16969_s20] ss:$0 sm:$0xff]  ;;  %s17072_s20 = sld [smem:[#allocation14_spill]] }
0x1b03   :  { %3035 = vadd.xlane.f32.xlu0 %v3034_v25  ;;  %3038 = vadd.xlane.f32.xlu1 %v3037_v16  ;;  %v10891_v16 = vcombine.high %v10881_v38, %v10883_v12 }
0x1b04   :  { %v3030_v31 = vmul.f32 %v14736_v13, %v14736_v13 }
0x1b06   :  { %v3040_v18 = vsel %vm252_vm3, %v3030_v31, 0.0 }
0x1b07   :  { %3041 = vadd.xlane.f32.xlu0 %v3040_v18 }
0x1b88   :  { %v3033_v47 = vpop.xlane.xlu1 %3032 }
0x1b89   :  { %v3043_v41 = vmul.f32 0.03125, %v3033_v47  ;;  %v13373_v47 = vld [vmem:[%s16968_s16 + $0x1d0] sm:$0xff]  }
0x1b8b   :  { %v3047_v57 = vadd.f32 1e-05, %v3043_v41  ;;  %v13374_v41 = vld [vmem:[%s16968_s16 + $0x110] sm:$0xff]  }
0x1b8c   :  { %v3039_v43 = vpop.xlane.xlu1 %3038  ;;  %v3036_v58 = vpop.xlane.xlu0 %3035 }
0x1b8d   :  { %13754 = vrsqrt.f32 %v3047_v57  ;;  %v3045_v51 = vmul.f32 0.03125, %v3039_v43  ;;  %v3044_v52 = vmul.f32 0.03125, %v3036_v58  ;;  %v13375_v57 = vld [vmem:[%s16968_s16 + $0x190] sm:$0xff]   ;;  %v13376_v43 = vld [vmem:[%s16968_s16 + $0x148] sm:$0xff]  }
0x1b8e   :  { %v13377_v58 = vld [vmem:[%s16968_s16 + $0x1c8] sm:$0xff]  }
0x1b8f   :  { %v3049_v36 = vadd.f32 1e-05, %v3045_v51  ;;  %v3048_v42 = vadd.f32 1e-05, %v3044_v52  ;;  %v13378_v51 = vld [vmem:[%s16968_s16 + $0x108] sm:$0xff]  }
0x1b90   :  { %v3042_v63 = vpop.xlane.xlu0 %3041  ;;  %v13379_v52 = vld [vmem:[%s16968_s16 + $0x188] sm:$0xff]  }
0x1b91   :  { %v3046_v48 = vmul.f32 0.03125, %v3042_v63  ;;  %13756 = vrsqrt.f32 %v3048_v42  ;;  %v13381_v42 = vld [vmem:[%s16968_s16 + $0x1c0] sm:$0xff]  }
0x1b92   :  { %13758 = vrsqrt.f32 %v3049_v36  ;;  %v13380_v36 = vld [vmem:[%s16968_s16 + $0x140] sm:$0xff]  }
0x1b93   :  { %v3050_v59 = vadd.f32 1e-05, %v3046_v48  ;;  %v13382_v63 = vld [vmem:[%s16968_s16 + $0x100] sm:$0xff]  }
0x1b94   :  { %v13383_v48 = vld [vmem:[%s16968_s16 + $0x180] sm:$0xff]  }
0x1b95   :  { %13760 = vrsqrt.f32 %v3050_v59  ;;  %v13384_v59 = vld [vmem:[%s16968_s16 + $0x78] sm:$0xff]  }
0x1b9a   :  { %v13755_v60 = vpop.eup %13754 }
0x1b9b   :  { %v3055_v56 = vmul.f32 %v13755_v60, %v14723_v62  ;;  %v10882_v62 = vld [vmem:[%s16967_s14 + $0x18] sm:$0xff] }
0x1b9c   :  { %v10893_v31 = vcombine.high %v10882_v62, %v10884_v2  ;;  %v10892_v20 = vcombine.low %v10882_v62, %v10884_v2  ;;  %v13385_v60 = vld [vmem:[%s16968_s16 + $0xf8] sm:$0xff]  }
0x1b9d   :  { %v3065_v61 = vmul.f32 %v10867_v55, %v3055_v56 }
0x1b9e   :  { %v13757_v0 = vpop.eup %13756 }
0x1b9f   :  { %v3056_v14 = vmul.f32 %v13757_v0, %v14727_v15  ;;  %v13759_v3 = vpop.eup %13758  ;;  %v14802_v6 = vadd.f32 %v10868_v10, %v3065_v61 }
0x1ba0   :  { %v3057_v7 = vmul.f32 %v13759_v3, %v14729_v1  ;;  %v13352_v1 = vld [vmem:[%s16968_s16 + $0x178] sm:$0xff]  }
0x1ba1   :  { %v3066_v5 = vmul.f32 %v10867_v55, %v3056_v14 }
0x1ba2   :  { %v13761_v4 = vpop.eup %13760  ;;  %v3067_v18 = vmul.f32 %v10867_v55, %v3057_v7 }
0x1ba3   :  { %v3058_v15 = vmul.f32 %v13761_v4, %v14736_v13  ;;  %v14805_v8 = vadd.f32 %v10868_v10, %v3066_v5  ;;  %v13353_v13 = vld [vmem:[%s16968_s16 + $0x1f8] sm:$0xff]   ;;  %v3091_v5 = vlaneseq }
0x1ba4   :  { %v14825_v32 = vadd.f32 %v10868_v10, %v3067_v18  ;;  %v10889_v18 = vld [vmem:[%s16971_s15 + $0x4] sm:$0xf] }
0x1ba5   :  { %v14809_v9 = vpack.c.bf16 %v14805_v8, %v14802_v6  ;;  %v3068_v25 = vmul.f32 %v10867_v55, %v3058_v15  ;;  %v3092_v15 = vshrl.u32 %v3091_v5, 7 }
0x1ba7   :  { %10877 = vmatmul.mubr.msk.bf16.vlgmr.msra.gmra.mxu0 %vm252_vm3, %v14809_v9  ;;  %10879 = vmatmul.mubr.msk.bf16.vlgmr.msra.gmra.mxu1 %vm252_vm3, %v14809_v9  ;;  %v14821_v21 = vadd.f32 %v10868_v10, %v3068_v25 }
0x1ba8   :  { %3428 = vmatpush1.bf16.msra.mxu0 %v10894_v19  ;;  %3481 = vmatpush1.bf16.msra.mxu1 %v10896_v24  ;;  %v13368_v19 = vld [vmem:[%s16968_s16 + $0x158] sm:$0xff]  }
0x1ba9   :  { %3199 = vmatprep.mubr.bf16.mxu0 %v13952_v39  ;;  %3252 = vmatprep.mubr.bf16.mxu1 %v13952_v39  ;;  %v14829_v27 = vpack.c.bf16 %v14821_v21, %v14825_v32  ;;  %v13371_v24 = vld [vmem:[%s16968_s16 + $0x198] sm:$0xff]  }
0x1baa   :  { %3429 = vmatprep.subr.bf16.mxu0 %v10891_v16  ;;  %3482 = vmatprep.subr.bf16.mxu1 %v10893_v31 }
0x1bac   :  { %3430 = vmatpush1.bf16.msra.mxu0 %v10890_v26  ;;  %3483 = vmatpush1.bf16.msra.mxu1 %v10892_v20 }
0x1bad   :  { %12053 = vmatprep.subr.bf16.mxu0 %v13352_v1  ;;  %12081 = vmatprep.subr.bf16.mxu1 %v13353_v13  ;;  %v14977_v1 = vsub.s32 0, %v3092_v15  ;;  %v14979_v13 = vsub.s32 2, %v3092_v15 }
0x1baf   :  { %10878 = vmatmul.mubr.msk.bf16.gmra.mxu0 %vm252_vm3, %v14829_v27  ;;  %10880 = vmatmul.mubr.msk.bf16.gmra.mxu1 %vm252_vm3, %v14829_v27 }
0x1bb0   :  { %3447 = vmatprep.mubr.bf16.mxu0 %v13952_v39  ;;  %3500 = vmatprep.mubr.bf16.mxu1 %v13952_v39 }
0x1bb7   :  { %10898 = vmatmul.mubr.msk.bf16.vlgmr.msra.gmra.mxu0 %vm252_vm3, %v14809_v9  ;;  %10900 = vmatmul.mubr.msk.bf16.vlgmr.msra.gmra.mxu1 %vm252_vm3, %v14809_v9 }
0x1bb8   :  { %3457 = vmatprep.mubr.bf16.mxu0 %v13952_v39  ;;  %3510 = vmatprep.mubr.bf16.mxu1 %v13952_v39 }
0x1bb9   :  { %12054 = vmatpush3.bf16.msra.mxu0 %v13354_v29  ;;  %12082 = vmatpush3.bf16.msra.mxu1 %v13355_v30  ;;  %v14981_v29 = vsub.s32 1, %v3092_v15  ;;  %v14983_v30 = vsub.s32 3, %v3092_v15  ;;  %v13386_v15 = vld [vmem:[%s16968_s16 + $0x38] sm:$0xff]  }
0x1bba   :  { %12055 = vmatprep.subr.bf16.mxu0 %v13356_v34  ;;  %12083 = vmatprep.subr.bf16.mxu1 %v13357_v35  ;;  %v3358_v34 = vrot.slane %v10889_v18, %v14977_v1  ;;  %v3366_v35 = vrot.slane %v10889_v18, %v14979_v13 }
0x1bbd   :  { %12056 = vmatpush3.bf16.msra.mxu0 %v13358_v44  ;;  %12084 = vmatpush3.bf16.msra.mxu1 %v13359_v45 }
0x1bbe   :  { %12057 = vmatprep.subr.bf16.mxu0 %v13360_v46  ;;  %12085 = vmatprep.subr.bf16.mxu1 %v13361_v17  ;;  %v3362_v46 = vrot.slane %v10889_v18, %v14981_v29  ;;  %v3370_v17 = vrot.slane %v10889_v18, %v14983_v30 }
0x1bbf   :  { %10899 = vmatmul.mubr.msk.bf16.gmra.mxu0 %vm252_vm3, %v14829_v27  ;;  %10901 = vmatmul.mubr.msk.bf16.gmra.mxu1 %vm252_vm3, %v14829_v27 }
0x1bc1   :  { %12058 = vmatpush3.bf16.msra.mxu0 %v13362_v37  ;;  %12086 = vmatpush3.bf16.msra.mxu1 %v13363_v40 }
0x1bc2   :  { %12059 = vmatprep.subr.bf16.mxu0 %v13364_v53  ;;  %12087 = vmatprep.subr.bf16.mxu1 %v13365_v49 }
0x1bc5   :  { %12060 = vmatpush3.bf16.msra.mxu0 %v13366_v50  ;;  %12088 = vmatpush3.bf16.msra.mxu1 %v13367_v54 }
0x1bc6   :  { %12061 = vmatprep.subr.bf16.mxu0 %v13368_v19  ;;  %12089 = vmatprep.subr.bf16.mxu1 %v13369_v22 }
0x1bc9   :  { %12062 = vmatpush3.bf16.msra.mxu0 %v13370_v23  ;;  %12090 = vmatpush3.bf16.msra.mxu1 %v13371_v24 }
0x1bca   :  { %12063 = vmatprep.subr.bf16.mxu0 %v13372_v11  ;;  %12091 = vmatprep.subr.bf16.mxu1 %v13373_v47 }
0x1bcd   :  { %12064 = vmatpush3.bf16.msra.mxu0 %v13374_v41  ;;  %12092 = vmatpush3.bf16.msra.mxu1 %v13375_v57 }
0x1bce   :  { %12065 = vmatprep.subr.bf16.mxu0 %v13376_v43  ;;  %12093 = vmatprep.subr.bf16.mxu1 %v13377_v58 }
0x1bd1   :  { %12066 = vmatpush3.bf16.msra.mxu0 %v13378_v51  ;;  %12094 = vmatpush3.bf16.msra.mxu1 %v13379_v52 }
0x1bd2   :  { %12067 = vmatprep.subr.bf16.mxu0 %v13380_v36  ;;  %12095 = vmatprep.subr.bf16.mxu1 %v13381_v42  ;;  %v14992_v36 = vld [vmem:[%s16971_s15] sm:$0xf] }
0x1bd3   :  { %v15005_v18 = vrot.slane %v14992_v36, %v14983_v30 }
0x1bd5   :  { %12068 = vmatpush3.bf16.msra.mxu0 %v13382_v63  ;;  %12096 = vmatpush3.bf16.msra.mxu1 %v13383_v48  ;;  %v14996_v48 = vrot.slane %v14992_v36, %v14981_v29 }
0x1bd6   :  { %12109 = vmatprep.subr.bf16.mxu0 %v13384_v59  ;;  %12137 = vmatprep.subr.bf16.mxu1 %v13385_v60 }
0x1c67   :  { %v14943_v55 = vpop.f32.mrf.mxu0  ;;  %v14945_v56 = vpop.f32.mrf.mxu1 }
0x1c69   :  { %v14947_v0 = vpop.f32.mrf.mxu0  ;;  %v14949_v10 = vpop.f32.mrf.mxu1 }
0x1c6b   :  { %v14951_v61 = vpop.f32.mrf.mxu0  ;;  %v14953_v14 = vpop.f32.mrf.mxu1 }
0x1c6d   :  { %v3197_v3 = vpop.f32.mrf.mxu0  ;;  %v14955_v4 = vpop.f32.mrf.mxu1 }
0x1c6f   :  { %v14957_v38 = vpop.f32.mrf.mxu0  ;;  %v14959_v12 = vpop.f32.mrf.mxu1 }
0x1c71   :  { %v14961_v62 = vpop.f32.mrf.mxu0  ;;  %v14963_v2 = vpop.f32.mrf.mxu1 }
0x1c73   :  { %v14966_v7 = vpop.f32.mrf.mxu0  ;;  %v14968_v25 = vpop.f32.mrf.mxu1 }
0x1c75   :  { %v14970_v16 = vpop.f32.mrf.mxu0  ;;  %v14972_v31 = vpop.f32.mrf.mxu1 }
0x1c77   :  { %v3449_v26 = vpop.f32.mrf.mxu0  ;;  %v3502_v20 = vpop.f32.mrf.mxu1 }
0x1c78   :  { %v3450_v50 = vadd.f32 %v3449_v26, %v3358_v34  ;;  %v3503_v54 = vadd.f32 %v3502_v20, %v3366_v35 }
0x1c79   :  { %v3451_v44 = vpop.f32.mrf.mxu0  ;;  %v3504_v45 = vpop.f32.mrf.mxu1 }
0x1c7a   :  { %v3452_v23 = vadd.f32 %v3451_v44, %v3362_v46  ;;  %v3505_v24 = vadd.f32 %v3504_v45, %v3370_v17 }
0x1c7b   :  { %v3453_v37 = vpop.f32.mrf.mxu0  ;;  %v3506_v40 = vpop.f32.mrf.mxu1 }
0x1c7c   :  { %v3454_v53 = vadd.f32 %v3453_v37, %v3358_v34  ;;  %v3507_v49 = vadd.f32 %v3506_v40, %v3366_v35  ;;  %v13387_v37 = vld [vmem:[%s16968_s16 + $0xb8] sm:$0xff]   ;;  %v13388_v40 = vld [vmem:[%s16968_s16 + $0x70] sm:$0xff]  }
0x1c7d   :  { %v3455_v19 = vpop.f32.mrf.mxu0  ;;  %v3508_v22 = vpop.f32.mrf.mxu1 }
0x1c7e   :  { %v3456_v11 = vadd.f32 %v3455_v19, %v3362_v46  ;;  %v3509_v47 = vadd.f32 %v3508_v22, %v3370_v17  ;;  %v3521_v41 = vpack.c.bf16 %v3454_v53, %v3450_v50  ;;  %v3523_v57 = vpack.c.bf16 %v3507_v49, %v3503_v54  ;;  %v13389_v54 = vld [vmem:[%s16968_s16 + $0xf0] sm:$0xff]  }
0x1c7f   :  { %v3459_v43 = vpop.f32.mrf.mxu0  ;;  %v3512_v58 = vpop.f32.mrf.mxu1  ;;  %v3198_v53 = vadd.f32 %v3197_v3, %v14996_v48  ;;  %v3251_v19 = vadd.f32 %v14955_v4, %v15005_v18  ;;  %v13391_v4 = vld [vmem:[%s16968_s16 + $0xb0] sm:$0xff]  }
0x1c80   :  { %v3522_v51 = vpack.c.bf16 %v3456_v11, %v3452_v23  ;;  %v3524_v52 = vpack.c.bf16 %v3509_v47, %v3505_v24  ;;  %v3529_v26 = vmax.bf16 %v13952_v39, %v3521_v41  ;;  %v3531_v20 = vmax.bf16 %v13952_v39, %v3523_v57 }
0x1c81   :  { %v3461_v42 = vpop.f32.mrf.mxu0  ;;  %v3514_v63 = vpop.f32.mrf.mxu1  ;;  %v3460_v22 = vadd.f32 %v3459_v43, %v3358_v34  ;;  %v3513_v23 = vadd.f32 %v3512_v58, %v3366_v35 }
0x1c82   :  { %v3530_v59 = vmax.bf16 %v13952_v39, %v3522_v51  ;;  %v3532_v60 = vmax.bf16 %v13952_v39, %v3524_v52  ;;  %v3462_v47 = vadd.f32 %v3461_v42, %v3362_v46  ;;  %v3515_v41 = vadd.f32 %v3514_v63, %v3370_v17  ;;  %v13390_v51 = vld [vmem:[%s16968_s16 + $0x30] sm:$0xff]  }
0x1c83   :  { %v3463_v44 = vpop.f32.mrf.mxu0  ;;  %v3516_v45 = vpop.f32.mrf.mxu1  ;;  %v3194_v52 = vadd.f32 %v14947_v0, %v14996_v48  ;;  %v13393_v0 = vld [vmem:[%s16968_s16 + $0xe8] sm:$0xff]  }
0x1c84   :  { %v3464_v49 = vadd.f32 %v3463_v44, %v3358_v34  ;;  %v3517_v50 = vadd.f32 %v3516_v45, %v3366_v35  ;;  %3826 = vmatprep.mubr.bf16.mxu0 %v3530_v59  ;;  %3875 = vmatprep.mubr.bf16.mxu1 %v3532_v60  ;;  %v13392_v34 = vld [vmem:[%s16968_s16 + $0x68] sm:$0xff]   ;;  %v3247_v35 = vadd.f32 %v14949_v10, %v15005_v18  ;;  %v13396_v44 = vld [vmem:[%s16968_s16 + $0x60] sm:$0xff]  }
0x1c85   :  { %v3465_v24 = vpop.f32.mrf.mxu0  ;;  %v3518_v11 = vpop.f32.mrf.mxu1  ;;  %3827 = vmatmul.mubr.bf16.vlgmr.msra.gmra.mxu0 %v3529_v26  ;;  %3876 = vmatmul.mubr.bf16.vlgmr.msra.gmra.mxu1 %v3531_v20  ;;  %v3264_v58 = vpack.c.bf16 %v3198_v53, %v3194_v52  ;;  %v13395_v26 = vld [vmem:[%s16968_s16 + $0xa8] sm:$0xff]   ;;  %v13398_v53 = vld [vmem:[%s16968_s16 + $0x20] sm:$0xff]  }
0x1c86   :  { %v3466_v3 = vadd.f32 %v3465_v24, %v3362_v46  ;;  %v3519_v57 = vadd.f32 %v3518_v11, %v3370_v17  ;;  %12110 = vmatpush3.bf16.msra.mxu0 %v13386_v15  ;;  %v3525_v59 = vpack.c.bf16 %v3464_v49, %v3460_v22  ;;  %12138 = vmatpush3.bf16.msra.mxu1 %v13387_v37  ;;  %v13394_v15 = vld [vmem:[%s16968_s16 + $0x28] sm:$0xff]   ;;  %v13397_v37 = vld [vmem:[%s16968_s16 + $0xe0] sm:$0xff]   ;;  %v13403_v22 = vld [vmem:[%s16968_s16 + $0x98] sm:$0xff]  }
0x1c87   :  { %12111 = vmatprep.subr.bf16.mxu0 %v13388_v40  ;;  %v3527_v46 = vpack.c.bf16 %v3517_v50, %v3513_v23  ;;  %12139 = vmatprep.subr.bf16.mxu1 %v13389_v54  ;;  %v3266_v42 = vpack.c.bf16 %v3251_v19, %v3247_v35  ;;  %v3272_v45 = vmax.bf16 %v13952_v39, %v3264_v58  ;;  %v13399_v49 = vld [vmem:[%s16968_s16 + $0xa0] sm:$0xff]   ;;  %v13400_v50 = vld [vmem:[%s16968_s16 + $0x58] sm:$0xff]   ;;  %v13404_v23 = vld [vmem:[%s16968_s16 + $0x50] sm:$0xff]  }
0x1c88   :  { %v3526_v17 = vpack.c.bf16 %v3466_v3, %v3462_v47  ;;  %v3528_v43 = vpack.c.bf16 %v3519_v57, %v3515_v41  ;;  %v3533_v10 = vmax.bf16 %v13952_v39, %v3525_v59  ;;  %v13401_v54 = vld [vmem:[%s16968_s16 + $0xd8] sm:$0xff]   ;;  %v13405_v24 = vld [vmem:[%s16968_s16 + $0xd0] sm:$0xff]   ;;  %v13408_v41 = vld [vmem:[%s16968_s16 + $0x48] sm:$0xff]   ;;  %v3094_v57 = vrot.slane %v14992_v36, %v14977_v1 }
0x1c89   :  { %v3535_v20 = vmax.bf16 %v13952_v39, %v3527_v46  ;;  %v3274_v40 = vmax.bf16 %v13952_v39, %v3266_v42  ;;  %v13402_v19 = vld [vmem:[%s16968_s16 + $0x18] sm:$0xff]   ;;  %v13406_v11 = vld [vmem:[%s16968_s16 + $0x10] sm:$0xff]   ;;  %v13409_v3 = vld [vmem:[%s16968_s16 + $0xc8] sm:$0xff]   ;;  %v3204_v42 = vadd.f32 %v14961_v62, %v14996_v48 }
0x1c8a   :  { %12112 = vmatpush3.bf16.msra.mxu0 %v13390_v51  ;;  %v3534_v63 = vmax.bf16 %v13952_v39, %v3526_v17  ;;  %v3536_v60 = vmax.bf16 %v13952_v39, %v3528_v43  ;;  %12140 = vmatpush3.bf16.msra.mxu1 %v13391_v4  ;;  %v13407_v47 = vld [vmem:[%s16968_s16 + $0x90] sm:$0xff]   ;;  %v3102_v51 = vrot.slane %v14992_v36, %v14979_v13  ;;  %v13410_v52 = vld [vmem:[%s16968_s16 + $0x8] sm:$0xff]   ;;  %v11034_v46 = vld [vmem:[%s16967_s14 + $0xa0] sm:$0xff] }
0x1c8b   :  { %12113 = vmatprep.subr.bf16.mxu0 %v13392_v34  ;;  %12141 = vmatprep.subr.bf16.mxu1 %v13393_v0  ;;  %v3196_v59 = vadd.f32 %v14951_v61, %v3094_v57  ;;  %v13411_v4 = vld [vmem:[%s16968_s16 + $0x88] sm:$0xff]   ;;  %v13412_v34 = vld [vmem:[%s16968_s16 + $0x40] sm:$0xff]   ;;  %v3208_v36 = vadd.f32 %v14970_v16, %v14996_v48  ;;  %v3192_v43 = vadd.f32 %v14943_v55, %v3094_v57 }
0x1c8c   :  { %3834 = vmatprep.mubr.bf16.mxu0 %v3534_v63  ;;  %3883 = vmatprep.mubr.bf16.mxu1 %v3536_v60  ;;  %v3249_v35 = vadd.f32 %v14953_v14, %v3102_v51  ;;  %v13413_v61 = vld [vmem:[%s16968_s16 + $0xc0] sm:$0xff]   ;;  %v3261_v14 = vadd.f32 %v14972_v31, %v15005_v18  ;;  %v11035_v16 = vld [vmem:[%s16967_s14 + $0xa8] sm:$0xff]  ;;  %v3245_v0 = vadd.f32 %v14945_v56, %v3102_v51 }
0x1c8d   :  { %3835 = vmatmul.mubr.bf16.gmra.mxu0 %v3533_v10  ;;  %3884 = vmatmul.mubr.bf16.gmra.mxu1 %v3535_v20  ;;  %v11036_v17 = vld [vmem:[%s16967_s14 + $0xe0] sm:$0xff]  ;;  %v11037_v58 = vld [vmem:[%s16967_s14 + $0xe8] sm:$0xff]  ;;  %v3263_v63 = vpack.c.bf16 %v3196_v59, %v3192_v43  ;;  %v3257_v31 = vadd.f32 %v14963_v2, %v15005_v18  ;;  %v3268_v10 = vpack.c.bf16 %v3208_v36, %v3204_v42  ;;  %v13421_v59 = vld [vmem:[%s16968_s16 + $0x2f0] sm:$0xff]  }
0x1c8e   :  { %12114 = vmatpush3.bf16.msra.mxu0 %v13394_v15  ;;  %12142 = vmatpush3.bf16.msra.mxu1 %v13395_v26  ;;  %v13414_v55 = vld [vmem:[%s16968_s16] sm:$0xff]   ;;  %v11044_v15 = vcombine.high %v11034_v46, %v11036_v17  ;;  %v3265_v56 = vpack.c.bf16 %v3249_v35, %v3245_v0  ;;  %v11046_v62 = vcombine.high %v11035_v16, %v11037_v58  ;;  %v11031_v20 = vld [vmem:[%s16967_s14 + $0x28] sm:$0xff]  ;;  %v13433_v0 = vld [vmem:[%s16968_s16 + $0x2d8] sm:$0xff]  }
0x1c8f   :  { %4116 = vmatprep.mubr.bf16.mxu0 %v3272_v45  ;;  %4165 = vmatprep.mubr.bf16.mxu1 %v3274_v40  ;;  %v13415_v60 = vld [vmem:[%s16968_s16 + $0x80] sm:$0xff]   ;;  %v3270_v48 = vpack.c.bf16 %v3261_v14, %v3257_v31  ;;  %v11043_v18 = vcombine.low %v11034_v46, %v11036_v17  ;;  %v3271_v45 = vmax.bf16 %v13952_v39, %v3263_v63  ;;  %v13424_v35 = vld [vmem:[%s16968_s16 + $0x268] sm:$0xff]   ;;  %v13434_v42 = vld [vmem:[%s16968_s16 + $0x218] sm:$0xff]  }
0x1c90   :  { %12115 = vmatprep.subr.bf16.mxu0 %v13396_v44  ;;  %12143 = vmatprep.subr.bf16.mxu1 %v13397_v37  ;;  %v11030_v26 = vld [vmem:[%s16967_s14 + $0x20] sm:$0xff]  ;;  %v11033_v44 = vld [vmem:[%s16967_s14 + $0x68] sm:$0xff]  ;;  %v3206_v37 = vadd.f32 %v14966_v7, %v3094_v57  ;;  %v11045_v40 = vcombine.low %v11035_v16, %v11037_v58  ;;  %v13432_v58 = vld [vmem:[%s16968_s16 + $0x258] sm:$0xff]  }
0x1c91   :  { %v11032_v2 = vld [vmem:[%s16967_s14 + $0x60] sm:$0xff]  ;;  %v13425_v36 = vld [vmem:[%s16968_s16 + $0x2e8] sm:$0xff]   ;;  %v13436_v63 = vld [vmem:[%s16968_s16 + $0x250] sm:$0xff]  }
0x1c92   :  { %12116 = vmatpush3.bf16.msra.mxu0 %v13398_v53  ;;  %12144 = vmatpush3.bf16.msra.mxu1 %v13399_v49  ;;  %v3273_v53 = vmax.bf16 %v13952_v39, %v3265_v56  ;;  %v3259_v49 = vadd.f32 %v14968_v25, %v3102_v51  ;;  %v11041_v25 = vcombine.low %v11031_v20, %v11033_v44  ;;  %v13427_v46 = vld [vmem:[%s16968_s16 + $0x2a8] sm:$0xff]   ;;  %v13428_v17 = vld [vmem:[%s16968_s16 + $0x260] sm:$0xff]   ;;  %v13437_v31 = vld [vmem:[%s16968_s16 + $0x2d0] sm:$0xff]  }
0x1c93   :  { %12117 = vmatprep.subr.bf16.mxu0 %v13400_v50  ;;  %12145 = vmatprep.subr.bf16.mxu1 %v13401_v54  ;;  %v3276_v50 = vmax.bf16 %v13952_v39, %v3268_v10  ;;  %v11040_v54 = vcombine.high %v11030_v26, %v11032_v2  ;;  %v13429_v43 = vld [vmem:[%s16968_s16 + $0x2e0] sm:$0xff]   ;;  %v13440_v56 = vld [vmem:[%s16968_s16 + $0x248] sm:$0xff]  }
0x1c94   :  { %v13430_v14 = vld [vmem:[%s16968_s16 + $0x220] sm:$0xff]   ;;  %v13441_v10 = vld [vmem:[%s16968_s16 + $0x2c8] sm:$0xff]  }
0x1c95   :  { %v13431_v16 = vld [vmem:[%s16968_s16 + $0x2a0] sm:$0xff]  }
0x1c96   :  { %12118 = vmatpush3.bf16.msra.mxu0 %v13402_v19  ;;  %12146 = vmatpush3.bf16.msra.mxu1 %v13403_v22  ;;  %v3202_v19 = vadd.f32 %v14957_v38, %v3094_v57  ;;  %v3278_v22 = vmax.bf16 %v13952_v39, %v3270_v48  ;;  %v13418_v57 = vld [vmem:[%s16968_s16 + $0x238] sm:$0xff]   ;;  %v13443_v48 = vld [vmem:[%s16968_s16 + $0x288] sm:$0xff]  }
0x1c97   :  { %12119 = vmatprep.subr.bf16.mxu0 %v13404_v23  ;;  %12147 = vmatprep.subr.bf16.mxu1 %v13405_v24  ;;  %v11042_v23 = vcombine.high %v11031_v20, %v11033_v44  ;;  %v3255_v24 = vadd.f32 %v14959_v12, %v3102_v51  ;;  %v13416_v12 = vld [vmem:[%s16968_s16 + $0x278] sm:$0xff]   ;;  %v13447_v20 = vld [vmem:[%s16968_s16 + $0x280] sm:$0xff]   ;;  %v15270_v44 = vld [vmem:[%s16967_s14 + $0xb0] sm:$0xff] }
0x1c98   :  { %v3267_v7 = vpack.c.bf16 %v3206_v37, %v3202_v19  ;;  %v13419_v51 = vld [vmem:[%s16968_s16 + $0x2b8] sm:$0xff]  }
0x1c99   :  { %v15280_v37 = vld [vmem:[%s16967_s14 + $0xb8] sm:$0xff] }
0x1c9a   :  { %12120 = vmatpush3.bf16.msra.mxu0 %v13406_v11  ;;  %12148 = vmatpush3.bf16.msra.mxu1 %v13407_v47  ;;  %v11039_v11 = vcombine.low %v11030_v26, %v11032_v2  ;;  %v3269_v47 = vpack.c.bf16 %v3259_v49, %v3255_v24  ;;  %v13444_v26 = vld [vmem:[%s16968_s16 + $0x240] sm:$0xff]   ;;  %v15289_v49 = vld [vmem:[%s16967_s14 + $0xf8] sm:$0xff] }
0x1c9b   :  { %12121 = vmatprep.subr.bf16.mxu0 %v13408_v41  ;;  %12149 = vmatprep.subr.bf16.mxu1 %v13409_v3  ;;  %v3275_v41 = vmax.bf16 %v13952_v39, %v3267_v7  ;;  %v13417_v3 = vld [vmem:[%s16968_s16 + $0x2f8] sm:$0xff]   ;;  %v13445_v2 = vld [vmem:[%s16968_s16 + $0x2c0] sm:$0xff]  }
0x1c9c   :  { %v3277_v38 = vmax.bf16 %v13952_v39, %v3269_v47 }
0x1c9e   :  { %12122 = vmatpush3.bf16.msra.mxu0 %v13410_v52  ;;  %12150 = vmatpush3.bf16.msra.mxu1 %v13411_v4  ;;  %v13420_v52 = vld [vmem:[%s16968_s16 + $0x270] sm:$0xff]  }
0x1c9f   :  { %12123 = vmatprep.subr.bf16.mxu0 %v13412_v34  ;;  %12151 = vmatprep.subr.bf16.mxu1 %v13413_v61  ;;  %v13422_v4 = vld [vmem:[%s16968_s16 + $0x230] sm:$0xff]   ;;  %v13426_v61 = vld [vmem:[%s16968_s16 + $0x228] sm:$0xff]  }
0x1ca0   :  { %v13423_v34 = vld [vmem:[%s16968_s16 + $0x2b0] sm:$0xff]  }
0x1ca2   :  { %12124 = vmatpush3.bf16.msra.mxu0 %v13414_v55  ;;  %12152 = vmatpush3.bf16.msra.mxu1 %v13415_v60  ;;  %v13435_v55 = vld [vmem:[%s16968_s16 + $0x298] sm:$0xff]   ;;  %v13438_v60 = vld [vmem:[%s16968_s16 + $0x210] sm:$0xff]  }
0x1ca3   :  { %4266 = vmatprep.subr.bf16.mxu0 %v11044_v15  ;;  %4319 = vmatprep.subr.bf16.mxu1 %v11046_v62  ;;  %v13439_v15 = vld [vmem:[%s16968_s16 + $0x290] sm:$0xff]   ;;  %v13442_v62 = vld [vmem:[%s16968_s16 + $0x208] sm:$0xff]  }
0x1ca5   :  { %4117 = vmatmul.mubr.bf16.vlgmr.msra.gmra.mxu0 %v3271_v45  ;;  %4166 = vmatmul.mubr.bf16.vlgmr.msra.gmra.mxu1 %v3273_v53  ;;  %v15275_v45 = vld [vmem:[%s16967_s14 + $0xf0] sm:$0xff] }
0x1ca6   :  { %4124 = vmatprep.mubr.bf16.mxu0 %v3276_v50  ;;  %4173 = vmatprep.mubr.bf16.mxu1 %v3278_v22  ;;  %v11161_v53 = vcombine.high %v15270_v44, %v15275_v45  ;;  %v11162_v50 = vcombine.low %v15280_v37, %v15289_v49 }
0x1ca7   :  { %4267 = vmatpush1.bf16.msra.mxu0 %v11043_v18  ;;  %4320 = vmatpush1.bf16.msra.mxu1 %v11045_v40  ;;  %v13446_v18 = vld [vmem:[%s16968_s16 + $0x200] sm:$0xff]   ;;  %v11160_v40 = vcombine.low %v15270_v44, %v15275_v45  ;;  %v13449_v44 = vld [vmem:[%s16968_s16 + $0x3f8] sm:$0xff]  }
0x1ca8   :  { %4268 = vmatprep.subr.bf16.mxu0 %v11040_v54  ;;  %4321 = vmatprep.subr.bf16.mxu1 %v11042_v23  ;;  %v11163_v54 = vcombine.high %v15280_v37, %v15289_v49 }
0x1cab   :  { %4269 = vmatpush1.bf16.msra.mxu0 %v11039_v11  ;;  %4322 = vmatpush1.bf16.msra.mxu1 %v11041_v25 }
0x1cac   :  { %12165 = vmatprep.subr.bf16.mxu0 %v13416_v12  ;;  %12193 = vmatprep.subr.bf16.mxu1 %v13417_v3 }
0x1cad   :  { %4125 = vmatmul.mubr.bf16.gmra.mxu0 %v3275_v41  ;;  %4174 = vmatmul.mubr.bf16.gmra.mxu1 %v3277_v38 }
0x1cae   :  { %4286 = vmatprep.mubr.bf16.mxu0 %v13952_v39  ;;  %4339 = vmatprep.mubr.bf16.mxu1 %v13952_v39 }
0x1cb5   :  { %11047 = vmatmul.mubr.msk.bf16.vlgmr.msra.gmra.mxu0 %vm252_vm3, %v14809_v9  ;;  %11049 = vmatmul.mubr.msk.bf16.vlgmr.msra.gmra.mxu1 %vm252_vm3, %v14809_v9 }
0x1cb6   :  { %4296 = vmatprep.mubr.bf16.mxu0 %v13952_v39  ;;  %4349 = vmatprep.mubr.bf16.mxu1 %v13952_v39 }
0x1cb7   :  { %12166 = vmatpush3.bf16.msra.mxu0 %v13418_v57  ;;  %12194 = vmatpush3.bf16.msra.mxu1 %v13419_v51 }
0x1cb8   :  { %12167 = vmatprep.subr.bf16.mxu0 %v13420_v52  ;;  %12195 = vmatprep.subr.bf16.mxu1 %v13421_v59 }
0x1cbb   :  { %12168 = vmatpush3.bf16.msra.mxu0 %v13422_v4  ;;  %12196 = vmatpush3.bf16.msra.mxu1 %v13423_v34 }
0x1cbc   :  { %12169 = vmatprep.subr.bf16.mxu0 %v13424_v35  ;;  %12197 = vmatprep.subr.bf16.mxu1 %v13425_v36 }
0x1cbd   :  { %11048 = vmatmul.mubr.msk.bf16.gmra.mxu0 %vm252_vm3, %v14829_v27  ;;  %11050 = vmatmul.mubr.msk.bf16.gmra.mxu1 %vm252_vm3, %v14829_v27 }
0x1cbf   :  { %12170 = vmatpush3.bf16.msra.mxu0 %v13426_v61  ;;  %12198 = vmatpush3.bf16.msra.mxu1 %v13427_v46 }
0x1cc0   :  { %12171 = vmatprep.subr.bf16.mxu0 %v13428_v17  ;;  %12199 = vmatprep.subr.bf16.mxu1 %v13429_v43 }
0x1cc3   :  { %12172 = vmatpush3.bf16.msra.mxu0 %v13430_v14  ;;  %12200 = vmatpush3.bf16.msra.mxu1 %v13431_v16 }
0x1cc4   :  { %12173 = vmatprep.subr.bf16.mxu0 %v13432_v58  ;;  %12201 = vmatprep.subr.bf16.mxu1 %v13433_v0 }
0x1cc7   :  { %12174 = vmatpush3.bf16.msra.mxu0 %v13434_v42  ;;  %12202 = vmatpush3.bf16.msra.mxu1 %v13435_v55 }
0x1cc8   :  { %12175 = vmatprep.subr.bf16.mxu0 %v13436_v63  ;;  %12203 = vmatprep.subr.bf16.mxu1 %v13437_v31 }
0x1ccb   :  { %12176 = vmatpush3.bf16.msra.mxu0 %v13438_v60  ;;  %12204 = vmatpush3.bf16.msra.mxu1 %v13439_v15 }
0x1ccc   :  { %12177 = vmatprep.subr.bf16.mxu0 %v13440_v56  ;;  %12205 = vmatprep.subr.bf16.mxu1 %v13441_v10 }
0x1ccf   :  { %12178 = vmatpush3.bf16.msra.mxu0 %v13442_v62  ;;  %12206 = vmatpush3.bf16.msra.mxu1 %v13443_v48 }
0x1cd0   :  { %12179 = vmatprep.subr.bf16.mxu0 %v13444_v26  ;;  %12207 = vmatprep.subr.bf16.mxu1 %v13445_v2 }
0x1cd3   :  { %12180 = vmatpush3.bf16.msra.mxu0 %v13446_v18  ;;  %12208 = vmatpush3.bf16.msra.mxu1 %v13447_v20 }
0x1cd4   :  { %4819 = vmatprep.subr.bf16.mxu0 %v11161_v53  ;;  %4872 = vmatprep.subr.bf16.mxu1 %v11163_v54 }
0x1d45   :  { %v12069_v19 = vpop.f32.mrf.mxu0  ;;  %v12097_v22 = vpop.f32.mrf.mxu1 }
0x1d47   :  { %v12070_v23 = vpop.f32.mrf.mxu0  ;;  %v12098_v24 = vpop.f32.mrf.mxu1 }
0x1d48   :  { %v12071_v7 = vadd.f32 %v12070_v23, %v12069_v19  ;;  %v12099_v11 = vadd.f32 %v12098_v24, %v12097_v22 }
0x1d49   :  { %v12072_v47 = vpop.f32.mrf.mxu0  ;;  %v12100_v25 = vpop.f32.mrf.mxu1 }
0x1d4a   :  { %v3878_v41 = vadd.f32 %v12099_v11, %v12071_v7 }
0x1d4b   :  { %v12073_v38 = vpop.f32.mrf.mxu0  ;;  %v12101_v12 = vpop.f32.mrf.mxu1 }
0x1d4c   :  { %v12074_v3 = vadd.f32 %v12073_v38, %v12072_v47  ;;  %v12102_v57 = vadd.f32 %v12101_v12, %v12100_v25 }
0x1d4d   :  { %v12075_v51 = vpop.f32.mrf.mxu0  ;;  %v12103_v59 = vpop.f32.mrf.mxu1 }
0x1d4e   :  { %v3881_v52 = vadd.f32 %v12102_v57, %v12074_v3 }
0x1d4f   :  { %v12076_v4 = vpop.f32.mrf.mxu0  ;;  %v12104_v35 = vpop.f32.mrf.mxu1 }
0x1d50   :  { %v12077_v34 = vadd.f32 %v12076_v4, %v12075_v51  ;;  %v12105_v36 = vadd.f32 %v12104_v35, %v12103_v59  ;;  %v11038_v51 = vld [vmem:[%s16971_s15 + $0x8] sm:$0xf] }
0x1d51   :  { %v12078_v61 = vpop.f32.mrf.mxu0  ;;  %v12106_v46 = vpop.f32.mrf.mxu1  ;;  %v4197_v35 = vrot.slane %v11038_v51, %v14977_v1 }
0x1d52   :  { %v3886_v17 = vadd.f32 %v12105_v36, %v12077_v34 }
0x1d53   :  { %v12079_v43 = vpop.f32.mrf.mxu0  ;;  %v12107_v16 = vpop.f32.mrf.mxu1 }
0x1d54   :  { %v12080_v14 = vadd.f32 %v12079_v43, %v12078_v61  ;;  %v12108_v58 = vadd.f32 %v12107_v16, %v12106_v46  ;;  %v4205_v46 = vrot.slane %v11038_v51, %v14979_v13 }
0x1d56   :  { %v3889_v0 = vadd.f32 %v12108_v58, %v12080_v14  ;;  %v4209_v14 = vrot.slane %v11038_v51, %v14983_v30 }
0x1d65   :  { %v12125_v42 = vpop.f32.mrf.mxu0  ;;  %v12153_v55 = vpop.f32.mrf.mxu1 }
0x1d67   :  { %v12126_v63 = vpop.f32.mrf.mxu0  ;;  %v12154_v60 = vpop.f32.mrf.mxu1 }
0x1d68   :  { %v12127_v31 = vadd.f32 %v12126_v63, %v12125_v42  ;;  %v12155_v15 = vadd.f32 %v12154_v60, %v12153_v55 }
0x1d69   :  { %v12128_v56 = vpop.f32.mrf.mxu0  ;;  %v12156_v62 = vpop.f32.mrf.mxu1 }
0x1d6a   :  { %v4119_v10 = vadd.f32 %v12127_v31, %v3878_v41 }
0x1d6b   :  { %v12129_v48 = vpop.f32.mrf.mxu0  ;;  %v12157_v18 = vpop.f32.mrf.mxu1 }
0x1d6c   :  { %v15295_v26 = vadd.f32 %v12155_v15, %v4119_v10  ;;  %v12130_v2 = vadd.f32 %v12129_v48, %v12128_v56  ;;  %v12158_v54 = vadd.f32 %v12157_v18, %v12156_v62 }
0x1d6d   :  { %v12131_v20 = vpop.f32.mrf.mxu0  ;;  %v12159_v19 = vpop.f32.mrf.mxu1 }
0x1d6e   :  { %v4122_v53 = vadd.f32 %v12130_v2, %v3881_v52 }
0x1d6f   :  { %v12132_v22 = vpop.f32.mrf.mxu0  ;;  %v12160_v7 = vpop.f32.mrf.mxu1 }
0x1d70   :  { %v15297_v23 = vadd.f32 %v12158_v54, %v4122_v53  ;;  %v12133_v24 = vadd.f32 %v12132_v22, %v12131_v20  ;;  %v12161_v11 = vadd.f32 %v12160_v7, %v12159_v19  ;;  %v11147_v54 = vld [vmem:[%s16967_s14 + $0x30] sm:$0xff]  ;;  %v11148_v7 = vld [vmem:[%s16967_s14 + $0x38] sm:$0xff] }
0x1d71   :  { %v12134_v47 = vpop.f32.mrf.mxu0  ;;  %v12162_v38 = vpop.f32.mrf.mxu1  ;;  %v11149_v19 = vld [vmem:[%s16967_s14 + $0x70] sm:$0xff] }
0x1d72   :  { %v4127_v25 = vadd.f32 %v12133_v24, %v3886_v17  ;;  %v4201_v17 = vrot.slane %v11038_v51, %v14981_v29 }
0x1d73   :  { %v12135_v41 = vpop.f32.mrf.mxu0  ;;  %v12163_v57 = vpop.f32.mrf.mxu1 }
0x1d74   :  { %v15299_v12 = vadd.f32 %v12161_v11, %v4127_v25  ;;  %v12136_v3 = vadd.f32 %v12135_v41, %v12134_v47  ;;  %v12164_v4 = vadd.f32 %v12163_v57, %v12162_v38  ;;  %v11150_v11 = vld [vmem:[%s16967_s14 + $0x78] sm:$0xff]  ;;  %v11157_v57 = vcombine.high %v11147_v54, %v11149_v19 }
0x1d75   :  { %v4288_v52 = vpop.f32.mrf.mxu0  ;;  %v4341_v34 = vpop.f32.mrf.mxu1 }
0x1d76   :  { %v4130_v59 = vadd.f32 %v12136_v3, %v3889_v0  ;;  %v4289_v55 = vadd.f32 %v4288_v52, %v4197_v35  ;;  %v4342_v31 = vadd.f32 %v4341_v34, %v4205_v46  ;;  %v11159_v34 = vcombine.high %v11148_v7, %v11150_v11 }
0x1d77   :  { %v4290_v36 = vpop.f32.mrf.mxu0  ;;  %v4343_v43 = vpop.f32.mrf.mxu1 }
0x1d78   :  { %v15305_v61 = vadd.f32 %v12164_v4, %v4130_v59  ;;  %v4291_v60 = vadd.f32 %v4290_v36, %v4201_v17  ;;  %v4344_v10 = vadd.f32 %v4343_v43, %v4209_v14  ;;  %v11156_v4 = vcombine.low %v11147_v54, %v11149_v19  ;;  %v13461_v54 = vld [vmem:[%s16968_s16 + $0x3e0] sm:$0xff]  }
0x1d79   :  { %v4292_v16 = vpop.f32.mrf.mxu0  ;;  %v4345_v42 = vpop.f32.mrf.mxu1  ;;  %v13462_v19 = vld [vmem:[%s16968_s16 + $0x320] sm:$0xff]  }
0x1d7a   :  { %v4293_v58 = vadd.f32 %v4292_v16, %v4197_v35  ;;  %v4346_v63 = vadd.f32 %v4345_v42, %v4205_v46 }
0x1d7b   :  { %v4294_v0 = vpop.f32.mrf.mxu0  ;;  %v4347_v56 = vpop.f32.mrf.mxu1 }
0x1d7c   :  { %v4295_v15 = vadd.f32 %v4294_v0, %v4201_v17  ;;  %v4360_v62 = vpack.c.bf16 %v4293_v58, %v4289_v55  ;;  %v4348_v48 = vadd.f32 %v4347_v56, %v4209_v14  ;;  %v4362_v18 = vpack.c.bf16 %v4346_v63, %v4342_v31  ;;  %v13451_v56 = vld [vmem:[%s16968_s16 + $0x3b8] sm:$0xff]  }
0x1d7d   :  { %v4298_v2 = vpop.f32.mrf.mxu0  ;;  %v4351_v53 = vpop.f32.mrf.mxu1  ;;  %v11158_v58 = vcombine.low %v11148_v7, %v11150_v11  ;;  %v13465_v7 = vld [vmem:[%s16968_s16 + $0x3d8] sm:$0xff]  }
0x1d7e   :  { %v4361_v20 = vpack.c.bf16 %v4295_v15, %v4291_v60  ;;  %v4363_v22 = vpack.c.bf16 %v4348_v48, %v4344_v10  ;;  %v4368_v38 = vmax.bf16 %v13952_v39, %v4360_v62  ;;  %v4370_v51 = vmax.bf16 %v13952_v39, %v4362_v18  ;;  %v13452_v10 = vld [vmem:[%s16968_s16 + $0x370] sm:$0xff]   ;;  %v13458_v18 = vld [vmem:[%s16968_s16 + $0x328] sm:$0xff]   ;;  %v13466_v11 = vld [vmem:[%s16968_s16 + $0x318] sm:$0xff]  }
0x1d7f   :  { %v4300_v24 = vpop.f32.mrf.mxu0  ;;  %v4353_v47 = vpop.f32.mrf.mxu1  ;;  %v4299_v36 = vadd.f32 %v4298_v2, %v4197_v35  ;;  %v4352_v42 = vadd.f32 %v4351_v53, %v4205_v46  ;;  %v13454_v62 = vld [vmem:[%s16968_s16 + $0x330] sm:$0xff]   ;;  %v13457_v2 = vld [vmem:[%s16968_s16 + $0x3e8] sm:$0xff]   ;;  %v13460_v53 = vld [vmem:[%s16968_s16 + $0x360] sm:$0xff]  }
0x1d80   :  { %v4369_v25 = vmax.bf16 %v13952_v39, %v4361_v20  ;;  %v4371_v3 = vmax.bf16 %v13952_v39, %v4363_v22  ;;  %v4301_v55 = vadd.f32 %v4300_v24, %v4201_v17  ;;  %v4354_v31 = vadd.f32 %v4353_v47, %v4209_v14  ;;  %v13455_v48 = vld [vmem:[%s16968_s16 + $0x3b0] sm:$0xff]   ;;  %v13459_v20 = vld [vmem:[%s16968_s16 + $0x3a8] sm:$0xff]   ;;  %v13463_v22 = vld [vmem:[%s16968_s16 + $0x3a0] sm:$0xff]  }
0x1d81   :  { %v4302_v41 = vpop.f32.mrf.mxu0  ;;  %v4355_v59 = vpop.f32.mrf.mxu1  ;;  %v13464_v24 = vld [vmem:[%s16968_s16 + $0x358] sm:$0xff]  }
0x1d82   :  { %v4303_v52 = vadd.f32 %v4302_v41, %v4197_v35  ;;  %4665 = vmatprep.mubr.bf16.mxu0 %v4369_v25  ;;  %v4356_v43 = vadd.f32 %v4355_v59, %v4205_v46  ;;  %4714 = vmatprep.mubr.bf16.mxu1 %v4371_v3  ;;  %v13448_v35 = vld [vmem:[%s16968_s16 + $0x378] sm:$0xff]   ;;  %v13468_v25 = vld [vmem:[%s16968_s16 + $0x350] sm:$0xff]   ;;  %v13475_v59 = vld [vmem:[%s16968_s16 + $0x388] sm:$0xff]  }
0x1d83   :  { %v4304_v16 = vpop.f32.mrf.mxu0  ;;  %4666 = vmatmul.mubr.bf16.vlgmr.msra.gmra.mxu0 %v4368_v38  ;;  %v4357_v0 = vpop.f32.mrf.mxu1  ;;  %4715 = vmatmul.mubr.bf16.vlgmr.msra.gmra.mxu1 %v4370_v51  ;;  %v13467_v47 = vld [vmem:[%s16968_s16 + $0x398] sm:$0xff]   ;;  %v13469_v38 = vld [vmem:[%s16968_s16 + $0x3d0] sm:$0xff]   ;;  %v13473_v51 = vld [vmem:[%s16968_s16 + $0x3c8] sm:$0xff]  }
0x1d84   :  { %v4305_v63 = vadd.f32 %v4304_v16, %v4201_v17  ;;  %4820 = vmatpush1.bf16.msra.mxu0 %v11160_v40  ;;  %v4364_v60 = vpack.c.bf16 %v4303_v52, %v4299_v36  ;;  %v4358_v15 = vadd.f32 %v4357_v0, %v4209_v14  ;;  %4873 = vmatpush1.bf16.msra.mxu1 %v11162_v50  ;;  %v13450_v50 = vld [vmem:[%s16968_s16 + $0x338] sm:$0xff]   ;;  %v13470_v41 = vld [vmem:[%s16968_s16 + $0x310] sm:$0xff]   ;;  %v13474_v52 = vld [vmem:[%s16968_s16 + $0x308] sm:$0xff]  }
0x1d85   :  { %4821 = vmatprep.subr.bf16.mxu0 %v11157_v57  ;;  %v4366_v46 = vpack.c.bf16 %v4356_v43, %v4352_v42  ;;  %4874 = vmatprep.subr.bf16.mxu1 %v11159_v34  ;;  %v13471_v3 = vld [vmem:[%s16968_s16 + $0x390] sm:$0xff]   ;;  %v13472_v57 = vld [vmem:[%s16968_s16 + $0x348] sm:$0xff]   ;;  %v13477_v34 = vld [vmem:[%s16968_s16 + $0x3c0] sm:$0xff]  }
0x1d86   :  { %v4365_v17 = vpack.c.bf16 %v4305_v63, %v4301_v55  ;;  %v4367_v45 = vpack.c.bf16 %v4358_v15, %v4354_v31  ;;  %v4372_v37 = vmax.bf16 %v13952_v39, %v4364_v60  ;;  %v13478_v36 = vld [vmem:[%s16968_s16 + $0x300] sm:$0xff]  }
0x1d87   :  { %v4374_v49 = vmax.bf16 %v13952_v39, %v4366_v46  ;;  %v13479_v43 = vld [vmem:[%s16968_s16 + $0x380] sm:$0xff]  }
0x1d88   :  { %v4373_v40 = vmax.bf16 %v13952_v39, %v4365_v17  ;;  %4822 = vmatpush1.bf16.msra.mxu0 %v11156_v4  ;;  %v4375_v14 = vmax.bf16 %v13952_v39, %v4367_v45  ;;  %4875 = vmatpush1.bf16.msra.mxu1 %v11158_v58  ;;  %v13476_v4 = vld [vmem:[%s16968_s16 + $0x340] sm:$0xff]  }
0x1d89   :  { %12221 = vmatprep.subr.bf16.mxu0 %v13448_v35  ;;  %12249 = vmatprep.subr.bf16.mxu1 %v13449_v44 }
0x1d8a   :  { %4673 = vmatprep.mubr.bf16.mxu0 %v4373_v40  ;;  %4722 = vmatprep.mubr.bf16.mxu1 %v4375_v14 }
0x1d8b   :  { %4674 = vmatmul.mubr.bf16.gmra.mxu0 %v4372_v37  ;;  %4723 = vmatmul.mubr.bf16.gmra.mxu1 %v4374_v49 }
0x1d8c   :  { %4839 = vmatprep.mubr.bf16.mxu0 %v13952_v39  ;;  %4892 = vmatprep.mubr.bf16.mxu1 %v13952_v39 }
0x1d93   :  { %11164 = vmatmul.mubr.msk.bf16.vlgmr.msra.gmra.mxu0 %vm252_vm3, %v14809_v9  ;;  %11166 = vmatmul.mubr.msk.bf16.vlgmr.msra.gmra.mxu1 %vm252_vm3, %v14809_v9  ;;  %v13453_v9 = vld [vmem:[%s16968_s16 + $0x3f0] sm:$0xff]  }
0x1d94   :  { %4849 = vmatprep.mubr.bf16.mxu0 %v13952_v39  ;;  %4902 = vmatprep.mubr.bf16.mxu1 %v13952_v39 }
0x1d95   :  { %12222 = vmatpush3.bf16.msra.mxu0 %v13450_v50  ;;  %12250 = vmatpush3.bf16.msra.mxu1 %v13451_v56 }
0x1d96   :  { %12223 = vmatprep.subr.bf16.mxu0 %v13452_v10  ;;  %12251 = vmatprep.subr.bf16.mxu1 %v13453_v9 }
0x1d99   :  { %12224 = vmatpush3.bf16.msra.mxu0 %v13454_v62  ;;  %12252 = vmatpush3.bf16.msra.mxu1 %v13455_v48 }
0x1d9a   :  { %12253 = vmatprep.subr.bf16.mxu1 %v13457_v2 }
0x1d9b   :  { %11165 = vmatmul.mubr.msk.bf16.gmra.mxu0 %vm252_vm3, %v14829_v27  ;;  %11167 = vmatmul.mubr.msk.bf16.gmra.mxu1 %vm252_vm3, %v14829_v27  ;;  %v13456_v27 = vld [vmem:[%s16968_s16 + $0x368] sm:$0xff]  }
0x1d9c   :  { %12225 = vmatprep.subr.bf16.mxu0 %v13456_v27 }
0x1d9d   :  { %12226 = vmatpush3.bf16.msra.mxu0 %v13458_v18  ;;  %12254 = vmatpush3.bf16.msra.mxu1 %v13459_v20 }
0x1d9e   :  { %12227 = vmatprep.subr.bf16.mxu0 %v13460_v53  ;;  %12255 = vmatprep.subr.bf16.mxu1 %v13461_v54 }
0x1da1   :  { %12228 = vmatpush3.bf16.msra.mxu0 %v13462_v19  ;;  %12256 = vmatpush3.bf16.msra.mxu1 %v13463_v22 }
0x1da2   :  { %12229 = vmatprep.subr.bf16.mxu0 %v13464_v24  ;;  %12257 = vmatprep.subr.bf16.mxu1 %v13465_v7 }
0x1da5   :  { %12230 = vmatpush3.bf16.msra.mxu0 %v13466_v11  ;;  %12258 = vmatpush3.bf16.msra.mxu1 %v13467_v47 }
0x1da6   :  { %12231 = vmatprep.subr.bf16.mxu0 %v13468_v25  ;;  %12259 = vmatprep.subr.bf16.mxu1 %v13469_v38 }
0x1da9   :  { %12232 = vmatpush3.bf16.msra.mxu0 %v13470_v41  ;;  %12260 = vmatpush3.bf16.msra.mxu1 %v13471_v3 }
0x1daa   :  { %12233 = vmatprep.subr.bf16.mxu0 %v13472_v57  ;;  %12261 = vmatprep.subr.bf16.mxu1 %v13473_v51 }
0x1dad   :  { %12234 = vmatpush3.bf16.msra.mxu0 %v13474_v52  ;;  %12262 = vmatpush3.bf16.msra.mxu1 %v13475_v59 }
0x1dae   :  { %12235 = vmatprep.subr.bf16.mxu0 %v13476_v4  ;;  %12263 = vmatprep.subr.bf16.mxu1 %v13477_v34 }
0x1db1   :  { %12236 = vmatpush3.bf16.msra.mxu0 %v13478_v36  ;;  %12264 = vmatpush3.bf16.msra.mxu1 %v13479_v43 }
0x1e43   :  { %v12181_v16 = vpop.f32.mrf.mxu0  ;;  %v12209_v58 = vpop.f32.mrf.mxu1 }
0x1e45   :  { %v12182_v42 = vpop.f32.mrf.mxu0  ;;  %v12210_v63 = vpop.f32.mrf.mxu1 }
0x1e46   :  { %v12183_v55 = vadd.f32 %v12182_v42, %v12181_v16  ;;  %v12211_v0 = vadd.f32 %v12210_v63, %v12209_v58 }
0x1e47   :  { %v12184_v31 = vpop.f32.mrf.mxu0  ;;  %v12212_v60 = vpop.f32.mrf.mxu1 }
0x1e48   :  { %v4717_v15 = vadd.f32 %v12211_v0, %v12183_v55 }
0x1e49   :  { %v12185_v35 = vpop.f32.mrf.mxu0  ;;  %v12213_v17 = vpop.f32.mrf.mxu1 }
0x1e4a   :  { %v12186_v46 = vadd.f32 %v12185_v35, %v12184_v31  ;;  %v15445_v44 = vadd.f32 %v4717_v15, %v15295_v26  ;;  %v12214_v45 = vadd.f32 %v12213_v17, %v12212_v60  ;;  %v11155_v26 = vld [vmem:[%s16971_s15 + $0xc] sm:$0xf] }
0x1e4b   :  { %v12187_v40 = vpop.f32.mrf.mxu0  ;;  %v12215_v14 = vpop.f32.mrf.mxu1  ;;  %v4758_v11 = vrot.slane %v11155_v26, %v14979_v13  ;;  %v4754_v47 = vrot.slane %v11155_v26, %v14981_v29  ;;  %v4762_v41 = vrot.slane %v11155_v26, %v14983_v30 }
0x1e4c   :  { %v4720_v37 = vadd.f32 %v12214_v45, %v12186_v46 }
0x1e4d   :  { %v12188_v49 = vpop.f32.mrf.mxu0  ;;  %v12216_v56 = vpop.f32.mrf.mxu1 }
0x1e4e   :  { %v12189_v50 = vadd.f32 %v12188_v49, %v12187_v40  ;;  %v15448_v10 = vadd.f32 %v4720_v37, %v15297_v23  ;;  %v12217_v9 = vadd.f32 %v12216_v56, %v12215_v14  ;;  %v4750_v23 = vrot.slane %v11155_v26, %v14977_v1 }
0x1e4f   :  { %v12190_v62 = vpop.f32.mrf.mxu0  ;;  %v12218_v48 = vpop.f32.mrf.mxu1 }
0x1e50   :  { %v4725_v27 = vadd.f32 %v12217_v9, %v12189_v50 }
0x1e51   :  { %v12191_v2 = vpop.f32.mrf.mxu0  ;;  %v12219_v20 = vpop.f32.mrf.mxu1 }
0x1e52   :  { %v12192_v18 = vadd.f32 %v12191_v2, %v12190_v62  ;;  %v15454_v53 = vadd.f32 %v4725_v27, %v15299_v12  ;;  %v12220_v54 = vadd.f32 %v12219_v20, %v12218_v48 }
0x1e53   :  { %v4841_v19 = vpop.f32.mrf.mxu0  ;;  %v4894_v22 = vpop.f32.mrf.mxu1 }
0x1e54   :  { %v4728_v24 = vadd.f32 %v12220_v54, %v12192_v18  ;;  %v4842_v51 = vadd.f32 %v4841_v19, %v4750_v23  ;;  %v4895_v4 = vadd.f32 %v4894_v22, %v4758_v11 }
0x1e55   :  { %v4843_v7 = vpop.f32.mrf.mxu0  ;;  %v4896_v25 = vpop.f32.mrf.mxu1 }
0x1e56   :  { %v15460_v38 = vadd.f32 %v4728_v24, %v15305_v61  ;;  %v4844_v34 = vadd.f32 %v4843_v7, %v4754_v47  ;;  %v4897_v16 = vadd.f32 %v4896_v25, %v4762_v41 }
0x1e57   :  { %v4845_v3 = vpop.f32.mrf.mxu0  ;;  %v4898_v57 = vpop.f32.mrf.mxu1 }
0x1e58   :  { %v4846_v12 = vadd.f32 %v4845_v3, %v4750_v23  ;;  %v4899_v52 = vadd.f32 %v4898_v57, %v4758_v11 }
0x1e59   :  { %v4847_v59 = vpop.f32.mrf.mxu0  ;;  %v4900_v43 = vpop.f32.mrf.mxu1 }
0x1e5a   :  { %v4848_v36 = vadd.f32 %v4847_v59, %v4754_v47  ;;  %v4913_v58 = vpack.c.bf16 %v4846_v12, %v4842_v51  ;;  %v4901_v42 = vadd.f32 %v4900_v43, %v4762_v41  ;;  %v4915_v63 = vpack.c.bf16 %v4899_v52, %v4895_v4 }
0x1e5b   :  { %v4851_v55 = vpop.f32.mrf.mxu0  ;;  %v4904_v61 = vpop.f32.mrf.mxu1 }
0x1e5c   :  { %v4914_v0 = vpack.c.bf16 %v4848_v36, %v4844_v34  ;;  %v4916_v31 = vpack.c.bf16 %v4901_v42, %v4897_v16  ;;  %v4921_v46 = vmax.bf16 %v13952_v39, %v4913_v58  ;;  %v4923_v40 = vmax.bf16 %v13952_v39, %v4915_v63  ;;  %v11264_v42 = vld [vmem:[%s16972_s17] ss:$0 sm:$0xff] }
0x1e5d   :  { %v4853_v60 = vpop.f32.mrf.mxu0  ;;  %v4906_v15 = vpop.f32.mrf.mxu1  ;;  %v4852_v49 = vadd.f32 %v4851_v55, %v4750_v23  ;;  %v4905_v9 = vadd.f32 %v4904_v61, %v4758_v11 }
0x1e5e   :  { %v4922_v35 = vmax.bf16 %v13952_v39, %v4914_v0  ;;  %v4924_v45 = vmax.bf16 %v13952_v39, %v4916_v31  ;;  %v4854_v62 = vadd.f32 %v4853_v60, %v4754_v47  ;;  %v4907_v2 = vadd.f32 %v4906_v15, %v4762_v41 }
0x1e5f   :  { %v4855_v17 = vpop.f32.mrf.mxu0  ;;  %v4908_v37 = vpop.f32.mrf.mxu1 }
0x1e60   :  { %v4856_v14 = vadd.f32 %v4855_v17, %v4750_v23  ;;  %5218 = vmatprep.mubr.bf16.mxu0 %v4922_v35  ;;  %v4909_v50 = vadd.f32 %v4908_v37, %v4758_v11  ;;  %5267 = vmatprep.mubr.bf16.mxu1 %v4924_v45 }
0x1e61   :  { %v4857_v56 = vpop.f32.mrf.mxu0  ;;  %5219 = vmatmul.mubr.bf16.vlgmr.msra.gmra.mxu0 %v4921_v46  ;;  %v4910_v27 = vpop.f32.mrf.mxu1  ;;  %5268 = vmatmul.mubr.bf16.vlgmr.msra.gmra.mxu1 %v4923_v40 }
0x1e62   :  { %v4858_v48 = vadd.f32 %v4857_v56, %v4754_v47  ;;  %v4917_v18 = vpack.c.bf16 %v4856_v14, %v4852_v49  ;;  %v4911_v20 = vadd.f32 %v4910_v27, %v4762_v41  ;;  %v4919_v26 = vpack.c.bf16 %v4909_v50, %v4905_v9 }
0x1e64   :  { %v4918_v54 = vpack.c.bf16 %v4858_v48, %v4854_v62  ;;  %v4920_v19 = vpack.c.bf16 %v4911_v20, %v4907_v2  ;;  %v4925_v23 = vmax.bf16 %v13952_v39, %v4917_v18  ;;  %v4927_v7 = vmax.bf16 %v13952_v39, %v4919_v26 }
0x1e66   :  { %v4926_v22 = vmax.bf16 %v13952_v39, %v4918_v54  ;;  %v4928_v24 = vmax.bf16 %v13952_v39, %v4920_v19 }
0x1e68   :  { %5226 = vmatprep.mubr.bf16.mxu0 %v4926_v22  ;;  %5275 = vmatprep.mubr.bf16.mxu1 %v4928_v24 }
0x1e69   :  { %5227 = vmatmul.mubr.bf16.gmra.mxu0 %v4925_v23  ;;  %5276 = vmatmul.mubr.bf16.gmra.mxu1 %v4927_v7 }
0x1f21   :  { %v12237_v11 = vpop.f32.mrf.mxu0  ;;  %v12265_v47 = vpop.f32.mrf.mxu1 }
0x1f23   :  { %v12238_v25 = vpop.f32.mrf.mxu0  ;;  %v12266_v41 = vpop.f32.mrf.mxu1 }
0x1f24   :  { %v12239_v3 = vadd.f32 %v12238_v25, %v12237_v11  ;;  %v12267_v12 = vadd.f32 %v12266_v41, %v12265_v47 }
0x1f25   :  { %v12240_v57 = vpop.f32.mrf.mxu0  ;;  %v12268_v51 = vpop.f32.mrf.mxu1 }
0x1f26   :  { %v5270_v52 = vadd.f32 %v12267_v12, %v12239_v3 }
0x1f27   :  { %v12241_v59 = vpop.f32.mrf.mxu0  ;;  %v12269_v34 = vpop.f32.mrf.mxu1 }
0x1f28   :  { %v12242_v4 = vadd.f32 %v12241_v59, %v12240_v57  ;;  %v5284_v36 = vadd.f32 %v5270_v52, %v15445_v44  ;;  %v12270_v43 = vadd.f32 %v12269_v34, %v12268_v51  ;;  %v13480_v59 = vld [vmem:[%s17048_s1 + $0x18] sm:$0xff]  }
0x1f29   :  { %v12243_v16 = vpop.f32.mrf.mxu0  ;;  %v12271_v58 = vpop.f32.mrf.mxu1  ;;  %12929 = vmatprep.subr.bf16.mxu0 %v13480_v59 }
0x1f2a   :  { %v5273_v55 = vadd.f32 %v12270_v43, %v12242_v4  ;;  %v5288_v0 = vadd.f32 %v5284_v36, %v14802_v6  ;;  %v13481_v4 = vld [vmem:[%s17048_s1 + $0x10] sm:$0xff]   ;;  %12930 = vmatpush3.bf16.msra.mxu0 %v13480_v59 }
0x1f2b   :  { %v12244_v63 = vpop.f32.mrf.mxu0  ;;  %v12272_v31 = vpop.f32.mrf.mxu1  ;;  %12931 = vmatprep.subr.bf16.mxu0 %v13481_v4 }
0x1f2c   :  { %v12245_v61 = vadd.f32 %v12244_v63, %v12243_v16  ;;  %v5285_v60 = vadd.f32 %v5273_v55, %v15448_v10  ;;  %v12273_v15 = vadd.f32 %v12272_v31, %v12271_v58  ;;  %v5299_v46 = vadd.f32 %v11264_v42, %v5288_v0 }
0x1f2d   :  { %v12246_v35 = vpop.f32.mrf.mxu0  ;;  %v12274_v17 = vpop.f32.mrf.mxu1 }
0x1f2e   :  { %v5278_v44 = vadd.f32 %v12273_v15, %v12245_v61  ;;  %v5305_v40 = vsel %vm252_vm3, %v5299_v46, 0.0  ;;  %v5289_v14 = vadd.f32 %v5285_v60, %v14805_v8  ;;  %12932 = vmatpush3.bf16.msra.mxu0 %v13481_v4 }
0x1f2f   :  { %v12247_v45 = vpop.f32.mrf.mxu0  ;;  %v12275_v49 = vpop.f32.mrf.mxu1  ;;  %5306 = vadd.xlane.f32.xlu1 %v5305_v40  ;;  %v11266_v40 = vld [vmem:[%s16974_s23] ss:$0 sm:$0xff] }
0x1f30   :  { %v12248_v37 = vadd.f32 %v12247_v45, %v12246_v35  ;;  %v5286_v50 = vadd.f32 %v5278_v44, %v15454_v53  ;;  %v12276_v6 = vadd.f32 %v12275_v49, %v12274_v17  ;;  %v5300_v56 = vadd.f32 %v11264_v42, %v5289_v14 }
0x1f32   :  { %v5281_v9 = vadd.f32 %v12276_v6, %v12248_v37  ;;  %v5308_v10 = vsel %vm252_vm3, %v5300_v56, 0.0  ;;  %v5290_v62 = vadd.f32 %v5286_v50, %v14825_v32 }
0x1f33   :  { %5309 = vadd.xlane.f32.xlu0 %v5308_v10 }
0x1f34   :  { %v5287_v48 = vadd.f32 %v5281_v9, %v15460_v38  ;;  %v5301_v27 = vadd.f32 %v11264_v42, %v5290_v62 }
0x1f36   :  { %v5311_v2 = vsel %vm252_vm3, %v5301_v27, 0.0  ;;  %v5291_v8 = vadd.f32 %v5287_v48, %v14821_v21 }
0x1f37   :  { %5312 = vadd.xlane.f32.xlu1 %v5311_v2 }
0x1f38   :  { %v5302_v18 = vadd.f32 %v11264_v42, %v5291_v8 }
0x1f3a   :  { %v5314_v20 = vsel %vm252_vm3, %v5302_v18, 0.0 }
0x1f3b   :  { %5315 = vadd.xlane.f32.xlu0 %v5314_v20 }
0x1fb8   :  { %v5307_v53 = vpop.xlane.xlu1 %5306 }
0x1fb9   :  { %v5317_v26 = vmul.f32 0.03125, %v5307_v53 }
0x1fbb   :  { %v5321_v54 = vsub.f32 %v5299_v46, %v5317_v26  ;;  %v11265_v46 = vld [vmem:[%s16973_s22] ss:$0 sm:$0xff] }
0x1fbc   :  { %v5310_v19 = vpop.xlane.xlu0 %5309 }
0x1fbd   :  { %v5318_v22 = vmul.f32 0.03125, %v5310_v19  ;;  %v5325_v24 = vmul.f32 %v5321_v54, %v5321_v54 }
0x1fbf   :  { %v5322_v32 = vsub.f32 %v5300_v56, %v5318_v22  ;;  %v5329_v23 = vsel %vm252_vm3, %v5325_v24, 0.0 }
0x1fc0   :  { %5330 = vadd.xlane.f32.xlu1 %v5329_v23  ;;  %v5313_v38 = vpop.xlane.xlu1 %5312 }
0x1fc1   :  { %v5319_v7 = vmul.f32 0.03125, %v5313_v38  ;;  %v5326_v11 = vmul.f32 %v5322_v32, %v5322_v32 }
0x1fc3   :  { %v5323_v47 = vsub.f32 %v5301_v27, %v5319_v7  ;;  %v5332_v21 = vsel %vm252_vm3, %v5326_v11, 0.0 }
0x1fc4   :  { %5333 = vadd.xlane.f32.xlu0 %v5332_v21  ;;  %v5316_v25 = vpop.xlane.xlu0 %5315 }
0x1fc5   :  { %v5320_v3 = vmul.f32 0.03125, %v5316_v25  ;;  %v5327_v41 = vmul.f32 %v5323_v47, %v5323_v47 }
0x1fc7   :  { %v5324_v12 = vsub.f32 %v5302_v18, %v5320_v3  ;;  %v5335_v57 = vsel %vm252_vm3, %v5327_v41, 0.0  ;;  %v11272_v18 = vld [vmem:[%s17051_s28 + $0x1] ss:$0 sm:$0xff]  ;;  %s17066_s28 = smov 120  }
0x1fc8   :  { %5336 = vadd.xlane.f32.xlu1 %v5335_v57 }
0x1fc9   :  { %v5328_v51 = vmul.f32 %v5324_v12, %v5324_v12 }
0x1fcb   :  { %v5338_v52 = vsel %vm252_vm3, %v5328_v51, 0.0 }
0x1fcc   :  { %5339 = vadd.xlane.f32.xlu0 %v5338_v52 }
0x2049   :  { %v5331_v34 = vpop.xlane.xlu1 %5330 }
0x204a   :  { %v5341_v36 = vmul.f32 0.03125, %v5331_v34 }
0x204c   :  { %v5345_v43 = vadd.f32 1e-05, %v5341_v36 }
0x204d   :  { %v5334_v16 = vpop.xlane.xlu0 %5333 }
0x204e   :  { %13762 = vrsqrt.f32 %v5345_v43  ;;  %v5342_v58 = vmul.f32 0.03125, %v5334_v16 }
0x2050   :  { %v5346_v42 = vadd.f32 1e-05, %v5342_v58 }
0x2051   :  { %v5337_v55 = vpop.xlane.xlu1 %5336 }
0x2052   :  { %13764 = vrsqrt.f32 %v5346_v42  ;;  %v5343_v63 = vmul.f32 0.03125, %v5337_v55 }
0x2054   :  { %v5347_v0 = vadd.f32 1e-05, %v5343_v63 }
0x2055   :  { %v5340_v61 = vpop.xlane.xlu0 %5339 }
0x2056   :  { %13766 = vrsqrt.f32 %v5347_v0  ;;  %v5344_v31 = vmul.f32 0.03125, %v5340_v61 }
0x2058   :  { %v5348_v60 = vadd.f32 1e-05, %v5344_v31 }
0x205a   :  { %13768 = vrsqrt.f32 %v5348_v60 }
0x205b   :  { %v13763_v15 = vpop.eup %13762 }
0x205c   :  { %v5353_v35 = vmul.f32 %v13763_v15, %v5321_v54 }
0x205e   :  { %v5363_v45 = vmul.f32 %v11265_v46, %v5353_v35 }
0x205f   :  { %v13765_v17 = vpop.eup %13764 }
0x2060   :  { %v5354_v44 = vmul.f32 %v13765_v17, %v5322_v32  ;;  %v15502_v50 = vadd.f32 %v11266_v40, %v5363_v45 }
0x2062   :  { %v5364_v14 = vmul.f32 %v11265_v46, %v5354_v44 }
0x2063   :  { %v13767_v37 = vpop.eup %13766 }
0x2064   :  { %v5355_v49 = vmul.f32 %v13767_v37, %v5323_v47  ;;  %v15504_v6 = vadd.f32 %v11266_v40, %v5364_v14 }
0x2066   :  { %v5377_v56 = vpack.c.bf16 %v15504_v6, %v15502_v50  ;;  %v5365_v62 = vmul.f32 %v11265_v46, %v5355_v49 }
0x2067   :  { %v13769_v9 = vpop.eup %13768 }
0x2068   :  { %v5356_v10 = vmul.f32 %v13769_v9, %v5324_v12  ;;  %12933 = vmatprep.mubr.msk.bf16.mxu0 %vm252_vm3, %v5377_v56  ;;  %v15509_v27 = vadd.f32 %v11266_v40, %v5365_v62 }
0x206a   :  { %v5366_v48 = vmul.f32 %v11265_v46, %v5356_v10 }
0x206c   :  { %v15511_v2 = vadd.f32 %v11266_v40, %v5366_v48 }
0x206e   :  { %v5378_v8 = vpack.c.bf16 %v15511_v2, %v15509_v27 }
0x2070   :  { %12934 = vmatmul.mubr.msk.bf16.vlgmr.msra.gmra.mxu0 %vm252_vm3, %v5378_v8 }
0x2130   :  { %v12935_v20 = vpop.f32.mrf.mxu0 }
0x2131   :  { %v15519_v53 = vadd.f32 %v12935_v20, %v11272_v18 }
0x2132   :  { %v5444_v26 = vpop.f32.mrf.mxu0 }
0x2133   :  { %v15521_v54 = vadd.f32 %v11272_v18, %v5444_v26  ;;  %5467 = vrot.lane.b32.xlu0 %v15519_v53, %s17065_s21 }
0x2134   :  { %v12936_v19 = vpop.f32.mrf.mxu0 }
0x2135   :  { %v15525_v22 = vadd.f32 %v12936_v19, %v11272_v18  ;;  %12945 = vmatprep.mubr.msk.f32.mxu1 %vm222_vm2, %v15521_v54 }
0x2136   :  { %v5447_v24 = vpop.f32.mrf.mxu0 }
0x2137   :  { %5743 = vrot.lane.b32.xlu0 %v15525_v22, %s17057_s0  ;;  %5469 = vrot.lane.b32.xlu1 %v15525_v22, %s17065_s21  ;;  %v15533_v32 = vadd.f32 %v11272_v18, %v5447_v24 }
0x213b   :  { %5739 = vrot.lane.b32.xlu0 %v15533_v32, %s17057_s0  ;;  %5465 = vrot.lane.b32.xlu1 %v15533_v32, %s17065_s21 }
0x213f   :  { %5729 = vrot.lane.b32.xlu0 %v15521_v54, %s17066_s28  ;;  %5463 = vrot.lane.b32.xlu1 %v15521_v54, %s17065_s21 }
0x2143   :  { %5733 = vrot.lane.b32.xlu0 %v15519_v53, %s17066_s28  ;;  %5741 = vrot.lane.b32.xlu1 %v15519_v53, %s17057_s0 }
0x2147   :  { %5737 = vrot.lane.b32.xlu1 %v15521_v54, %s17057_s0 }
0x214b   :  { %5731 = vrot.lane.b32.xlu1 %v15533_v32, %s17066_s28 }
0x214f   :  { %5735 = vrot.lane.b32.xlu1 %v15525_v22, %s17066_s28 }
0x21a5   :  { %v5468_v38 = vpop.permute.xlu0 %5467 }
0x21a9   :  { %v5470_v23 = vpop.permute.xlu1 %5469  ;;  %v5744_v11 = vpop.permute.xlu0 %5743 }
0x21aa   :  { %12937 = vmatprep.subr.msk.mxu1 %vm222_vm2, %v5470_v23 }
0x21ab   :  { %12938 = vmatpush3.xpose.msk.msra.mxu1 %vm222_vm2, %v5470_v23 }
0x21ac   :  { %12939 = vmatprep.subr.msk.mxu1 %vm222_vm2, %v5468_v38 }
0x21ad   :  { %v5466_v7 = vpop.permute.xlu1 %5465  ;;  %v5740_v21 = vpop.permute.xlu0 %5739 }
0x21af   :  { %12940 = vmatpush3.xpose.msk.msra.mxu1 %vm222_vm2, %v5468_v38 }
0x21b0   :  { %12941 = vmatprep.subr.msk.mxu1 %vm222_vm2, %v5466_v7 }
0x21b1   :  { %v5464_v47 = vpop.permute.xlu1 %5463  ;;  %v5730_v3 = vpop.permute.xlu0 %5729 }
0x21b3   :  { %12942 = vmatpush3.xpose.msk.msra.mxu1 %vm222_vm2, %v5466_v7 }
0x21b4   :  { %12943 = vmatprep.subr.msk.mxu1 %vm222_vm2, %v5464_v47 }
0x21b5   :  { %v5742_v25 = vpop.permute.xlu1 %5741  ;;  %v5734_v57 = vpop.permute.xlu0 %5733 }
0x21b7   :  { %12944 = vmatpush3.xpose.msk.msra.mxu1 %vm222_vm2, %v5464_v47 }
0x21b8   :  { %12965 = vmatprep.subr.msk.mxu1 %vm222_vm2, %v5744_v11 }
0x21b9   :  { %v5738_v41 = vpop.permute.xlu1 %5737 }
0x21ba   :  { %12946 = vmatmul.mubr.msk.f32.vlgmr.msra.gmra.mxu1 %vm222_vm2, %v15533_v32 }
0x21bb   :  { %12948 = vmatprep.mubr.msk.f32.mxu1 %vm222_vm2, %v15519_v53  ;;  %12966 = vmatpush3.xpose.msk.msra.mxu1 %vm222_vm2, %v5744_v11 }
0x21bc   :  { %12967 = vmatprep.subr.msk.mxu1 %vm222_vm2, %v5742_v25 }
0x21bd   :  { %v5732_v12 = vpop.permute.xlu1 %5731 }
0x21be   :  { %12949 = vmatmul.mubr.msk.f32.gmra.mxu1 %vm222_vm2, %v15525_v22 }
0x21bf   :  { %12968 = vmatpush3.xpose.msk.msra.mxu1 %vm222_vm2, %v5742_v25  ;;  %12973 = vmatprep.mubr.msk.f32.mxu1 %vm222_vm2, %v5730_v3 }
0x21c0   :  { %12969 = vmatprep.subr.msk.mxu1 %vm222_vm2, %v5740_v21 }
0x21c1   :  { %v5736_v51 = vpop.permute.xlu1 %5735 }
0x21c3   :  { %12970 = vmatpush3.xpose.msk.msra.mxu1 %vm222_vm2, %v5740_v21 }
0x21c4   :  { %12971 = vmatprep.subr.msk.mxu1 %vm222_vm2, %v5738_v41 }
0x21c7   :  { %12972 = vmatpush3.xpose.msk.msra.mxu1 %vm222_vm2, %v5738_v41 }
0x21ca   :  { %12974 = vmatmul.mubr.msk.f32.vlgmr.msra.gmra.mxu1 %vm222_vm2, %v5732_v12 }
0x21cb   :  { %12976 = vmatprep.mubr.msk.f32.mxu1 %vm222_vm2, %v5734_v57 }
0x21ce   :  { %12977 = vmatmul.mubr.msk.f32.gmra.mxu1 %vm222_vm2, %v5736_v51 }
0x227a   :  { %v12947_v52 = vpop.f32.mrf.mxu1 }
0x227b   :  { %v5573_v59 = vmul.f32 0.35355338, %v12947_v52 }
0x227c   :  { %v5553_v4 = vpop.f32.mrf.mxu1 }
0x227d   :  { %v5572_v34 = vmul.f32 0.35355338, %v5553_v4  ;;  %v5579_v36 = vsel %vm252_vm3, %v5573_v59, -inf }
0x227e   :  { %5580 = vmax.xlane.f32.xlu1 %v5579_v36  ;;  %v12950_v43 = vpop.f32.mrf.mxu1 }
0x227f   :  { %v5576_v16 = vsel %vm252_vm3, %v5572_v34, -inf  ;;  %v5575_v55 = vmul.f32 0.35355338, %v12950_v43 }
0x2280   :  { %5577 = vmax.xlane.f32.xlu0 %v5576_v16  ;;  %v5563_v58 = vpop.f32.mrf.mxu1 }
0x2281   :  { %v5574_v42 = vmul.f32 0.35355338, %v5563_v58  ;;  %v5585_v0 = vsel %vm252_vm3, %v5575_v55, -inf }
0x2283   :  { %v5582_v63 = vsel %vm252_vm3, %v5574_v42, -inf }
0x2284   :  { %5583 = vmax.xlane.f32.xlu0 %v5582_v63 }
0x2288   :  { %5586 = vmax.xlane.f32.xlu0 %v5585_v0 }
0x228a   :  { %v12975_v61 = vpop.f32.mrf.mxu1 }
0x228b   :  { %v5847_v31 = vmul.f32 0.35355338, %v12975_v61 }
0x228c   :  { %v5827_v60 = vpop.f32.mrf.mxu1 }
0x228d   :  { %v15583_v15 = vmul.f32 0.35355338, %v5827_v60  ;;  %v5853_v35 = vsel %vm252_vm3, %v5847_v31, -inf }
0x228e   :  { %v12978_v46 = vpop.f32.mrf.mxu1  ;;  %5854 = vmax.xlane.f32.xlu0 %v5853_v35 }
0x228f   :  { %v15586_v17 = vmul.f32 0.35355338, %v12978_v46  ;;  %v5850_v44 = vsel %vm252_vm3, %v15583_v15, -inf }
0x2290   :  { %5851 = vmax.xlane.f32.xlu1 %v5850_v44  ;;  %v5837_v40 = vpop.f32.mrf.mxu1 }
0x2291   :  { %v5859_v45 = vsel %vm252_vm3, %v15586_v17, -inf  ;;  %v15606_v14 = vmul.f32 0.35355338, %v5837_v40 }
0x2292   :  { %5860 = vmax.xlane.f32.xlu0 %v5859_v45 }
0x2293   :  { %v5856_v37 = vsel %vm252_vm3, %v15606_v14, -inf }
0x22a1   :  { %5624 = vrot.lane.b32.xlu1 %v15519_v53, %s17067_s12 }
0x22a5   :  { %5620 = vrot.lane.b32.xlu1 %v15521_v54, %s17067_s12 }
0x22a8   :  { %5626 = vrot.lane.b32.xlu0 %v15525_v22, %s17067_s12 }
0x22a9   :  { %5898 = vrot.lane.b32.xlu1 %v15519_v53, %s17068_s13 }
0x22ac   :  { %5622 = vrot.lane.b32.xlu0 %v15533_v32, %s17067_s12 }
0x22b0   :  { %5900 = vrot.lane.b32.xlu0 %v15525_v22, %s17068_s13 }
0x22b4   :  { %5896 = vrot.lane.b32.xlu0 %v15533_v32, %s17068_s13 }
0x22cd   :  { %5857 = vmax.xlane.f32.xlu1 %v5856_v37 }
0x22de   :  { %5894 = vrot.lane.b32.xlu1 %v15521_v54, %s17068_s13  ;;  %s17073_s13 = sld [smem:[#allocation15_spill]] }
0x2307   :  { %v5581_v49 = vpop.xlane.xlu1 %5580 }
0x2308   :  { %v5589_v56 = vsub.f32 %v5573_v59, %v5581_v49 }
0x2309   :  { %v5578_v9 = vpop.xlane.xlu0 %5577 }
0x230a   :  { %v5594_v10 = vmul.f32 1.442695, %v5589_v56  ;;  %v5588_v62 = vsub.f32 %v5572_v34, %v5578_v9 }
0x230c   :  { %13770 = vpow2.f32 %v5594_v10  ;;  %v5592_v48 = vmul.f32 1.442695, %v5588_v62 }
0x230d   :  { %v5584_v8 = vpop.xlane.xlu0 %5583 }
0x230e   :  { %13772 = vpow2.f32 %v5592_v48  ;;  %v5590_v18 = vsub.f32 %v5574_v42, %v5584_v8 }
0x2310   :  { %v5596_v20 = vmul.f32 1.442695, %v5590_v18 }
0x2311   :  { %v5587_v26 = vpop.xlane.xlu0 %5586 }
0x2312   :  { %13774 = vpow2.f32 %v5596_v20  ;;  %v5591_v19 = vsub.f32 %v5575_v55, %v5587_v26 }
0x2314   :  { %v5598_v24 = vmul.f32 1.442695, %v5591_v19 }
0x2316   :  { %13776 = vpow2.f32 %v5598_v24 }
0x2317   :  { %v5855_v23 = vpop.xlane.xlu0 %5854 }
0x2318   :  { %v5863_v38 = vsub.f32 %v5847_v31, %v5855_v23 }
0x2319   :  { %v15612_v7 = vpop.eup %13770  ;;  %v5852_v11 = vpop.xlane.xlu1 %5851 }
0x231a   :  { %v5868_v47 = vmul.f32 1.442695, %v5863_v38  ;;  %v5603_v21 = vsel %vm252_vm3, %v15612_v7, 0.0  ;;  %v5862_v42 = vsub.f32 %v15583_v15, %v5852_v11 }
0x231b   :  { %v15616_v25 = vpop.eup %13772  ;;  %5604 = vadd.xlane.f32.xlu0 %v5603_v21  ;;  %v5861_v3 = vpop.xlane.xlu0 %5860 }
0x231c   :  { %13778 = vpow2.f32 %v5868_v47  ;;  %v5600_v41 = vsel %vm252_vm3, %v15616_v25, 0.0  ;;  %v5866_v55 = vmul.f32 1.442695, %v5862_v42  ;;  %v5865_v63 = vsub.f32 %v15586_v17, %v5861_v3 }
0x231d   :  { %5601 = vadd.xlane.f32.xlu1 %v5600_v41  ;;  %v5625_v57 = vpop.permute.xlu1 %5624 }
0x231e   :  { %13780 = vpow2.f32 %v5866_v55  ;;  %v5872_v0 = vmul.f32 1.442695, %v5865_v63 }
0x231f   :  { %v15620_v12 = vpop.eup %13774  ;;  %v5627_v51 = vpop.permute.xlu0 %5626 }
0x2320   :  { %12951 = vmatprep.subr.mxu0 %v5627_v51  ;;  %v5606_v52 = vsel %vm252_vm3, %v15620_v12, 0.0  ;;  %13782 = vpow2.f32 %v5872_v0 }
0x2321   :  { %5607 = vadd.xlane.f32.xlu1 %v5606_v52  ;;  %12952 = vmatpush3.msra.mxu0 %v5627_v51  ;;  %v5621_v36 = vpop.permute.xlu1 %5620 }
0x2322   :  { %12953 = vmatprep.subr.mxu0 %v5625_v57 }
0x2323   :  { %v15624_v59 = vpop.eup %13776  ;;  %12954 = vmatpush3.msra.mxu0 %v5625_v57  ;;  %v5623_v4 = vpop.permute.xlu0 %5622 }
0x2324   :  { %12955 = vmatprep.subr.mxu0 %v5623_v4  ;;  %v5609_v34 = vsel %vm252_vm3, %v15624_v59, 0.0 }
0x2325   :  { %5610 = vadd.xlane.f32.xlu0 %v5609_v34  ;;  %12956 = vmatpush3.msra.mxu0 %v5623_v4  ;;  %v5899_v61 = vpop.permute.xlu1 %5898 }
0x2326   :  { %12957 = vmatprep.subr.mxu0 %v5621_v36 }
0x2327   :  { %12958 = vmatpush3.msra.mxu0 %v5621_v36  ;;  %v5901_v43 = vpop.permute.xlu0 %5900 }
0x2328   :  { %12979 = vmatprep.subr.mxu0 %v5901_v43 }
0x2329   :  { %v15628_v16 = vpop.eup %13778 }
0x232a   :  { %v5877_v58 = vsel %vm252_vm3, %v15628_v16, 0.0 }
0x232b   :  { %5878 = vadd.xlane.f32.xlu0 %v5877_v58  ;;  %v13781_v31 = vpop.eup %13780 }
0x232c   :  { %v5874_v46 = vsel %vm252_vm3, %v13781_v31, 0.0 }
0x232d   :  { %v15650_v17 = vpop.eup %13782 }
0x232e   :  { %v5883_v44 = vsel %vm252_vm3, %v15650_v17, 0.0 }
0x2332   :  { %6015 = vrot.lane.b32.xlu1 %v15519_v53, %s17059_s29 }
0x2336   :  { %6011 = vrot.lane.b32.xlu1 %v15521_v54, %s17059_s29 }
0x2341   :  { %6017 = vrot.lane.b32.xlu0 %v15525_v22, %s17059_s29 }
0x2345   :  { %6013 = vrot.lane.b32.xlu0 %v15533_v32, %s17059_s29 }
0x2349   :  { %6003 = vrot.lane.b32.xlu0 %v15521_v54, %s17058_s10 }
0x234d   :  { %6007 = vrot.lane.b32.xlu0 %v15519_v53, %s17058_s10 }
0x2351   :  { %6172 = vrot.lane.b32.xlu0 %v15519_v53, %s17069_s18 }
0x2356   :  { %v5858_v60 = vpop.xlane.xlu1 %5857 }
0x2357   :  { %v5864_v15 = vsub.f32 %v15606_v14, %v5858_v60  ;;  %v5897_v14 = vpop.permute.xlu0 %5896 }
0x2359   :  { %v5870_v35 = vmul.f32 1.442695, %v5864_v15 }
0x235a   :  { %5875 = vadd.xlane.f32.xlu1 %v5874_v46  ;;  %v5895_v37 = vpop.permute.xlu1 %5894 }
0x235b   :  { %13784 = vpow2.f32 %v5870_v35 }
0x235e   :  { %5884 = vadd.xlane.f32.xlu1 %v5883_v44 }
0x2368   :  { %v15654_v45 = vpop.eup %13784 }
0x2369   :  { %v5880_v40 = vsel %vm252_vm3, %v15654_v45, 0.0 }
0x236a   :  { %5881 = vadd.xlane.f32.xlu1 %v5880_v40 }
0x237b   :  { %6005 = vrot.lane.b32.xlu1 %v15533_v32, %s17058_s10 }
0x237f   :  { %6009 = vrot.lane.b32.xlu1 %v15525_v22, %s17058_s10 }
0x2383   :  { %6174 = vrot.lane.b32.xlu1 %v15525_v22, %s17069_s18 }
0x2387   :  { %6170 = vrot.lane.b32.xlu1 %v15533_v32, %s17069_s18 }
0x238b   :  { %6168 = vrot.lane.b32.xlu1 %v15521_v54, %s17069_s18  ;;  %s17076_s18 = sld [smem:[#allocation18_spill]] }
0x23a4   :  { %v5605_v49 = vpop.xlane.xlu0 %5604 }
0x23a5   :  { %13786 = vrcp.f32 %v5605_v49 }
0x23a6   :  { %v5602_v56 = vpop.xlane.xlu1 %5601 }
0x23a7   :  { %13788 = vrcp.f32 %v5602_v56 }
0x23aa   :  { %v5608_v9 = vpop.xlane.xlu1 %5607 }
0x23ab   :  { %13790 = vrcp.f32 %v5608_v9 }
0x23ae   :  { %v5611_v10 = vpop.xlane.xlu0 %5610 }
0x23af   :  { %13792 = vrcp.f32 %v5611_v10 }
0x23b2   :  { %v13787_v62 = vpop.eup %13786 }
0x23b3   :  { %v5617_v18 = vmul.f32 %v13787_v62, %v15612_v7  ;;  %v6016_v7 = vpop.permute.xlu1 %6015 }
0x23b4   :  { %v13789_v48 = vpop.eup %13788  ;;  %v5879_v26 = vpop.xlane.xlu0 %5878 }
0x23b5   :  { %v5616_v8 = vmul.f32 %v13789_v48, %v15616_v25  ;;  %13794 = vrcp.f32 %v5879_v26 }
0x23b7   :  { %12959 = vmatprep.mubr.msk.f32.mxu0 %vm252_vm3, %v5616_v8  ;;  %v6012_v11 = vpop.permute.xlu1 %6011 }
0x23b8   :  { %v13791_v20 = vpop.eup %13790  ;;  %12960 = vmatmul.mubr.msk.f32.vlgmr.msra.gmra.mxu0 %vm252_vm3, %v5617_v18  ;;  %v6018_v38 = vpop.permute.xlu0 %6017 }
0x23b9   :  { %12980 = vmatpush3.msra.mxu0 %v5901_v43  ;;  %v5618_v19 = vmul.f32 %v13791_v20, %v15620_v12 }
0x23ba   :  { %12981 = vmatprep.subr.mxu0 %v5899_v61 }
0x23bb   :  { %12982 = vmatpush3.msra.mxu0 %v5899_v61  ;;  %12962 = vmatprep.mubr.msk.f32.mxu0 %vm252_vm3, %v5618_v19 }
0x23bc   :  { %v13793_v24 = vpop.eup %13792  ;;  %12983 = vmatprep.subr.mxu0 %v5897_v14  ;;  %v6014_v21 = vpop.permute.xlu0 %6013 }
0x23bd   :  { %12984 = vmatpush3.msra.mxu0 %v5897_v14  ;;  %v5619_v23 = vmul.f32 %v13793_v24, %v15624_v59 }
0x23be   :  { %12985 = vmatprep.subr.mxu0 %v5895_v37 }
0x23bf   :  { %12986 = vmatpush3.msra.mxu0 %v5895_v37 }
0x23c0   :  { %12963 = vmatmul.mubr.msk.f32.gmra.mxu0 %vm252_vm3, %v5619_v23  ;;  %12993 = vmatprep.subr.msk.mxu0 %vm222_vm2, %v6018_v38  ;;  %v6004_v52 = vpop.permute.xlu0 %6003 }
0x23c2   :  { %v13795_v3 = vpop.eup %13794 }
0x23c3   :  { %v5891_v57 = vmul.f32 %v13795_v3, %v15628_v16 }
0x23c4   :  { %v6008_v4 = vpop.permute.xlu0 %6007 }
0x23c8   :  { %v6173_v58 = vpop.permute.xlu0 %6172 }
0x23e3   :  { %v5876_v47 = vpop.xlane.xlu1 %5875 }
0x23e4   :  { %13796 = vrcp.f32 %v5876_v47 }
0x23e7   :  { %v5885_v25 = vpop.xlane.xlu1 %5884 }
0x23e8   :  { %13798 = vrcp.f32 %v5885_v25 }
0x23f1   :  { %v13797_v41 = vpop.eup %13796 }
0x23f2   :  { %v5890_v12 = vmul.f32 %v13797_v41, %v13781_v31 }
0x23f3   :  { %v5882_v51 = vpop.xlane.xlu1 %5881 }
0x23f4   :  { %13800 = vrcp.f32 %v5882_v51  ;;  %12987 = vmatprep.mubr.msk.f32.mxu0 %vm252_vm3, %v5890_v12 }
0x23f5   :  { %12988 = vmatmul.mubr.msk.f32.vlgmr.msra.gmra.mxu0 %vm252_vm3, %v5891_v57  ;;  %v13799_v43 = vpop.eup %13798 }
0x23f6   :  { %12994 = vmatpush3.xpose.msk.msra.mxu0 %vm222_vm2, %v6018_v38  ;;  %v5893_v63 = vmul.f32 %v13799_v43, %v15650_v17 }
0x23f7   :  { %12995 = vmatprep.subr.msk.mxu0 %vm222_vm2, %v6016_v7  ;;  %v6006_v59 = vpop.permute.xlu1 %6005 }
0x23fa   :  { %12996 = vmatpush3.xpose.msk.msra.mxu0 %vm222_vm2, %v6016_v7 }
0x23fb   :  { %12997 = vmatprep.subr.msk.mxu0 %vm222_vm2, %v6014_v21  ;;  %v6010_v34 = vpop.permute.xlu1 %6009 }
0x23fe   :  { %12998 = vmatpush3.xpose.msk.msra.mxu0 %vm222_vm2, %v6014_v21 }
0x23ff   :  { %12999 = vmatprep.subr.msk.mxu0 %vm222_vm2, %v6012_v11  ;;  %v6175_v36 = vpop.permute.xlu1 %6174 }
0x2400   :  { %13007 = vmatprep.subr.mxu1 %v6175_v36 }
0x2401   :  { %v13801_v16 = vpop.eup %13800  ;;  %13008 = vmatpush3.msra.mxu1 %v6175_v36 }
0x2402   :  { %13000 = vmatpush3.xpose.msk.msra.mxu0 %vm222_vm2, %v6012_v11  ;;  %13009 = vmatprep.subr.mxu1 %v6173_v58  ;;  %v5892_v42 = vmul.f32 %v13801_v16, %v15654_v45 }
0x2403   :  { %v6171_v55 = vpop.permute.xlu1 %6170  ;;  %13010 = vmatpush3.msra.mxu1 %v6173_v58 }
0x2404   :  { %12990 = vmatprep.mubr.msk.f32.mxu0 %vm252_vm3, %v5892_v42  ;;  %13011 = vmatprep.subr.mxu1 %v6171_v55 }
0x2405   :  { %12991 = vmatmul.mubr.msk.f32.gmra.mxu0 %vm252_vm3, %v5893_v63  ;;  %13012 = vmatpush3.msra.mxu1 %v6171_v55 }
0x2406   :  { %13001 = vmatprep.mubr.msk.f32.mxu0 %vm222_vm2, %v6004_v52 }
0x2407   :  { %v6169_v0 = vpop.permute.xlu1 %6168 }
0x2408   :  { %13013 = vmatprep.subr.mxu1 %v6169_v0 }
0x2409   :  { %13002 = vmatmul.mubr.msk.f32.vlgmr.msra.gmra.mxu0 %vm222_vm2, %v6006_v59  ;;  %13014 = vmatpush3.msra.mxu1 %v6169_v0 }
0x240a   :  { %13004 = vmatprep.mubr.msk.f32.mxu0 %vm222_vm2, %v6008_v4 }
0x240d   :  { %13005 = vmatmul.mubr.msk.f32.gmra.mxu0 %vm222_vm2, %v6010_v34 }
0x2478   :  { %v15695_v61 = vpop.f32.mrf.mxu0 }
0x247a   :  { %v15697_v31 = vpop.f32.mrf.mxu0 }
0x2480   :  { %v15699_v60 = vpop.f32.mrf.mxu0 }
0x2482   :  { %v15701_v15 = vpop.f32.mrf.mxu0 }
0x24b5   :  { %v15703_v35 = vpop.f32.mrf.mxu0 }
0x24b7   :  { %v15705_v46 = vpop.f32.mrf.mxu0 }
0x24b8   :  { %v13282_v17 = vpack.i.bf16 %v15703_v35, %v15705_v46 }
0x24c5   :  { %v15709_v44 = vpop.f32.mrf.mxu0 }
0x24c7   :  { %v15711_v45 = vpop.f32.mrf.mxu0 }
0x24c8   :  { %v13287_v40 = vpack.i.bf16 %v15709_v44, %v15711_v45 }
0x24c9   :  { %v13003_v14 = vpop.f32.mrf.mxu0 }
0x24ca   :  { %v6121_v37 = vmul.f32 0.35355338, %v13003_v14 }
0x24cb   :  { %v6101_v49 = vpop.f32.mrf.mxu0 }
0x24cc   :  { %v6120_v56 = vmul.f32 0.35355338, %v6101_v49  ;;  %v6127_v9 = vsel %vm252_vm3, %v6121_v37, -inf }
0x24cd   :  { %6128 = vmax.xlane.f32.xlu1 %v6127_v9  ;;  %v13006_v10 = vpop.f32.mrf.mxu0 }
0x24ce   :  { %v6123_v62 = vmul.f32 0.35355338, %v13006_v10  ;;  %v6124_v48 = vsel %vm252_vm3, %v6120_v56, -inf }
0x24cf   :  { %6125 = vmax.xlane.f32.xlu0 %v6124_v48  ;;  %v6111_v8 = vpop.f32.mrf.mxu0 }
0x24d0   :  { %v6122_v18 = vmul.f32 0.35355338, %v6111_v8  ;;  %v6133_v20 = vsel %vm252_vm3, %v6123_v62, -inf }
0x24d2   :  { %v6130_v26 = vsel %vm252_vm3, %v6122_v18, -inf }
0x24d3   :  { %6134 = vmax.xlane.f32.xlu0 %v6133_v20 }
0x24d7   :  { %6131 = vmax.xlane.f32.xlu0 %v6130_v26 }
0x24de   :  { %6289 = vrot.lane.b32.xlu1 %v15519_v53, %s17061_s6 }
0x24ed   :  { %6291 = vrot.lane.b32.xlu0 %v15525_v22, %s17061_s6 }
0x2556   :  { %v6129_v19 = vpop.xlane.xlu1 %6128 }
0x2557   :  { %v6137_v24 = vsub.f32 %v6121_v37, %v6129_v19 }
0x2558   :  { %v6126_v23 = vpop.xlane.xlu0 %6125 }
0x2559   :  { %v6142_v38 = vmul.f32 1.442695, %v6137_v24  ;;  %v6136_v7 = vsub.f32 %v6120_v56, %v6126_v23 }
0x255a   :  { %v6290_v58 = vpop.permute.xlu1 %6289 }
0x255b   :  { %13802 = vpow2.f32 %v6142_v38  ;;  %v6140_v11 = vmul.f32 1.442695, %v6136_v7 }
0x255c   :  { %v6135_v47 = vpop.xlane.xlu0 %6134 }
0x255d   :  { %13804 = vpow2.f32 %v6140_v11  ;;  %v6139_v51 = vsub.f32 %v6123_v62, %v6135_v47 }
0x255f   :  { %v6146_v59 = vmul.f32 1.442695, %v6139_v51 }
0x2560   :  { %v6132_v21 = vpop.xlane.xlu0 %6131 }
0x2561   :  { %v6138_v52 = vsub.f32 %v6122_v18, %v6132_v21  ;;  %13806 = vpow2.f32 %v6146_v59 }
0x2563   :  { %v6144_v4 = vmul.f32 1.442695, %v6138_v52 }
0x2564   :  { %v6292_v25 = vpop.permute.xlu0 %6291 }
0x2565   :  { %13021 = vmatprep.subr.msk.mxu1 %vm222_vm2, %v6292_v25  ;;  %13808 = vpow2.f32 %v6144_v4 }
0x2568   :  { %v13803_v3 = vpop.eup %13802 }
0x2569   :  { %v6151_v41 = vsel %vm252_vm3, %v13803_v3, 0.0 }
0x256a   :  { %v13805_v12 = vpop.eup %13804  ;;  %6152 = vadd.xlane.f32.xlu0 %v6151_v41 }
0x256b   :  { %v6148_v57 = vsel %vm252_vm3, %v13805_v12, 0.0 }
0x256c   :  { %6149 = vadd.xlane.f32.xlu1 %v6148_v57 }
0x256e   :  { %v13807_v34 = vpop.eup %13806 }
0x256f   :  { %v6157_v43 = vsel %vm252_vm3, %v13807_v34, 0.0 }
0x2572   :  { %v13809_v36 = vpop.eup %13808 }
0x2573   :  { %v6154_v16 = vsel %vm252_vm3, %v13809_v36, 0.0 }
0x257d   :  { %6285 = vrot.lane.b32.xlu1 %v15521_v54, %s17061_s6 }
0x2580   :  { %6287 = vrot.lane.b32.xlu0 %v15533_v32, %s17061_s6 }
0x259f   :  { %6158 = vadd.xlane.f32.xlu0 %v6157_v43 }
0x25a1   :  { %6155 = vadd.xlane.f32.xlu1 %v6154_v16 }
0x25b2   :  { %6279 = vrot.lane.b32.xlu1 %v15533_v32, %s17060_s11 }
0x25b5   :  { %6277 = vrot.lane.b32.xlu0 %v15521_v54, %s17060_s11 }
0x25b6   :  { %6283 = vrot.lane.b32.xlu1 %v15525_v22, %s17060_s11 }
0x25b9   :  { %6281 = vrot.lane.b32.xlu0 %v15519_v53, %s17060_s11 }
0x25f3   :  { %v6153_v42 = vpop.xlane.xlu0 %6152 }
0x25f4   :  { %13810 = vrcp.f32 %v6153_v42 }
0x25f5   :  { %v6150_v55 = vpop.xlane.xlu1 %6149 }
0x25f6   :  { %13812 = vrcp.f32 %v6150_v55 }
0x25f7   :  { %v6288_v49 = vpop.permute.xlu0 %6287 }
0x25f9   :  { %v6286_v56 = vpop.permute.xlu1 %6285 }
0x2601   :  { %v13811_v63 = vpop.eup %13810 }
0x2602   :  { %v6165_v37 = vmul.f32 %v13811_v63, %v13803_v3 }
0x2603   :  { %v13813_v0 = vpop.eup %13812 }
0x2604   :  { %v6164_v14 = vmul.f32 %v13813_v0, %v13805_v12 }
0x2606   :  { %13015 = vmatprep.mubr.msk.f32.mxu1 %vm252_vm3, %v6164_v14 }
0x2607   :  { %13016 = vmatmul.mubr.msk.f32.vlgmr.msra.gmra.mxu1 %vm252_vm3, %v6165_v37 }
0x2608   :  { %13022 = vmatpush3.xpose.msk.msra.mxu1 %vm222_vm2, %v6292_v25 }
0x2609   :  { %13023 = vmatprep.subr.msk.mxu1 %vm222_vm2, %v6290_v58 }
0x260c   :  { %13024 = vmatpush3.xpose.msk.msra.mxu1 %vm222_vm2, %v6290_v58 }
0x260d   :  { %13025 = vmatprep.subr.msk.mxu1 %vm222_vm2, %v6288_v49 }
0x2610   :  { %13026 = vmatpush3.xpose.msk.msra.mxu1 %vm222_vm2, %v6288_v49 }
0x2611   :  { %13027 = vmatprep.subr.msk.mxu1 %vm222_vm2, %v6286_v56 }
0x2614   :  { %13028 = vmatpush3.xpose.msk.msra.mxu1 %vm222_vm2, %v6286_v56 }
0x2628   :  { %v6159_v9 = vpop.xlane.xlu0 %6158 }
0x2629   :  { %13814 = vrcp.f32 %v6159_v9 }
0x262a   :  { %v6156_v10 = vpop.xlane.xlu1 %6155 }
0x262b   :  { %13816 = vrcp.f32 %v6156_v10 }
0x262c   :  { %v6278_v18 = vpop.permute.xlu0 %6277 }
0x262e   :  { %v6280_v26 = vpop.permute.xlu1 %6279 }
0x2630   :  { %v6282_v19 = vpop.permute.xlu0 %6281 }
0x2632   :  { %v6284_v24 = vpop.permute.xlu1 %6283 }
0x2636   :  { %v13815_v62 = vpop.eup %13814 }
0x2637   :  { %v6167_v20 = vmul.f32 %v13815_v62, %v13807_v34 }
0x2638   :  { %v13817_v48 = vpop.eup %13816 }
0x2639   :  { %v6166_v8 = vmul.f32 %v13817_v48, %v13809_v36 }
0x263b   :  { %13018 = vmatprep.mubr.msk.f32.mxu1 %vm252_vm3, %v6166_v8 }
0x263c   :  { %13019 = vmatmul.mubr.msk.f32.gmra.mxu1 %vm252_vm3, %v6167_v20 }
0x263d   :  { %13029 = vmatprep.mubr.msk.f32.mxu1 %vm222_vm2, %v6278_v18 }
0x2640   :  { %13030 = vmatmul.mubr.msk.f32.vlgmr.msra.gmra.mxu1 %vm222_vm2, %v6280_v26 }
0x2641   :  { %13032 = vmatprep.mubr.msk.f32.mxu1 %vm222_vm2, %v6282_v19 }
0x2644   :  { %13033 = vmatmul.mubr.msk.f32.gmra.mxu1 %vm222_vm2, %v6284_v24 }
0x26c7   :  { %v13017_v23 = vpop.f32.mrf.mxu1 }
0x26c9   :  { %v6258_v38 = vpop.f32.mrf.mxu1 }
0x26ca   :  { %v13292_v7 = vpack.i.bf16 %v13017_v23, %v6258_v38 }
0x26fc   :  { %v13020_v11 = vpop.f32.mrf.mxu1 }
0x26fe   :  { %v6268_v47 = vpop.f32.mrf.mxu1 }
0x26ff   :  { %v13297_v21 = vpack.i.bf16 %v13020_v11, %v6268_v47 }
0x2700   :  { %v13031_v25 = vpop.f32.mrf.mxu1 }
0x2701   :  { %v6395_v3 = vmul.f32 0.35355338, %v13031_v25  ;;  %v13482_v25 = vld [vmem:[%s17052_s30 + $0x18] sm:$0xff]  }
0x2702   :  { %v6375_v41 = vpop.f32.mrf.mxu1 }
0x2703   :  { %v6394_v12 = vmul.f32 0.35355338, %v6375_v41  ;;  %v6401_v57 = vsel %vm252_vm3, %v6395_v3, -inf }
0x2704   :  { %6402 = vmax.xlane.f32.xlu1 %v6401_v57  ;;  %v13034_v51 = vpop.f32.mrf.mxu1  ;;  %v13483_v57 = vld [vmem:[%s17052_s30 + $0x10] sm:$0xff]  }
0x2705   :  { %v6398_v52 = vsel %vm252_vm3, %v6394_v12, -inf  ;;  %v6397_v34 = vmul.f32 0.35355338, %v13034_v51  ;;  %v13484_v51 = vld [vmem:[%s17053_s4 + $0x18] sm:$0xff]  }
0x2706   :  { %6399 = vmax.xlane.f32.xlu0 %v6398_v52  ;;  %v6385_v59 = vpop.f32.mrf.mxu1 }
0x2707   :  { %v6396_v4 = vmul.f32 0.35355338, %v6385_v59  ;;  %v6407_v43 = vsel %vm252_vm3, %v6397_v34, -inf }
0x2709   :  { %v6404_v36 = vsel %vm252_vm3, %v6396_v4, -inf }
0x270a   :  { %6405 = vmax.xlane.f32.xlu0 %v6404_v36 }
0x270e   :  { %6408 = vmax.xlane.f32.xlu0 %v6407_v43 }
0x2715   :  { %6448 = vrot.lane.b32.xlu1 %v15525_v22, %s17070_s19 }
0x278d   :  { %v6403_v16 = vpop.xlane.xlu1 %6402 }
0x278e   :  { %v6411_v58 = vsub.f32 %v6395_v3, %v6403_v16 }
0x278f   :  { %v6400_v42 = vpop.xlane.xlu0 %6399 }
0x2790   :  { %v6416_v55 = vmul.f32 1.442695, %v6411_v58  ;;  %v6410_v63 = vsub.f32 %v6394_v12, %v6400_v42 }
0x2791   :  { %v6449_v0 = vpop.permute.xlu1 %6448 }
0x2792   :  { %13818 = vpow2.f32 %v6416_v55  ;;  %v6414_v14 = vmul.f32 1.442695, %v6410_v63  ;;  %13035 = vmatprep.subr.mxu0 %v6449_v0 }
0x2793   :  { %13036 = vmatpush3.msra.mxu0 %v6449_v0  ;;  %v6406_v37 = vpop.xlane.xlu0 %6405 }
0x2794   :  { %13820 = vpow2.f32 %v6414_v14  ;;  %v6412_v20 = vsub.f32 %v6396_v4, %v6406_v37 }
0x2796   :  { %v6418_v26 = vmul.f32 1.442695, %v6412_v20 }
0x2797   :  { %v6409_v49 = vpop.xlane.xlu0 %6408 }
0x2798   :  { %v6413_v56 = vsub.f32 %v6397_v34, %v6409_v49 }
0x279a   :  { %v6420_v9 = vmul.f32 1.442695, %v6413_v56 }
0x279c   :  { %13822 = vpow2.f32 %v6420_v9 }
0x279d   :  { %13824 = vpow2.f32 %v6418_v26 }
0x279f   :  { %v13819_v10 = vpop.eup %13818 }
0x27a0   :  { %v6425_v62 = vsel %vm252_vm3, %v13819_v10, 0.0 }
0x27a1   :  { %v13821_v22 = vpop.eup %13820  ;;  %6426 = vadd.xlane.f32.xlu0 %v6425_v62 }
0x27a2   :  { %v6422_v48 = vsel %vm252_vm3, %v13821_v22, 0.0 }
0x27a3   :  { %6423 = vadd.xlane.f32.xlu1 %v6422_v48 }
0x27a9   :  { %v13823_v8 = vpop.eup %13822 }
0x27aa   :  { %v6431_v18 = vsel %vm252_vm3, %v13823_v8, 0.0  ;;  %v13825_v19 = vpop.eup %13824 }
0x27ab   :  { %6432 = vadd.xlane.f32.xlu0 %v6431_v18  ;;  %v6428_v24 = vsel %vm252_vm3, %v13825_v19, 0.0 }
0x27b4   :  { %6444 = vrot.lane.b32.xlu1 %v15533_v32, %s17070_s19 }
0x27c1   :  { %6446 = vrot.lane.b32.xlu0 %v15519_v53, %s17070_s19 }
0x27c5   :  { %13283 = vrot.lane.b32.xlu0 %v13282_v17, %s17062_s27 }
0x27c9   :  { %13293 = vrot.lane.b32.xlu0 %v13292_v7, %s17063_s7 }
0x27d8   :  { %6429 = vadd.xlane.f32.xlu1 %v6428_v24 }
0x27e9   :  { %6442 = vrot.lane.b32.xlu1 %v15521_v54, %s17070_s19 }
0x27ed   :  { %13288 = vrot.lane.b32.xlu1 %v13287_v40, %s17062_s27 }
0x27f1   :  { %13298 = vrot.lane.b32.xlu1 %v13297_v21, %s17063_s7 }
0x282a   :  { %v6427_v32 = vpop.xlane.xlu0 %6426 }
0x282c   :  { %v6424_v53 = vpop.xlane.xlu1 %6423 }
0x282d   :  { %13826 = vrcp.f32 %v6424_v53 }
0x282e   :  { %13828 = vrcp.f32 %v6427_v32 }
0x2830   :  { %v6445_v23 = vpop.permute.xlu1 %6444 }
0x2834   :  { %v6433_v35 = vpop.xlane.xlu0 %6432 }
0x2835   :  { %13830 = vrcp.f32 %v6433_v35 }
0x2838   :  { %v6447_v46 = vpop.permute.xlu0 %6446 }
0x2839   :  { %13037 = vmatprep.subr.mxu0 %v6447_v46 }
0x283a   :  { %v13827_v17 = vpop.eup %13826  ;;  %13038 = vmatpush3.msra.mxu0 %v6447_v46 }
0x283b   :  { %13039 = vmatprep.subr.mxu0 %v6445_v23  ;;  %v6438_v38 = vmul.f32 %v13827_v17, %v13821_v22  ;;  %v13829_v44 = vpop.eup %13828 }
0x283c   :  { %13040 = vmatpush3.msra.mxu0 %v6445_v23  ;;  %v6439_v40 = vmul.f32 %v13829_v44, %v13819_v10  ;;  %v13284_v34 = vpop.permute.xlu0 %13283 }
0x283d   :  { %13043 = vmatprep.mubr.msk.f32.mxu0 %vm252_vm3, %v6438_v38  ;;  %v13286_v43 = vunpack.i.h.bf16 %v13284_v34  ;;  %v13285_v16 = vunpack.i.l.bf16 %v13284_v34  ;;  %v13485_v38 = vld [vmem:[%s17053_s4 + $0x10] sm:$0xff]   ;;  %s17077_s4 = sld [smem:[#allocation19_spill]] }
0x283f   :  { %v6600_v0 = vsel %vm222_vm2, %v15695_v61, %v13286_v43  ;;  %v6599_v14 = vsel %vm222_vm2, %v15697_v31, %v13285_v16 }
0x2840   :  { %v13294_v36 = vpop.permute.xlu0 %13293 }
0x2841   :  { %v13296_v58 = vunpack.i.h.bf16 %v13294_v36  ;;  %v13295_v42 = vunpack.i.l.bf16 %v13294_v36 }
0x2842   :  { %v13831_v7 = vpop.eup %13830 }
0x2843   :  { %v6441_v21 = vmul.f32 %v13831_v7, %v13823_v8  ;;  %v6603_v56 = vsel %vm1452_vm4, %v6599_v14, %v13295_v42  ;;  %v6604_v9 = vsel %vm1452_vm4, %v6600_v0, %v13296_v58 }
0x2861   :  { %v6430_v54 = vpop.xlane.xlu1 %6429 }
0x2862   :  { %13832 = vrcp.f32 %v6430_v54 }
0x2865   :  { %v6443_v45 = vpop.permute.xlu1 %6442 }
0x2866   :  { %13041 = vmatprep.subr.mxu0 %v6443_v45 }
0x2867   :  { %13042 = vmatpush3.msra.mxu0 %v6443_v45 }
0x2868   :  { %13044 = vmatmul.mubr.msk.f32.vlgmr.msra.gmra.mxu0 %vm252_vm3, %v6439_v40  ;;  %13049 = vmatprep.subr.bf16.mxu0 %v13482_v25 }
0x2869   :  { %13050 = vmatpush3.bf16.msra.mxu0 %v13482_v25  ;;  %v13289_v55 = vpop.permute.xlu1 %13288 }
0x286a   :  { %13051 = vmatprep.subr.bf16.mxu0 %v13483_v57  ;;  %v13291_v8 = vunpack.i.h.bf16 %v13289_v55  ;;  %v13290_v18 = vunpack.i.l.bf16 %v13289_v55 }
0x286c   :  { %v6602_v31 = vsel %vm222_vm2, %v15699_v60, %v13291_v8  ;;  %v13486_v60 = vld [vmem:[%s17054_s3 + $0x18] sm:$0xff]  }
0x286d   :  { %13052 = vmatpush3.bf16.msra.mxu0 %v13483_v57  ;;  %v13299_v48 = vpop.permute.xlu1 %13298  ;;  %13057 = vmatprep.subr.bf16.mxu1 %v13486_v60 }
0x286e   :  { %13065 = vmatprep.subr.bf16.mxu0 %v13484_v51  ;;  %v13301_v61 = vunpack.i.h.bf16 %v13299_v48  ;;  %v13300_v20 = vunpack.i.l.bf16 %v13299_v48  ;;  %13058 = vmatpush3.bf16.msra.mxu1 %v13486_v60 }
0x286f   :  { %v13833_v11 = vpop.eup %13832 }
0x2870   :  { %v6440_v47 = vmul.f32 %v13833_v11, %v13825_v19  ;;  %v6601_v19 = vsel %vm222_vm2, %v15701_v15, %v13290_v18  ;;  %v6606_v35 = vsel %vm1452_vm4, %v6602_v31, %v13301_v61  ;;  %v13487_v15 = vld [vmem:[%s17054_s3 + $0x10] sm:$0xff]   ;;  %s17071_s3 = sld [smem:[#allocation13_spill]] }
0x2871   :  { %v6605_v32 = vsel %vm1452_vm4, %v6601_v19, %v13300_v20  ;;  %13059 = vmatprep.subr.bf16.mxu1 %v13487_v15 }
0x2872   :  { %13046 = vmatprep.mubr.msk.f32.mxu0 %vm252_vm3, %v6440_v47  ;;  %13060 = vmatpush3.bf16.msra.mxu1 %v13487_v15  ;;  %v11354_v47 = vld [vmem:[%s17056_s2 + $0x1] ss:$0 sm:$0xff] }
0x2873   :  { %13047 = vmatmul.mubr.msk.f32.gmra.mxu0 %vm252_vm3, %v6441_v21 }
0x2928   :  { %v13045_v3 = vpop.f32.mrf.mxu0 }
0x292a   :  { %v6532_v41 = vpop.f32.mrf.mxu0 }
0x292b   :  { %v13302_v12 = vpack.i.bf16 %v13045_v3, %v6532_v41 }
0x292d   :  { %13303 = vrot.lane.b32.xlu0 %v13302_v12, %s17064_s9 }
0x2933   :  { %v13048_v52 = vpop.f32.mrf.mxu0 }
0x2935   :  { %v6542_v59 = vpop.f32.mrf.mxu0 }
0x2936   :  { %v13307_v4 = vpack.i.bf16 %v13048_v52, %v6542_v59 }
0x2938   :  { %13308 = vrot.lane.b32.xlu1 %v13307_v4, %s17064_s9 }
0x299f   :  { %v13304_v63 = vpop.permute.xlu0 %13303 }
0x29a0   :  { %v13306_v37 = vunpack.i.h.bf16 %v13304_v63  ;;  %v13305_v49 = vunpack.i.l.bf16 %v13304_v63 }
0x29a2   :  { %v6607_v10 = vsel %vm1457_vm5, %v6603_v56, %v13305_v49  ;;  %v6608_v62 = vsel %vm1457_vm5, %v6604_v9, %v13306_v37 }
0x29a3   :  { %v6611_v22 = vpack.c.bf16 %v6608_v62, %v6607_v10 }
0x29a5   :  { %13053 = vmatprep.mubr.msk.bf16.mxu0 %vm252_vm3, %v6611_v22 }
0x29aa   :  { %v13309_v26 = vpop.permute.xlu1 %13308 }
0x29ab   :  { %v13311_v24 = vunpack.i.h.bf16 %v13309_v26  ;;  %v13310_v53 = vunpack.i.l.bf16 %v13309_v26 }
0x29ad   :  { %v6610_v46 = vsel %vm1457_vm5, %v6606_v35, %v13311_v24  ;;  %v6609_v17 = vsel %vm1457_vm5, %v6605_v32, %v13310_v53 }
0x29ae   :  { %v6612_v23 = vpack.c.bf16 %v6610_v46, %v6609_v17 }
0x29b0   :  { %13054 = vmatmul.mubr.msk.bf16.vlgmr.msra.gmra.mxu0 %vm252_vm3, %v6612_v23 }
0x29b1   :  { %13066 = vmatpush3.bf16.msra.mxu0 %v13484_v51  ;;  %13069 = vmatprep.mubr.msk.bf16.mxu0 %vm252_vm3, %v14133_v28  ;;  %v11330_v28 = vld [vmem:[%s17055_s5 + $0x1] ss:$0 sm:$0xff] }
0x29b2   :  { %13067 = vmatprep.subr.bf16.mxu0 %v13485_v38 }
0x29b5   :  { %13068 = vmatpush3.bf16.msra.mxu0 %v13485_v38 }
0x29b8   :  { %13070 = vmatmul.mubr.msk.bf16.vlgmr.msra.gmra.mxu0 %vm252_vm3, %v14148_v33 }
0x2a70   :  { %v13055_v54 = vpop.f32.mrf.mxu0 }
0x2a71   :  { %v6687_v45 = vadd.f32 %v13055_v54, %v11330_v28 }
0x2a72   :  { %v6678_v44 = vpop.f32.mrf.mxu0 }
0x2a73   :  { %v6679_v33 = vadd.f32 %v11330_v28, %v6678_v44  ;;  %v6695_v21 = vadd.f32 %v6687_v45, %v15509_v27 }
0x2a74   :  { %v13056_v40 = vpop.f32.mrf.mxu0 }
0x2a75   :  { %v6693_v7 = vadd.f32 %v6679_v33, %v15502_v50  ;;  %v6690_v25 = vadd.f32 %v13056_v40, %v11330_v28  ;;  %v6707_v34 = vsel %vm252_vm3, %v6695_v21, 0.0 }
0x2a76   :  { %v6681_v11 = vpop.f32.mrf.mxu0 }
0x2a77   :  { %v6682_v3 = vadd.f32 %v11330_v28, %v6681_v11  ;;  %v6701_v41 = vsel %vm252_vm3, %v6693_v7, 0.0  ;;  %v6696_v50 = vadd.f32 %v6690_v25, %v15511_v2 }
0x2a78   :  { %v13071_v12 = vpop.f32.mrf.mxu0  ;;  %6702 = vadd.xlane.f32.xlu0 %v6701_v41  ;;  %v11338_v41 = vld [vmem:[%s17072_s20 + $0x1] ss:$0 sm:$0xff] }
0x2a79   :  { %v6694_v57 = vadd.f32 %v6682_v3, %v15504_v6  ;;  %v15837_v51 = vadd.f32 %v13071_v12, %v11354_v47  ;;  %v6710_v6 = vsel %vm252_vm3, %v6696_v50, 0.0 }
0x2a7a   :  { %v6914_v52 = vpop.f32.mrf.mxu0 }
0x2a7b   :  { %v15840_v59 = vadd.f32 %v11354_v47, %v6914_v52  ;;  %v6704_v4 = vsel %vm252_vm3, %v6694_v57, 0.0 }
0x2a7c   :  { %v13072_v27 = vpop.f32.mrf.mxu0  ;;  %6705 = vadd.xlane.f32.xlu1 %v6704_v4  ;;  %6708 = vadd.xlane.f32.xlu0 %v6707_v34 }
0x2a7d   :  { %v15844_v36 = vadd.f32 %v13072_v27, %v11354_v47 }
0x2a7e   :  { %v6917_v20 = vpop.f32.mrf.mxu0 }
0x2a7f   :  { %13073 = vmatprep.subr.msk.mxu1 %vm222_vm2, %v15844_v36  ;;  %v15855_v26 = vadd.f32 %v11354_v47, %v6917_v20 }
0x2a80   :  { %6711 = vadd.xlane.f32.xlu0 %v6710_v6 }
0x2b01   :  { %v6703_v43 = vpop.xlane.xlu0 %6702 }
0x2b02   :  { %v6713_v16 = vmul.f32 0.03125, %v6703_v43 }
0x2b04   :  { %v6717_v2 = vsub.f32 %v6693_v7, %v6713_v16  ;;  %v11337_v7 = vld [vmem:[%s17071_s3 + $0x1] ss:$0 sm:$0xff] }
0x2b05   :  { %v6706_v58 = vpop.xlane.xlu1 %6705  ;;  %v6709_v42 = vpop.xlane.xlu0 %6708 }
0x2b06   :  { %v6714_v55 = vmul.f32 0.03125, %v6706_v58  ;;  %v6715_v63 = vmul.f32 0.03125, %v6709_v42  ;;  %v6721_v0 = vmul.f32 %v6717_v2, %v6717_v2  ;;  %v11344_v42 = vld [vmem:[%s17073_s13 + $0x1] ss:$0 sm:$0xff] }
0x2b08   :  { %v6718_v14 = vsub.f32 %v6694_v57, %v6714_v55  ;;  %v6719_v37 = vsub.f32 %v6695_v21, %v6715_v63  ;;  %v6725_v49 = vsel %vm252_vm3, %v6721_v0, 0.0 }
0x2b09   :  { %6726 = vadd.xlane.f32.xlu1 %v6725_v49  ;;  %v6712_v56 = vpop.xlane.xlu0 %6711 }
0x2b0a   :  { %v6716_v9 = vmul.f32 0.03125, %v6712_v56  ;;  %v6722_v10 = vmul.f32 %v6718_v14, %v6718_v14  ;;  %v6723_v62 = vmul.f32 %v6719_v37, %v6719_v37 }
0x2b0c   :  { %v6720_v22 = vsub.f32 %v6696_v50, %v6716_v9  ;;  %v6728_v48 = vsel %vm252_vm3, %v6722_v10, 0.0  ;;  %v6731_v8 = vsel %vm252_vm3, %v6723_v62, 0.0 }
0x2b0d   :  { %6729 = vadd.xlane.f32.xlu0 %v6728_v48  ;;  %6732 = vadd.xlane.f32.xlu1 %v6731_v8 }
0x2b0e   :  { %v6724_v18 = vmul.f32 %v6720_v22, %v6720_v22 }
0x2b10   :  { %v6734_v61 = vsel %vm252_vm3, %v6724_v18, 0.0 }
0x2b11   :  { %6735 = vadd.xlane.f32.xlu0 %v6734_v61 }
0x2b1e   :  { %7092 = vrot.lane.b32.xlu1 %v15844_v36, %s17065_s21 }
0x2b22   :  { %7088 = vrot.lane.b32.xlu1 %v15855_v26, %s17065_s21 }
0x2b26   :  { %7086 = vrot.lane.b32.xlu1 %v15840_v59, %s17065_s21 }
0x2b27   :  { %7090 = vrot.lane.b32.xlu0 %v15837_v51, %s17065_s21 }
0x2b92   :  { %v6727_v31 = vpop.xlane.xlu1 %6726 }
0x2b93   :  { %v6737_v19 = vmul.f32 0.03125, %v6727_v31 }
0x2b95   :  { %v6741_v24 = vadd.f32 1e-05, %v6737_v19 }
0x2b96   :  { %v6733_v53 = vpop.xlane.xlu1 %6732  ;;  %v6730_v32 = vpop.xlane.xlu0 %6729 }
0x2b97   :  { %13834 = vrsqrt.f32 %v6741_v24  ;;  %v6739_v35 = vmul.f32 0.03125, %v6733_v53  ;;  %v6738_v46 = vmul.f32 0.03125, %v6730_v32 }
0x2b99   :  { %v6743_v17 = vadd.f32 1e-05, %v6739_v35  ;;  %v6742_v23 = vadd.f32 1e-05, %v6738_v46 }
0x2b9a   :  { %v7093_v38 = vpop.permute.xlu1 %7092  ;;  %v6736_v60 = vpop.xlane.xlu0 %6735 }
0x2b9b   :  { %13836 = vrsqrt.f32 %v6743_v17  ;;  %v6740_v15 = vmul.f32 0.03125, %v6736_v60  ;;  %13087 = vmatprep.subr.mxu0 %v7093_v38 }
0x2b9c   :  { %13838 = vrsqrt.f32 %v6742_v23  ;;  %13088 = vmatpush3.msra.mxu0 %v7093_v38 }
0x2b9d   :  { %v6744_v54 = vadd.f32 1e-05, %v6740_v15 }
0x2b9e   :  { %v7089_v28 = vpop.permute.xlu1 %7088  ;;  %v7091_v44 = vpop.permute.xlu0 %7090 }
0x2b9f   :  { %13840 = vrsqrt.f32 %v6744_v54  ;;  %13089 = vmatprep.subr.mxu0 %v7091_v44 }
0x2ba0   :  { %13090 = vmatpush3.msra.mxu0 %v7091_v44 }
0x2ba1   :  { %13091 = vmatprep.subr.mxu0 %v7089_v28 }
0x2ba2   :  { %v7087_v45 = vpop.permute.xlu1 %7086  ;;  %13092 = vmatpush3.msra.mxu0 %v7089_v28 }
0x2ba3   :  { %13093 = vmatprep.subr.mxu0 %v7087_v45 }
0x2ba4   :  { %v13835_v33 = vpop.eup %13834  ;;  %13094 = vmatpush3.msra.mxu0 %v7087_v45 }
0x2ba5   :  { %v6749_v40 = vmul.f32 %v13835_v33, %v6717_v2 }
0x2ba7   :  { %v6759_v3 = vmul.f32 %v11337_v7, %v6749_v40 }
0x2ba8   :  { %v13837_v11 = vpop.eup %13836 }
0x2ba9   :  { %v13839_v47 = vpop.eup %13838  ;;  %v6751_v21 = vmul.f32 %v13837_v11, %v6719_v37  ;;  %v15869_v4 = vadd.f32 %v11338_v41, %v6759_v3 }
0x2baa   :  { %v6750_v25 = vmul.f32 %v13839_v47, %v6718_v14 }
0x2bab   :  { %v6761_v50 = vmul.f32 %v11337_v7, %v6751_v21 }
0x2bac   :  { %v13841_v12 = vpop.eup %13840  ;;  %v6760_v57 = vmul.f32 %v11337_v7, %v6750_v25 }
0x2bad   :  { %v6752_v52 = vmul.f32 %v13841_v12, %v6720_v22  ;;  %v15875_v43 = vadd.f32 %v11338_v41, %v6761_v50 }
0x2bae   :  { %v15871_v34 = vadd.f32 %v11338_v41, %v6760_v57 }
0x2baf   :  { %v6762_v27 = vmul.f32 %v11337_v7, %v6752_v52 }
0x2bb0   :  { %v6773_v6 = vpack.c.bf16 %v15871_v34, %v15869_v4 }
0x2bb1   :  { %v15877_v16 = vadd.f32 %v11338_v41, %v6762_v27 }
0x2bb2   :  { %13061 = vmatprep.mubr.msk.bf16.mxu1 %vm252_vm3, %v6773_v6 }
0x2bb3   :  { %v6774_v2 = vpack.c.bf16 %v15877_v16, %v15875_v43 }
0x2bb5   :  { %13062 = vmatmul.mubr.msk.bf16.vlgmr.msra.gmra.mxu1 %vm252_vm3, %v6774_v2 }
0x2bb6   :  { %13074 = vmatpush3.xpose.msk.msra.mxu1 %vm222_vm2, %v15844_v36 }
0x2bb7   :  { %13075 = vmatprep.subr.msk.mxu1 %vm222_vm2, %v15837_v51 }
0x2bba   :  { %13076 = vmatpush3.xpose.msk.msra.mxu1 %vm222_vm2, %v15837_v51 }
0x2bbb   :  { %13077 = vmatprep.subr.msk.mxu1 %vm222_vm2, %v15855_v26 }
0x2bbe   :  { %13078 = vmatpush3.xpose.msk.msra.mxu1 %vm222_vm2, %v15855_v26 }
0x2bbf   :  { %13079 = vmatprep.subr.msk.mxu1 %vm222_vm2, %v15840_v59 }
0x2bc2   :  { %13080 = vmatpush3.xpose.msk.msra.mxu1 %vm222_vm2, %v15840_v59 }
0x2c75   :  { %v13063_v58 = vpop.f32.mrf.mxu1 }
0x2c76   :  { %v15906_v49 = vadd.f32 %v13063_v58, %v11344_v42 }
0x2c77   :  { %v6840_v55 = vpop.f32.mrf.mxu1 }
0x2c78   :  { %v15900_v63 = vadd.f32 %v11344_v42, %v6840_v55 }
0x2c79   :  { %v13064_v0 = vpop.f32.mrf.mxu1 }
0x2c7a   :  { %13081 = vmatprep.mubr.msk.f32.mxu1 %vm222_vm2, %v15900_v63  ;;  %v15912_v56 = vadd.f32 %v13064_v0, %v11344_v42 }
0x2c7b   :  { %v6843_v14 = vpop.f32.mrf.mxu1 }
0x2c7c   :  { %v15904_v37 = vadd.f32 %v11344_v42, %v6843_v14 }
0x2c7e   :  { %13082 = vmatmul.mubr.msk.f32.vlgmr.msra.gmra.mxu1 %vm222_vm2, %v15904_v37 }
0x2c7f   :  { %13084 = vmatprep.mubr.msk.f32.mxu1 %vm222_vm2, %v15906_v49 }
0x2c82   :  { %13085 = vmatmul.mubr.msk.f32.gmra.mxu1 %vm222_vm2, %v15912_v56 }
0x2d3e   :  { %v13083_v9 = vpop.f32.mrf.mxu1 }
0x2d3f   :  { %v7039_v10 = vmul.f32 0.35355338, %v13083_v9 }
0x2d40   :  { %v7019_v62 = vpop.f32.mrf.mxu1 }
0x2d41   :  { %v7038_v22 = vmul.f32 0.35355338, %v7019_v62  ;;  %v7045_v48 = vsel %vm252_vm3, %v7039_v10, -inf }
0x2d42   :  { %7046 = vmax.xlane.f32.xlu0 %v7045_v48  ;;  %v13086_v8 = vpop.f32.mrf.mxu1 }
0x2d43   :  { %v7041_v18 = vmul.f32 0.35355338, %v13086_v8  ;;  %v7042_v61 = vsel %vm252_vm3, %v7038_v22, -inf }
0x2d44   :  { %7043 = vmax.xlane.f32.xlu1 %v7042_v61  ;;  %v7029_v20 = vpop.f32.mrf.mxu1 }
0x2d45   :  { %v7040_v31 = vmul.f32 0.35355338, %v7029_v20  ;;  %v7051_v19 = vsel %vm252_vm3, %v7041_v18, -inf }
0x2d46   :  { %7052 = vmax.xlane.f32.xlu0 %v7051_v19 }
0x2d47   :  { %v7048_v24 = vsel %vm252_vm3, %v7040_v31, -inf }
0x2d48   :  { %7049 = vmax.xlane.f32.xlu1 %v7048_v24 }
0x2d59   :  { %7207 = vrot.lane.b32.xlu1 %v15837_v51, %s17066_s28 }
0x2d5c   :  { %7209 = vrot.lane.b32.xlu0 %v15844_v36, %s17066_s28 }
0x2dcb   :  { %v7047_v53 = vpop.xlane.xlu0 %7046 }
0x2dcc   :  { %v7055_v32 = vsub.f32 %v7039_v10, %v7047_v53 }
0x2dcd   :  { %v7044_v35 = vpop.xlane.xlu1 %7043 }
0x2dce   :  { %v7060_v46 = vmul.f32 1.442695, %v7055_v32  ;;  %v7054_v17 = vsub.f32 %v7038_v22, %v7044_v35 }
0x2dcf   :  { %v7053_v23 = vpop.xlane.xlu0 %7052 }
0x2dd0   :  { %13842 = vpow2.f32 %v7060_v46  ;;  %v7058_v38 = vmul.f32 1.442695, %v7054_v17  ;;  %v7057_v33 = vsub.f32 %v7041_v18, %v7053_v23 }
0x2dd1   :  { %v7050_v45 = vpop.xlane.xlu1 %7049 }
0x2dd2   :  { %13844 = vpow2.f32 %v7058_v38  ;;  %v7056_v40 = vsub.f32 %v7040_v31, %v7050_v45  ;;  %v7064_v7 = vmul.f32 1.442695, %v7057_v33 }
0x2dd3   :  { %v7210_v60 = vpop.permute.xlu0 %7209 }
0x2dd4   :  { %13101 = vmatprep.subr.msk.mxu0 %vm222_vm2, %v7210_v60  ;;  %v7062_v11 = vmul.f32 1.442695, %v7056_v40  ;;  %13846 = vpow2.f32 %v7064_v7 }
0x2dd5   :  { %v7208_v41 = vpop.permute.xlu1 %7207 }
0x2dd6   :  { %13848 = vpow2.f32 %v7062_v11 }
0x2ddd   :  { %v13843_v15 = vpop.eup %13842 }
0x2dde   :  { %v7069_v54 = vsel %vm252_vm3, %v13843_v15, 0.0 }
0x2ddf   :  { %v13845_v28 = vpop.eup %13844  ;;  %7070 = vadd.xlane.f32.xlu0 %v7069_v54 }
0x2de0   :  { %v7066_v44 = vsel %vm252_vm3, %v13845_v28, 0.0 }
0x2de1   :  { %7067 = vadd.xlane.f32.xlu1 %v7066_v44  ;;  %v13847_v47 = vpop.eup %13846 }
0x2de2   :  { %v7075_v25 = vsel %vm252_vm3, %v13847_v47, 0.0 }
0x2de3   :  { %v13849_v21 = vpop.eup %13848 }
0x2de4   :  { %v7072_v3 = vsel %vm252_vm3, %v13849_v21, 0.0 }
0x2df2   :  { %7203 = vrot.lane.b32.xlu1 %v15840_v59, %s17066_s28 }
0x2df5   :  { %7205 = vrot.lane.b32.xlu0 %v15855_v26, %s17066_s28 }
0x2e14   :  { %7076 = vadd.xlane.f32.xlu0 %v7075_v25 }
0x2e16   :  { %7073 = vadd.xlane.f32.xlu1 %v7072_v3 }
0x2e27   :  { %7197 = vrot.lane.b32.xlu1 %v15904_v37, %s17066_s28 }
0x2e2a   :  { %7195 = vrot.lane.b32.xlu0 %v15900_v63, %s17066_s28 }
0x2e2b   :  { %7201 = vrot.lane.b32.xlu1 %v15912_v56, %s17066_s28 }
0x2e2e   :  { %7199 = vrot.lane.b32.xlu0 %v15906_v49, %s17066_s28 }
0x2e2f   :  { %7366 = vrot.lane.b32.xlu1 %v15844_v36, %s17057_s0 }
0x2e32   :  { %7364 = vrot.lane.b32.xlu0 %v15837_v51, %s17057_s0 }
0x2e33   :  { %7362 = vrot.lane.b32.xlu1 %v15855_v26, %s17057_s0 }
0x2e37   :  { %7360 = vrot.lane.b32.xlu1 %v15840_v59, %s17057_s0 }
0x2e68   :  { %v7071_v12 = vpop.xlane.xlu0 %7070 }
0x2e69   :  { %13850 = vrcp.f32 %v7071_v12 }
0x2e6a   :  { %v7068_v57 = vpop.xlane.xlu1 %7067 }
0x2e6b   :  { %13852 = vrcp.f32 %v7068_v57 }
0x2e6c   :  { %v7206_v2 = vpop.permute.xlu0 %7205 }
0x2e6e   :  { %v7204_v58 = vpop.permute.xlu1 %7203 }
0x2e76   :  { %v13851_v52 = vpop.eup %13850 }
0x2e77   :  { %v7083_v6 = vmul.f32 %v13851_v52, %v13843_v15 }
0x2e78   :  { %v13853_v50 = vpop.eup %13852 }
0x2e79   :  { %v7082_v27 = vmul.f32 %v13853_v50, %v13845_v28 }
0x2e7b   :  { %13095 = vmatprep.mubr.msk.f32.mxu0 %vm252_vm3, %v7082_v27 }
0x2e7c   :  { %13096 = vmatmul.mubr.msk.f32.vlgmr.msra.gmra.mxu0 %vm252_vm3, %v7083_v6 }
0x2e7d   :  { %13102 = vmatpush3.xpose.msk.msra.mxu0 %vm222_vm2, %v7210_v60 }
0x2e7e   :  { %13103 = vmatprep.subr.msk.mxu0 %vm222_vm2, %v7208_v41 }
0x2e81   :  { %13104 = vmatpush3.xpose.msk.msra.mxu0 %vm222_vm2, %v7208_v41 }
0x2e82   :  { %13105 = vmatprep.subr.msk.mxu0 %vm222_vm2, %v7206_v2 }
0x2e85   :  { %13106 = vmatpush3.xpose.msk.msra.mxu0 %vm222_vm2, %v7206_v2 }
0x2e86   :  { %13107 = vmatprep.subr.msk.mxu0 %vm222_vm2, %v7204_v58 }
0x2e89   :  { %13108 = vmatpush3.xpose.msk.msra.mxu0 %vm222_vm2, %v7204_v58 }
0x2e9d   :  { %v7077_v42 = vpop.xlane.xlu0 %7076 }
0x2e9e   :  { %13854 = vrcp.f32 %v7077_v42 }
0x2e9f   :  { %v7074_v55 = vpop.xlane.xlu1 %7073 }
0x2ea0   :  { %13856 = vrcp.f32 %v7074_v55 }
0x2ea1   :  { %v7196_v0 = vpop.permute.xlu0 %7195 }
0x2ea3   :  { %v7198_v14 = vpop.permute.xlu1 %7197 }
0x2ea5   :  { %v7200_v9 = vpop.permute.xlu0 %7199 }
0x2ea7   :  { %v7202_v10 = vpop.permute.xlu1 %7201 }
0x2ea9   :  { %v7365_v8 = vpop.permute.xlu0 %7364 }
0x2eab   :  { %v7367_v62 = vpop.permute.xlu1 %7366  ;;  %v13855_v22 = vpop.eup %13854 }
0x2eac   :  { %13115 = vmatprep.subr.mxu1 %v7367_v62  ;;  %v7085_v20 = vmul.f32 %v13855_v22, %v13847_v47 }
0x2ead   :  { %v13857_v48 = vpop.eup %13856  ;;  %13116 = vmatpush3.msra.mxu1 %v7367_v62 }
0x2eae   :  { %13117 = vmatprep.subr.mxu1 %v7365_v8  ;;  %v7084_v18 = vmul.f32 %v13857_v48, %v13849_v21 }
0x2eaf   :  { %v7363_v61 = vpop.permute.xlu1 %7362  ;;  %13118 = vmatpush3.msra.mxu1 %v7365_v8 }
0x2eb0   :  { %13098 = vmatprep.mubr.msk.f32.mxu0 %vm252_vm3, %v7084_v18  ;;  %13119 = vmatprep.subr.mxu1 %v7363_v61 }
0x2eb1   :  { %13099 = vmatmul.mubr.msk.f32.gmra.mxu0 %vm252_vm3, %v7085_v20  ;;  %13120 = vmatpush3.msra.mxu1 %v7363_v61 }
0x2eb2   :  { %13109 = vmatprep.mubr.msk.f32.mxu0 %vm222_vm2, %v7196_v0 }
0x2eb3   :  { %v7361_v31 = vpop.permute.xlu1 %7360 }
0x2eb4   :  { %13121 = vmatprep.subr.mxu1 %v7361_v31 }
0x2eb5   :  { %13110 = vmatmul.mubr.msk.f32.vlgmr.msra.gmra.mxu0 %vm222_vm2, %v7198_v14  ;;  %13122 = vmatpush3.msra.mxu1 %v7361_v31 }
0x2eb6   :  { %13112 = vmatprep.mubr.msk.f32.mxu0 %vm222_vm2, %v7200_v9 }
0x2eb9   :  { %13113 = vmatmul.mubr.msk.f32.gmra.mxu0 %vm222_vm2, %v7202_v10 }
0x2f3c   :  { %v15964_v19 = vpop.f32.mrf.mxu0 }
0x2f3e   :  { %v15966_v24 = vpop.f32.mrf.mxu0 }
0x2f71   :  { %v15968_v53 = vpop.f32.mrf.mxu0 }
0x2f73   :  { %v15970_v32 = vpop.f32.mrf.mxu0 }
0x2f75   :  { %v13111_v35 = vpop.f32.mrf.mxu0 }
0x2f76   :  { %v7313_v46 = vmul.f32 0.35355338, %v13111_v35 }
0x2f77   :  { %v7293_v17 = vpop.f32.mrf.mxu0 }
0x2f78   :  { %v7312_v23 = vmul.f32 0.35355338, %v7293_v17  ;;  %v7319_v38 = vsel %vm252_vm3, %v7313_v46, -inf }
0x2f79   :  { %7320 = vmax.xlane.f32.xlu1 %v7319_v38  ;;  %v13114_v60 = vpop.f32.mrf.mxu0 }
0x2f7a   :  { %v7315_v15 = vmul.f32 0.35355338, %v13114_v60  ;;  %v7316_v54 = vsel %vm252_vm3, %v7312_v23, -inf }
0x2f7b   :  { %7317 = vmax.xlane.f32.xlu0 %v7316_v54  ;;  %v7303_v28 = vpop.f32.mrf.mxu0 }
0x2f7c   :  { %v7314_v44 = vmul.f32 0.35355338, %v7303_v28  ;;  %v7325_v45 = vsel %vm252_vm3, %v7315_v15, -inf }
0x2f7e   :  { %v7322_v33 = vsel %vm252_vm3, %v7314_v44, -inf }
0x2f7f   :  { %7326 = vmax.xlane.f32.xlu0 %v7325_v45 }
0x2f83   :  { %7323 = vmax.xlane.f32.xlu0 %v7322_v33 }
0x2f8a   :  { %7481 = vrot.lane.b32.xlu1 %v15837_v51, %s17058_s10 }
0x2f99   :  { %7483 = vrot.lane.b32.xlu0 %v15844_v36, %s17058_s10 }
0x3002   :  { %v7321_v40 = vpop.xlane.xlu1 %7320 }
0x3003   :  { %v7329_v7 = vsub.f32 %v7313_v46, %v7321_v40 }
0x3004   :  { %v7318_v11 = vpop.xlane.xlu0 %7317 }
0x3005   :  { %v7334_v47 = vmul.f32 1.442695, %v7329_v7  ;;  %v7328_v21 = vsub.f32 %v7312_v23, %v7318_v11 }
0x3006   :  { %v7482_v10 = vpop.permute.xlu1 %7481 }
0x3007   :  { %13858 = vpow2.f32 %v7334_v47  ;;  %v7332_v25 = vmul.f32 1.442695, %v7328_v21 }
0x3008   :  { %v7327_v3 = vpop.xlane.xlu0 %7326 }
0x3009   :  { %13860 = vpow2.f32 %v7332_v25  ;;  %v7331_v6 = vsub.f32 %v7315_v15, %v7327_v3 }
0x300b   :  { %v7338_v58 = vmul.f32 1.442695, %v7331_v6 }
0x300c   :  { %v7324_v41 = vpop.xlane.xlu0 %7323 }
0x300d   :  { %v7330_v2 = vsub.f32 %v7314_v44, %v7324_v41  ;;  %13862 = vpow2.f32 %v7338_v58 }
0x300f   :  { %v7336_v42 = vmul.f32 1.442695, %v7330_v2 }
0x3010   :  { %v7484_v12 = vpop.permute.xlu0 %7483 }
0x3011   :  { %13129 = vmatprep.subr.msk.mxu1 %vm222_vm2, %v7484_v12  ;;  %13864 = vpow2.f32 %v7336_v42 }
0x3014   :  { %v13859_v57 = vpop.eup %13858 }
0x3015   :  { %v7343_v52 = vsel %vm252_vm3, %v13859_v57, 0.0 }
0x3016   :  { %v13861_v50 = vpop.eup %13860  ;;  %7344 = vadd.xlane.f32.xlu0 %v7343_v52 }
0x3017   :  { %v7340_v27 = vsel %vm252_vm3, %v13861_v50, 0.0 }
0x3018   :  { %7341 = vadd.xlane.f32.xlu1 %v7340_v27 }
0x301a   :  { %v13863_v55 = vpop.eup %13862 }
0x301b   :  { %v7349_v14 = vsel %vm252_vm3, %v13863_v55, 0.0 }
0x301e   :  { %v13865_v0 = vpop.eup %13864 }
0x301f   :  { %v7346_v9 = vsel %vm252_vm3, %v13865_v0, 0.0 }
0x3029   :  { %7477 = vrot.lane.b32.xlu1 %v15840_v59, %s17058_s10 }
0x302c   :  { %7479 = vrot.lane.b32.xlu0 %v15855_v26, %s17058_s10 }
0x304b   :  { %7350 = vadd.xlane.f32.xlu0 %v7349_v14 }
0x304d   :  { %7347 = vadd.xlane.f32.xlu1 %v7346_v9 }
0x305e   :  { %7471 = vrot.lane.b32.xlu1 %v15904_v37, %s17058_s10 }
0x3061   :  { %7469 = vrot.lane.b32.xlu0 %v15900_v63, %s17058_s10 }
0x3062   :  { %7475 = vrot.lane.b32.xlu1 %v15912_v56, %s17058_s10 }
0x3065   :  { %7473 = vrot.lane.b32.xlu0 %v15906_v49, %s17058_s10  ;;  %s17074_s10 = sld [smem:[#allocation16_spill]] }
0x3066   :  { %7640 = vrot.lane.b32.xlu1 %v15844_v36, %s17059_s29 }
0x3069   :  { %7638 = vrot.lane.b32.xlu0 %v15837_v51, %s17059_s29 }
0x306a   :  { %7636 = vrot.lane.b32.xlu1 %v15855_v26, %s17059_s29 }
0x306e   :  { %7634 = vrot.lane.b32.xlu1 %v15840_v59, %s17059_s29  ;;  %s17080_s29 = sld [smem:[#allocation22_spill]] }
0x309f   :  { %v7345_v62 = vpop.xlane.xlu0 %7344 }
0x30a0   :  { %13866 = vrcp.f32 %v7345_v62 }
0x30a1   :  { %v7342_v22 = vpop.xlane.xlu1 %7341 }
0x30a2   :  { %13868 = vrcp.f32 %v7342_v22 }
0x30a3   :  { %v7480_v20 = vpop.permute.xlu0 %7479 }
0x30a5   :  { %v7478_v31 = vpop.permute.xlu1 %7477 }
0x30ad   :  { %v13867_v48 = vpop.eup %13866 }
0x30ae   :  { %v7357_v61 = vmul.f32 %v13867_v48, %v13859_v57 }
0x30af   :  { %v13869_v8 = vpop.eup %13868 }
0x30b0   :  { %v7356_v18 = vmul.f32 %v13869_v8, %v13861_v50 }
0x30b2   :  { %13123 = vmatprep.mubr.msk.f32.mxu1 %vm252_vm3, %v7356_v18 }
0x30b3   :  { %13124 = vmatmul.mubr.msk.f32.vlgmr.msra.gmra.mxu1 %vm252_vm3, %v7357_v61 }
0x30b4   :  { %13130 = vmatpush3.xpose.msk.msra.mxu1 %vm222_vm2, %v7484_v12 }
0x30b5   :  { %13131 = vmatprep.subr.msk.mxu1 %vm222_vm2, %v7482_v10 }
0x30b8   :  { %13132 = vmatpush3.xpose.msk.msra.mxu1 %vm222_vm2, %v7482_v10 }
0x30b9   :  { %13133 = vmatprep.subr.msk.mxu1 %vm222_vm2, %v7480_v20 }
0x30bc   :  { %13134 = vmatpush3.xpose.msk.msra.mxu1 %vm222_vm2, %v7480_v20 }
0x30bd   :  { %13135 = vmatprep.subr.msk.mxu1 %vm222_vm2, %v7478_v31 }
0x30c0   :  { %13136 = vmatpush3.xpose.msk.msra.mxu1 %vm222_vm2, %v7478_v31 }
0x30d4   :  { %v7351_v35 = vpop.xlane.xlu0 %7350 }
0x30d5   :  { %13870 = vrcp.f32 %v7351_v35 }
0x30d6   :  { %v7348_v46 = vpop.xlane.xlu1 %7347 }
0x30d7   :  { %13872 = vrcp.f32 %v7348_v46 }
0x30d8   :  { %v7470_v17 = vpop.permute.xlu0 %7469 }
0x30da   :  { %v7472_v23 = vpop.permute.xlu1 %7471 }
0x30dc   :  { %v7474_v38 = vpop.permute.xlu0 %7473 }
0x30de   :  { %v7476_v60 = vpop.permute.xlu1 %7475 }
0x30e0   :  { %v7639_v44 = vpop.permute.xlu0 %7638 }
0x30e2   :  { %v7641_v15 = vpop.permute.xlu1 %7640  ;;  %v13871_v54 = vpop.eup %13870 }
0x30e3   :  { %13143 = vmatprep.subr.mxu0 %v7641_v15  ;;  %v7359_v40 = vmul.f32 %v13871_v54, %v13863_v55 }
0x30e4   :  { %v13873_v28 = vpop.eup %13872  ;;  %13144 = vmatpush3.msra.mxu0 %v7641_v15 }
0x30e5   :  { %13145 = vmatprep.subr.mxu0 %v7639_v44  ;;  %v7358_v45 = vmul.f32 %v13873_v28, %v13865_v0 }
0x30e6   :  { %v7637_v33 = vpop.permute.xlu1 %7636  ;;  %13146 = vmatpush3.msra.mxu0 %v7639_v44 }
0x30e7   :  { %13126 = vmatprep.mubr.msk.f32.mxu1 %vm252_vm3, %v7358_v45  ;;  %13147 = vmatprep.subr.mxu0 %v7637_v33 }
0x30e8   :  { %13127 = vmatmul.mubr.msk.f32.gmra.mxu1 %vm252_vm3, %v7359_v40  ;;  %13148 = vmatpush3.msra.mxu0 %v7637_v33 }
0x30e9   :  { %13137 = vmatprep.mubr.msk.f32.mxu1 %vm222_vm2, %v7470_v17 }
0x30ea   :  { %v7635_v7 = vpop.permute.xlu1 %7634 }
0x30eb   :  { %13149 = vmatprep.subr.mxu0 %v7635_v7 }
0x30ec   :  { %13138 = vmatmul.mubr.msk.f32.vlgmr.msra.gmra.mxu1 %vm222_vm2, %v7472_v23  ;;  %13150 = vmatpush3.msra.mxu0 %v7635_v7 }
0x30ed   :  { %13140 = vmatprep.mubr.msk.f32.mxu1 %vm222_vm2, %v7474_v38 }
0x30f0   :  { %13141 = vmatmul.mubr.msk.f32.gmra.mxu1 %vm222_vm2, %v7476_v60 }
0x3173   :  { %v16020_v11 = vpop.f32.mrf.mxu1 }
0x3175   :  { %v16022_v47 = vpop.f32.mrf.mxu1 }
0x3176   :  { %v13312_v21 = vpack.i.bf16 %v16020_v11, %v16022_v47 }
0x31a8   :  { %v16026_v25 = vpop.f32.mrf.mxu1 }
0x31aa   :  { %v16028_v3 = vpop.f32.mrf.mxu1 }
0x31ab   :  { %v13317_v41 = vpack.i.bf16 %v16026_v25, %v16028_v3 }
0x31ac   :  { %v13139_v12 = vpop.f32.mrf.mxu1 }
0x31ad   :  { %v7587_v57 = vmul.f32 0.35355338, %v13139_v12 }
0x31ae   :  { %v7567_v52 = vpop.f32.mrf.mxu1 }
0x31af   :  { %v7586_v50 = vmul.f32 0.35355338, %v7567_v52  ;;  %v7593_v27 = vsel %vm252_vm3, %v7587_v57, -inf }
0x31b0   :  { %7594 = vmax.xlane.f32.xlu1 %v7593_v27  ;;  %v13142_v6 = vpop.f32.mrf.mxu1 }
0x31b1   :  { %v7589_v2 = vmul.f32 0.35355338, %v13142_v6  ;;  %v7590_v58 = vsel %vm252_vm3, %v7586_v50, -inf }
0x31b2   :  { %7591 = vmax.xlane.f32.xlu0 %v7590_v58  ;;  %v7577_v42 = vpop.f32.mrf.mxu1 }
0x31b3   :  { %v7588_v55 = vmul.f32 0.35355338, %v7577_v42  ;;  %v7599_v0 = vsel %vm252_vm3, %v7589_v2, -inf }
0x31b5   :  { %v7596_v14 = vsel %vm252_vm3, %v7588_v55, -inf }
0x31b6   :  { %7600 = vmax.xlane.f32.xlu0 %v7599_v0 }
0x31ba   :  { %7597 = vmax.xlane.f32.xlu0 %v7596_v14 }
0x31c1   :  { %7755 = vrot.lane.b32.xlu1 %v15837_v51, %s17060_s11 }
0x31d0   :  { %7757 = vrot.lane.b32.xlu0 %v15844_v36, %s17060_s11 }
0x3239   :  { %v7595_v9 = vpop.xlane.xlu1 %7594 }
0x323a   :  { %v7603_v10 = vsub.f32 %v7587_v57, %v7595_v9 }
0x323b   :  { %v7592_v62 = vpop.xlane.xlu0 %7591 }
0x323c   :  { %v7608_v22 = vmul.f32 1.442695, %v7603_v10  ;;  %v7602_v48 = vsub.f32 %v7586_v50, %v7592_v62 }
0x323d   :  { %v7756_v33 = vpop.permute.xlu1 %7755 }
0x323e   :  { %13874 = vpow2.f32 %v7608_v22  ;;  %v7606_v8 = vmul.f32 1.442695, %v7602_v48 }
0x323f   :  { %v7601_v18 = vpop.xlane.xlu0 %7600 }
0x3240   :  { %13876 = vpow2.f32 %v7606_v8  ;;  %v7605_v23 = vsub.f32 %v7589_v2, %v7601_v18 }
0x3242   :  { %v7612_v60 = vmul.f32 1.442695, %v7605_v23 }
0x3243   :  { %v7598_v61 = vpop.xlane.xlu0 %7597 }
0x3244   :  { %v7604_v38 = vsub.f32 %v7588_v55, %v7598_v61  ;;  %13878 = vpow2.f32 %v7612_v60 }
0x3246   :  { %v7610_v15 = vmul.f32 1.442695, %v7604_v38 }
0x3247   :  { %v7758_v20 = vpop.permute.xlu0 %7757 }
0x3248   :  { %13157 = vmatprep.subr.msk.mxu0 %vm222_vm2, %v7758_v20  ;;  %13880 = vpow2.f32 %v7610_v15 }
0x324b   :  { %v13875_v31 = vpop.eup %13874 }
0x324c   :  { %v7617_v35 = vsel %vm252_vm3, %v13875_v31, 0.0 }
0x324d   :  { %v13877_v46 = vpop.eup %13876  ;;  %7618 = vadd.xlane.f32.xlu0 %v7617_v35 }
0x324e   :  { %v7614_v17 = vsel %vm252_vm3, %v13877_v46, 0.0 }
0x324f   :  { %7615 = vadd.xlane.f32.xlu1 %v7614_v17 }
0x3251   :  { %v13879_v54 = vpop.eup %13878 }
0x3252   :  { %v7623_v44 = vsel %vm252_vm3, %v13879_v54, 0.0 }
0x3255   :  { %v13881_v28 = vpop.eup %13880 }
0x3256   :  { %v7620_v45 = vsel %vm252_vm3, %v13881_v28, 0.0 }
0x3260   :  { %7751 = vrot.lane.b32.xlu1 %v15840_v59, %s17060_s11 }
0x3263   :  { %7753 = vrot.lane.b32.xlu0 %v15855_v26, %s17060_s11 }
0x3282   :  { %7624 = vadd.xlane.f32.xlu0 %v7623_v44 }
0x3284   :  { %7621 = vadd.xlane.f32.xlu1 %v7620_v45 }
0x3295   :  { %7745 = vrot.lane.b32.xlu1 %v15904_v37, %s17060_s11 }
0x3298   :  { %7743 = vrot.lane.b32.xlu0 %v15900_v63, %s17060_s11 }
0x3299   :  { %7749 = vrot.lane.b32.xlu1 %v15912_v56, %s17060_s11 }
0x329c   :  { %7747 = vrot.lane.b32.xlu0 %v15906_v49, %s17060_s11 }
0x32d6   :  { %v7619_v40 = vpop.xlane.xlu0 %7618 }
0x32d7   :  { %13882 = vrcp.f32 %v7619_v40 }
0x32d8   :  { %v7616_v7 = vpop.xlane.xlu1 %7615 }
0x32d9   :  { %13884 = vrcp.f32 %v7616_v7 }
0x32da   :  { %v7754_v63 = vpop.permute.xlu0 %7753 }
0x32dc   :  { %v7752_v37 = vpop.permute.xlu1 %7751 }
0x32e4   :  { %v13883_v12 = vpop.eup %13882 }
0x32e5   :  { %v7631_v50 = vmul.f32 %v13883_v12, %v13875_v31 }
0x32e6   :  { %v13885_v57 = vpop.eup %13884 }
0x32e7   :  { %v7630_v52 = vmul.f32 %v13885_v57, %v13877_v46 }
0x32e9   :  { %13151 = vmatprep.mubr.msk.f32.mxu0 %vm252_vm3, %v7630_v52 }
0x32ea   :  { %13152 = vmatmul.mubr.msk.f32.vlgmr.msra.gmra.mxu0 %vm252_vm3, %v7631_v50 }
0x32eb   :  { %13158 = vmatpush3.xpose.msk.msra.mxu0 %vm222_vm2, %v7758_v20 }
0x32ec   :  { %13159 = vmatprep.subr.msk.mxu0 %vm222_vm2, %v7756_v33 }
0x32ef   :  { %13160 = vmatpush3.xpose.msk.msra.mxu0 %vm222_vm2, %v7756_v33 }
0x32f0   :  { %13161 = vmatprep.subr.msk.mxu0 %vm222_vm2, %v7754_v63 }
0x32f3   :  { %13162 = vmatpush3.xpose.msk.msra.mxu0 %vm222_vm2, %v7754_v63 }
0x32f4   :  { %13163 = vmatprep.subr.msk.mxu0 %vm222_vm2, %v7752_v37 }
0x32f7   :  { %13164 = vmatpush3.xpose.msk.msra.mxu0 %vm222_vm2, %v7752_v37 }
0x330b   :  { %v7625_v49 = vpop.xlane.xlu0 %7624 }
0x330c   :  { %13886 = vrcp.f32 %v7625_v49 }
0x330d   :  { %v7622_v56 = vpop.xlane.xlu1 %7621 }
0x330e   :  { %13888 = vrcp.f32 %v7622_v56 }
0x330f   :  { %v7744_v58 = vpop.permute.xlu0 %7743 }
0x3311   :  { %v7746_v55 = vpop.permute.xlu1 %7745 }
0x3313   :  { %v7748_v0 = vpop.permute.xlu0 %7747 }
0x3315   :  { %v7750_v14 = vpop.permute.xlu1 %7749 }
0x3319   :  { %v13887_v27 = vpop.eup %13886 }
0x331a   :  { %v7633_v42 = vmul.f32 %v13887_v27, %v13879_v54 }
0x331b   :  { %v13889_v6 = vpop.eup %13888 }
0x331c   :  { %v7632_v2 = vmul.f32 %v13889_v6, %v13881_v28 }
0x331e   :  { %13154 = vmatprep.mubr.msk.f32.mxu0 %vm252_vm3, %v7632_v2 }
0x331f   :  { %13155 = vmatmul.mubr.msk.f32.gmra.mxu0 %vm252_vm3, %v7633_v42 }
0x3320   :  { %13165 = vmatprep.mubr.msk.f32.mxu0 %vm222_vm2, %v7744_v58 }
0x3323   :  { %13166 = vmatmul.mubr.msk.f32.vlgmr.msra.gmra.mxu0 %vm222_vm2, %v7746_v55 }
0x3324   :  { %13168 = vmatprep.mubr.msk.f32.mxu0 %vm222_vm2, %v7748_v0 }
0x3327   :  { %13169 = vmatmul.mubr.msk.f32.gmra.mxu0 %vm222_vm2, %v7750_v14 }
0x3328   :  { %8354 = vmatprep.mubr.bf16.mxu0 %v13952_v39 }
0x33aa   :  { %v13153_v9 = vpop.f32.mrf.mxu0 }
0x33ac   :  { %v7724_v10 = vpop.f32.mrf.mxu0 }
0x33ad   :  { %v13322_v62 = vpack.i.bf16 %v13153_v9, %v7724_v10 }
0x33df   :  { %v13156_v22 = vpop.f32.mrf.mxu0 }
0x33e1   :  { %v7734_v48 = vpop.f32.mrf.mxu0 }
0x33e2   :  { %v13327_v8 = vpack.i.bf16 %v13156_v22, %v7734_v48  ;;  %v13488_v48 = vld [vmem:[%s17074_s10 + $0x18] sm:$0xff]  }
0x33e3   :  { %v13167_v18 = vpop.f32.mrf.mxu0 }
0x33e4   :  { %v7861_v61 = vmul.f32 0.35355338, %v13167_v18 }
0x33e5   :  { %v7841_v20 = vpop.f32.mrf.mxu0 }
0x33e6   :  { %v7860_v31 = vmul.f32 0.35355338, %v7841_v20  ;;  %v7867_v35 = vsel %vm252_vm3, %v7861_v61, -inf  ;;  %v13489_v20 = vld [vmem:[%s17074_s10 + $0x10] sm:$0xff]  }
0x33e7   :  { %7868 = vmax.xlane.f32.xlu1 %v7867_v35  ;;  %v13170_v46 = vpop.f32.mrf.mxu0 }
0x33e8   :  { %v7864_v17 = vsel %vm252_vm3, %v7860_v31, -inf  ;;  %v7863_v60 = vmul.f32 0.35355338, %v13170_v46 }
0x33e9   :  { %7865 = vmax.xlane.f32.xlu0 %v7864_v17  ;;  %v7851_v23 = vpop.f32.mrf.mxu0 }
0x33ea   :  { %v7862_v38 = vmul.f32 0.35355338, %v7851_v23  ;;  %v7873_v54 = vsel %vm252_vm3, %v7863_v60, -inf }
0x33ec   :  { %v7870_v15 = vsel %vm252_vm3, %v7862_v38, -inf }
0x33ed   :  { %7871 = vmax.xlane.f32.xlu0 %v7870_v15 }
0x33f1   :  { %7874 = vmax.xlane.f32.xlu0 %v7873_v54 }
0x33f8   :  { %7914 = vrot.lane.b32.xlu1 %v15844_v36, %s17061_s6 }
0x3470   :  { %v7869_v28 = vpop.xlane.xlu1 %7868 }
0x3471   :  { %v7877_v44 = vsub.f32 %v7861_v61, %v7869_v28 }
0x3472   :  { %v7866_v45 = vpop.xlane.xlu0 %7865 }
0x3473   :  { %v7882_v33 = vmul.f32 1.442695, %v7877_v44  ;;  %v7876_v40 = vsub.f32 %v7860_v31, %v7866_v45 }
0x3474   :  { %v7915_v7 = vpop.permute.xlu1 %7914 }
0x3475   :  { %13890 = vpow2.f32 %v7882_v33  ;;  %v7880_v12 = vmul.f32 1.442695, %v7876_v40  ;;  %13171 = vmatprep.subr.mxu1 %v7915_v7 }
0x3476   :  { %13172 = vmatpush3.msra.mxu1 %v7915_v7  ;;  %v7872_v57 = vpop.xlane.xlu0 %7871 }
0x3477   :  { %13892 = vpow2.f32 %v7880_v12  ;;  %v7878_v2 = vsub.f32 %v7862_v38, %v7872_v57 }
0x3479   :  { %v7884_v58 = vmul.f32 1.442695, %v7878_v2 }
0x347a   :  { %v7875_v52 = vpop.xlane.xlu0 %7874 }
0x347b   :  { %v7879_v50 = vsub.f32 %v7863_v60, %v7875_v52 }
0x347d   :  { %v7886_v63 = vmul.f32 1.442695, %v7879_v50 }
0x347f   :  { %13894 = vpow2.f32 %v7886_v63 }
0x3480   :  { %13896 = vpow2.f32 %v7884_v58 }
0x3482   :  { %v13891_v37 = vpop.eup %13890 }
0x3483   :  { %v7891_v49 = vsel %vm252_vm3, %v13891_v37, 0.0 }
0x3484   :  { %v13893_v36 = vpop.eup %13892  ;;  %7892 = vadd.xlane.f32.xlu0 %v7891_v49 }
0x3485   :  { %v7888_v56 = vsel %vm252_vm3, %v13893_v36, 0.0 }
0x3486   :  { %7889 = vadd.xlane.f32.xlu1 %v7888_v56 }
0x348c   :  { %v13895_v27 = vpop.eup %13894 }
0x348d   :  { %v7897_v6 = vsel %vm252_vm3, %v13895_v27, 0.0  ;;  %v13897_v42 = vpop.eup %13896 }
0x348e   :  { %7898 = vadd.xlane.f32.xlu0 %v7897_v6  ;;  %v7894_v55 = vsel %vm252_vm3, %v13897_v42, 0.0 }
0x3497   :  { %7910 = vrot.lane.b32.xlu1 %v15855_v26, %s17061_s6 }
0x34a4   :  { %7912 = vrot.lane.b32.xlu0 %v15837_v51, %s17061_s6 }
0x34a8   :  { %13313 = vrot.lane.b32.xlu0 %v13312_v21, %s17062_s27 }
0x34ac   :  { %13323 = vrot.lane.b32.xlu0 %v13322_v62, %s17063_s7 }
0x34bb   :  { %7895 = vadd.xlane.f32.xlu1 %v7894_v55 }
0x34cc   :  { %7908 = vrot.lane.b32.xlu1 %v15840_v59, %s17061_s6 }
0x34d0   :  { %13318 = vrot.lane.b32.xlu1 %v13317_v41, %s17062_s27  ;;  %s17075_s27 = sld [smem:[#allocation17_spill]] }
0x34d4   :  { %13328 = vrot.lane.b32.xlu1 %v13327_v8, %s17063_s7 }
0x350d   :  { %v7893_v26 = vpop.xlane.xlu0 %7892 }
0x350f   :  { %v7890_v51 = vpop.xlane.xlu1 %7889 }
0x3510   :  { %13898 = vrcp.f32 %v7890_v51 }
0x3511   :  { %13900 = vrcp.f32 %v7893_v26 }
0x3513   :  { %v7911_v0 = vpop.permute.xlu1 %7910 }
0x3517   :  { %v7899_v11 = vpop.xlane.xlu0 %7898 }
0x3518   :  { %13902 = vrcp.f32 %v7899_v11 }
0x351b   :  { %v7913_v47 = vpop.permute.xlu0 %7912 }
0x351c   :  { %13173 = vmatprep.subr.mxu1 %v7913_v47 }
0x351d   :  { %v13899_v21 = vpop.eup %13898  ;;  %13174 = vmatpush3.msra.mxu1 %v7913_v47 }
0x351e   :  { %13175 = vmatprep.subr.mxu1 %v7911_v0  ;;  %v7904_v14 = vmul.f32 %v13899_v21, %v13893_v36  ;;  %v13901_v25 = vpop.eup %13900 }
0x351f   :  { %13176 = vmatpush3.msra.mxu1 %v7911_v0  ;;  %v7905_v41 = vmul.f32 %v13901_v25, %v13891_v37  ;;  %v13314_v17 = vpop.permute.xlu0 %13313 }
0x3520   :  { %13179 = vmatprep.mubr.msk.f32.mxu1 %vm252_vm3, %v7904_v14  ;;  %v13316_v38 = vunpack.i.h.bf16 %v13314_v17  ;;  %v13315_v60 = vunpack.i.l.bf16 %v13314_v17 }
0x3522   :  { %v8066_v45 = vsel %vm222_vm2, %v15964_v19, %v13316_v38  ;;  %v8065_v33 = vsel %vm222_vm2, %v15966_v24, %v13315_v60 }
0x3523   :  { %v13324_v23 = vpop.permute.xlu0 %13323 }
0x3524   :  { %v13326_v15 = vunpack.i.h.bf16 %v13324_v23  ;;  %v13325_v54 = vunpack.i.l.bf16 %v13324_v23 }
0x3525   :  { %v13903_v9 = vpop.eup %13902 }
0x3526   :  { %v7907_v22 = vmul.f32 %v13903_v9, %v13895_v27  ;;  %v8069_v12 = vsel %vm1452_vm4, %v8065_v33, %v13325_v54  ;;  %v8070_v57 = vsel %vm1452_vm4, %v8066_v45, %v13326_v15 }
0x3544   :  { %v7896_v59 = vpop.xlane.xlu1 %7895 }
0x3545   :  { %13904 = vrcp.f32 %v7896_v59 }
0x3548   :  { %v7909_v3 = vpop.permute.xlu1 %7908 }
0x3549   :  { %13177 = vmatprep.subr.mxu1 %v7909_v3 }
0x354a   :  { %13178 = vmatpush3.msra.mxu1 %v7909_v3 }
0x354b   :  { %13180 = vmatmul.mubr.msk.f32.vlgmr.msra.gmra.mxu1 %vm252_vm3, %v7905_v41  ;;  %13185 = vmatprep.subr.bf16.mxu1 %v13488_v48 }
0x354c   :  { %13186 = vmatpush3.bf16.msra.mxu1 %v13488_v48  ;;  %v13319_v28 = vpop.permute.xlu1 %13318 }
0x354d   :  { %13187 = vmatprep.subr.bf16.mxu1 %v13489_v20  ;;  %v13321_v49 = vunpack.i.h.bf16 %v13319_v28  ;;  %v13320_v36 = vunpack.i.l.bf16 %v13319_v28 }
0x354f   :  { %v8068_v24 = vsel %vm222_vm2, %v15968_v53, %v13321_v49  ;;  %v8067_v6 = vsel %vm222_vm2, %v15970_v32, %v13320_v36  ;;  %v11412_v53 = vld [vmem:[%s17075_s27 + $0x1] ss:$0 sm:$0xff] }
0x3550   :  { %13188 = vmatpush3.bf16.msra.mxu1 %v13489_v20  ;;  %v13329_v37 = vpop.permute.xlu1 %13328  ;;  %v11421_v36 = vld [vmem:[%s16967_s14 + $0x100] sm:$0xff] }
0x3551   :  { %v13331_v19 = vunpack.i.h.bf16 %v13329_v37  ;;  %v13330_v56 = vunpack.i.l.bf16 %v13329_v37 }
0x3552   :  { %v13905_v10 = vpop.eup %13904 }
0x3553   :  { %v7906_v62 = vmul.f32 %v13905_v10, %v13897_v42  ;;  %v8071_v42 = vsel %vm1452_vm4, %v8067_v6, %v13330_v56  ;;  %v8072_v55 = vsel %vm1452_vm4, %v8068_v24, %v13331_v19  ;;  %v11423_v19 = vld [vmem:[%s16967_s14 + $0x140] sm:$0xff]  ;;  %v11422_v56 = vld [vmem:[%s16967_s14 + $0x108] sm:$0xff] }
0x3554   :  { %v11424_v24 = vld [vmem:[%s16967_s14 + $0x148] sm:$0xff]  ;;  %v11430_v6 = vcombine.low %v11421_v36, %v11423_v19 }
0x3555   :  { %13182 = vmatprep.mubr.msk.f32.mxu1 %vm252_vm3, %v7906_v62 }
0x3556   :  { %13183 = vmatmul.mubr.msk.f32.gmra.mxu1 %vm252_vm3, %v7907_v22 }
0x360b   :  { %v13181_v8 = vpop.f32.mrf.mxu1 }
0x360d   :  { %v7998_v18 = vpop.f32.mrf.mxu1 }
0x360e   :  { %v13332_v61 = vpack.i.bf16 %v13181_v8, %v7998_v18 }
0x3610   :  { %13333 = vrot.lane.b32.xlu0 %v13332_v61, %s17064_s9 }
0x3616   :  { %v13184_v31 = vpop.f32.mrf.mxu1 }
0x3618   :  { %v8008_v35 = vpop.f32.mrf.mxu1 }
0x3619   :  { %v13337_v46 = vpack.i.bf16 %v13184_v31, %v8008_v35 }
0x361b   :  { %13338 = vrot.lane.b32.xlu1 %v13337_v46, %s17064_s9 }
0x3682   :  { %v13334_v44 = vpop.permute.xlu0 %13333 }
0x3683   :  { %v13336_v40 = vunpack.i.h.bf16 %v13334_v44  ;;  %v13335_v7 = vunpack.i.l.bf16 %v13334_v44 }
0x3685   :  { %v8073_v52 = vsel %vm1457_vm5, %v8069_v12, %v13335_v7  ;;  %v8074_v50 = vsel %vm1457_vm5, %v8070_v57, %v13336_v40  ;;  %v11425_v7 = vld [vmem:[%s16967_s14 + $0x180] sm:$0xff]  ;;  %v11426_v57 = vld [vmem:[%s16967_s14 + $0x188] sm:$0xff] }
0x3686   :  { %v8077_v63 = vpack.c.bf16 %v8074_v50, %v8073_v52  ;;  %v11427_v12 = vld [vmem:[%s16967_s14 + $0x1c0] sm:$0xff]  ;;  %v11428_v50 = vld [vmem:[%s16967_s14 + $0x1c8] sm:$0xff] }
0x3687   :  { %v11435_v52 = vcombine.high %v11425_v7, %v11427_v12  ;;  %v11436_v37 = vcombine.low %v11426_v57, %v11428_v50  ;;  %v11437_v49 = vcombine.high %v11426_v57, %v11428_v50  ;;  %v13490_v50 = vld [vmem:[%s16968_s16 + $0x578] sm:$0xff]  }
0x3688   :  { %13189 = vmatprep.mubr.msk.bf16.mxu1 %vm252_vm3, %v8077_v63  ;;  %v11434_v63 = vcombine.low %v11425_v7, %v11427_v12 }
0x3689   :  { %8334 = vmatprep.subr.bf16.mxu0 %v11435_v52  ;;  %8387 = vmatprep.subr.bf16.mxu1 %v11437_v49 }
0x368a   :  { %8335 = vmatpush1.bf16.msra.mxu0 %v11434_v63  ;;  %v13491_v63 = vld [vmem:[%s16968_s16 + $0x5f8] sm:$0xff]  }
0x368d   :  { %v13339_v27 = vpop.permute.xlu1 %13338 }
0x368e   :  { %v13341_v2 = vunpack.i.h.bf16 %v13339_v27  ;;  %v13340_v58 = vunpack.i.l.bf16 %v13339_v27  ;;  %v11431_v27 = vcombine.high %v11421_v36, %v11423_v19  ;;  %v13492_v36 = vld [vmem:[%s16968_s16 + $0x538] sm:$0xff]  }
0x368f   :  { %v13493_v19 = vld [vmem:[%s16968_s16 + $0x5b8] sm:$0xff]  }
0x3690   :  { %v8076_v51 = vsel %vm1457_vm5, %v8072_v55, %v13341_v2  ;;  %v8075_v26 = vsel %vm1457_vm5, %v8071_v42, %v13340_v58  ;;  %v11432_v2 = vcombine.low %v11422_v56, %v11424_v24  ;;  %v11433_v58 = vcombine.high %v11422_v56, %v11424_v24  ;;  %8336 = vmatprep.subr.bf16.mxu0 %v11431_v27  ;;  %v11510_v42 = vld [vmem:[%s16967_s14 + $0x190] sm:$0xff] }
0x3691   :  { %v8078_v11 = vpack.c.bf16 %v8076_v51, %v8075_v26  ;;  %8337 = vmatpush1.bf16.msra.mxu0 %v11430_v6  ;;  %v11512_v55 = vld [vmem:[%s16967_s14 + $0x1d0] sm:$0xff]  ;;  %v11511_v51 = vld [vmem:[%s16967_s14 + $0x198] sm:$0xff] }
0x3692   :  { %v11519_v26 = vcombine.low %v11510_v42, %v11512_v55  ;;  %v13494_v56 = vld [vmem:[%s16968_s16 + $0x570] sm:$0xff]  }
0x3693   :  { %13190 = vmatmul.mubr.msk.bf16.vlgmr.msra.gmra.mxu1 %vm252_vm3, %v8078_v11  ;;  %v11520_v11 = vcombine.high %v11510_v42, %v11512_v55  ;;  %v13495_v27 = vld [vmem:[%s16968_s16 + $0x5f0] sm:$0xff]   ;;  %v13500_v42 = vld [vmem:[%s16968_s16 + $0x528] sm:$0xff]  }
0x3694   :  { %8407 = vmatprep.mubr.bf16.mxu1 %v13952_v39  ;;  %8388 = vmatpush1.bf16.msra.mxu1 %v11436_v37  ;;  %v13496_v24 = vld [vmem:[%s16968_s16 + $0x530] sm:$0xff]   ;;  %v13501_v55 = vld [vmem:[%s16968_s16 + $0x5a8] sm:$0xff]  }
0x3695   :  { %8389 = vmatprep.subr.bf16.mxu1 %v11433_v58  ;;  %8598 = vmatprep.subr.bf16.mxu0 %v11520_v11  ;;  %v13497_v6 = vld [vmem:[%s16968_s16 + $0x5b0] sm:$0xff]   ;;  %v13499_v58 = vld [vmem:[%s16968_s16 + $0x5e8] sm:$0xff]   ;;  %v13504_v11 = vld [vmem:[%s16968_s16 + $0x520] sm:$0xff]  }
0x3698   :  { %8390 = vmatpush1.bf16.msra.mxu1 %v11432_v2  ;;  %v13498_v2 = vld [vmem:[%s16968_s16 + $0x568] sm:$0xff]  }
0x3753   :  { %v13191_v47 = vpop.f32.mrf.mxu1 }
0x3754   :  { %v8153_v21 = vadd.f32 %v13191_v47, %v11412_v53  ;;  %v11513_v47 = vld [vmem:[%s16967_s14 + $0x1d8] sm:$0xff] }
0x3755   :  { %v8144_v32 = vpop.f32.mrf.mxu1 }
0x3756   :  { %v8145_v0 = vadd.f32 %v11412_v53, %v8144_v32  ;;  %v8161_v3 = vadd.f32 %v8153_v21, %v15875_v43  ;;  %v11522_v32 = vcombine.high %v11511_v51, %v11513_v47 }
0x3757   :  { %v13192_v14 = vpop.f32.mrf.mxu1 }
0x3758   :  { %v8159_v59 = vadd.f32 %v8145_v0, %v15869_v4  ;;  %v8156_v41 = vadd.f32 %v13192_v14, %v11412_v53  ;;  %v8173_v8 = vsel %vm252_vm3, %v8161_v3, 0.0  ;;  %8651 = vmatprep.subr.bf16.mxu1 %v11522_v32  ;;  %v13507_v32 = vld [vmem:[%s16968_s16 + $0x5d8] sm:$0xff]  }
0x3759   :  { %v8147_v25 = vpop.f32.mrf.mxu1 }
0x375a   :  { %v8148_v9 = vadd.f32 %v11412_v53, %v8147_v25  ;;  %v8167_v10 = vsel %vm252_vm3, %v8159_v59, 0.0  ;;  %v8162_v22 = vadd.f32 %v8156_v41, %v15877_v16  ;;  %v11521_v53 = vcombine.low %v11511_v51, %v11513_v47  ;;  %v13502_v51 = vld [vmem:[%s16968_s16 + $0x560] sm:$0xff]  }
0x375b   :  { %8168 = vadd.xlane.f32.xlu0 %v8167_v10  ;;  %v13505_v47 = vld [vmem:[%s16968_s16 + $0x5a0] sm:$0xff]  }
0x375c   :  { %v8160_v62 = vadd.f32 %v8148_v9, %v15871_v34  ;;  %v8176_v4 = vsel %vm252_vm3, %v8162_v22, 0.0 }
0x375e   :  { %v8170_v48 = vsel %vm252_vm3, %v8160_v62, 0.0 }
0x375f   :  { %8171 = vadd.xlane.f32.xlu1 %v8170_v48  ;;  %8174 = vadd.xlane.f32.xlu0 %v8173_v8 }
0x3763   :  { %8177 = vadd.xlane.f32.xlu0 %v8176_v4 }
0x37e4   :  { %v8169_v18 = vpop.xlane.xlu0 %8168 }
0x37e5   :  { %v8179_v43 = vmul.f32 0.03125, %v8169_v18  ;;  %v11419_v18 = vld [vmem:[%s17076_s18 + $0x1] ss:$0 sm:$0xff] }
0x37e7   :  { %v16141_v61 = vsub.f32 %v8159_v59, %v8179_v43 }
0x37e8   :  { %v8172_v20 = vpop.xlane.xlu1 %8171  ;;  %v8175_v31 = vpop.xlane.xlu0 %8174 }
0x37e9   :  { %v8180_v35 = vmul.f32 0.03125, %v8172_v20  ;;  %v8181_v46 = vmul.f32 0.03125, %v8175_v31  ;;  %v8187_v34 = vmul.f32 %v16141_v61, %v16141_v61 }
0x37eb   :  { %v16145_v16 = vsub.f32 %v8160_v62, %v8180_v35  ;;  %v16147_v17 = vsub.f32 %v8161_v3, %v8181_v46  ;;  %v8191_v23 = vsel %vm252_vm3, %v8187_v34, 0.0  ;;  %v11420_v46 = vld [vmem:[%s17077_s4 + $0x1] ss:$0 sm:$0xff] }
0x37ec   :  { %8192 = vadd.xlane.f32.xlu1 %v8191_v23  ;;  %v8178_v38 = vpop.xlane.xlu0 %8177 }
0x37ed   :  { %v8182_v60 = vmul.f32 0.03125, %v8178_v38  ;;  %v8188_v15 = vmul.f32 %v16145_v16, %v16145_v16  ;;  %v8189_v54 = vmul.f32 %v16147_v17, %v16147_v17 }
0x37ef   :  { %v16154_v28 = vsub.f32 %v8162_v22, %v8182_v60  ;;  %v8194_v44 = vsel %vm252_vm3, %v8188_v15, 0.0  ;;  %v8197_v45 = vsel %vm252_vm3, %v8189_v54, 0.0 }
0x37f0   :  { %8195 = vadd.xlane.f32.xlu0 %v8194_v44  ;;  %8198 = vadd.xlane.f32.xlu1 %v8197_v45  ;;  %v11507_v44 = vld [vmem:[%s16967_s14 + $0x118] sm:$0xff] }
0x37f1   :  { %v8190_v33 = vmul.f32 %v16154_v28, %v16154_v28 }
0x37f3   :  { %v8200_v40 = vsel %vm252_vm3, %v8190_v33, 0.0 }
0x37f4   :  { %8201 = vadd.xlane.f32.xlu0 %v8200_v40 }
0x3875   :  { %v8193_v21 = vpop.xlane.xlu1 %8192 }
0x3876   :  { %v8203_v0 = vmul.f32 0.03125, %v8193_v21  ;;  %v13508_v21 = vld [vmem:[%s16968_s16 + $0x518] sm:$0xff]  }
0x3878   :  { %v8207_v14 = vadd.f32 1e-05, %v8203_v0  ;;  %v13509_v0 = vld [vmem:[%s16968_s16 + $0x598] sm:$0xff]  }
0x3879   :  { %v8199_v59 = vpop.xlane.xlu1 %8198  ;;  %v8196_v25 = vpop.xlane.xlu0 %8195 }
0x387a   :  { %13906 = vrsqrt.f32 %v8207_v14  ;;  %v8205_v3 = vmul.f32 0.03125, %v8199_v59  ;;  %v8204_v41 = vmul.f32 0.03125, %v8196_v25  ;;  %v13510_v14 = vld [vmem:[%s16968_s16 + $0x550] sm:$0xff]  }
0x387b   :  { %v13511_v59 = vld [vmem:[%s16968_s16 + $0x5d0] sm:$0xff]  }
0x387c   :  { %v8208_v9 = vadd.f32 1e-05, %v8204_v41  ;;  %v8209_v10 = vadd.f32 1e-05, %v8205_v3  ;;  %v13512_v25 = vld [vmem:[%s16968_s16 + $0x510] sm:$0xff]   ;;  %v13514_v41 = vld [vmem:[%s16968_s16 + $0x548] sm:$0xff]  }
0x387d   :  { %v8202_v62 = vpop.xlane.xlu0 %8201  ;;  %v13513_v3 = vld [vmem:[%s16968_s16 + $0x590] sm:$0xff]  }
0x387e   :  { %v8206_v22 = vmul.f32 0.03125, %v8202_v62  ;;  %13908 = vrsqrt.f32 %v8208_v9  ;;  %v13515_v9 = vld [vmem:[%s16968_s16 + $0x5c8] sm:$0xff]  }
0x387f   :  { %13910 = vrsqrt.f32 %v8209_v10  ;;  %v13516_v10 = vld [vmem:[%s16968_s16 + $0x508] sm:$0xff]  }
0x3880   :  { %v8210_v48 = vadd.f32 1e-05, %v8206_v22  ;;  %v13517_v62 = vld [vmem:[%s16968_s16 + $0x588] sm:$0xff]   ;;  %v13518_v22 = vld [vmem:[%s16968_s16 + $0x540] sm:$0xff]  }
0x3882   :  { %13912 = vrsqrt.f32 %v8210_v48  ;;  %v13519_v48 = vld [vmem:[%s16968_s16 + $0x5c0] sm:$0xff]  }
0x3887   :  { %v13907_v8 = vpop.eup %13906 }
0x3888   :  { %v8215_v4 = vmul.f32 %v13907_v8, %v16141_v61  ;;  %v11506_v61 = vld [vmem:[%s16967_s14 + $0x110] sm:$0xff]  ;;  %v13520_v8 = vld [vmem:[%s16968_s16 + $0x500] sm:$0xff]  }
0x388a   :  { %v8225_v20 = vmul.f32 %v11419_v18, %v8215_v4  ;;  %v13521_v4 = vld [vmem:[%s16968_s16 + $0x580] sm:$0xff]  }
0x388b   :  { %v13909_v43 = vpop.eup %13908 }
0x388c   :  { %v8216_v31 = vmul.f32 %v13909_v43, %v16145_v16  ;;  %v13911_v35 = vpop.eup %13910  ;;  %v16209_v60 = vadd.f32 %v11420_v46, %v8225_v20  ;;  %v11508_v16 = vld [vmem:[%s16967_s14 + $0x150] sm:$0xff]  ;;  %v13523_v43 = vld [vmem:[%s16968_s16 + $0x4f8] sm:$0xff]  }
0x388d   :  { %v8217_v15 = vmul.f32 %v13911_v35, %v16147_v17  ;;  %v11516_v17 = vcombine.high %v11506_v61, %v11508_v16  ;;  %v11515_v12 = vcombine.low %v11506_v61, %v11508_v16 }
0x388e   :  { %v8226_v23 = vmul.f32 %v11419_v18, %v8216_v31 }
0x388f   :  { %v13913_v34 = vpop.eup %13912  ;;  %v8227_v7 = vmul.f32 %v11419_v18, %v8217_v15 }
0x3890   :  { %v8218_v38 = vmul.f32 %v13913_v34, %v16154_v28  ;;  %v16212_v54 = vadd.f32 %v11420_v46, %v8226_v23  ;;  %v11509_v28 = vld [vmem:[%s16967_s14 + $0x158] sm:$0xff] }
0x3891   :  { %v11518_v40 = vcombine.high %v11507_v44, %v11509_v28  ;;  %v11517_v57 = vcombine.low %v11507_v44, %v11509_v28  ;;  %v16241_v37 = vadd.f32 %v11420_v46, %v8227_v7 }
0x3892   :  { %v16225_v45 = vpack.c.bf16 %v16212_v54, %v16209_v60  ;;  %v8228_v33 = vmul.f32 %v11419_v18, %v8218_v38  ;;  %v13522_v18 = vld [vmem:[%s16968_s16 + $0x478] sm:$0xff]  }
0x3894   :  { %11438 = vmatmul.mubr.msk.bf16.vlgmr.msra.gmra.mxu0 %vm252_vm3, %v16225_v45  ;;  %11440 = vmatmul.mubr.msk.bf16.vlgmr.msra.gmra.mxu1 %vm252_vm3, %v16225_v45  ;;  %v16231_v52 = vadd.f32 %v11420_v46, %v8228_v33 }
0x3895   :  { %8599 = vmatpush1.bf16.msra.mxu0 %v11519_v26  ;;  %8652 = vmatpush1.bf16.msra.mxu1 %v11521_v53  ;;  %v13503_v26 = vld [vmem:[%s16968_s16 + $0x5e0] sm:$0xff]   ;;  %v13506_v53 = vld [vmem:[%s16968_s16 + $0x558] sm:$0xff]  }
0x3896   :  { %8364 = vmatprep.mubr.bf16.mxu0 %v13952_v39  ;;  %8417 = vmatprep.mubr.bf16.mxu1 %v13952_v39  ;;  %v16245_v49 = vpack.c.bf16 %v16231_v52, %v16241_v37 }
0x3897   :  { %8600 = vmatprep.subr.bf16.mxu0 %v11516_v17  ;;  %8653 = vmatprep.subr.bf16.mxu1 %v11518_v40 }
0x3899   :  { %8601 = vmatpush1.bf16.msra.mxu0 %v11515_v12  ;;  %8654 = vmatpush1.bf16.msra.mxu1 %v11517_v57  ;;  %v11514_v12 = vld [vmem:[%s16971_s15 + $0x14] sm:$0xf] }
0x389a   :  { %12425 = vmatprep.subr.bf16.mxu0 %v13490_v50  ;;  %12453 = vmatprep.subr.bf16.mxu1 %v13491_v63  ;;  %v8529_v63 = vrot.slane %v11514_v12, %v14977_v1 }
0x389c   :  { %11439 = vmatmul.mubr.msk.bf16.gmra.mxu0 %vm252_vm3, %v16245_v49  ;;  %11441 = vmatmul.mubr.msk.bf16.gmra.mxu1 %vm252_vm3, %v16245_v49 }
0x389d   :  { %8618 = vmatprep.mubr.bf16.mxu0 %v13952_v39  ;;  %8671 = vmatprep.mubr.bf16.mxu1 %v13952_v39 }
0x38a4   :  { %11523 = vmatmul.mubr.msk.bf16.vlgmr.msra.gmra.mxu0 %vm252_vm3, %v16225_v45  ;;  %11525 = vmatmul.mubr.msk.bf16.vlgmr.msra.gmra.mxu1 %vm252_vm3, %v16225_v45 }
0x38a5   :  { %8628 = vmatprep.mubr.bf16.mxu0 %v13952_v39  ;;  %8681 = vmatprep.mubr.bf16.mxu1 %v13952_v39 }
0x38a6   :  { %12426 = vmatpush3.bf16.msra.mxu0 %v13492_v36  ;;  %12454 = vmatpush3.bf16.msra.mxu1 %v13493_v19  ;;  %v8537_v36 = vrot.slane %v11514_v12, %v14979_v13 }
0x38a7   :  { %12427 = vmatprep.subr.bf16.mxu0 %v13494_v56  ;;  %12455 = vmatprep.subr.bf16.mxu1 %v13495_v27  ;;  %v8533_v27 = vrot.slane %v11514_v12, %v14981_v29 }
0x38aa   :  { %12428 = vmatpush3.bf16.msra.mxu0 %v13496_v24  ;;  %12456 = vmatpush3.bf16.msra.mxu1 %v13497_v6  ;;  %v8541_v24 = vrot.slane %v11514_v12, %v14983_v30 }
0x38ab   :  { %12429 = vmatprep.subr.bf16.mxu0 %v13498_v2  ;;  %12457 = vmatprep.subr.bf16.mxu1 %v13499_v58 }
0x38ac   :  { %11524 = vmatmul.mubr.msk.bf16.gmra.mxu0 %vm252_vm3, %v16245_v49  ;;  %11526 = vmatmul.mubr.msk.bf16.gmra.mxu1 %vm252_vm3, %v16245_v49 }
0x38ae   :  { %12430 = vmatpush3.bf16.msra.mxu0 %v13500_v42  ;;  %12458 = vmatpush3.bf16.msra.mxu1 %v13501_v55 }
0x38af   :  { %12431 = vmatprep.subr.bf16.mxu0 %v13502_v51  ;;  %12459 = vmatprep.subr.bf16.mxu1 %v13503_v26 }
0x38b2   :  { %12432 = vmatpush3.bf16.msra.mxu0 %v13504_v11  ;;  %12460 = vmatpush3.bf16.msra.mxu1 %v13505_v47 }
0x38b3   :  { %12433 = vmatprep.subr.bf16.mxu0 %v13506_v53  ;;  %12461 = vmatprep.subr.bf16.mxu1 %v13507_v32 }
0x38b6   :  { %12434 = vmatpush3.bf16.msra.mxu0 %v13508_v21  ;;  %12462 = vmatpush3.bf16.msra.mxu1 %v13509_v0 }
0x38b7   :  { %12435 = vmatprep.subr.bf16.mxu0 %v13510_v14  ;;  %12463 = vmatprep.subr.bf16.mxu1 %v13511_v59 }
0x38ba   :  { %12436 = vmatpush3.bf16.msra.mxu0 %v13512_v25  ;;  %12464 = vmatpush3.bf16.msra.mxu1 %v13513_v3 }
0x38bb   :  { %12437 = vmatprep.subr.bf16.mxu0 %v13514_v41  ;;  %12465 = vmatprep.subr.bf16.mxu1 %v13515_v9  ;;  %v16397_v9 = vld [vmem:[%s16971_s15 + $0x10] sm:$0xf] }
0x38be   :  { %12438 = vmatpush3.bf16.msra.mxu0 %v13516_v10  ;;  %12466 = vmatpush3.bf16.msra.mxu1 %v13517_v62 }
0x38bf   :  { %12439 = vmatprep.subr.bf16.mxu0 %v13518_v22  ;;  %12467 = vmatprep.subr.bf16.mxu1 %v13519_v48  ;;  %v16401_v22 = vrot.slane %v16397_v9, %v14981_v29 }
0x38c2   :  { %12440 = vmatpush3.bf16.msra.mxu0 %v13520_v8  ;;  %12468 = vmatpush3.bf16.msra.mxu1 %v13521_v4  ;;  %v13524_v4 = vld [vmem:[%s16968_s16 + $0x438] sm:$0xff]  }
0x38c3   :  { %12481 = vmatprep.subr.bf16.mxu0 %v13522_v18  ;;  %12509 = vmatprep.subr.bf16.mxu1 %v13523_v43  ;;  %v16410_v18 = vrot.slane %v16397_v9, %v14983_v30 }
0x3954   :  { %v16359_v20 = vpop.f32.mrf.mxu0  ;;  %v16361_v31 = vpop.f32.mrf.mxu1 }
0x3956   :  { %v16363_v35 = vpop.f32.mrf.mxu0  ;;  %v16365_v46 = vpop.f32.mrf.mxu1 }
0x3958   :  { %v16367_v34 = vpop.f32.mrf.mxu0  ;;  %v16369_v23 = vpop.f32.mrf.mxu1 }
0x395a   :  { %v8362_v38 = vpop.f32.mrf.mxu0  ;;  %v8415_v61 = vpop.f32.mrf.mxu1 }
0x395c   :  { %v16371_v15 = vpop.f32.mrf.mxu0  ;;  %v16373_v16 = vpop.f32.mrf.mxu1 }
0x395e   :  { %v16375_v44 = vpop.f32.mrf.mxu0  ;;  %v16377_v28 = vpop.f32.mrf.mxu1 }
0x3960   :  { %v16379_v33 = vpop.f32.mrf.mxu0  ;;  %v16381_v17 = vpop.f32.mrf.mxu1 }
0x3962   :  { %v16383_v40 = vpop.f32.mrf.mxu0  ;;  %v16385_v7 = vpop.f32.mrf.mxu1 }
0x3964   :  { %v8620_v57 = vpop.f32.mrf.mxu0  ;;  %v8673_v50 = vpop.f32.mrf.mxu1 }
0x3965   :  { %v8621_v55 = vadd.f32 %v8620_v57, %v8529_v63  ;;  %v8674_v51 = vadd.f32 %v8673_v50, %v8537_v36 }
0x3966   :  { %v8622_v19 = vpop.f32.mrf.mxu0  ;;  %v8675_v56 = vpop.f32.mrf.mxu1 }
0x3967   :  { %v8623_v47 = vadd.f32 %v8622_v19, %v8533_v27  ;;  %v8676_v53 = vadd.f32 %v8675_v56, %v8541_v24  ;;  %v13525_v19 = vld [vmem:[%s16968_s16 + $0x4b8] sm:$0xff]   ;;  %v13526_v56 = vld [vmem:[%s16968_s16 + $0x470] sm:$0xff]  }
0x3968   :  { %v8624_v6 = vpop.f32.mrf.mxu0  ;;  %v8677_v2 = vpop.f32.mrf.mxu1 }
0x3969   :  { %v8625_v58 = vadd.f32 %v8624_v6, %v8529_v63  ;;  %v8678_v42 = vadd.f32 %v8677_v2, %v8537_v36  ;;  %v8363_v6 = vadd.f32 %v8362_v38, %v16401_v22 }
0x396a   :  { %v8626_v26 = vpop.f32.mrf.mxu0  ;;  %v8679_v11 = vpop.f32.mrf.mxu1 }
0x396b   :  { %v8627_v32 = vadd.f32 %v8626_v26, %v8533_v27  ;;  %v8680_v21 = vadd.f32 %v8679_v11, %v8541_v24  ;;  %v8692_v0 = vpack.c.bf16 %v8625_v58, %v8621_v55  ;;  %v8694_v14 = vpack.c.bf16 %v8678_v42, %v8674_v51  ;;  %v13527_v42 = vld [vmem:[%s16968_s16 + $0x4f0] sm:$0xff]  }
0x396c   :  { %v8630_v59 = vpop.f32.mrf.mxu0  ;;  %v8683_v25 = vpop.f32.mrf.mxu1  ;;  %v8416_v55 = vadd.f32 %v8415_v61, %v16410_v18  ;;  %v13529_v61 = vld [vmem:[%s16968_s16 + $0x4b0] sm:$0xff]  }
0x396d   :  { %v8693_v3 = vpack.c.bf16 %v8627_v32, %v8623_v47  ;;  %v8695_v41 = vpack.c.bf16 %v8680_v21, %v8676_v53  ;;  %v8700_v43 = vmax.bf16 %v13952_v39, %v8692_v0  ;;  %v8702_v12 = vmax.bf16 %v13952_v39, %v8694_v14  ;;  %v13528_v0 = vld [vmem:[%s16968_s16 + $0x430] sm:$0xff]  }
0x396e   :  { %v8632_v10 = vpop.f32.mrf.mxu0  ;;  %v8685_v62 = vpop.f32.mrf.mxu1  ;;  %v8631_v51 = vadd.f32 %v8630_v59, %v8529_v63  ;;  %v8684_v26 = vadd.f32 %v8683_v25, %v8537_v36  ;;  %v8359_v14 = vadd.f32 %v16363_v35, %v16401_v22  ;;  %v13531_v35 = vld [vmem:[%s16968_s16 + $0x4e8] sm:$0xff]  }
0x396f   :  { %v8701_v48 = vmax.bf16 %v13952_v39, %v8693_v3  ;;  %v8703_v8 = vmax.bf16 %v13952_v39, %v8695_v41  ;;  %v8633_v53 = vadd.f32 %v8632_v10, %v8533_v27  ;;  %v8686_v32 = vadd.f32 %v8685_v62, %v8541_v24 }
0x3970   :  { %v8634_v57 = vpop.f32.mrf.mxu0  ;;  %v8687_v50 = vpop.f32.mrf.mxu1  ;;  %v8429_v25 = vpack.c.bf16 %v8363_v6, %v8359_v14  ;;  %v13538_v6 = vld [vmem:[%s16968_s16 + $0x458] sm:$0xff]   ;;  %v13549_v14 = vld [vmem:[%s16968_s16 + $0x488] sm:$0xff]  }
0x3971   :  { %v8635_v2 = vadd.f32 %v8634_v57, %v8529_v63  ;;  %v8688_v58 = vadd.f32 %v8687_v50, %v8537_v36  ;;  %8999 = vmatprep.mubr.bf16.mxu0 %v8701_v48  ;;  %9048 = vmatprep.mubr.bf16.mxu1 %v8703_v8  ;;  %v13530_v63 = vld [vmem:[%s16968_s16 + $0x468] sm:$0xff]   ;;  %v8412_v36 = vadd.f32 %v16365_v46, %v16410_v18  ;;  %v13535_v57 = vld [vmem:[%s16968_s16 + $0x4e0] sm:$0xff]  }
0x3972   :  { %v8636_v11 = vpop.f32.mrf.mxu0  ;;  %v8689_v47 = vpop.f32.mrf.mxu1  ;;  %9000 = vmatmul.mubr.bf16.vlgmr.msra.gmra.mxu0 %v8700_v43  ;;  %9049 = vmatmul.mubr.bf16.vlgmr.msra.gmra.mxu1 %v8702_v12  ;;  %v13532_v48 = vld [vmem:[%s16968_s16 + $0x428] sm:$0xff]   ;;  %v13534_v43 = vld [vmem:[%s16968_s16 + $0x460] sm:$0xff]   ;;  %v8437_v12 = vmax.bf16 %v13952_v39, %v8429_v25  ;;  %v8369_v25 = vadd.f32 %v16375_v44, %v16401_v22 }
0x3973   :  { %v8637_v21 = vadd.f32 %v8636_v11, %v8533_v27  ;;  %v8690_v38 = vadd.f32 %v8689_v47, %v8541_v24  ;;  %12482 = vmatpush3.bf16.msra.mxu0 %v13524_v4  ;;  %v8696_v3 = vpack.c.bf16 %v8635_v2, %v8631_v51  ;;  %12510 = vmatpush3.bf16.msra.mxu1 %v13525_v19  ;;  %v13533_v8 = vld [vmem:[%s16968_s16 + $0x4a8] sm:$0xff]   ;;  %v13536_v19 = vld [vmem:[%s16968_s16 + $0x420] sm:$0xff]   ;;  %v13539_v2 = vld [vmem:[%s16968_s16 + $0x4d8] sm:$0xff]  }
0x3974   :  { %12483 = vmatprep.subr.bf16.mxu0 %v13526_v56  ;;  %v8698_v27 = vpack.c.bf16 %v8688_v58, %v8684_v26  ;;  %12511 = vmatprep.subr.bf16.mxu1 %v13527_v42  ;;  %v8431_v41 = vpack.c.bf16 %v8416_v55, %v8412_v36  ;;  %v13537_v56 = vld [vmem:[%s16968_s16 + $0x4a0] sm:$0xff]   ;;  %v13540_v58 = vld [vmem:[%s16968_s16 + $0x418] sm:$0xff]   ;;  %v13542_v55 = vld [vmem:[%s16968_s16 + $0x450] sm:$0xff]  }
0x3975   :  { %v8697_v24 = vpack.c.bf16 %v8637_v21, %v8633_v53  ;;  %v8699_v59 = vpack.c.bf16 %v8690_v38, %v8686_v32  ;;  %v8704_v46 = vmax.bf16 %v13952_v39, %v8696_v3  ;;  %v13541_v42 = vld [vmem:[%s16968_s16 + $0x498] sm:$0xff]   ;;  %v13543_v51 = vld [vmem:[%s16968_s16 + $0x4d0] sm:$0xff]   ;;  %v13546_v47 = vld [vmem:[%s16968_s16 + $0x448] sm:$0xff]   ;;  %v8259_v32 = vrot.slane %v16397_v9, %v14977_v1 }
0x3976   :  { %v8706_v4 = vmax.bf16 %v13952_v39, %v8698_v27  ;;  %v8439_v50 = vmax.bf16 %v13952_v39, %v8431_v41  ;;  %v13544_v26 = vld [vmem:[%s16968_s16 + $0x410] sm:$0xff]   ;;  %v13547_v53 = vld [vmem:[%s16968_s16 + $0x4c8] sm:$0xff]   ;;  %v8267_v21 = vrot.slane %v16397_v9, %v14979_v13  ;;  %v13550_v3 = vld [vmem:[%s16968_s16 + $0x440] sm:$0xff]   ;;  %v8373_v9 = vadd.f32 %v16383_v40, %v16401_v22 }
0x3977   :  { %12484 = vmatpush3.bf16.msra.mxu0 %v13528_v0  ;;  %v8705_v10 = vmax.bf16 %v13952_v39, %v8697_v24  ;;  %v8707_v62 = vmax.bf16 %v13952_v39, %v8699_v59  ;;  %12512 = vmatpush3.bf16.msra.mxu1 %v13529_v61  ;;  %v13545_v11 = vld [vmem:[%s16968_s16 + $0x490] sm:$0xff]   ;;  %v13548_v38 = vld [vmem:[%s16968_s16 + $0x408] sm:$0xff]   ;;  %v8361_v0 = vadd.f32 %v16367_v34, %v8259_v32  ;;  %v13551_v34 = vld [vmem:[%s16968_s16 + $0x4c0] sm:$0xff]  }
0x3978   :  { %12485 = vmatprep.subr.bf16.mxu0 %v13530_v63  ;;  %12513 = vmatprep.subr.bf16.mxu1 %v13531_v35  ;;  %v8414_v61 = vadd.f32 %v16369_v23, %v8267_v21  ;;  %v11659_v63 = vld [vmem:[%s16967_s14 + $0x1a0] sm:$0xff]  ;;  %v8357_v27 = vadd.f32 %v16359_v20, %v8259_v32  ;;  %v8426_v23 = vadd.f32 %v16385_v7, %v16410_v18  ;;  %v11660_v40 = vld [vmem:[%s16967_s14 + $0x1a8] sm:$0xff] }
0x3979   :  { %9007 = vmatprep.mubr.bf16.mxu0 %v8705_v10  ;;  %9056 = vmatprep.mubr.bf16.mxu1 %v8707_v62  ;;  %v11661_v36 = vld [vmem:[%s16967_s14 + $0x1e0] sm:$0xff]  ;;  %v11662_v24 = vld [vmem:[%s16967_s14 + $0x1e8] sm:$0xff]  ;;  %v8410_v59 = vadd.f32 %v16361_v31, %v8267_v21  ;;  %v8422_v7 = vadd.f32 %v16377_v28, %v16410_v18  ;;  %v8433_v62 = vpack.c.bf16 %v8373_v9, %v8369_v25  ;;  %v13574_v25 = vld [vmem:[%s16968_s16 + $0x650] sm:$0xff]  }
0x397a   :  { %9008 = vmatmul.mubr.bf16.gmra.mxu0 %v8704_v46  ;;  %9057 = vmatmul.mubr.bf16.gmra.mxu1 %v8706_v4  ;;  %v13552_v20 = vld [vmem:[%s16968_s16 + $0x400] sm:$0xff]   ;;  %v8428_v35 = vpack.c.bf16 %v8361_v0, %v8357_v27  ;;  %v11669_v10 = vcombine.high %v11659_v63, %v11661_v36  ;;  %v11671_v44 = vcombine.high %v11660_v40, %v11662_v24  ;;  %v11656_v46 = vld [vmem:[%s16967_s14 + $0x128] sm:$0xff]  ;;  %v13561_v0 = vld [vmem:[%s16968_s16 + $0x6b0] sm:$0xff]  }
0x397b   :  { %12486 = vmatpush3.bf16.msra.mxu0 %v13532_v48  ;;  %12514 = vmatpush3.bf16.msra.mxu1 %v13533_v8  ;;  %v13553_v41 = vld [vmem:[%s16968_s16 + $0x480] sm:$0xff]   ;;  %v8430_v31 = vpack.c.bf16 %v8414_v61, %v8410_v59  ;;  %v8435_v22 = vpack.c.bf16 %v8426_v23, %v8422_v7  ;;  %v11668_v18 = vcombine.low %v11659_v63, %v11661_v36  ;;  %v11658_v8 = vld [vmem:[%s16967_s14 + $0x168] sm:$0xff]  ;;  %v13570_v23 = vld [vmem:[%s16968_s16 + $0x658] sm:$0xff]  }
0x397c   :  { %9289 = vmatprep.mubr.bf16.mxu0 %v8437_v12  ;;  %9338 = vmatprep.mubr.bf16.mxu1 %v8439_v50  ;;  %v11655_v48 = vld [vmem:[%s16967_s14 + $0x120] sm:$0xff]  ;;  %v8436_v4 = vmax.bf16 %v13952_v39, %v8428_v35  ;;  %v11670_v12 = vcombine.low %v11660_v40, %v11662_v24  ;;  %v8424_v50 = vadd.f32 %v16381_v17, %v8267_v21  ;;  %v13564_v61 = vld [vmem:[%s16968_s16 + $0x628] sm:$0xff]   ;;  %v13571_v40 = vld [vmem:[%s16968_s16 + $0x6d8] sm:$0xff]  }
0x397d   :  { %12487 = vmatprep.subr.bf16.mxu0 %v13534_v43  ;;  %12515 = vmatprep.subr.bf16.mxu1 %v13535_v57  ;;  %v11657_v28 = vld [vmem:[%s16967_s14 + $0x160] sm:$0xff]  ;;  %v8371_v43 = vadd.f32 %v16379_v33, %v8259_v32  ;;  %v8438_v57 = vmax.bf16 %v13952_v39, %v8430_v31  ;;  %v11666_v17 = vcombine.low %v11656_v46, %v11658_v8  ;;  %v13565_v9 = vld [vmem:[%s16968_s16 + $0x6a8] sm:$0xff]   ;;  %v13572_v24 = vld [vmem:[%s16968_s16 + $0x618] sm:$0xff]  }
0x397e   :  { %v13567_v63 = vld [vmem:[%s16968_s16 + $0x6e0] sm:$0xff]   ;;  %v13573_v59 = vld [vmem:[%s16968_s16 + $0x698] sm:$0xff]   ;;  %v13576_v35 = vld [vmem:[%s16968_s16 + $0x610] sm:$0xff]  }
0x397f   :  { %12488 = vmatpush3.bf16.msra.mxu0 %v13536_v19  ;;  %12516 = vmatpush3.bf16.msra.mxu1 %v13537_v56  ;;  %v8441_v19 = vmax.bf16 %v13952_v39, %v8433_v62  ;;  %v11665_v56 = vcombine.high %v11655_v48, %v11657_v28  ;;  %v13568_v36 = vld [vmem:[%s16968_s16 + $0x620] sm:$0xff]   ;;  %v13577_v7 = vld [vmem:[%s16968_s16 + $0x690] sm:$0xff]   ;;  %v13580_v31 = vld [vmem:[%s16968_s16 + $0x608] sm:$0xff]  }
0x3980   :  { %12489 = vmatprep.subr.bf16.mxu0 %v13538_v6  ;;  %12517 = vmatprep.subr.bf16.mxu1 %v13539_v2  ;;  %v8367_v6 = vadd.f32 %v16371_v15, %v8259_v32  ;;  %v8443_v2 = vmax.bf16 %v13952_v39, %v8435_v22  ;;  %v13558_v32 = vld [vmem:[%s16968_s16 + $0x670] sm:$0xff]   ;;  %v13569_v27 = vld [vmem:[%s16968_s16 + $0x6a0] sm:$0xff]   ;;  %v13581_v62 = vld [vmem:[%s16968_s16 + $0x688] sm:$0xff]  }
0x3981   :  { %v13583_v22 = vld [vmem:[%s16968_s16 + $0x6c0] sm:$0xff]  }
0x3982   :  { %v8432_v33 = vpack.c.bf16 %v8371_v43, %v8367_v6 }
0x3983   :  { %12490 = vmatpush3.bf16.msra.mxu0 %v13540_v58  ;;  %12518 = vmatpush3.bf16.msra.mxu1 %v13541_v42  ;;  %v11667_v58 = vcombine.high %v11656_v46, %v11658_v8  ;;  %v8420_v42 = vadd.f32 %v16373_v16, %v8267_v21  ;;  %v13554_v16 = vld [vmem:[%s16968_s16 + $0x678] sm:$0xff]   ;;  %v13559_v21 = vld [vmem:[%s16968_s16 + $0x6f0] sm:$0xff]  }
0x3984   :  { %12491 = vmatprep.subr.bf16.mxu0 %v13542_v55  ;;  %12519 = vmatprep.subr.bf16.mxu1 %v13543_v51  ;;  %v11664_v55 = vcombine.low %v11655_v48, %v11657_v28  ;;  %v13584_v48 = vld [vmem:[%s16968_s16 + $0x600] sm:$0xff]   ;;  %v16679_v46 = vld [vmem:[%s16967_s14 + $0x1f0] sm:$0xff]  ;;  %v16684_v8 = vld [vmem:[%s16967_s14 + $0x1b8] sm:$0xff] }
0x3985   :  { %v8434_v51 = vpack.c.bf16 %v8424_v50, %v8420_v42  ;;  %v13585_v28 = vld [vmem:[%s16968_s16 + $0x680] sm:$0xff]  }
0x3987   :  { %12492 = vmatpush3.bf16.msra.mxu0 %v13544_v26  ;;  %12520 = vmatpush3.bf16.msra.mxu1 %v13545_v11  ;;  %v8440_v26 = vmax.bf16 %v13952_v39, %v8432_v33  ;;  %v8442_v15 = vmax.bf16 %v13952_v39, %v8434_v51  ;;  %v13555_v11 = vld [vmem:[%s16968_s16 + $0x6f8] sm:$0xff]  }
0x3988   :  { %12493 = vmatprep.subr.bf16.mxu0 %v13546_v47  ;;  %12521 = vmatprep.subr.bf16.mxu1 %v13547_v53  ;;  %v13556_v47 = vld [vmem:[%s16968_s16 + $0x638] sm:$0xff]  }
0x3989   :  { %v13557_v53 = vld [vmem:[%s16968_s16 + $0x6b8] sm:$0xff]  }
0x398b   :  { %12494 = vmatpush3.bf16.msra.mxu0 %v13548_v38  ;;  %12522 = vmatpush3.bf16.msra.mxu1 %v13549_v14  ;;  %v13560_v38 = vld [vmem:[%s16968_s16 + $0x630] sm:$0xff]   ;;  %v13562_v14 = vld [vmem:[%s16968_s16 + $0x668] sm:$0xff]  }
0x398c   :  { %12495 = vmatprep.subr.bf16.mxu0 %v13550_v3  ;;  %12523 = vmatprep.subr.bf16.mxu1 %v13551_v34  ;;  %v13563_v3 = vld [vmem:[%s16968_s16 + $0x6e8] sm:$0xff]   ;;  %v13566_v34 = vld [vmem:[%s16968_s16 + $0x660] sm:$0xff]  }
0x398f   :  { %12496 = vmatpush3.bf16.msra.mxu0 %v13552_v20  ;;  %12524 = vmatpush3.bf16.msra.mxu1 %v13553_v41  ;;  %v13575_v20 = vld [vmem:[%s16968_s16 + $0x6d0] sm:$0xff]   ;;  %v13578_v41 = vld [vmem:[%s16968_s16 + $0x648] sm:$0xff]  }
0x3990   :  { %9442 = vmatprep.subr.bf16.mxu0 %v11669_v10  ;;  %9495 = vmatprep.subr.bf16.mxu1 %v11671_v44  ;;  %v13579_v10 = vld [vmem:[%s16968_s16 + $0x6c8] sm:$0xff]   ;;  %v13582_v44 = vld [vmem:[%s16968_s16 + $0x640] sm:$0xff]  }
0x3992   :  { %9290 = vmatmul.mubr.bf16.vlgmr.msra.gmra.mxu0 %v8436_v4  ;;  %9339 = vmatmul.mubr.bf16.vlgmr.msra.gmra.mxu1 %v8438_v57 }
0x3993   :  { %9297 = vmatprep.mubr.bf16.mxu0 %v8441_v19  ;;  %9346 = vmatprep.mubr.bf16.mxu1 %v8443_v2 }
0x3994   :  { %9443 = vmatpush1.bf16.msra.mxu0 %v11668_v18  ;;  %9496 = vmatpush1.bf16.msra.mxu1 %v11670_v12  ;;  %v16674_v18 = vld [vmem:[%s16967_s14 + $0x1b0] sm:$0xff]  ;;  %v16693_v12 = vld [vmem:[%s16967_s14 + $0x1f8] sm:$0xff] }
0x3995   :  { %9444 = vmatprep.subr.bf16.mxu0 %v11665_v56  ;;  %9497 = vmatprep.subr.bf16.mxu1 %v11667_v58  ;;  %v11785_v4 = vcombine.low %v16674_v18, %v16679_v46  ;;  %v11786_v43 = vcombine.high %v16674_v18, %v16679_v46  ;;  %v11787_v57 = vcombine.low %v16684_v8, %v16693_v12  ;;  %v13587_v18 = vld [vmem:[%s16968_s16 + $0x7f8] sm:$0xff]  }
0x3996   :  { %v11788_v50 = vcombine.high %v16684_v8, %v16693_v12 }
0x3998   :  { %9445 = vmatpush1.bf16.msra.mxu0 %v11664_v55  ;;  %9498 = vmatpush1.bf16.msra.mxu1 %v11666_v17 }
0x3999   :  { %12537 = vmatprep.subr.bf16.mxu0 %v13554_v16  ;;  %12565 = vmatprep.subr.bf16.mxu1 %v13555_v11 }
0x399a   :  { %9298 = vmatmul.mubr.bf16.gmra.mxu0 %v8440_v26  ;;  %9347 = vmatmul.mubr.bf16.gmra.mxu1 %v8442_v15 }
0x399b   :  { %9462 = vmatprep.mubr.bf16.mxu0 %v13952_v39  ;;  %9515 = vmatprep.mubr.bf16.mxu1 %v13952_v39 }
0x39a2   :  { %11672 = vmatmul.mubr.msk.bf16.vlgmr.msra.gmra.mxu0 %vm252_vm3, %v16225_v45  ;;  %11674 = vmatmul.mubr.msk.bf16.vlgmr.msra.gmra.mxu1 %vm252_vm3, %v16225_v45 }
0x39a3   :  { %9472 = vmatprep.mubr.bf16.mxu0 %v13952_v39  ;;  %9525 = vmatprep.mubr.bf16.mxu1 %v13952_v39 }
0x39a4   :  { %12538 = vmatpush3.bf16.msra.mxu0 %v13556_v47  ;;  %12566 = vmatpush3.bf16.msra.mxu1 %v13557_v53 }
0x39a5   :  { %12539 = vmatprep.subr.bf16.mxu0 %v13558_v32  ;;  %12567 = vmatprep.subr.bf16.mxu1 %v13559_v21 }
0x39a8   :  { %12540 = vmatpush3.bf16.msra.mxu0 %v13560_v38  ;;  %12568 = vmatpush3.bf16.msra.mxu1 %v13561_v0 }
0x39a9   :  { %12541 = vmatprep.subr.bf16.mxu0 %v13562_v14  ;;  %12569 = vmatprep.subr.bf16.mxu1 %v13563_v3 }
0x39aa   :  { %11673 = vmatmul.mubr.msk.bf16.gmra.mxu0 %vm252_vm3, %v16245_v49  ;;  %11675 = vmatmul.mubr.msk.bf16.gmra.mxu1 %vm252_vm3, %v16245_v49 }
0x39ac   :  { %12542 = vmatpush3.bf16.msra.mxu0 %v13564_v61  ;;  %12570 = vmatpush3.bf16.msra.mxu1 %v13565_v9 }
0x39ad   :  { %12543 = vmatprep.subr.bf16.mxu0 %v13566_v34  ;;  %12571 = vmatprep.subr.bf16.mxu1 %v13567_v63 }
0x39b0   :  { %12544 = vmatpush3.bf16.msra.mxu0 %v13568_v36  ;;  %12572 = vmatpush3.bf16.msra.mxu1 %v13569_v27 }
0x39b1   :  { %12545 = vmatprep.subr.bf16.mxu0 %v13570_v23  ;;  %12573 = vmatprep.subr.bf16.mxu1 %v13571_v40 }
0x39b4   :  { %12546 = vmatpush3.bf16.msra.mxu0 %v13572_v24  ;;  %12574 = vmatpush3.bf16.msra.mxu1 %v13573_v59 }
0x39b5   :  { %12547 = vmatprep.subr.bf16.mxu0 %v13574_v25  ;;  %12575 = vmatprep.subr.bf16.mxu1 %v13575_v20 }
0x39b8   :  { %12548 = vmatpush3.bf16.msra.mxu0 %v13576_v35  ;;  %12576 = vmatpush3.bf16.msra.mxu1 %v13577_v7 }
0x39b9   :  { %12549 = vmatprep.subr.bf16.mxu0 %v13578_v41  ;;  %12577 = vmatprep.subr.bf16.mxu1 %v13579_v10 }
0x39bc   :  { %12550 = vmatpush3.bf16.msra.mxu0 %v13580_v31  ;;  %12578 = vmatpush3.bf16.msra.mxu1 %v13581_v62 }
0x39bd   :  { %12551 = vmatprep.subr.bf16.mxu0 %v13582_v44  ;;  %12579 = vmatprep.subr.bf16.mxu1 %v13583_v22 }
0x39c0   :  { %12552 = vmatpush3.bf16.msra.mxu0 %v13584_v48  ;;  %12580 = vmatpush3.bf16.msra.mxu1 %v13585_v28 }
0x39c1   :  { %10000 = vmatprep.subr.bf16.mxu0 %v11786_v43  ;;  %10053 = vmatprep.subr.bf16.mxu1 %v11788_v50 }
0x3a32   :  { %v12441_v19 = vpop.f32.mrf.mxu0  ;;  %v12469_v56 = vpop.f32.mrf.mxu1 }
0x3a34   :  { %v12442_v6 = vpop.f32.mrf.mxu0  ;;  %v12470_v2 = vpop.f32.mrf.mxu1 }
0x3a35   :  { %v12443_v58 = vadd.f32 %v12442_v6, %v12441_v19  ;;  %v12471_v42 = vadd.f32 %v12470_v2, %v12469_v56 }
0x3a36   :  { %v12444_v33 = vpop.f32.mrf.mxu0  ;;  %v12472_v55 = vpop.f32.mrf.mxu1 }
0x3a37   :  { %v9051_v51 = vadd.f32 %v12471_v42, %v12443_v58 }
0x3a38   :  { %v12445_v17 = vpop.f32.mrf.mxu0  ;;  %v12473_v26 = vpop.f32.mrf.mxu1 }
0x3a39   :  { %v12446_v15 = vadd.f32 %v12445_v17, %v12444_v33  ;;  %v12474_v16 = vadd.f32 %v12473_v26, %v12472_v55 }
0x3a3a   :  { %v12447_v11 = vpop.f32.mrf.mxu0  ;;  %v12475_v53 = vpop.f32.mrf.mxu1 }
0x3a3b   :  { %v9054_v47 = vadd.f32 %v12474_v16, %v12446_v15  ;;  %v11663_v15 = vld [vmem:[%s16971_s15 + $0x18] sm:$0xf] }
0x3a3c   :  { %v12448_v32 = vpop.f32.mrf.mxu0  ;;  %v12476_v38 = vpop.f32.mrf.mxu1 }
0x3a3d   :  { %v12449_v21 = vadd.f32 %v12448_v32, %v12447_v11  ;;  %v12477_v0 = vadd.f32 %v12476_v38, %v12475_v53  ;;  %v9373_v32 = vrot.slane %v11663_v15, %v14977_v1 }
0x3a3e   :  { %v12450_v14 = vpop.f32.mrf.mxu0  ;;  %v12478_v3 = vpop.f32.mrf.mxu1 }
0x3a3f   :  { %v9059_v61 = vadd.f32 %v12477_v0, %v12449_v21  ;;  %v9381_v0 = vrot.slane %v11663_v15, %v14979_v13 }
0x3a40   :  { %v12451_v9 = vpop.f32.mrf.mxu0  ;;  %v12479_v63 = vpop.f32.mrf.mxu1 }
0x3a41   :  { %v12452_v34 = vadd.f32 %v12451_v9, %v12450_v14  ;;  %v12480_v36 = vadd.f32 %v12479_v63, %v12478_v3  ;;  %v9377_v14 = vrot.slane %v11663_v15, %v14981_v29 }
0x3a43   :  { %v9062_v27 = vadd.f32 %v12480_v36, %v12452_v34 }
0x3a52   :  { %v12497_v23 = vpop.f32.mrf.mxu0  ;;  %v12525_v40 = vpop.f32.mrf.mxu1 }
0x3a54   :  { %v12498_v24 = vpop.f32.mrf.mxu0  ;;  %v12526_v25 = vpop.f32.mrf.mxu1 }
0x3a55   :  { %v12499_v59 = vadd.f32 %v12498_v24, %v12497_v23  ;;  %v12527_v20 = vadd.f32 %v12526_v25, %v12525_v40 }
0x3a56   :  { %v12500_v35 = vpop.f32.mrf.mxu0  ;;  %v12528_v41 = vpop.f32.mrf.mxu1 }
0x3a57   :  { %v9292_v7 = vadd.f32 %v12499_v59, %v9051_v51 }
0x3a58   :  { %v12501_v10 = vpop.f32.mrf.mxu0  ;;  %v12529_v44 = vpop.f32.mrf.mxu1 }
0x3a59   :  { %v16699_v31 = vadd.f32 %v12527_v20, %v9292_v7  ;;  %v12502_v62 = vadd.f32 %v12501_v10, %v12500_v35  ;;  %v12530_v22 = vadd.f32 %v12529_v44, %v12528_v41 }
0x3a5a   :  { %v12503_v48 = vpop.f32.mrf.mxu0  ;;  %v12531_v43 = vpop.f32.mrf.mxu1 }
0x3a5b   :  { %v9295_v28 = vadd.f32 %v12502_v62, %v9054_v47 }
0x3a5c   :  { %v12504_v50 = vpop.f32.mrf.mxu0  ;;  %v12532_v6 = vpop.f32.mrf.mxu1 }
0x3a5d   :  { %v16701_v19 = vadd.f32 %v12530_v22, %v9295_v28  ;;  %v12505_v56 = vadd.f32 %v12504_v50, %v12503_v48  ;;  %v12533_v2 = vadd.f32 %v12532_v6, %v12531_v43  ;;  %v11772_v22 = vld [vmem:[%s16967_s14 + $0x130] sm:$0xff]  ;;  %v11773_v50 = vld [vmem:[%s16967_s14 + $0x138] sm:$0xff] }
0x3a5e   :  { %v12506_v58 = vpop.f32.mrf.mxu0  ;;  %v12534_v33 = vpop.f32.mrf.mxu1  ;;  %v11774_v48 = vld [vmem:[%s16967_s14 + $0x170] sm:$0xff] }
0x3a5f   :  { %v9300_v42 = vadd.f32 %v12505_v56, %v9059_v61  ;;  %v9385_v61 = vrot.slane %v11663_v15, %v14983_v30  ;;  %v11775_v56 = vld [vmem:[%s16967_s14 + $0x178] sm:$0xff]  ;;  %s17079_s14 = sld [smem:[#allocation21_spill]] }
0x3a60   :  { %v12507_v55 = vpop.f32.mrf.mxu0  ;;  %v12535_v26 = vpop.f32.mrf.mxu1 }
0x3a61   :  { %v16703_v51 = vadd.f32 %v12533_v2, %v9300_v42  ;;  %v12508_v17 = vadd.f32 %v12507_v55, %v12506_v58  ;;  %v12536_v16 = vadd.f32 %v12535_v26, %v12534_v33  ;;  %v11782_v55 = vcombine.high %v11772_v22, %v11774_v48 }
0x3a62   :  { %v9464_v11 = vpop.f32.mrf.mxu0  ;;  %v9517_v53 = vpop.f32.mrf.mxu1 }
0x3a63   :  { %v9303_v47 = vadd.f32 %v12508_v17, %v9062_v27  ;;  %v9465_v36 = vadd.f32 %v9464_v11, %v9373_v32  ;;  %v9518_v27 = vadd.f32 %v9517_v53, %v9381_v0  ;;  %v11784_v11 = vcombine.high %v11773_v50, %v11775_v56 }
0x3a64   :  { %v9466_v21 = vpop.f32.mrf.mxu0  ;;  %v9519_v3 = vpop.f32.mrf.mxu1 }
0x3a65   :  { %v16709_v38 = vadd.f32 %v12536_v16, %v9303_v47  ;;  %v9467_v24 = vadd.f32 %v9466_v21, %v9377_v14  ;;  %v9520_v20 = vadd.f32 %v9519_v3, %v9385_v61  ;;  %v11781_v16 = vcombine.low %v11772_v22, %v11774_v48  ;;  %v13601_v22 = vld [vmem:[%s16968_s16 + $0x7a0] sm:$0xff]   ;;  %v13602_v48 = vld [vmem:[%s16968_s16 + $0x758] sm:$0xff]  }
0x3a66   :  { %v9468_v9 = vpop.f32.mrf.mxu0  ;;  %v9521_v63 = vpop.f32.mrf.mxu1  ;;  %v11783_v3 = vcombine.low %v11773_v50, %v11775_v56  ;;  %v13605_v50 = vld [vmem:[%s16968_s16 + $0x798] sm:$0xff]   ;;  %v13606_v56 = vld [vmem:[%s16968_s16 + $0x750] sm:$0xff]  }
0x3a67   :  { %v9469_v34 = vadd.f32 %v9468_v9, %v9373_v32  ;;  %v9522_v23 = vadd.f32 %v9521_v63, %v9381_v0 }
0x3a68   :  { %v9470_v40 = vpop.f32.mrf.mxu0  ;;  %v9523_v25 = vpop.f32.mrf.mxu1 }
0x3a69   :  { %v9471_v59 = vadd.f32 %v9470_v40, %v9377_v14  ;;  %v9536_v35 = vpack.c.bf16 %v9469_v34, %v9465_v36  ;;  %v9524_v7 = vadd.f32 %v9523_v25, %v9385_v61  ;;  %v9538_v10 = vpack.c.bf16 %v9522_v23, %v9518_v27  ;;  %v13592_v25 = vld [vmem:[%s16968_s16 + $0x730] sm:$0xff]  }
0x3a6a   :  { %v9474_v41 = vpop.f32.mrf.mxu0  ;;  %v9527_v44 = vpop.f32.mrf.mxu1 }
0x3a6b   :  { %v9537_v62 = vpack.c.bf16 %v9471_v59, %v9467_v24  ;;  %v9539_v28 = vpack.c.bf16 %v9524_v7, %v9520_v20  ;;  %v9544_v58 = vmax.bf16 %v13952_v39, %v9536_v35  ;;  %v9546_v17 = vmax.bf16 %v13952_v39, %v9538_v10  ;;  %v13589_v24 = vld [vmem:[%s16968_s16 + $0x7b8] sm:$0xff]   ;;  %v13590_v59 = vld [vmem:[%s16968_s16 + $0x770] sm:$0xff]   ;;  %v13595_v35 = vld [vmem:[%s16968_s16 + $0x7e8] sm:$0xff]  }
0x3a6c   :  { %v9476_v43 = vpop.f32.mrf.mxu0  ;;  %v9529_v6 = vpop.f32.mrf.mxu1  ;;  %v9475_v47 = vadd.f32 %v9474_v41, %v9373_v32  ;;  %v9528_v9 = vadd.f32 %v9527_v44, %v9381_v0  ;;  %v13593_v20 = vld [vmem:[%s16968_s16 + $0x7b0] sm:$0xff]   ;;  %v13596_v7 = vld [vmem:[%s16968_s16 + $0x728] sm:$0xff]   ;;  %v13598_v10 = vld [vmem:[%s16968_s16 + $0x760] sm:$0xff]  }
0x3a6d   :  { %v9545_v2 = vmax.bf16 %v13952_v39, %v9537_v62  ;;  %v9547_v33 = vmax.bf16 %v13952_v39, %v9539_v28  ;;  %v9477_v34 = vadd.f32 %v9476_v43, %v9377_v14  ;;  %v9530_v23 = vadd.f32 %v9529_v6, %v9385_v61  ;;  %v13597_v41 = vld [vmem:[%s16968_s16 + $0x7a8] sm:$0xff]   ;;  %v13599_v62 = vld [vmem:[%s16968_s16 + $0x7e0] sm:$0xff]   ;;  %v13603_v28 = vld [vmem:[%s16968_s16 + $0x7d8] sm:$0xff]  }
0x3a6e   :  { %v9478_v42 = vpop.f32.mrf.mxu0  ;;  %v9531_v15 = vpop.f32.mrf.mxu1  ;;  %v13600_v44 = vld [vmem:[%s16968_s16 + $0x720] sm:$0xff]   ;;  %v13604_v43 = vld [vmem:[%s16968_s16 + $0x718] sm:$0xff]   ;;  %v13607_v6 = vld [vmem:[%s16968_s16 + $0x7d0] sm:$0xff]  }
0x3a6f   :  { %v9479_v26 = vadd.f32 %v9478_v42, %v9373_v32  ;;  %9843 = vmatprep.mubr.bf16.mxu0 %v9545_v2  ;;  %v9532_v53 = vadd.f32 %v9531_v15, %v9381_v0  ;;  %9892 = vmatprep.mubr.bf16.mxu1 %v9547_v33  ;;  %v13586_v32 = vld [vmem:[%s16968_s16 + $0x778] sm:$0xff]   ;;  %v13608_v2 = vld [vmem:[%s16968_s16 + $0x710] sm:$0xff]   ;;  %v13610_v42 = vld [vmem:[%s16968_s16 + $0x748] sm:$0xff]  }
0x3a70   :  { %v9480_v21 = vpop.f32.mrf.mxu0  ;;  %9844 = vmatmul.mubr.bf16.vlgmr.msra.gmra.mxu0 %v9544_v58  ;;  %v9533_v36 = vpop.f32.mrf.mxu1  ;;  %9893 = vmatmul.mubr.bf16.vlgmr.msra.gmra.mxu1 %v9546_v17  ;;  %v13609_v58 = vld [vmem:[%s16968_s16 + $0x790] sm:$0xff]   ;;  %v13611_v33 = vld [vmem:[%s16968_s16 + $0x7c8] sm:$0xff]   ;;  %v13615_v15 = vld [vmem:[%s16968_s16 + $0x7c0] sm:$0xff]  }
0x3a71   :  { %v9481_v63 = vadd.f32 %v9480_v21, %v9377_v14  ;;  %10001 = vmatpush1.bf16.msra.mxu0 %v11785_v4  ;;  %v9540_v40 = vpack.c.bf16 %v9479_v26, %v9475_v47  ;;  %v9534_v27 = vadd.f32 %v9533_v36, %v9385_v61  ;;  %10054 = vmatpush1.bf16.msra.mxu1 %v11787_v57  ;;  %v13588_v57 = vld [vmem:[%s16968_s16 + $0x738] sm:$0xff]   ;;  %v13613_v17 = vld [vmem:[%s16968_s16 + $0x788] sm:$0xff]   ;;  %v13614_v26 = vld [vmem:[%s16968_s16 + $0x740] sm:$0xff]  }
0x3a72   :  { %10002 = vmatprep.subr.bf16.mxu0 %v11782_v55  ;;  %v9542_v0 = vpack.c.bf16 %v9532_v53, %v9528_v9  ;;  %10055 = vmatprep.subr.bf16.mxu1 %v11784_v11  ;;  %v13612_v55 = vld [vmem:[%s16968_s16 + $0x708] sm:$0xff]   ;;  %v13617_v11 = vld [vmem:[%s16968_s16 + $0x780] sm:$0xff]  }
0x3a73   :  { %v9541_v14 = vpack.c.bf16 %v9481_v63, %v9477_v34  ;;  %v9543_v46 = vpack.c.bf16 %v9534_v27, %v9530_v23  ;;  %v9548_v61 = vmax.bf16 %v13952_v39, %v9540_v40 }
0x3a74   :  { %v9550_v12 = vmax.bf16 %v13952_v39, %v9542_v0 }
0x3a75   :  { %v9549_v4 = vmax.bf16 %v13952_v39, %v9541_v14  ;;  %10003 = vmatpush1.bf16.msra.mxu0 %v11781_v16  ;;  %v9551_v8 = vmax.bf16 %v13952_v39, %v9543_v46  ;;  %10056 = vmatpush1.bf16.msra.mxu1 %v11783_v3  ;;  %v13616_v16 = vld [vmem:[%s16968_s16 + $0x700] sm:$0xff]  }
0x3a76   :  { %12593 = vmatprep.subr.bf16.mxu0 %v13586_v32  ;;  %12621 = vmatprep.subr.bf16.mxu1 %v13587_v18 }
0x3a77   :  { %9851 = vmatprep.mubr.bf16.mxu0 %v9549_v4  ;;  %9900 = vmatprep.mubr.bf16.mxu1 %v9551_v8 }
0x3a78   :  { %9852 = vmatmul.mubr.bf16.gmra.mxu0 %v9548_v61  ;;  %9901 = vmatmul.mubr.bf16.gmra.mxu1 %v9550_v12 }
0x3a79   :  { %10020 = vmatprep.mubr.bf16.mxu0 %v13952_v39  ;;  %10073 = vmatprep.mubr.bf16.mxu1 %v13952_v39 }
0x3a80   :  { %11789 = vmatmul.mubr.msk.bf16.vlgmr.msra.gmra.mxu0 %vm252_vm3, %v16225_v45  ;;  %11791 = vmatmul.mubr.msk.bf16.vlgmr.msra.gmra.mxu1 %vm252_vm3, %v16225_v45  ;;  %v13591_v45 = vld [vmem:[%s16968_s16 + $0x7f0] sm:$0xff]  }
0x3a81   :  { %10030 = vmatprep.mubr.bf16.mxu0 %v13952_v39  ;;  %10083 = vmatprep.mubr.bf16.mxu1 %v13952_v39 }
0x3a82   :  { %12594 = vmatpush3.bf16.msra.mxu0 %v13588_v57  ;;  %12622 = vmatpush3.bf16.msra.mxu1 %v13589_v24 }
0x3a83   :  { %12595 = vmatprep.subr.bf16.mxu0 %v13590_v59  ;;  %12623 = vmatprep.subr.bf16.mxu1 %v13591_v45 }
0x3a86   :  { %12596 = vmatpush3.bf16.msra.mxu0 %v13592_v25  ;;  %12624 = vmatpush3.bf16.msra.mxu1 %v13593_v20 }
0x3a87   :  { %12625 = vmatprep.subr.bf16.mxu1 %v13595_v35 }
0x3a88   :  { %11790 = vmatmul.mubr.msk.bf16.gmra.mxu0 %vm252_vm3, %v16245_v49  ;;  %11792 = vmatmul.mubr.msk.bf16.gmra.mxu1 %vm252_vm3, %v16245_v49  ;;  %v13594_v49 = vld [vmem:[%s16968_s16 + $0x768] sm:$0xff]  }
0x3a89   :  { %12597 = vmatprep.subr.bf16.mxu0 %v13594_v49 }
0x3a8a   :  { %12598 = vmatpush3.bf16.msra.mxu0 %v13596_v7  ;;  %12626 = vmatpush3.bf16.msra.mxu1 %v13597_v41 }
0x3a8b   :  { %12599 = vmatprep.subr.bf16.mxu0 %v13598_v10  ;;  %12627 = vmatprep.subr.bf16.mxu1 %v13599_v62 }
0x3a8e   :  { %12600 = vmatpush3.bf16.msra.mxu0 %v13600_v44  ;;  %12628 = vmatpush3.bf16.msra.mxu1 %v13601_v22 }
0x3a8f   :  { %12601 = vmatprep.subr.bf16.mxu0 %v13602_v48  ;;  %12629 = vmatprep.subr.bf16.mxu1 %v13603_v28 }
0x3a92   :  { %12602 = vmatpush3.bf16.msra.mxu0 %v13604_v43  ;;  %12630 = vmatpush3.bf16.msra.mxu1 %v13605_v50 }
0x3a93   :  { %12603 = vmatprep.subr.bf16.mxu0 %v13606_v56  ;;  %12631 = vmatprep.subr.bf16.mxu1 %v13607_v6 }
0x3a96   :  { %12604 = vmatpush3.bf16.msra.mxu0 %v13608_v2  ;;  %12632 = vmatpush3.bf16.msra.mxu1 %v13609_v58 }
0x3a97   :  { %12605 = vmatprep.subr.bf16.mxu0 %v13610_v42  ;;  %12633 = vmatprep.subr.bf16.mxu1 %v13611_v33 }
0x3a9a   :  { %12606 = vmatpush3.bf16.msra.mxu0 %v13612_v55  ;;  %12634 = vmatpush3.bf16.msra.mxu1 %v13613_v17 }
0x3a9b   :  { %12607 = vmatprep.subr.bf16.mxu0 %v13614_v26  ;;  %12635 = vmatprep.subr.bf16.mxu1 %v13615_v15 }
0x3a9e   :  { %12608 = vmatpush3.bf16.msra.mxu0 %v13616_v16  ;;  %12636 = vmatpush3.bf16.msra.mxu1 %v13617_v11 }
0x3b30   :  { %v12553_v47 = vpop.f32.mrf.mxu0  ;;  %v12581_v53 = vpop.f32.mrf.mxu1 }
0x3b32   :  { %v12554_v21 = vpop.f32.mrf.mxu0  ;;  %v12582_v9 = vpop.f32.mrf.mxu1 }
0x3b33   :  { %v12555_v3 = vadd.f32 %v12554_v21, %v12553_v47  ;;  %v12583_v34 = vadd.f32 %v12582_v9, %v12581_v53 }
0x3b34   :  { %v12556_v63 = vpop.f32.mrf.mxu0  ;;  %v12584_v36 = vpop.f32.mrf.mxu1 }
0x3b35   :  { %v9895_v23 = vadd.f32 %v12583_v34, %v12555_v3 }
0x3b36   :  { %v12557_v40 = vpop.f32.mrf.mxu0  ;;  %v12585_v32 = vpop.f32.mrf.mxu1 }
0x3b37   :  { %v12558_v27 = vadd.f32 %v12557_v40, %v12556_v63  ;;  %v16849_v0 = vadd.f32 %v9895_v23, %v16699_v31  ;;  %v12586_v14 = vadd.f32 %v12585_v32, %v12584_v36  ;;  %v11780_v31 = vld [vmem:[%s16971_s15 + $0x1c] sm:$0xf] }
0x3b38   :  { %v12559_v18 = vpop.f32.mrf.mxu0  ;;  %v12587_v46 = vpop.f32.mrf.mxu1  ;;  %v9939_v48 = vrot.slane %v11780_v31, %v14979_v13  ;;  %v9935_v28 = vrot.slane %v11780_v31, %v14981_v29  ;;  %v9943_v56 = vrot.slane %v11780_v31, %v14983_v30 }
0x3b39   :  { %v9898_v4 = vadd.f32 %v12586_v14, %v12558_v27 }
0x3b3a   :  { %v12560_v61 = vpop.f32.mrf.mxu0  ;;  %v12588_v12 = vpop.f32.mrf.mxu1 }
0x3b3b   :  { %v12561_v8 = vadd.f32 %v12560_v61, %v12559_v18  ;;  %v16852_v57 = vadd.f32 %v9898_v4, %v16701_v19  ;;  %v12589_v24 = vadd.f32 %v12588_v12, %v12587_v46  ;;  %v9931_v19 = vrot.slane %v11780_v31, %v14977_v1 }
0x3b3c   :  { %v12562_v59 = vpop.f32.mrf.mxu0  ;;  %v12590_v45 = vpop.f32.mrf.mxu1 }
0x3b3d   :  { %v9903_v25 = vadd.f32 %v12589_v24, %v12561_v8 }
0x3b3e   :  { %v12563_v20 = vpop.f32.mrf.mxu0  ;;  %v12591_v35 = vpop.f32.mrf.mxu1 }
0x3b3f   :  { %v12564_v49 = vadd.f32 %v12563_v20, %v12562_v59  ;;  %v16858_v7 = vadd.f32 %v9903_v25, %v16703_v51  ;;  %v12592_v41 = vadd.f32 %v12591_v35, %v12590_v45 }
0x3b40   :  { %v10022_v10 = vpop.f32.mrf.mxu0  ;;  %v10075_v62 = vpop.f32.mrf.mxu1 }
0x3b41   :  { %v9906_v44 = vadd.f32 %v12592_v41, %v12564_v49  ;;  %v10023_v58 = vadd.f32 %v10022_v10, %v9931_v19  ;;  %v10076_v55 = vadd.f32 %v10075_v62, %v9939_v48 }
0x3b42   :  { %v10024_v22 = vpop.f32.mrf.mxu0  ;;  %v10077_v43 = vpop.f32.mrf.mxu1 }
0x3b43   :  { %v16864_v50 = vadd.f32 %v9906_v44, %v16709_v38  ;;  %v10025_v17 = vadd.f32 %v10024_v22, %v9935_v28  ;;  %v10078_v15 = vadd.f32 %v10077_v43, %v9943_v56 }
0x3b44   :  { %v10026_v6 = vpop.f32.mrf.mxu0  ;;  %v10079_v2 = vpop.f32.mrf.mxu1 }
0x3b45   :  { %v10027_v51 = vadd.f32 %v10026_v6, %v9931_v19  ;;  %v10080_v42 = vadd.f32 %v10079_v2, %v9939_v48 }
0x3b46   :  { %v10028_v33 = vpop.f32.mrf.mxu0  ;;  %v10081_v26 = vpop.f32.mrf.mxu1 }
0x3b47   :  { %v10029_v1 = vadd.f32 %v10028_v33, %v9935_v28  ;;  %v10094_v13 = vpack.c.bf16 %v10027_v51, %v10023_v58  ;;  %v10082_v16 = vadd.f32 %v10081_v26, %v9943_v56  ;;  %v10096_v11 = vpack.c.bf16 %v10080_v42, %v10076_v55  ;;  %v11890_v33 = vld [vmem:[%s16972_s17 + $0x1] ss:$0 sm:$0xff] }
0x3b48   :  { %v10032_v29 = vpop.f32.mrf.mxu0  ;;  %v10085_v38 = vpop.f32.mrf.mxu1 }
0x3b49   :  { %v10095_v47 = vpack.c.bf16 %v10029_v1, %v10025_v17  ;;  %v10097_v53 = vpack.c.bf16 %v10082_v16, %v10078_v15  ;;  %v10102_v9 = vmax.bf16 %v13952_v39, %v10094_v13  ;;  %v10104_v36 = vmax.bf16 %v13952_v39, %v10096_v11 }
0x3b4a   :  { %v10034_v21 = vpop.f32.mrf.mxu0  ;;  %v10087_v30 = vpop.f32.mrf.mxu1  ;;  %v10033_v27 = vadd.f32 %v10032_v29, %v9931_v19  ;;  %v10086_v18 = vadd.f32 %v10085_v38, %v9939_v48 }
0x3b4b   :  { %v10103_v3 = vmax.bf16 %v13952_v39, %v10095_v47  ;;  %v10105_v63 = vmax.bf16 %v13952_v39, %v10097_v53  ;;  %v10035_v46 = vadd.f32 %v10034_v21, %v9935_v28  ;;  %v10088_v8 = vadd.f32 %v10087_v30, %v9943_v56 }
0x3b4c   :  { %v10036_v34 = vpop.f32.mrf.mxu0  ;;  %v10089_v40 = vpop.f32.mrf.mxu1 }
0x3b4d   :  { %v10037_v23 = vadd.f32 %v10036_v34, %v9931_v19  ;;  %10401 = vmatprep.mubr.bf16.mxu0 %v10103_v3  ;;  %v10090_v32 = vadd.f32 %v10089_v40, %v9939_v48  ;;  %10450 = vmatprep.mubr.bf16.mxu1 %v10105_v63 }
0x3b4e   :  { %v10038_v14 = vpop.f32.mrf.mxu0  ;;  %10402 = vmatmul.mubr.bf16.vlgmr.msra.gmra.mxu0 %v10102_v9  ;;  %v10091_v61 = vpop.f32.mrf.mxu1  ;;  %10451 = vmatmul.mubr.bf16.vlgmr.msra.gmra.mxu1 %v10104_v36 }
0x3b4f   :  { %v10039_v4 = vadd.f32 %v10038_v14, %v9935_v28  ;;  %v10098_v12 = vpack.c.bf16 %v10037_v23, %v10033_v27  ;;  %v10092_v24 = vadd.f32 %v10091_v61, %v9943_v56  ;;  %v10100_v59 = vpack.c.bf16 %v10090_v32, %v10086_v18 }
0x3b51   :  { %v10099_v45 = vpack.c.bf16 %v10039_v4, %v10035_v46  ;;  %v10101_v25 = vpack.c.bf16 %v10092_v24, %v10088_v8  ;;  %v10106_v49 = vmax.bf16 %v13952_v39, %v10098_v12  ;;  %v10108_v31 = vmax.bf16 %v13952_v39, %v10100_v59 }
0x3b53   :  { %v10107_v20 = vmax.bf16 %v13952_v39, %v10099_v45  ;;  %v10109_v35 = vmax.bf16 %v13952_v39, %v10101_v25 }
0x3b55   :  { %10409 = vmatprep.mubr.bf16.mxu0 %v10107_v20  ;;  %10458 = vmatprep.mubr.bf16.mxu1 %v10109_v35 }
0x3b56   :  { %10410 = vmatmul.mubr.bf16.gmra.mxu0 %v10106_v49  ;;  %10459 = vmatmul.mubr.bf16.gmra.mxu1 %v10108_v31 }
0x3c0e   :  { %v12609_v41 = vpop.f32.mrf.mxu0  ;;  %v12637_v10 = vpop.f32.mrf.mxu1 }
0x3c10   :  { %v12610_v62 = vpop.f32.mrf.mxu0  ;;  %v12638_v19 = vpop.f32.mrf.mxu1 }
0x3c11   :  { %v12611_v44 = vadd.f32 %v12610_v62, %v12609_v41  ;;  %v12639_v22 = vadd.f32 %v12638_v19, %v12637_v10  ;;  %v10566_v62 = vld [vmem:[%s17078_s24 + $0x18] sm:$0xff]  ;;  %v10564_v19 = vld [vmem:[%s17078_s24 + $0x8] sm:$0xff] }
0x3c12   :  { %v12612_v48 = vpop.f32.mrf.mxu0  ;;  %v12640_v28 = vpop.f32.mrf.mxu1  ;;  %13193 = vmatprep.subr.mxu0 %v10566_v62 }
0x3c13   :  { %v10453_v43 = vadd.f32 %v12639_v22, %v12611_v44  ;;  %13194 = vmatpush3.msra.mxu0 %v10566_v62  ;;  %v10565_v44 = vld [vmem:[%s17078_s24 + $0x10] sm:$0xff]  ;;  %v10563_v22 = vld [vmem:[%s17078_s24] sm:$0xff] }
0x3c14   :  { %v12613_v56 = vpop.f32.mrf.mxu0  ;;  %v12641_v51 = vpop.f32.mrf.mxu1  ;;  %13195 = vmatprep.subr.mxu0 %v10565_v44 }
0x3c15   :  { %v12614_v6 = vadd.f32 %v12613_v56, %v12612_v48  ;;  %v10467_v2 = vadd.f32 %v10453_v43, %v16849_v0  ;;  %v12642_v58 = vadd.f32 %v12641_v51, %v12640_v28  ;;  %13196 = vmatpush3.msra.mxu0 %v10565_v44 }
0x3c16   :  { %v12615_v39 = vpop.f32.mrf.mxu0  ;;  %v12643_v42 = vpop.f32.mrf.mxu1  ;;  %13197 = vmatprep.subr.mxu0 %v10564_v19 }
0x3c17   :  { %v10456_v55 = vadd.f32 %v12642_v58, %v12614_v6  ;;  %v10471_v1 = vadd.f32 %v10467_v2, %v16209_v60  ;;  %13198 = vmatpush3.msra.mxu0 %v10564_v19 }
0x3c18   :  { %v12616_v17 = vpop.f32.mrf.mxu0  ;;  %v12644_v15 = vpop.f32.mrf.mxu1  ;;  %13199 = vmatprep.subr.mxu0 %v10563_v22 }
0x3c19   :  { %v12617_v26 = vadd.f32 %v12616_v17, %v12615_v39  ;;  %v10468_v13 = vadd.f32 %v10456_v55, %v16852_v57  ;;  %v12645_v16 = vadd.f32 %v12644_v15, %v12643_v42  ;;  %v10483_v11 = vadd.f32 %v11890_v33, %v10471_v1  ;;  %13200 = vmatpush3.msra.mxu0 %v10563_v22  ;;  %v11893_v1 = vld [vmem:[%s16973_s22 + $0x1] ss:$0 sm:$0xff] }
0x3c1a   :  { %v12618_v29 = vpop.f32.mrf.mxu0  ;;  %v12646_v47 = vpop.f32.mrf.mxu1  ;;  %v11894_v15 = vld [vmem:[%s16974_s23 + $0x1] ss:$0 sm:$0xff] }
0x3c1b   :  { %v10461_v0 = vadd.f32 %v12645_v16, %v12617_v26  ;;  %v10491_v53 = vsel %vm252_vm3, %v10483_v11, 0.0  ;;  %v10472_v21 = vadd.f32 %v10468_v13, %v16212_v54 }
0x3c1c   :  { %v12619_v38 = vpop.f32.mrf.mxu0  ;;  %v12647_v3 = vpop.f32.mrf.mxu1  ;;  %10492 = vadd.xlane.f32.xlu1 %v10491_v53 }
0x3c1d   :  { %v12620_v30 = vadd.f32 %v12619_v38, %v12618_v29  ;;  %v10469_v9 = vadd.f32 %v10461_v0, %v16858_v7  ;;  %v12648_v60 = vadd.f32 %v12647_v3, %v12646_v47  ;;  %v10484_v34 = vadd.f32 %v11890_v33, %v10472_v21 }
0x3c1f   :  { %v10464_v63 = vadd.f32 %v12648_v60, %v12620_v30  ;;  %v10494_v57 = vsel %vm252_vm3, %v10484_v34, 0.0  ;;  %v10473_v36 = vadd.f32 %v10469_v9, %v16241_v37 }
0x3c20   :  { %10495 = vadd.xlane.f32.xlu0 %v10494_v57  ;;  %v11895_v57 = vld [vmem:[%s17079_s14] ss:$0 sm:$0xff] }
0x3c21   :  { %v10470_v23 = vadd.f32 %v10464_v63, %v16864_v50  ;;  %v10485_v40 = vadd.f32 %v11890_v33, %v10473_v36  ;;  %v16917_v63 = vand.u32 127, %v3091_v5 }
0x3c23   :  { %v10497_v27 = vsel %vm252_vm3, %v10485_v40, 0.0  ;;  %v10474_v54 = vadd.f32 %v10470_v23, %v16231_v52  ;;  %vm10673_vm6 = vcmp.lt.s32.totalorder %v16917_v63, 16 }
0x3c24   :  { %10498 = vadd.xlane.f32.xlu1 %v10497_v27 }
0x3c25   :  { %v10486_v32 = vadd.f32 %v11890_v33, %v10474_v54 }
0x3c27   :  { %v10500_v14 = vsel %vm252_vm3, %v10486_v32, 0.0 }
0x3c28   :  { %10501 = vadd.xlane.f32.xlu0 %v10500_v14 }
0x3ca5   :  { %v10493_v7 = vpop.xlane.xlu1 %10492 }
0x3ca6   :  { %v10503_v18 = vmul.f32 0.03125, %v10493_v7 }
0x3ca8   :  { %v10507_v46 = vsub.f32 %v10483_v11, %v10503_v18 }
0x3ca9   :  { %v10496_v4 = vpop.xlane.xlu0 %10495 }
0x3caa   :  { %v10504_v61 = vmul.f32 0.03125, %v10496_v4  ;;  %v10511_v8 = vmul.f32 %v10507_v46, %v10507_v46 }
0x3cac   :  { %v10508_v37 = vsub.f32 %v10484_v34, %v10504_v61  ;;  %v10515_v12 = vsel %vm252_vm3, %v10511_v8, 0.0 }
0x3cad   :  { %10516 = vadd.xlane.f32.xlu1 %v10515_v12  ;;  %v10499_v50 = vpop.xlane.xlu1 %10498 }
0x3cae   :  { %v10505_v24 = vmul.f32 0.03125, %v10499_v50  ;;  %v10512_v59 = vmul.f32 %v10508_v37, %v10508_v37 }
0x3cb0   :  { %v10509_v45 = vsub.f32 %v10485_v40, %v10505_v24  ;;  %v10518_v52 = vsel %vm252_vm3, %v10512_v59, 0.0 }
0x3cb1   :  { %10519 = vadd.xlane.f32.xlu0 %v10518_v52  ;;  %v10502_v25 = vpop.xlane.xlu0 %10501 }
0x3cb2   :  { %v10506_v20 = vmul.f32 0.03125, %v10502_v25  ;;  %v10513_v49 = vmul.f32 %v10509_v45, %v10509_v45 }
0x3cb4   :  { %v10510_v35 = vsub.f32 %v10486_v32, %v10506_v20  ;;  %v10521_v31 = vsel %vm252_vm3, %v10513_v49, 0.0 }
0x3cb5   :  { %10522 = vadd.xlane.f32.xlu1 %v10521_v31 }
0x3cb6   :  { %v10514_v41 = vmul.f32 %v10510_v35, %v10510_v35 }
0x3cb8   :  { %v10524_v10 = vsel %vm252_vm3, %v10514_v41, 0.0 }
0x3cb9   :  { %10525 = vadd.xlane.f32.xlu0 %v10524_v10 }
0x3d36   :  { %v10517_v48 = vpop.xlane.xlu1 %10516 }
0x3d37   :  { %v10527_v28 = vmul.f32 0.03125, %v10517_v48 }
0x3d39   :  { %v10531_v43 = vadd.f32 1e-05, %v10527_v28 }
0x3d3a   :  { %v10520_v56 = vpop.xlane.xlu0 %10519 }
0x3d3b   :  { %13914 = vrsqrt.f32 %v10531_v43  ;;  %v10528_v6 = vmul.f32 0.03125, %v10520_v56 }
0x3d3d   :  { %v10532_v51 = vadd.f32 1e-05, %v10528_v6 }
0x3d3e   :  { %v10523_v2 = vpop.xlane.xlu1 %10522 }
0x3d3f   :  { %13916 = vrsqrt.f32 %v10532_v51  ;;  %v10529_v58 = vmul.f32 0.03125, %v10523_v2 }
0x3d41   :  { %v10533_v39 = vadd.f32 1e-05, %v10529_v58 }
0x3d42   :  { %v10526_v42 = vpop.xlane.xlu0 %10525 }
0x3d43   :  { %13918 = vrsqrt.f32 %v10533_v39  ;;  %v10530_v33 = vmul.f32 0.03125, %v10526_v42 }
0x3d45   :  { %v10534_v55 = vadd.f32 1e-05, %v10530_v33 }
0x3d47   :  { %13920 = vrsqrt.f32 %v10534_v55 }
0x3d48   :  { %v13915_v17 = vpop.eup %13914 }
0x3d49   :  { %v10539_v26 = vmul.f32 %v13915_v17, %v10507_v46 }
0x3d4b   :  { %v10549_v13 = vmul.f32 %v11893_v1, %v10539_v26 }
0x3d4c   :  { %v13917_v16 = vpop.eup %13916 }
0x3d4d   :  { %v10540_v29 = vmul.f32 %v13917_v16, %v10508_v37  ;;  %v10559_v11 = vadd.f32 %v11894_v15, %v10549_v13 }
0x3d4f   :  { %v10550_v47 = vmul.f32 %v11893_v1, %v10540_v29  ;;  %13201 = vmatprep.mubr.msk.f32.mxu0 %vm252_vm3, %v10559_v11 }
0x3d50   :  { %v13919_v0 = vpop.eup %13918 }
0x3d51   :  { %v10560_v38 = vadd.f32 %v11894_v15, %v10550_v47  ;;  %v10541_v53 = vmul.f32 %v13919_v0, %v10509_v45 }
0x3d53   :  { %13202 = vmatmul.mubr.msk.f32.vlgmr.msra.gmra.mxu0 %vm252_vm3, %v10560_v38  ;;  %v10551_v21 = vmul.f32 %v11893_v1, %v10541_v53 }
0x3d54   :  { %v13921_v30 = vpop.eup %13920 }
0x3d55   :  { %v10542_v3 = vmul.f32 %v13921_v30, %v10510_v35  ;;  %v10561_v9 = vadd.f32 %v11894_v15, %v10551_v21 }
0x3d57   :  { %13204 = vmatprep.mubr.msk.f32.mxu0 %vm252_vm3, %v10561_v9  ;;  %v10552_v60 = vmul.f32 %v11893_v1, %v10542_v3 }
0x3d59   :  { %v10562_v34 = vadd.f32 %v11894_v15, %v10552_v60 }
0x3d5b   :  { %13205 = vmatmul.mubr.msk.f32.gmra.mxu0 %vm252_vm3, %v10562_v34 }
0x3e13   :  { %v13203_v36 = vpop.f32.mrf.mxu0 }
0x3e14   :  { %v10658_v23 = vadd.f32 %v13203_v36, %v11895_v57 }
0x3e15   :  { %v10652_v40 = vpop.f32.mrf.mxu0 }
0x3e16   :  { %v10653_v27 = vadd.f32 %v11895_v57, %v10652_v40  ;;  %v10675_v54 = vsel %vm10673_vm6, %v10658_v23, -inf }
0x3e17   :  { %10680 = vmax.xlane.f32.xlu0 %v10675_v54 }
0x3e18   :  { %v10674_v32 = vsel %vm10673_vm6, %v10653_v27, -inf }
0x3e19   :  { %10678 = vmax.xlane.f32.xlu1 %v10674_v32 }
0x3e1b   :  { %v13206_v5 = vpop.f32.mrf.mxu0 }
0x3e1c   :  { %v10668_v14 = vadd.f32 %v13206_v5, %v11895_v57 }
0x3e1d   :  { %v10662_v7 = vpop.f32.mrf.mxu0 }
0x3e1e   :  { %v10663_v18 = vadd.f32 %v11895_v57, %v10662_v7  ;;  %v10677_v46 = vsel %vm10673_vm6, %v10668_v14, -inf }
0x3e1f   :  { %10684 = vmax.xlane.f32.xlu0 %v10677_v46 }
0x3e20   :  { %v10676_v4 = vsel %vm10673_vm6, %v10663_v18, -inf }
0x3e21   :  { %10682 = vmax.xlane.f32.xlu1 %v10676_v4 }
0x3ea0   :  { %v10681_v61 = vpop.xlane.xlu0 %10680 }
0x3ea1   :  { %v10687_v8 = vsub.f32 %v10675_v54, %v10681_v61 }
0x3ea2   :  { %v10679_v37 = vpop.xlane.xlu1 %10678 }
0x3ea3   :  { %v10692_v12 = vmul.f32 1.442695, %v10687_v8  ;;  %v10686_v50 = vsub.f32 %v10674_v32, %v10679_v37 }
0x3ea5   :  { %13922 = vpow2.f32 %v10692_v12  ;;  %v10690_v24 = vmul.f32 1.442695, %v10686_v50 }
0x3ea7   :  { %13924 = vpow2.f32 %v10690_v24 }
0x3ea8   :  { %v10685_v59 = vpop.xlane.xlu0 %10684 }
0x3ea9   :  { %v10689_v45 = vsub.f32 %v10677_v46, %v10685_v59 }
0x3eaa   :  { %v10683_v52 = vpop.xlane.xlu1 %10682 }
0x3eab   :  { %v10696_v25 = vmul.f32 1.442695, %v10689_v45  ;;  %v10688_v20 = vsub.f32 %v10676_v4, %v10683_v52 }
0x3ead   :  { %13926 = vpow2.f32 %v10696_v25  ;;  %v10694_v49 = vmul.f32 1.442695, %v10688_v20 }
0x3eaf   :  { %13928 = vpow2.f32 %v10694_v49 }
0x3eb2   :  { %v13923_v35 = vpop.eup %13922 }
0x3eb3   :  { %10700 = vadd.xlane.f32.xlu0 %v13923_v35 }
0x3eb4   :  { %v13925_v31 = vpop.eup %13924 }
0x3eb5   :  { %10698 = vadd.xlane.f32.xlu1 %v13925_v31 }
0x3eba   :  { %v13927_v41 = vpop.eup %13926 }
0x3ebb   :  { %10704 = vadd.xlane.f32.xlu0 %v13927_v41 }
0x3ebc   :  { %v13929_v10 = vpop.eup %13928 }
0x3ebd   :  { %10702 = vadd.xlane.f32.xlu1 %v13929_v10 }
0x3f3c   :  { %v10701_v62 = vpop.xlane.xlu0 %10700 }
0x3f3d   :  { %13930 = vrcp.f32 %v10701_v62 }
0x3f3e   :  { %v10699_v44 = vpop.xlane.xlu1 %10698 }
0x3f3f   :  { %13932 = vrcp.f32 %v10699_v44 }
0x3f44   :  { %v10705_v19 = vpop.xlane.xlu0 %10704 }
0x3f45   :  { %13934 = vrcp.f32 %v10705_v19 }
0x3f46   :  { %v10703_v22 = vpop.xlane.xlu1 %10702 }
0x3f47   :  { %13936 = vrcp.f32 %v10703_v22 }
0x3f4a   :  { %v13931_v48 = vpop.eup %13930 }
0x3f4b   :  { %v10709_v28 = vmul.f32 %v13931_v48, %v13923_v35 }
0x3f4c   :  { %v13933_v43 = vpop.eup %13932 }
0x3f4d   :  { %v10715_v56 = vsel %vm10673_vm6, %v10709_v28, %v10658_v23  ;;  %v10707_v6 = vmul.f32 %v13933_v43, %v13925_v31 }
0x3f4e   :  { %10719 = vst [vmem:[%s17080_s29 + $0x8] sm:$0xff] %v10715_v56 }
0x3f4f   :  { %v10714_v51 = vsel %vm10673_vm6, %v10707_v6, %v10653_v27 }
0x3f50   :  { %10718 = vst [vmem:[%s17080_s29] sm:$0xff] %v10714_v51 }
0x3f52   :  { %v13935_v2 = vpop.eup %13934 }
0x3f53   :  { %v10713_v58 = vmul.f32 %v13935_v2, %v13927_v41 }
0x3f54   :  { %v13937_v39 = vpop.eup %13936 }
0x3f55   :  { %v10717_v42 = vsel %vm10673_vm6, %v10713_v58, %v10668_v14  ;;  %v10711_v33 = vmul.f32 %v13937_v39, %v13929_v10 }
0x3f56   :  { %10721 = vst [vmem:[%s17080_s29 + $0x18] sm:$0xff] %v10717_v42 }
0x3f57   :  { %v10716_v55 = vsel %vm10673_vm6, %v10711_v33, %v10663_v18 }
0x3f58   :  { %10720 = vst [vmem:[%s17080_s29 + $0x10] sm:$0xff] %v10716_v55 }

</bundles_post_ra>
